<compile_context>
chip_gen: v5e
topology: v5e:2x2
jax: 0.10.0
libtpu: 0.0.40
codegen_flags: <defaults>
</compile_context>

<pallas_src>
import functools

import jax
import jax.numpy as jnp
from jax.experimental import pallas as pl
from jax.experimental.pallas import tpu as pltpu

LEAKY_SLOPE = 0.2
BN_EPS = 0.8          # nn.BatchNorm1d(dim, 0.8): second positional arg is eps.
LATENT_DIM = 100
LANE = 128


def _round_up(n, m):
    return ((n + m - 1) // m) * m


def _layer(x, w_ref, *, bias=None, gamma=None, beta=None, activation):
    """One fused Linear (+BN) (+activation) step, activations kept in vregs."""
    # bf16 MXU matmul with f32 accumulation (weights are stored in bf16).
    y = jnp.dot(x.astype(jnp.bfloat16), w_ref[...],
                preferred_element_type=jnp.float32)
    if bias is not None:
        y = y + bias
    if gamma is not None:
        # BatchNorm1d training-mode forward: biased batch statistics, eps=0.8,
        # folded into a single per-feature scale/shift (one reduction pass).
        mean = jnp.mean(y, axis=0, keepdims=True)
        mean_sq = jnp.mean(y * y, axis=0, keepdims=True)
        var = mean_sq - mean * mean
        scale = gamma * jax.lax.rsqrt(var + BN_EPS)
        shift = beta - mean * scale
        y = y * scale + shift
    if activation == "leaky":
        y = jnp.maximum(y, LEAKY_SLOPE * y)
    elif activation == "tanh":
        y = jnp.tanh(y)
    return y


def _generator_kernel(z_ref,
                      w0_ref, b0_ref,
                      w1_ref, g1_ref, be1_ref,
                      w2_ref, g2_ref, be2_ref,
                      w3_ref, g3_ref, be3_ref,
                      w4_ref, b4_ref,
                      o_ref):
    """Whole generator MLP in a single kernel; all tensors resident in VMEM."""
    x = z_ref[...]                                                     # f32
    x = _layer(x, w0_ref, bias=b0_ref[...], activation="leaky")
    x = _layer(x, w1_ref, gamma=g1_ref[...], beta=be1_ref[...], activation="leaky")
    x = _layer(x, w2_ref, gamma=g2_ref[...], beta=be2_ref[...], activation="leaky")
    x = _layer(x, w3_ref, gamma=g3_ref[...], beta=be3_ref[...], activation="leaky")
    x = _layer(x, w4_ref, bias=b4_ref[...], activation="tanh")
    o_ref[...] = x.astype(o_ref.dtype)


def init_generator_params(key, channels=1, img_size=28, latent_dim=LATENT_DIM):
    """Deterministic synthetic parameters matching the PyTorch module's shapes.

    Weights are bf16 (streamed at half the HBM bytes); BN/bias vectors stay f32.
    The bias of the three BN layers is omitted entirely (exact no-op under
    batch-statistics BatchNorm). The last layer is zero-padded to a multiple of
    128 output columns for lane-dense stores.
    """
    out_dim = channels * img_size * img_size
    out_dim_pad = _round_up(out_dim, LANE)
    dims = [(latent_dim, 128), (128, 256), (256, 512), (512, 1024),
            (1024, out_dim)]
    params = []
    for li, (din, dout) in enumerate(dims):
        key, kw, kb, kg, kbe = jax.random.split(key, 5)
        w = jax.random.normal(kw, (din, dout), jnp.float32) * 0.05
        b = jax.random.normal(kb, (1, dout), jnp.float32) * 0.01
        if li == 0:
            # Linear + LeakyReLU (no BN): keep the bias.
            params.append((w.astype(jnp.bfloat16), b))
        elif li < 4:
            # Linear + BN + LeakyReLU: bias is mathematically a no-op -> drop.
            gamma = 1.0 + jax.random.normal(kg, (1, dout), jnp.float32) * 0.01
            beta = jax.random.normal(kbe, (1, dout), jnp.float32) * 0.01
            params.append((w.astype(jnp.bfloat16), gamma, beta))
        else:
            # Final Linear + Tanh: pad output columns 784 -> 896 (7 * 128).
            pad = out_dim_pad - dout
            w = jnp.pad(w, ((0, 0), (0, pad)))
            b = jnp.pad(b, ((0, 0), (0, pad)))
            params.append((w.astype(jnp.bfloat16), b))
    return params


def generator_forward(z, params, channels=1, img_size=28):
    """z: (B, 100) f32  ->  img: (B, channels, img_size, img_size) f32."""
    (w0, b0), (w1, g1, be1), (w2, g2, be2), (w3, g3, be3), (w4, b4) = params
    B = z.shape[0]
    n_out_pad = w4.shape[1]
    out_dim = channels * img_size * img_size

    def full_spec(arr):
        # Whole-array block (block_shape == array shape), single grid point.
        return pl.BlockSpec(arr.shape, lambda i: (0,) * arr.ndim)

    inputs = (z, w0, b0, w1, g1, be1, w2, g2, be2, w3, g3, be3, w4, b4)

    out = pl.pallas_call(
        _generator_kernel,
        out_shape=jax.ShapeDtypeStruct((B, n_out_pad), jnp.float32),
        grid=(1,),
        in_specs=[full_spec(a) for a in inputs],
        out_specs=pl.BlockSpec((B, n_out_pad), lambda i: (0, 0)),
        compiler_params=pltpu.CompilerParams(
            dimension_semantics=("arbitrary",)),
    )(*inputs)

    out = out[:, :out_dim]
    return out.reshape(B, channels, img_size, img_size)


if __name__ == "__main__":
    key = jax.random.PRNGKey(0)
    kz, kp = jax.random.split(key)

    B, C, IMG = 8, 1, 28
    z = jax.random.normal(kz, (B, LATENT_DIM), jnp.float32)
    params = init_generator_params(kp, channels=C, img_size=IMG)

    fwd = jax.jit(functools.partial(generator_forward, channels=C, img_size=IMG))
    img = jax.block_until_ready(fwd(z, params))

    assert img.shape == (B, C, IMG, IMG), img.shape
    assert img.dtype == jnp.float32
    assert bool(jnp.all(jnp.isfinite(img)))
    # Tanh output range sanity check.
    assert bool(jnp.all(jnp.abs(img) <= 1.0 + 1e-6))

    print("KERNEL_OK")
</pallas_src>

<mosaic_0001>
module attributes {stable_mosaic.version = 11 : i64} {
  func.func @_generator_kernel(%arg0: i32, %arg1: memref<8x100xf32, #tpu.memory_space<vmem>>, %arg2: memref<100x128xbf16, #tpu.memory_space<vmem>>, %arg3: memref<1x128xf32, #tpu.memory_space<vmem>>, %arg4: memref<128x256xbf16, #tpu.memory_space<vmem>>, %arg5: memref<1x256xf32, #tpu.memory_space<vmem>>, %arg6: memref<1x256xf32, #tpu.memory_space<vmem>>, %arg7: memref<256x512xbf16, #tpu.memory_space<vmem>>, %arg8: memref<1x512xf32, #tpu.memory_space<vmem>>, %arg9: memref<1x512xf32, #tpu.memory_space<vmem>>, %arg10: memref<512x1024xbf16, #tpu.memory_space<vmem>>, %arg11: memref<1x1024xf32, #tpu.memory_space<vmem>>, %arg12: memref<1x1024xf32, #tpu.memory_space<vmem>>, %arg13: memref<1024x896xbf16, #tpu.memory_space<vmem>>, %arg14: memref<1x896xf32, #tpu.memory_space<vmem>>, %arg15: memref<8x896xf32, #tpu.memory_space<vmem>>) attributes {dimension_semantics = [#tpu.dimension_semantics<arbitrary>], iteration_bounds = array<i64: 1>, scalar_prefetch = 0 : i64, scratch_operands = 0 : i64, tpu.core_type = #tpu.core_type<tc>, window_params = [{pipeline_mode = #tpu.pipeline_mode<synchronous>, transform_indices = @transform_0, window_bounds = array<i64: 8, 100>}, {pipeline_mode = #tpu.pipeline_mode<synchronous>, transform_indices = @transform_1, window_bounds = array<i64: 100, 128>}, {pipeline_mode = #tpu.pipeline_mode<synchronous>, transform_indices = @transform_2, window_bounds = array<i64: 1, 128>}, {pipeline_mode = #tpu.pipeline_mode<synchronous>, transform_indices = @transform_3, window_bounds = array<i64: 128, 256>}, {pipeline_mode = #tpu.pipeline_mode<synchronous>, transform_indices = @transform_4, window_bounds = array<i64: 1, 256>}, {pipeline_mode = #tpu.pipeline_mode<synchronous>, transform_indices = @transform_5, window_bounds = array<i64: 1, 256>}, {pipeline_mode = #tpu.pipeline_mode<synchronous>, transform_indices = @transform_6, window_bounds = array<i64: 256, 512>}, {pipeline_mode = #tpu.pipeline_mode<synchronous>, transform_indices = @transform_7, window_bounds = array<i64: 1, 512>}, {pipeline_mode = #tpu.pipeline_mode<synchronous>, transform_indices = @transform_8, window_bounds = array<i64: 1, 512>}, {pipeline_mode = #tpu.pipeline_mode<synchronous>, transform_indices = @transform_9, window_bounds = array<i64: 512, 1024>}, {pipeline_mode = #tpu.pipeline_mode<synchronous>, transform_indices = @transform_10, window_bounds = array<i64: 1, 1024>}, {pipeline_mode = #tpu.pipeline_mode<synchronous>, transform_indices = @transform_11, window_bounds = array<i64: 1, 1024>}, {pipeline_mode = #tpu.pipeline_mode<synchronous>, transform_indices = @transform_12, window_bounds = array<i64: 1024, 896>}, {pipeline_mode = #tpu.pipeline_mode<synchronous>, transform_indices = @transform_13, window_bounds = array<i64: 1, 896>}, {pipeline_mode = #tpu.pipeline_mode<synchronous>, transform_indices = @transform_14, window_bounds = array<i64: 8, 896>}]} {
    %c0 = arith.constant 0 : index
    %c0_0 = arith.constant 0 : index
    %0 = vector.load %arg1[%c0, %c0_0] : memref<8x100xf32, #tpu.memory_space<vmem>>, vector<8x100xf32>
    %c0_1 = arith.constant 0 : index
    %c0_2 = arith.constant 0 : index
    %1 = vector.load %arg3[%c0_1, %c0_2] : memref<1x128xf32, #tpu.memory_space<vmem>>, vector<1x128xf32>
    %2 = arith.truncf %0 : vector<8x100xf32> to vector<8x100xbf16>
    %c0_3 = arith.constant 0 : index
    %c0_4 = arith.constant 0 : index
    %3 = vector.load %arg2[%c0_3, %c0_4] : memref<100x128xbf16, #tpu.memory_space<vmem>>, vector<100x128xbf16>
    %cst = arith.constant dense<0.000000e+00> : vector<8x128xf32>
    %4 = tpu.matmul %2, %3, %cst {dimension_numbers = #tpu.dot_dimension_numbers<[1], [0], [0], [1], [0, 0, 1, 1], [], []>} : vector<8x100xbf16>, vector<100x128xbf16>, vector<8x128xf32> -> vector<8x128xf32>
    %5 = vector.broadcast %1 : vector<1x128xf32> to vector<8x128xf32>
    %6 = arith.addf %4, %5 : vector<8x128xf32>
    %cst_5 = arith.constant 2.000000e-01 : f32
    %7 = vector.broadcast %cst_5 : f32 to vector<8x128xf32>
    %8 = arith.mulf %7, %6 : vector<8x128xf32>
    %9 = arith.maximumf %6, %8 : vector<8x128xf32>
    %c0_6 = arith.constant 0 : index
    %c0_7 = arith.constant 0 : index
    %10 = vector.load %arg5[%c0_6, %c0_7] : memref<1x256xf32, #tpu.memory_space<vmem>>, vector<1x256xf32>
    %c0_8 = arith.constant 0 : index
    %c0_9 = arith.constant 0 : index
    %11 = vector.load %arg6[%c0_8, %c0_9] : memref<1x256xf32, #tpu.memory_space<vmem>>, vector<1x256xf32>
    %12 = arith.truncf %9 : vector<8x128xf32> to vector<8x128xbf16>
    %c0_10 = arith.constant 0 : index
    %c0_11 = arith.constant 0 : index
    %13 = vector.load %arg4[%c0_10, %c0_11] : memref<128x256xbf16, #tpu.memory_space<vmem>>, vector<128x256xbf16>
    %cst_12 = arith.constant dense<0.000000e+00> : vector<8x256xf32>
    %14 = tpu.matmul %12, %13, %cst_12 {dimension_numbers = #tpu.dot_dimension_numbers<[1], [0], [0], [1], [0, 0, 1, 1], [], []>} : vector<8x128xbf16>, vector<128x256xbf16>, vector<8x256xf32> -> vector<8x256xf32>
    %cst_13 = arith.constant dense<0.000000e+00> : vector<256xf32>
    %15 = vector.multi_reduction <add>, %14, %cst_13 [0] : vector<8x256xf32> to vector<256xf32>
    %16 = vector.shape_cast %15 : vector<256xf32> to vector<1x256xf32>
    %cst_14 = arith.constant 8.000000e+00 : f32
    %17 = vector.broadcast %cst_14 : f32 to vector<1x256xf32>
    %18 = arith.divf %16, %17 : vector<1x256xf32>
    %19 = arith.mulf %14, %14 : vector<8x256xf32>
    %cst_15 = arith.constant dense<0.000000e+00> : vector<256xf32>
    %20 = vector.multi_reduction <add>, %19, %cst_15 [0] : vector<8x256xf32> to vector<256xf32>
    %21 = vector.shape_cast %20 : vector<256xf32> to vector<1x256xf32>
    %cst_16 = arith.constant 8.000000e+00 : f32
    %22 = vector.broadcast %cst_16 : f32 to vector<1x256xf32>
    %23 = arith.divf %21, %22 : vector<1x256xf32>
    %24 = arith.mulf %18, %18 : vector<1x256xf32>
    %25 = arith.subf %23, %24 : vector<1x256xf32>
    %cst_17 = arith.constant 8.000000e-01 : f32
    %26 = vector.broadcast %cst_17 : f32 to vector<1x256xf32>
    %27 = arith.addf %25, %26 : vector<1x256xf32>
    %28 = math.rsqrt %27 : vector<1x256xf32>
    %29 = arith.mulf %10, %28 : vector<1x256xf32>
    %30 = arith.mulf %18, %29 : vector<1x256xf32>
    %31 = arith.subf %11, %30 : vector<1x256xf32>
    %32 = vector.broadcast %29 : vector<1x256xf32> to vector<8x256xf32>
    %33 = arith.mulf %14, %32 : vector<8x256xf32>
    %34 = vector.broadcast %31 : vector<1x256xf32> to vector<8x256xf32>
    %35 = arith.addf %33, %34 : vector<8x256xf32>
    %cst_18 = arith.constant 2.000000e-01 : f32
    %36 = vector.broadcast %cst_18 : f32 to vector<8x256xf32>
    %37 = arith.mulf %36, %35 : vector<8x256xf32>
    %38 = arith.maximumf %35, %37 : vector<8x256xf32>
    %c0_19 = arith.constant 0 : index
    %c0_20 = arith.constant 0 : index
    %39 = vector.load %arg8[%c0_19, %c0_20] : memref<1x512xf32, #tpu.memory_space<vmem>>, vector<1x512xf32>
    %c0_21 = arith.constant 0 : index
    %c0_22 = arith.constant 0 : index
    %40 = vector.load %arg9[%c0_21, %c0_22] : memref<1x512xf32, #tpu.memory_space<vmem>>, vector<1x512xf32>
    %41 = arith.truncf %38 : vector<8x256xf32> to vector<8x256xbf16>
    %c0_23 = arith.constant 0 : index
    %c0_24 = arith.constant 0 : index
    %42 = vector.load %arg7[%c0_23, %c0_24] : memref<256x512xbf16, #tpu.memory_space<vmem>>, vector<256x512xbf16>
    %cst_25 = arith.constant dense<0.000000e+00> : vector<8x512xf32>
    %43 = tpu.matmul %41, %42, %cst_25 {dimension_numbers = #tpu.dot_dimension_numbers<[1], [0], [0], [1], [0, 0, 1, 1], [], []>} : vector<8x256xbf16>, vector<256x512xbf16>, vector<8x512xf32> -> vector<8x512xf32>
    %cst_26 = arith.constant dense<0.000000e+00> : vector<512xf32>
    %44 = vector.multi_reduction <add>, %43, %cst_26 [0] : vector<8x512xf32> to vector<512xf32>
    %45 = vector.shape_cast %44 : vector<512xf32> to vector<1x512xf32>
    %cst_27 = arith.constant 8.000000e+00 : f32
    %46 = vector.broadcast %cst_27 : f32 to vector<1x512xf32>
    %47 = arith.divf %45, %46 : vector<1x512xf32>
    %48 = arith.mulf %43, %43 : vector<8x512xf32>
    %cst_28 = arith.constant dense<0.000000e+00> : vector<512xf32>
    %49 = vector.multi_reduction <add>, %48, %cst_28 [0] : vector<8x512xf32> to vector<512xf32>
    %50 = vector.shape_cast %49 : vector<512xf32> to vector<1x512xf32>
    %cst_29 = arith.constant 8.000000e+00 : f32
    %51 = vector.broadcast %cst_29 : f32 to vector<1x512xf32>
    %52 = arith.divf %50, %51 : vector<1x512xf32>
    %53 = arith.mulf %47, %47 : vector<1x512xf32>
    %54 = arith.subf %52, %53 : vector<1x512xf32>
    %cst_30 = arith.constant 8.000000e-01 : f32
    %55 = vector.broadcast %cst_30 : f32 to vector<1x512xf32>
    %56 = arith.addf %54, %55 : vector<1x512xf32>
    %57 = math.rsqrt %56 : vector<1x512xf32>
    %58 = arith.mulf %39, %57 : vector<1x512xf32>
    %59 = arith.mulf %47, %58 : vector<1x512xf32>
    %60 = arith.subf %40, %59 : vector<1x512xf32>
    %61 = vector.broadcast %58 : vector<1x512xf32> to vector<8x512xf32>
    %62 = arith.mulf %43, %61 : vector<8x512xf32>
    %63 = vector.broadcast %60 : vector<1x512xf32> to vector<8x512xf32>
    %64 = arith.addf %62, %63 : vector<8x512xf32>
    %cst_31 = arith.constant 2.000000e-01 : f32
    %65 = vector.broadcast %cst_31 : f32 to vector<8x512xf32>
    %66 = arith.mulf %65, %64 : vector<8x512xf32>
    %67 = arith.maximumf %64, %66 : vector<8x512xf32>
    %c0_32 = arith.constant 0 : index
    %c0_33 = arith.constant 0 : index
    %68 = vector.load %arg11[%c0_32, %c0_33] : memref<1x1024xf32, #tpu.memory_space<vmem>>, vector<1x1024xf32>
    %c0_34 = arith.constant 0 : index
    %c0_35 = arith.constant 0 : index
    %69 = vector.load %arg12[%c0_34, %c0_35] : memref<1x1024xf32, #tpu.memory_space<vmem>>, vector<1x1024xf32>
    %70 = arith.truncf %67 : vector<8x512xf32> to vector<8x512xbf16>
    %c0_36 = arith.constant 0 : index
    %c0_37 = arith.constant 0 : index
    %71 = vector.load %arg10[%c0_36, %c0_37] : memref<512x1024xbf16, #tpu.memory_space<vmem>>, vector<512x1024xbf16>
    %cst_38 = arith.constant dense<0.000000e+00> : vector<8x1024xf32>
    %72 = tpu.matmul %70, %71, %cst_38 {dimension_numbers = #tpu.dot_dimension_numbers<[1], [0], [0], [1], [0, 0, 1, 1], [], []>} : vector<8x512xbf16>, vector<512x1024xbf16>, vector<8x1024xf32> -> vector<8x1024xf32>
    %cst_39 = arith.constant dense<0.000000e+00> : vector<1024xf32>
    %73 = vector.multi_reduction <add>, %72, %cst_39 [0] : vector<8x1024xf32> to vector<1024xf32>
    %74 = vector.shape_cast %73 : vector<1024xf32> to vector<1x1024xf32>
    %cst_40 = arith.constant 8.000000e+00 : f32
    %75 = vector.broadcast %cst_40 : f32 to vector<1x1024xf32>
    %76 = arith.divf %74, %75 : vector<1x1024xf32>
    %77 = arith.mulf %72, %72 : vector<8x1024xf32>
    %cst_41 = arith.constant dense<0.000000e+00> : vector<1024xf32>
    %78 = vector.multi_reduction <add>, %77, %cst_41 [0] : vector<8x1024xf32> to vector<1024xf32>
    %79 = vector.shape_cast %78 : vector<1024xf32> to vector<1x1024xf32>
    %cst_42 = arith.constant 8.000000e+00 : f32
    %80 = vector.broadcast %cst_42 : f32 to vector<1x1024xf32>
    %81 = arith.divf %79, %80 : vector<1x1024xf32>
    %82 = arith.mulf %76, %76 : vector<1x1024xf32>
    %83 = arith.subf %81, %82 : vector<1x1024xf32>
    %cst_43 = arith.constant 8.000000e-01 : f32
    %84 = vector.broadcast %cst_43 : f32 to vector<1x1024xf32>
    %85 = arith.addf %83, %84 : vector<1x1024xf32>
    %86 = math.rsqrt %85 : vector<1x1024xf32>
    %87 = arith.mulf %68, %86 : vector<1x1024xf32>
    %88 = arith.mulf %76, %87 : vector<1x1024xf32>
    %89 = arith.subf %69, %88 : vector<1x1024xf32>
    %90 = vector.broadcast %87 : vector<1x1024xf32> to vector<8x1024xf32>
    %91 = arith.mulf %72, %90 : vector<8x1024xf32>
    %92 = vector.broadcast %89 : vector<1x1024xf32> to vector<8x1024xf32>
    %93 = arith.addf %91, %92 : vector<8x1024xf32>
    %cst_44 = arith.constant 2.000000e-01 : f32
    %94 = vector.broadcast %cst_44 : f32 to vector<8x1024xf32>
    %95 = arith.mulf %94, %93 : vector<8x1024xf32>
    %96 = arith.maximumf %93, %95 : vector<8x1024xf32>
    %c0_45 = arith.constant 0 : index
    %c0_46 = arith.constant 0 : index
    %97 = vector.load %arg14[%c0_45, %c0_46] : memref<1x896xf32, #tpu.memory_space<vmem>>, vector<1x896xf32>
    %98 = arith.truncf %96 : vector<8x1024xf32> to vector<8x1024xbf16>
    %c0_47 = arith.constant 0 : index
    %c0_48 = arith.constant 0 : index
    %99 = vector.load %arg13[%c0_47, %c0_48] : memref<1024x896xbf16, #tpu.memory_space<vmem>>, vector<1024x896xbf16>
    %cst_49 = arith.constant dense<0.000000e+00> : vector<8x896xf32>
    %100 = tpu.matmul %98, %99, %cst_49 {dimension_numbers = #tpu.dot_dimension_numbers<[1], [0], [0], [1], [0, 0, 1, 1], [], []>} : vector<8x1024xbf16>, vector<1024x896xbf16>, vector<8x896xf32> -> vector<8x896xf32>
    %101 = vector.broadcast %97 : vector<1x896xf32> to vector<8x896xf32>
    %102 = arith.addf %100, %101 : vector<8x896xf32>
    %103 = math.tanh %102 : vector<8x896xf32>
    %c0_50 = arith.constant 0 : index
    %c0_51 = arith.constant 0 : index
    %104 = vector.load %arg15[%c0_50, %c0_51] : memref<8x896xf32, #tpu.memory_space<vmem>>, vector<8x896xf32>
    tpu.vector_store %arg15[%c0_50, %c0_51], %103 {strides = array<i32>} : memref<8x896xf32, #tpu.memory_space<vmem>>, vector<8x896xf32>,
    return
  }
  func.func @transform_0(%arg0: i32) -> (i32, i32) {
    %c0_i32 = arith.constant 0 : i32
    %c0_i32_0 = arith.constant 0 : i32
    %c0_i32_1 = arith.constant 0 : i32
    return %c0_i32, %c0_i32_0 : i32, i32
  }
  func.func @transform_1(%arg0: i32) -> (i32, i32) {
    %c0_i32 = arith.constant 0 : i32
    %c0_i32_0 = arith.constant 0 : i32
    %c0_i32_1 = arith.constant 0 : i32
    return %c0_i32, %c0_i32_0 : i32, i32
  }
  func.func @transform_2(%arg0: i32) -> (i32, i32) {
    %c0_i32 = arith.constant 0 : i32
    %c0_i32_0 = arith.constant 0 : i32
    %c0_i32_1 = arith.constant 0 : i32
    return %c0_i32, %c0_i32_0 : i32, i32
  }
  func.func @transform_3(%arg0: i32) -> (i32, i32) {
    %c0_i32 = arith.constant 0 : i32
    %c0_i32_0 = arith.constant 0 : i32
    %c0_i32_1 = arith.constant 0 : i32
    return %c0_i32, %c0_i32_0 : i32, i32
  }
  func.func @transform_4(%arg0: i32) -> (i32, i32) {
    %c0_i32 = arith.constant 0 : i32
    %c0_i32_0 = arith.constant 0 : i32
    %c0_i32_1 = arith.constant 0 : i32
    return %c0_i32, %c0_i32_0 : i32, i32
  }
  func.func @transform_5(%arg0: i32) -> (i32, i32) {
    %c0_i32 = arith.constant 0 : i32
    %c0_i32_0 = arith.constant 0 : i32
    %c0_i32_1 = arith.constant 0 : i32
    return %c0_i32, %c0_i32_0 : i32, i32
  }
  func.func @transform_6(%arg0: i32) -> (i32, i32) {
    %c0_i32 = arith.constant 0 : i32
    %c0_i32_0 = arith.constant 0 : i32
    %c0_i32_1 = arith.constant 0 : i32
    return %c0_i32, %c0_i32_0 : i32, i32
  }
  func.func @transform_7(%arg0: i32) -> (i32, i32) {
    %c0_i32 = arith.constant 0 : i32
    %c0_i32_0 = arith.constant 0 : i32
    %c0_i32_1 = arith.constant 0 : i32
    return %c0_i32, %c0_i32_0 : i32, i32
  }
  func.func @transform_8(%arg0: i32) -> (i32, i32) {
    %c0_i32 = arith.constant 0 : i32
    %c0_i32_0 = arith.constant 0 : i32
    %c0_i32_1 = arith.constant 0 : i32
    return %c0_i32, %c0_i32_0 : i32, i32
  }
  func.func @transform_9(%arg0: i32) -> (i32, i32) {
    %c0_i32 = arith.constant 0 : i32
    %c0_i32_0 = arith.constant 0 : i32
    %c0_i32_1 = arith.constant 0 : i32
    return %c0_i32, %c0_i32_0 : i32, i32
  }
  func.func @transform_10(%arg0: i32) -> (i32, i32) {
    %c0_i32 = arith.constant 0 : i32
    %c0_i32_0 = arith.constant 0 : i32
    %c0_i32_1 = arith.constant 0 : i32
    return %c0_i32, %c0_i32_0 : i32, i32
  }
  func.func @transform_11(%arg0: i32) -> (i32, i32) {
    %c0_i32 = arith.constant 0 : i32
    %c0_i32_0 = arith.constant 0 : i32
    %c0_i32_1 = arith.constant 0 : i32
    return %c0_i32, %c0_i32_0 : i32, i32
  }
  func.func @transform_12(%arg0: i32) -> (i32, i32) {
    %c0_i32 = arith.constant 0 : i32
    %c0_i32_0 = arith.constant 0 : i32
    %c0_i32_1 = arith.constant 0 : i32
    return %c0_i32, %c0_i32_0 : i32, i32
  }
  func.func @transform_13(%arg0: i32) -> (i32, i32) {
    %c0_i32 = arith.constant 0 : i32
    %c0_i32_0 = arith.constant 0 : i32
    %c0_i32_1 = arith.constant 0 : i32
    return %c0_i32, %c0_i32_0 : i32, i32
  }
  func.func @transform_14(%arg0: i32) -> (i32, i32) {
    %c0_i32 = arith.constant 0 : i32
    %c0_i32_0 = arith.constant 0 : i32
    %c0_i32_1 = arith.constant 0 : i32
    return %c0_i32, %c0_i32_0 : i32, i32
  }
}

</mosaic_0001>

<bundles_post_ra>
// kernel: generator_forward.1
= control target key start
LH: loop header
LB: loop body
LE: loop exit
PB: predicated region body
PF: predicated region fallthrough
CT: control target
= control target key end

     0   :  { %19 = vsyncpa [#allocation3], 0  ;;  %s12282_s0 = inlined_call_operand.hbm [shape: f32[8,100], index: 0, kind: input, shape index: {}]   ;;  %s12283_s1 = inlined_call_operand.hbm [shape: bf16[100,128], index: 1, kind: input, shape index: {}]   ;;  %s12284_s2 = inlined_call_operand.hbm [shape: f32[1,128], index: 2, kind: input, shape index: {}]   ;;  %s12285_s3 = inlined_call_operand.hbm [shape: bf16[128,256], index: 3, kind: input, shape index: {}]   ;;  %s12286_s4 = inlined_call_operand.hbm [shape: f32[1,256], index: 4, kind: input, shape index: {}]   ;;  %s12287_s5 = inlined_call_operand.hbm [shape: f32[1,256], index: 5, kind: input, shape index: {}]   ;;  %s12288_s6 = inlined_call_operand.hbm [shape: bf16[256,512], index: 6, kind: input, shape index: {}]   ;;  %s12289_s7 = inlined_call_operand.hbm [shape: f32[1,512], index: 7, kind: input, shape index: {}]   ;;  %s12290_s8 = inlined_call_operand.hbm [shape: f32[1,512], index: 8, kind: input, shape index: {}]   ;;  %s12291_s9 = inlined_call_operand.hbm [shape: bf16[512,1024], index: 9, kind: input, shape index: {}]   ;;  %s12292_s10 = inlined_call_operand.hbm [shape: f32[1,1024], index: 10, kind: input, shape index: {}]   ;;  %s12293_s11 = inlined_call_operand.hbm [shape: f32[1,1024], index: 11, kind: input, shape index: {}]   ;;  %s12294_s12 = inlined_call_operand.hbm [shape: bf16[1024,896], index: 12, kind: input, shape index: {}]   ;;  %s12295_s13 = inlined_call_operand.hbm [shape: f32[1,896], index: 13, kind: input, shape index: {}]   ;;  %s12296_s14 = inlined_call_operand.vmem [shape: f32[8,896], index: 14, kind: output, shape index: {}]  }
   0x1   :  { %20 = vsyncpa [#allocation5], 0 }
   0x2   :  { %21 = vsyncpa [#allocation8], 0 }
   0x3   :  { %22 = vsyncpa [#allocation11], 0 }
   0x4   :  { %23 = vsyncpa [#allocation14], 0 }
   0x5   :  { %24 = vsyncpa [#allocation17], 0 }
   0x6   :  { %25 = vsyncpa [#allocation20], 0  ;;  %s42_s15 = sshll.u32 %s12283_s1, 4  ;;  %s43_s15 = int_to_ptr.hbm [resolvable:$true] %s42_s15 }
   0x7   :  { %26 = vsyncpa [#allocation23], 0  ;;  %s11494_s16 = smov [#allocation4]   ;;  %s66_s20 = sshll.u32 %s12285_s3, 4  ;;  %s67_s20 = int_to_ptr.hbm [resolvable:$true] %s66_s20 }
   0x8   :  { %s44_s17 = sshll.u32 %s11494_s16, 4  ;;  %s11495_s21 = smov 64   ;;  %s45_s17 = int_to_ptr.vmem [resolvable:$true] %s44_s17 }
   0x9   :  { %s11496_s22 = smov 4   ;;  %s11497_s23 = smov [#allocation7]  }
   0xa   :  { %50 = dma.hbm_to_vmem [thread:$0]  %s43_s15, 832, %s45_s17, [#allocation5], %s11495_s21, %s11495_s21, %s11496_s22  }
   0xb   :  { %s68_s24 = sshll.u32 %s11497_s23, 4  ;;  %s11498_s25 = smov 128   ;;  %s69_s24 = int_to_ptr.vmem [resolvable:$true] %s68_s24 }
   0xc   :  { %s11499_s26 = smov 8   ;;  %s91_s28 = sshll.u32 %s12287_s5, 4  ;;  %s92_s28 = int_to_ptr.hbm [resolvable:$true] %s91_s28 }
   0xd   :  { %74 = dma.hbm_to_vmem [thread:$0]  %s67_s20, 2048, %s69_s24, [#allocation8], %s11498_s25, %s11498_s25, %s11499_s26  }
   0xe   :  { %s11500_s29 = smov [#allocation10]   ;;  %s115_s18 = sshll.u32 %s12289_s7, 4  ;;  %s116_s18 = int_to_ptr.hbm [resolvable:$true] %s115_s18 }
   0xf   :  { %s93_s30 = sshll.u32 %s11500_s29, 4  ;;  %s11501_s15 = smov [#allocation13]   ;;  %s94_s30 = int_to_ptr.vmem [resolvable:$true] %s93_s30 }
  0x10   :  { %96 = dma.hbm_to_vmem [thread:$0]  %s92_s28, 32, %s94_s30, [#allocation11]  }
  0x11   :  { %s117_s17 = sshll.u32 %s11501_s15, 4  ;;  %s136_s20 = sshll.u32 %s12291_s9, 4  ;;  %s118_s17 = int_to_ptr.vmem [resolvable:$true] %s117_s17  ;;  %s137_s20 = int_to_ptr.hbm [resolvable:$true] %s136_s20 }
  0x12   :  { %120 = dma.hbm_to_vmem [thread:$0]  %s116_s18, 64, %s118_s17, [#allocation14]  }
  0x13   :  { %s11502_s5 = smov [#allocation16]   ;;  %s161_s25 = sshll.u32 %s12293_s11, 4  ;;  %s162_s25 = int_to_ptr.hbm [resolvable:$true] %s161_s25 }
  0x14   :  { %s138_s22 = sshll.u32 %s11502_s5, 4  ;;  %s11503_s26 = smov 512   ;;  %s139_s22 = int_to_ptr.vmem [resolvable:$true] %s138_s22 }
  0x15   :  { %s11504_s7 = smov 32   ;;  %s11505_s1 = smov [#allocation19]  }
  0x16   :  { %144 = dma.hbm_to_vmem [thread:$0]  %s137_s20, 32768, %s139_s22, [#allocation17], %s11503_s26, %s11503_s26, %s11504_s7  }
  0x17   :  { %s163_s27 = sshll.u32 %s11505_s1, 4  ;;  %s32_s9 = sshll.u32 %s12282_s0, 4  ;;  %s164_s27 = int_to_ptr.vmem [resolvable:$true] %s163_s27  ;;  %s33_s9 = int_to_ptr.hbm [resolvable:$true] %s32_s9 }
  0x18   :  { %166 = dma.hbm_to_vmem [thread:$0]  %s162_s25, 128, %s164_s27, [#allocation20]  }
  0x19   :  { %s56_s3 = sshll.u32 %s12284_s2, 4  ;;  %s11506_s18 = smov [#allocation2]   ;;  %s57_s3 = int_to_ptr.hbm [resolvable:$true] %s56_s3 }
  0x1a   :  { %s34_s15 = sshll.u32 %s11506_s18, 4  ;;  %s11507_s11 = smov [#allocation6]   ;;  %s35_s15 = int_to_ptr.vmem [resolvable:$true] %s34_s15 }
  0x1b   :  { %37 = dma.hbm_to_vmem [thread:$0]  %s33_s9, 128, %s35_s15, [#allocation3]  }
  0x1c   :  { %s58_s17 = sshll.u32 %s11507_s11, 4  ;;  %s80_s20 = sshll.u32 %s12286_s4, 4  ;;  %s59_s17 = int_to_ptr.vmem [resolvable:$true] %s58_s17  ;;  %s81_s20 = int_to_ptr.hbm [resolvable:$true] %s80_s20 }
  0x1d   :  { %61 = dma.hbm_to_vmem [thread:$0]  %s57_s3, 16, %s59_s17, [#allocation5]  }
  0x1e   :  { %s101_s22 = sshll.u32 %s12288_s6, 4  ;;  %s11508_s23 = smov [#allocation9]   ;;  %s102_s22 = int_to_ptr.hbm [resolvable:$true] %s101_s22 }
  0x1f   :  { %s82_s2 = sshll.u32 %s11508_s23, 4  ;;  %s11509_s24 = smov [#allocation12]   ;;  %s83_s2 = int_to_ptr.vmem [resolvable:$true] %s82_s2 }
  0x20   :  { %85 = dma.hbm_to_vmem [thread:$0]  %s81_s20, 32, %s83_s2, [#allocation8]  }
  0x21   :  { %s103_s25 = sshll.u32 %s11509_s24, 4  ;;  %s11510_s26 = smov 256   ;;  %s104_s25 = int_to_ptr.vmem [resolvable:$true] %s103_s25 }
  0x22   :  { %s11511_s7 = smov 16   ;;  %s126_s27 = sshll.u32 %s12290_s8, 4  ;;  %s127_s27 = int_to_ptr.hbm [resolvable:$true] %s126_s27 }
  0x23   :  { %109 = dma.hbm_to_vmem [thread:$0]  %s102_s22, 8192, %s104_s25, [#allocation11], %s11510_s26, %s11510_s26, %s11511_s7  }
  0x24   :  { %s11512_s28 = smov [#allocation15]   ;;  %s150_s30 = sshll.u32 %s12292_s10, 4  ;;  %s151_s30 = int_to_ptr.hbm [resolvable:$true] %s150_s30 }
  0x25   :  { %s128_s29 = sshll.u32 %s11512_s28, 4  ;;  %s11513_s16 = smov [#allocation18]   ;;  %s129_s29 = int_to_ptr.vmem [resolvable:$true] %s128_s29 }
  0x26   :  { %131 = dma.hbm_to_vmem [thread:$0]  %s127_s27, 64, %s129_s29, [#allocation14]  }
  0x27   :  { %s152_s3 = sshll.u32 %s11513_s16, 4  ;;  %s171_s11 = sshll.u32 %s12294_s12, 4  ;;  %s153_s3 = int_to_ptr.vmem [resolvable:$true] %s152_s3  ;;  %s172_s11 = int_to_ptr.hbm [resolvable:$true] %s171_s11 }
  0x28   :  { %155 = dma.hbm_to_vmem [thread:$0]  %s151_s30, 128, %s153_s3, [#allocation17]  }
  0x29   :  { %s11514_s8 = smov [#allocation21]   ;;  %s185_s20 = sshll.u32 %s12295_s13, 4  ;;  %s186_s20 = int_to_ptr.hbm [resolvable:$true] %s185_s20 }
  0x2a   :  { %s173_s17 = sshll.u32 %s11514_s8, 4  ;;  %s11515_s0 = smov 448   ;;  %s174_s17 = int_to_ptr.vmem [resolvable:$true] %s173_s17 }
  0x2b   :  { %s11516_s10 = smov 28   ;;  %s11517_s5 = smov [#allocation22]  }
  0x2c   :  { %179 = dma.hbm_to_vmem [thread:$0]  %s172_s11, 57344, %s174_s17, [#allocation20], %s11515_s0, %s11515_s0, %s11516_s10  }
  0x2d   :  { %s187_s22 = sshll.u32 %s11517_s5, 4  ;;  %s188_s22 = int_to_ptr.vmem [resolvable:$true] %s187_s22 }
  0x2e   :  { %190 = dma.hbm_to_vmem [thread:$0]  %s186_s20, 112, %s188_s22, [#allocation23]  }
  0x2f   :  { %11478 = dma.done.wait [#allocation3], 128  }
  0x30   :  { %11479 = vsyncadd [#allocation3], 4294967168 }
  0x31   :  { %11480 = dma.done.wait [#allocation5], 848  }
  0x32   :  { %11481 = vsyncadd [#allocation5], 4294966448 }
  0x33   :  { %11482 = dma.done.wait [#allocation8], 2080  }
  0x34   :  { %11483 = vsyncadd [#allocation8], 4294965216 }
  0x35   :  { %11484 = dma.done.wait [#allocation11], 8224  }
  0x36   :  { %11485 = vsyncadd [#allocation11], 4294959072 }
  0x37   :  { %11486 = dma.done.wait [#allocation14], 128  }
  0x38   :  { %11487 = vsyncadd [#allocation14], 4294967168 }
  0x39   :  { %11488 = dma.done.wait [#allocation17], 32896  }
  0x3a   :  { %11489 = vsyncadd [#allocation17], 4294934400 }
  0x3b   :  { %11490 = dma.done.wait [#allocation20], 57472  }
  0x3c   :  { %11491 = vsyncadd [#allocation20], 4294909824 }
  0x3d   :  { %11492 = dma.done.wait [#allocation23], 112  }
  0x3e   :  { %11493 = vsyncadd [#allocation23], 4294967184  ;;  %v263_v0 = vld [vmem:[#allocation4 + $0x30] sm:$0x3]  ;;  %vm310_vm0 = vcmask 1041408   ;;  %v10285_v14 = vld [vmem:[#allocation4 + $0x28] sm:$0xff] }
  0x3f   :  { %v292_v1 = vunpack.c.l.b16 %v263_v0  ;;  %v7202_v2 = vld [vmem:[#allocation7 + $0x70] sm:$0xf]  ;;  %v10301_v4 = vld [vmem:[#allocation7 + $0x74] sm:$0xf0]  ;;  %v10300_v5 = vld [vmem:[#allocation7 + $0x74] sm:$0xf] }
  0x40   :  { %v7204_v6 = vld [vmem:[#allocation7 + $0x78] sm:$0xf0]  ;;  %v7203_v7 = vor.u32 %v10301_v4, %v7202_v2  ;;  %v7194_v9 = vld [vmem:[#allocation7 + $0x60] sm:$0xf]  ;;  %v10299_v10 = vld [vmem:[#allocation7 + $0x64] sm:$0xf0] }
  0x41   :  { %v299_v3 = vpack.c.b16 %v292_v1, %v292_v1  ;;  %v7207_v8 = vor.u32 %v10300_v5, %v7204_v6  ;;  %v10298_v11 = vld [vmem:[#allocation7 + $0x64] sm:$0xf]  ;;  %v7196_v13 = vld [vmem:[#allocation7 + $0x68] sm:$0xf0]  ;;  %v7195_v15 = vor.u32 %v10299_v10, %v7194_v9  ;;  %v7186_v17 = vld [vmem:[#allocation7 + $0x50] sm:$0xf] }
  0x42   :  { %428 = vmatpush.bf16.msra.mxu1 %v7203_v7  ;;  %v7199_v16 = vor.u32 %v10298_v11, %v7196_v13  ;;  %v10297_v18 = vld [vmem:[#allocation7 + $0x54] sm:$0xf0]  ;;  %v10296_v19 = vld [vmem:[#allocation7 + $0x54] sm:$0xf]  ;;  %v7188_v20 = vld [vmem:[#allocation7 + $0x58] sm:$0xf0] }
  0x43   :  { %v312_v12 = vsel %vm310_vm0, %v299_v3, 0  ;;  %441 = vmatpush.bf16.msra.mxu2 %v7207_v8  ;;  %v10284_v21 = vld [vmem:[#allocation4 + $0x20] sm:$0xff]  ;;  %v7187_v22 = vor.u32 %v10297_v18, %v7186_v17  ;;  %v7191_v23 = vor.u32 %v10296_v19, %v7188_v20  ;;  %v7178_v24 = vld [vmem:[#allocation7 + $0x40] sm:$0xf]  ;;  %v10294_v26 = vld [vmem:[#allocation7 + $0x44] sm:$0xf] }
  0x44   :  { %315 = vmatpush.bf16.msra.mxu0 %v312_v12  ;;  %v10295_v25 = vld [vmem:[#allocation7 + $0x44] sm:$0xf0]  ;;  %v7180_v27 = vld [vmem:[#allocation7 + $0x48] sm:$0xf0]  ;;  %v7170_v31 = vld [vmem:[#allocation7 + $0x30] sm:$0xf] }
  0x45   :  { %v10283_v28 = vld [vmem:[#allocation4 + $0x18] sm:$0xff]  ;;  %v7179_v29 = vor.u32 %v10295_v25, %v7178_v24  ;;  %v7183_v30 = vor.u32 %v10294_v26, %v7180_v27  ;;  %v10293_v32 = vld [vmem:[#allocation7 + $0x34] sm:$0xf0]  ;;  %v10292_v33 = vld [vmem:[#allocation7 + $0x34] sm:$0xf]  ;;  %vm306_vm1 = vcmask 818176  }
  0x46   :  { %429 = vmatpush.bf16.msra.mxu1 %v7195_v15  ;;  %v7172_v34 = vld [vmem:[#allocation7 + $0x38] sm:$0xf0]  ;;  %v7171_v36 = vor.u32 %v10293_v32, %v7170_v31  ;;  %v7162_v38 = vld [vmem:[#allocation7 + $0x20] sm:$0xf]  ;;  %v10291_v39 = vld [vmem:[#allocation7 + $0x24] sm:$0xf0] }
  0x47   :  { %442 = vmatpush.bf16.msra.mxu2 %v7199_v16  ;;  %v10282_v35 = vld [vmem:[#allocation4 + $0x10] sm:$0xff]  ;;  %v7175_v37 = vor.u32 %v10292_v33, %v7172_v34  ;;  %v10290_v40 = vld [vmem:[#allocation7 + $0x24] sm:$0xf]  ;;  %v7164_v41 = vld [vmem:[#allocation7 + $0x28] sm:$0xf0]  ;;  %v7163_v43 = vor.u32 %v10291_v39, %v7162_v38  ;;  %v11518_v3 = vmov 8.0  }
  0x48   :  { %316 = vmatpush.bf16.msra.mxu0 %v10285_v14  ;;  %v10281_v42 = vld [vmem:[#allocation4 + $0x8] sm:$0xff]  ;;  %v7167_v44 = vor.u32 %v10290_v40, %v7164_v41  ;;  %v10280_v45 = vld [vmem:[#allocation4] sm:$0xff]  ;;  %v248_v46 = vld [vmem:[#allocation2] sm:$0xff]  ;;  %11096 = vrcp.f32 %v11518_v3  ;;  %vm520_vm8 = vcmask 1040384  }
  0x49   :  { %v250_v47 = vpack.c.bf16 %v248_v46, %v248_v46  ;;  %v7154_v48 = vld [vmem:[#allocation7 + $0x10] sm:$0xf]  ;;  %v10289_v49 = vld [vmem:[#allocation7 + $0x14] sm:$0xf0]  ;;  %v10288_v50 = vld [vmem:[#allocation7 + $0x14] sm:$0xf] }
  0x4a   :  { %430 = vmatpush.bf16.msra.mxu1 %v7187_v22  ;;  %v7155_v51 = vor.u32 %v10289_v49, %v7154_v48  ;;  %v7156_v52 = vld [vmem:[#allocation7 + $0x18] sm:$0xf0]  ;;  %v7146_v54 = vld [vmem:[#allocation7] sm:$0xf]  ;;  %v10287_v55 = vld [vmem:[#allocation7 + $0x4] sm:$0xf0] }
  0x4b   :  { %443 = vmatpush.bf16.msra.mxu2 %v7191_v23  ;;  %v7159_v53 = vor.u32 %v10288_v50, %v7156_v52  ;;  %v10286_v56 = vld [vmem:[#allocation7 + $0x4] sm:$0xf]  ;;  %v7147_v57 = vor.u32 %v10287_v55, %v7146_v54  ;;  %v7148_v58 = vld [vmem:[#allocation7 + $0x8] sm:$0xf0]  ;;  %v11095_v60 = vld [vmem:[#allocation6] ss:$0 sm:$0xff] }
  0x4c   :  { %317 = vmatpush.bf16.msra.mxu0 %v10284_v21  ;;  %v7151_v59 = vor.u32 %v10286_v56, %v7148_v58  ;;  %v7322_v5 = vld [vmem:[#allocation12 + $0xe0] sm:$0xf]  ;;  %v10332_v6 = vld [vmem:[#allocation12 + $0xec] sm:$0xf0]  ;;  %v10330_v10 = vld [vmem:[#allocation12 + $0xe4] sm:$0xf] }
  0x4d   :  { %v7450_v7 = vld [vmem:[#allocation12 + $0x1e0] sm:$0xf]  ;;  %v7323_v8 = vor.u32 %v10332_v6, %v7322_v5  ;;  %v10364_v9 = vld [vmem:[#allocation12 + $0x1ec] sm:$0xf0]  ;;  %v7324_v11 = vld [vmem:[#allocation12 + $0xf0] sm:$0xf0] }
  0x4e   :  { %431 = vmatpush.bf16.msra.mxu1 %v7179_v29  ;;  %v11637_v4 = vpop.eup %11096  ;;  %v7451_v12 = vor.u32 %v10364_v9, %v7450_v7  ;;  %v7327_v13 = vor.u32 %v10330_v10, %v7324_v11  ;;  %v10362_v14 = vld [vmem:[#allocation12 + $0x1e4] sm:$0xf]  ;;  %v7452_v15 = vld [vmem:[#allocation12 + $0x1f0] sm:$0xf0]  ;;  %v7306_v18 = vld [vmem:[#allocation12 + $0xc0] sm:$0xf] }
  0x4f   :  { %444 = vmatpush.bf16.msra.mxu2 %v7183_v30  ;;  %v467_v16 = vmul.f32 8.0, %v11637_v4  ;;  %938 = vmatpush.bf16.msra.mxu3 %v7323_v8  ;;  %v7455_v17 = vor.u32 %v10362_v14, %v7452_v15  ;;  %v10328_v19 = vld [vmem:[#allocation12 + $0xcc] sm:$0xf0]  ;;  %v7434_v20 = vld [vmem:[#allocation12 + $0x1c0] sm:$0xf]  ;;  %vm471_vm2 = vweird.f32 %v11637_v4 }
  0x50   :  { %318 = vmatpush.bf16.msra.mxu0 %v10283_v28  ;;  %v7307_v21 = vor.u32 %v10328_v19, %v7306_v18  ;;  %v10360_v22 = vld [vmem:[#allocation12 + $0x1cc] sm:$0xf0]  ;;  %v10326_v23 = vld [vmem:[#allocation12 + $0xc4] sm:$0xf]  ;;  %v7308_v24 = vld [vmem:[#allocation12 + $0xd0] sm:$0xf0] }
  0x51   :  { %v7435_v25 = vor.u32 %v10360_v22, %v7434_v20  ;;  %v7311_v26 = vor.u32 %v10326_v23, %v7308_v24  ;;  %v10358_v27 = vld [vmem:[#allocation12 + $0x1c4] sm:$0xf]  ;;  %v468_v28 = vsub.f32 1.0, %v467_v16  ;;  %v7436_v29 = vld [vmem:[#allocation12 + $0x1d0] sm:$0xf0] }
  0x52   :  { %432 = vmatpush.bf16.msra.mxu1 %v7171_v36  ;;  %v7439_v30 = vor.u32 %v10358_v27, %v7436_v29  ;;  %v7290_v31 = vld [vmem:[#allocation12 + $0xa0] sm:$0xf]  ;;  %v10324_v32 = vld [vmem:[#allocation12 + $0xac] sm:$0xf0]  ;;  %v10322_v36 = vld [vmem:[#allocation12 + $0xa4] sm:$0xf] }
  0x53   :  { %445 = vmatpush.bf16.msra.mxu2 %v7175_v37  ;;  %939 = vmatpush.bf16.msra.mxu3 %v7307_v21  ;;  %v7418_v33 = vld [vmem:[#allocation12 + $0x1a0] sm:$0xf]  ;;  %v7291_v34 = vor.u32 %v10324_v32, %v7290_v31  ;;  %v7292_v37 = vld [vmem:[#allocation12 + $0xb0] sm:$0xf0]  ;;  %v10354_v41 = vld [vmem:[#allocation12 + $0x1a4] sm:$0xf]  ;;  %v469_v46 = vmul.f32 %v11637_v4, %v468_v28 }
  0x54   :  { %319 = vmatpush.bf16.msra.mxu0 %v10282_v35  ;;  %v10356_v35 = vld [vmem:[#allocation12 + $0x1ac] sm:$0xf0]  ;;  %v7295_v40 = vor.u32 %v10322_v36, %v7292_v37  ;;  %v7402_v49 = vld [vmem:[#allocation12 + $0x180] sm:$0xf]  ;;  %v10318_v54 = vld [vmem:[#allocation12 + $0x84] sm:$0xf] }
  0x55   :  { %v7419_v39 = vor.u32 %v10356_v35, %v7418_v33  ;;  %v10320_v48 = vld [vmem:[#allocation12 + $0x8c] sm:$0xf0]  ;;  %v7276_v56 = vld [vmem:[#allocation12 + $0x90] sm:$0xf0]  ;;  %v7386_v3 = vld [vmem:[#allocation12 + $0x160] sm:$0xf] }
  0x56   :  { %433 = vmatpush.bf16.msra.mxu1 %v7163_v43  ;;  %v7404_v58 = vld [vmem:[#allocation12 + $0x190] sm:$0xf0]  ;;  %v10348_v9 = vld [vmem:[#allocation12 + $0x16c] sm:$0xf0]  ;;  %v10314_v10 = vld [vmem:[#allocation12 + $0x64] sm:$0xf] }
  0x57   :  { %446 = vmatpush.bf16.msra.mxu2 %v7167_v44  ;;  %940 = vmatpush.bf16.msra.mxu3 %v7291_v34  ;;  %v7260_v14 = vld [vmem:[#allocation12 + $0x70] sm:$0xf0]  ;;  %v10346_v15 = vld [vmem:[#allocation12 + $0x164] sm:$0xf]  ;;  %v7242_v24 = vld [vmem:[#allocation12 + $0x40] sm:$0xf] }
  0x58   :  { %320 = vmatpush.bf16.msra.mxu0 %v10281_v42  ;;  %v7420_v42 = vld [vmem:[#allocation12 + $0x1b0] sm:$0xf0]  ;;  %v7263_v22 = vor.u32 %v10314_v10, %v7260_v14  ;;  %v10344_v31 = vld [vmem:[#allocation12 + $0x14c] sm:$0xf0]  ;;  %v10310_v32 = vld [vmem:[#allocation12 + $0x44] sm:$0xf] }
  0x59   :  { %v7388_v16 = vld [vmem:[#allocation12 + $0x170] sm:$0xf0]  ;;  %v10302_v10 = vld [vmem:[#allocation12 + $0x4] sm:$0xf] }
  0x5a   :  { %434 = vmatpush.bf16.msra.mxu1 %v7155_v51  ;;  %v7391_v23 = vor.u32 %v10346_v15, %v7388_v16  ;;  %v7244_v35 = vld [vmem:[#allocation12 + $0x50] sm:$0xf0] }
  0x5b   :  { %447 = vmatpush.bf16.msra.mxu2 %v7159_v53  ;;  %v10352_v53 = vld [vmem:[#allocation12 + $0x18c] sm:$0xf0]  ;;  %v7372_v36 = vld [vmem:[#allocation12 + $0x150] sm:$0xf0] }
  0x5c   :  { %321 = vmatpush.bf16.msra.mxu0 %v10280_v45  ;;  %v7423_v45 = vor.u32 %v10354_v41, %v7420_v42  ;;  %v7403_v55 = vor.u32 %v10352_v53, %v7402_v49  ;;  %v7340_v14 = vld [vmem:[#allocation12 + $0x110] sm:$0xf0] }
  0x5e   :  { %435 = vmatpush.bf16.msra.mxu1 %v7147_v57  ;;  %v10350_v57 = vld [vmem:[#allocation12 + $0x184] sm:$0xf] }
  0x5f   :  { %7143 = vmatmul.msk.bf16.vlgmr.msra.gmra.mxu0 %vm306_vm1, %v250_v47  ;;  %448 = vmatpush.bf16.msra.mxu2 %v7151_v59  ;;  %v7274_v47 = vld [vmem:[#allocation12 + $0x80] sm:$0xf] }
  0x60   :  { %951 = vmatpush.bf16.msrb.mxu0 %v7451_v12  ;;  %v7275_v52 = vor.u32 %v10320_v48, %v7274_v47 }
  0x62   :  { %964 = vmatpush.bf16.msrb.mxu1 %v7327_v13  ;;  %941 = vmatpush.bf16.msra.mxu3 %v7275_v52  ;;  %v7387_v13 = vor.u32 %v10348_v9, %v7386_v3  ;;  %v10340_v52 = vld [vmem:[#allocation12 + $0x12c] sm:$0xf0]  ;;  %v7338_v3 = vld [vmem:[#allocation12 + $0x100] sm:$0xf] }
  0x63   :  { %977 = vmatpush.bf16.msrb.mxu2 %v7455_v17  ;;  %v10336_v9 = vld [vmem:[#allocation12 + $0x10c] sm:$0xf0] }
  0x64   :  { %952 = vmatpush.bf16.msrb.mxu0 %v7435_v25  ;;  %v10312_v25 = vld [vmem:[#allocation12 + $0x4c] sm:$0xf0] }
  0x65   :  { %v7243_v33 = vor.u32 %v10312_v25, %v7242_v24  ;;  %v10365_v24 = vld [vmem:[#allocation12 + $0x1f4] sm:$0xf0]  ;;  %v10331_v25 = vld [vmem:[#allocation12 + $0xec] sm:$0xf] }
  0x66   :  { %965 = vmatpush.bf16.msrb.mxu1 %v7311_v26  ;;  %v7370_v26 = vld [vmem:[#allocation12 + $0x140] sm:$0xf] }
  0x67   :  { %978 = vmatpush.bf16.msrb.mxu2 %v7439_v30  ;;  %v7371_v34 = vor.u32 %v10344_v31, %v7370_v26  ;;  %v7332_v26 = vld [vmem:[#allocation12 + $0xf8] sm:$0xf0] }
  0x68   :  { %953 = vmatpush.bf16.msrb.mxu0 %v7419_v39  ;;  %v7460_v31 = vld [vmem:[#allocation12 + $0x1f8] sm:$0xf0] }
  0x6a   :  { %966 = vmatpush.bf16.msrb.mxu1 %v7295_v40 }
  0x6b   :  { %979 = vmatpush.bf16.msrb.mxu2 %v7423_v45  ;;  %v7226_v45 = vld [vmem:[#allocation12 + $0x20] sm:$0xf] }
  0x6c   :  { %954 = vmatpush.bf16.msrb.mxu0 %v7403_v55  ;;  %v10306_v55 = vld [vmem:[#allocation12 + $0x24] sm:$0xf] }
  0x70   :  { %955 = vmatpush.bf16.msrb.mxu0 %v7387_v13  ;;  %v10334_v13 = vld [vmem:[#allocation12 + $0x104] sm:$0xf] }
  0x74   :  { %956 = vmatpush.bf16.msrb.mxu0 %v7371_v34  ;;  %v10329_v34 = vld [vmem:[#allocation12 + $0xd4] sm:$0xf0] }
  0xdc   :  { %v323_v61 = vpop.f32.mrf.mxu0 }
  0xdd   :  { %v324_v62 = vadd.f32 %v11095_v60, %v323_v61  ;;  %v7279_v61 = vor.u32 %v10318_v54, %v7276_v56  ;;  %v7228_v56 = vld [vmem:[#allocation12 + $0x30] sm:$0xf0] }
  0xdf   :  { %v327_v63 = vmul.f32 0.2, %v324_v62  ;;  %967 = vmatpush.bf16.msrb.mxu1 %v7279_v61  ;;  %v7231_v61 = vor.u32 %v10306_v55, %v7228_v56 }
  0xe1   :  { %v328_v0 = vmax.f32 %v324_v62, %v327_v63  ;;  %v7407_v62 = vor.u32 %v10350_v57, %v7404_v58  ;;  %v470_v63 = vadd.f32 %v11637_v4, %v469_v46  ;;  %v10308_v46 = vld [vmem:[#allocation12 + $0x2c] sm:$0xf0]  ;;  %v10338_v57 = vld [vmem:[#allocation12 + $0x124] sm:$0xf] }
  0xe2   :  { %v7227_v53 = vor.u32 %v10308_v46, %v7226_v45  ;;  %v7444_v45 = vld [vmem:[#allocation12 + $0x1d8] sm:$0xf0] }
  0xe3   :  { %v331_v1 = vpack.c.bf16 %v328_v0, %v328_v0  ;;  %980 = vmatpush.bf16.msrb.mxu2 %v7407_v62  ;;  %v11658_v21 = vsel %vm471_vm2, %v11637_v4, %v470_v63  ;;  %968 = vmatpush.bf16.msrb.mxu1 %v7263_v22  ;;  %v10342_v4 = vld [vmem:[#allocation12 + $0x144] sm:$0xf]  ;;  %v7356_v62 = vld [vmem:[#allocation12 + $0x130] sm:$0xf0]  ;;  %v7343_v22 = vor.u32 %v10334_v13, %v7340_v14  ;;  %v7412_v13 = vld [vmem:[#allocation12 + $0x198] sm:$0xf0] }
  0xe4   :  { %v325_v2 = vpop.f32.mrf.mxu0  ;;  %v7359_v63 = vor.u32 %v10338_v57, %v7356_v62  ;;  %v10355_v57 = vld [vmem:[#allocation12 + $0x1ac] sm:$0xf]  ;;  %v7282_v62 = vld [vmem:[#allocation12 + $0x88] sm:$0xf] }
  0xe5   :  { %436 = vmatmul.bf16.vlgmr.msra.gmra.mxu1 %v331_v1  ;;  %449 = vmatmul.bf16.vlgmr.msra.gmra.mxu2 %v331_v1  ;;  %v7258_v1 = vld [vmem:[#allocation12 + $0x60] sm:$0xf]  ;;  %v10316_v2 = vld [vmem:[#allocation12 + $0x6c] sm:$0xf0] }
  0xe6   :  { %v7259_v12 = vor.u32 %v10316_v2, %v7258_v1  ;;  %v7210_v1 = vld [vmem:[#allocation12] sm:$0xf]  ;;  %v10304_v2 = vld [vmem:[#allocation12 + $0xc] sm:$0xf0] }
  0xe7   :  { %981 = vmatpush.bf16.msrb.mxu2 %v7391_v23 }
  0xe8   :  { %942 = vmatpush.bf16.msra.mxu3 %v7259_v12  ;;  %v7212_v12 = vld [vmem:[#allocation12 + $0x10] sm:$0xf0] }
  0xec   :  { %943 = vmatpush.bf16.msra.mxu3 %v7243_v33 }
  0xf0   :  { %944 = vmatpush.bf16.msra.mxu3 %v7227_v53  ;;  %v10323_v53 = vld [vmem:[#allocation12 + $0xac] sm:$0xf] }
 0x162   :  { %v11640_v38 = vpop.f32.mrf.mxu1 }
 0x163   :  { %v454_v43 = vrot.slane %v11640_v38, 4  ;;  %v475_v44 = vmul.f32 %v11640_v38, %v11640_v38 }
 0x165   :  { %v455_v50 = vadd.f32 %v454_v43, %v11640_v38  ;;  %v477_v51 = vrot.slane %v475_v44, 4  ;;  %v7247_v43 = vor.u32 %v10310_v32, %v7244_v35  ;;  %v7314_v32 = vld [vmem:[#allocation12 + $0xc8] sm:$0xf] }
 0x166   :  { %v7442_v35 = vld [vmem:[#allocation12 + $0x1c8] sm:$0xf] }
 0x167   :  { %v456_v59 = vrot.slane %v455_v50, 2  ;;  %v478_v60 = vadd.f32 %v477_v51, %v475_v44  ;;  %v7375_v44 = vor.u32 %v10342_v4, %v7372_v36  ;;  %v7354_v51 = vld [vmem:[#allocation12 + $0x120] sm:$0xf]  ;;  %969 = vmatpush.bf16.msrb.mxu1 %v7247_v43  ;;  %v10361_v4 = vld [vmem:[#allocation12 + $0x1d4] sm:$0xf0] }
 0x168   :  { %v11649_v0 = vpop.f32.mrf.mxu2  ;;  %v7355_v54 = vor.u32 %v10340_v52, %v7354_v51  ;;  %v10357_v52 = vld [vmem:[#allocation12 + $0x1b4] sm:$0xf0] }
 0x169   :  { %v457_v5 = vadd.f32 %v456_v59, %v455_v50  ;;  %v479_v6 = vrot.slane %v478_v60, 2  ;;  %v460_v7 = vrot.slane %v11649_v0, 4  ;;  %v476_v8 = vmul.f32 %v11649_v0, %v11649_v0  ;;  %982 = vmatpush.bf16.msrb.mxu2 %v7375_v44  ;;  %v10359_v44 = vld [vmem:[#allocation12 + $0x1cc] sm:$0xf] }
 0x16a   :  { %v439_v11 = vpop.f32.mrf.mxu1  ;;  %957 = vmatpush.bf16.msrb.mxu0 %v7355_v54  ;;  %v7300_v54 = vld [vmem:[#allocation12 + $0xb8] sm:$0xf0] }
 0x16b   :  { %v458_v17 = vrot.slane %v457_v5, 1  ;;  %v480_v18 = vadd.f32 %v479_v6, %v478_v60  ;;  %v461_v19 = vadd.f32 %v460_v7, %v11649_v0  ;;  %v483_v20 = vrot.slane %v476_v8, 4  ;;  %970 = vmatpush.bf16.msrb.mxu1 %v7231_v61 }
 0x16c   :  { %v7339_v11 = vor.u32 %v10336_v9, %v7338_v3  ;;  %v10353_v3 = vld [vmem:[#allocation12 + $0x194] sm:$0xf0] }
 0x16d   :  { %v459_v27 = vadd.f32 %v458_v17, %v457_v5  ;;  %v481_v28 = vrot.slane %v480_v18, 1  ;;  %v462_v29 = vrot.slane %v461_v19, 2  ;;  %v484_v30 = vadd.f32 %v483_v20, %v476_v8  ;;  %983 = vmatpush.bf16.msrb.mxu2 %v7359_v63  ;;  %v7330_v17 = vld [vmem:[#allocation12 + $0xe8] sm:$0xf]  ;;  %v10321_v63 = vld [vmem:[#allocation12 + $0x94] sm:$0xf0] }
 0x16e   :  { %v7211_v8 = vor.u32 %v10304_v2, %v7210_v1  ;;  %958 = vmatpush.bf16.msrb.mxu0 %v7339_v11  ;;  %v7215_v20 = vor.u32 %v10302_v10, %v7212_v12  ;;  %v7410_v1 = vld [vmem:[#allocation12 + $0x188] sm:$0xf]  ;;  %v7283_v9 = vor.u32 %v10321_v63, %v7282_v62  ;;  %v7284_v11 = vld [vmem:[#allocation12 + $0x98] sm:$0xf0]  ;;  %v10351_v12 = vld [vmem:[#allocation12 + $0x18c] sm:$0xf] }
 0x16f   :  { %v11661_v37 = vmul.f32 %v11658_v21, %v459_v27  ;;  %v482_v39 = vadd.f32 %v481_v28, %v480_v18  ;;  %v463_v40 = vadd.f32 %v462_v29, %v461_v19  ;;  %v485_v41 = vrot.slane %v484_v30, 2  ;;  %v10333_v18 = vld [vmem:[#allocation12 + $0xf4] sm:$0xf0]  ;;  %v7458_v19 = vld [vmem:[#allocation12 + $0x1e8] sm:$0xf] }
 0x170   :  { %v452_v42 = vpop.f32.mrf.mxu2  ;;  %945 = vmatpush.bf16.msra.mxu3 %v7211_v8  ;;  %v7331_v23 = vor.u32 %v10333_v18, %v7330_v17  ;;  %v7459_v28 = vor.u32 %v10365_v24, %v7458_v19  ;;  %v7335_v29 = vor.u32 %v10331_v25, %v7332_v26  ;;  %971 = vmatpush.bf16.msrb.mxu1 %v7215_v20  ;;  %v7266_v19 = vld [vmem:[#allocation12 + $0x68] sm:$0xf]  ;;  %v10317_v20 = vld [vmem:[#allocation12 + $0x74] sm:$0xf0]  ;;  %v10315_v25 = vld [vmem:[#allocation12 + $0x6c] sm:$0xf] }
 0x171   :  { %v489_v47 = vmul.f32 %v482_v39, %v11658_v21  ;;  %v491_v48 = vmul.f32 %v11661_v37, %v11661_v37  ;;  %v464_v49 = vrot.slane %v463_v40, 1  ;;  %v486_v50 = vadd.f32 %v485_v41, %v484_v30  ;;  %v10363_v30 = vld [vmem:[#allocation12 + $0x1ec] sm:$0xf]  ;;  %984 = vmatpush.bf16.msrb.mxu2 %v7343_v22  ;;  %v7316_v42 = vld [vmem:[#allocation12 + $0xd8] sm:$0xf0] }
 0x172   :  { %v7463_v33 = vor.u32 %v10363_v30, %v7460_v31  ;;  %1003 = vmatpush.bf16.msra.mxu0 %v7459_v28  ;;  %v7315_v39 = vor.u32 %v10329_v34, %v7314_v32  ;;  %v10327_v41 = vld [vmem:[#allocation12 + $0xcc] sm:$0xf]  ;;  %v7411_v10 = vor.u32 %v10353_v3, %v7410_v1  ;;  %v7415_v17 = vor.u32 %v10351_v12, %v7412_v13  ;;  %v7394_v22 = vld [vmem:[#allocation12 + $0x168] sm:$0xf]  ;;  %v10349_v24 = vld [vmem:[#allocation12 + $0x174] sm:$0xf0] }
 0x173   :  { %v493_v58 = vsub.f32 %v489_v47, %v491_v48  ;;  %v465_v59 = vadd.f32 %v464_v49, %v463_v40  ;;  %v487_v60 = vrot.slane %v486_v50, 1  ;;  %v7443_v40 = vor.u32 %v10361_v4, %v7442_v35  ;;  %v7298_v48 = vld [vmem:[#allocation12 + $0xa8] sm:$0xf]  ;;  %v10325_v49 = vld [vmem:[#allocation12 + $0xb4] sm:$0xf0] }
 0x174   :  { %990 = vmatpush.bf16.msrb.mxu3 %v7331_v23  ;;  %1016 = vmatpush.bf16.msra.mxu1 %v7335_v29  ;;  %v7319_v43 = vor.u32 %v10327_v41, %v7316_v42  ;;  %v7447_v47 = vor.u32 %v10359_v44, %v7444_v45  ;;  %v7299_v55 = vor.u32 %v10325_v49, %v7298_v48  ;;  %v7268_v26 = vld [vmem:[#allocation12 + $0x78] sm:$0xf0]  ;;  %v10347_v30 = vld [vmem:[#allocation12 + $0x16c] sm:$0xf]  ;;  %v10313_v34 = vld [vmem:[#allocation12 + $0x54] sm:$0xf0] }
 0x175   :  { %v11666_v5 = vadd.f32 0.8, %v493_v58  ;;  %v11669_v6 = vmul.f32 %v11658_v21, %v465_v59  ;;  %v488_v7 = vadd.f32 %v487_v60, %v486_v50  ;;  %1029 = vmatpush.bf16.msra.mxu2 %v7463_v33  ;;  %v7426_v50 = vld [vmem:[#allocation12 + $0x1a8] sm:$0xf]  ;;  %v7428_v58 = vld [vmem:[#allocation12 + $0x1b8] sm:$0xf0]  ;;  %v7303_v60 = vor.u32 %v10323_v53, %v7300_v54 }
 0x176   :  { %1004 = vmatpush.bf16.msra.mxu0 %v7443_v40  ;;  %v7427_v56 = vor.u32 %v10357_v52, %v7426_v50  ;;  %v7431_v61 = vor.u32 %v10355_v57, %v7428_v58  ;;  %v7267_v23 = vor.u32 %v10317_v20, %v7266_v19  ;;  %v7395_v28 = vor.u32 %v10349_v24, %v7394_v22  ;;  %v7396_v31 = vld [vmem:[#allocation12 + $0x178] sm:$0xf0]  ;;  %v7250_v33 = vld [vmem:[#allocation12 + $0x48] sm:$0xf]  ;;  %v10345_v40 = vld [vmem:[#allocation12 + $0x154] sm:$0xf0] }
 0x177   :  { %11098 = vrsqrt.f32 %v11666_v5  ;;  %v490_v15 = vmul.f32 %v488_v7, %v11658_v21  ;;  %v492_v16 = vmul.f32 %v11669_v6, %v11669_v6  ;;  %v10319_v7 = vld [vmem:[#allocation12 + $0x8c] sm:$0xf]  ;;  %v7271_v29 = vor.u32 %v10315_v25, %v7268_v26  ;;  %v7378_v35 = vld [vmem:[#allocation12 + $0x148] sm:$0xf]  ;;  %v10309_v52 = vld [vmem:[#allocation12 + $0x34] sm:$0xf0] }
 0x178   :  { %991 = vmatpush.bf16.msrb.mxu3 %v7315_v39  ;;  %1017 = vmatpush.bf16.msra.mxu1 %v7319_v43  ;;  %v7399_v32 = vor.u32 %v10347_v30, %v7396_v31  ;;  %v10311_v41 = vld [vmem:[#allocation12 + $0x4c] sm:$0xf]  ;;  %v7251_v43 = vor.u32 %v10313_v34, %v7250_v33  ;;  %v7379_v44 = vor.u32 %v10345_v40, %v7378_v35  ;;  %v7362_v53 = vld [vmem:[#allocation12 + $0x128] sm:$0xf]  ;;  %v329_v54 = vld [vmem:[#allocation9] sm:$0x3]  ;;  %vm503_vm7 = vweird.f32 %v11666_v5 }
 0x179   :  { %v494_v27 = vsub.f32 %v490_v15, %v492_v16  ;;  %1030 = vmatpush.bf16.msra.mxu2 %v7447_v47  ;;  %v7287_v15 = vor.u32 %v10319_v7, %v7284_v11  ;;  %v10343_v45 = vld [vmem:[#allocation12 + $0x14c] sm:$0xf]  ;;  %v7380_v47 = vld [vmem:[#allocation12 + $0x158] sm:$0xf0] }
 0x17a   :  { %1005 = vmatpush.bf16.msra.mxu0 %v7427_v56  ;;  %v7383_v50 = vor.u32 %v10343_v45, %v7380_v47  ;;  %v10307_v56 = vld [vmem:[#allocation12 + $0x2c] sm:$0xf]  ;;  %v7236_v57 = vld [vmem:[#allocation12 + $0x38] sm:$0xf0]  ;;  %v8202_v45 = vld [vmem:[#allocation16 + $0x5c0] sm:$0xf] }
 0x17b   :  { %v11675_v36 = vadd.f32 0.8, %v494_v27  ;;  %v7239_v7 = vor.u32 %v10307_v56, %v7236_v57  ;;  %v10303_v11 = vld [vmem:[#allocation12 + $0xc] sm:$0xf]  ;;  %v7220_v13 = vld [vmem:[#allocation12 + $0x18] sm:$0xf0] }
 0x17c   :  { %992 = vmatpush.bf16.msrb.mxu3 %v7299_v55  ;;  %1018 = vmatpush.bf16.msra.mxu1 %v7303_v60  ;;  %v10341_v55 = vld [vmem:[#allocation12 + $0x134] sm:$0xf0]  ;;  %v7364_v60 = vld [vmem:[#allocation12 + $0x138] sm:$0xf0]  ;;  %v10554_v47 = vld [vmem:[#allocation16 + $0x5dc] sm:$0xf0] }
 0x17d   :  { %v11677_v46 = vpop.eup %11098  ;;  %11100 = vrsqrt.f32 %v11675_v36  ;;  %1031 = vmatpush.bf16.msra.mxu2 %v7431_v61  ;;  %vm513_vm4 = vweird.f32 %v11675_v36  ;;  %v7363_v1 = vor.u32 %v10341_v55, %v7362_v53  ;;  %v330_v24 = vld [vmem:[#allocation10] sm:$0x3]  ;;  %v7658_v53 = vld [vmem:[#allocation16 + $0x180] sm:$0xf] }
 0x17e   :  { %v498_v51 = vmul.f32 %v11677_v46, %v11666_v5  ;;  %1006 = vmatpush.bf16.msra.mxu0 %v7411_v10  ;;  %vm504_vm6 = vweird.f32 %v11677_v46  ;;  %v10305_v5 = vld [vmem:[#allocation12 + $0x14] sm:$0xf0]  ;;  %v7914_v55 = vld [vmem:[#allocation16 + $0x380] sm:$0xf] }
 0x17f   :  { %vm11705_vm9 = vmor %vm503_vm7, %vm504_vm6  ;;  %v10337_v10 = vld [vmem:[#allocation12 + $0x114] sm:$0xf0]  ;;  %v10482_v57 = vld [vmem:[#allocation16 + $0x39c] sm:$0xf0]  ;;  %vm1162_vm6 = vcmask 1042434  }
 0x180   :  { %v499_v59 = vmul.f32 %v11677_v46, %v498_v51  ;;  %993 = vmatpush.bf16.msrb.mxu3 %v7283_v9  ;;  %1019 = vmatpush.bf16.msra.mxu1 %v7287_v15  ;;  %v7234_v51 = vld [vmem:[#allocation12 + $0x28] sm:$0xf]  ;;  %v7348_v15 = vld [vmem:[#allocation12 + $0x118] sm:$0xf0]  ;;  %v7915_v61 = vor.u32 %v10482_v57, %v7914_v55 }
 0x181   :  { %1032 = vmatpush.bf16.msra.mxu2 %v7415_v17  ;;  %v7235_v63 = vor.u32 %v10309_v52, %v7234_v51  ;;  %v7346_v9 = vld [vmem:[#allocation12 + $0x108] sm:$0xf] }
 0x182   :  { %v500_v2 = vmul.f32 0.5, %v499_v59  ;;  %1007 = vmatpush.bf16.msra.mxu0 %v7395_v28  ;;  %v10339_v59 = vld [vmem:[#allocation12 + $0x12c] sm:$0xf]  ;;  %v10618_v51 = vld [vmem:[#allocation16 + $0x7dc] sm:$0xf0] }
 0x183   :  { %v11683_v8 = vpop.eup %11100  ;;  %v7818_v57 = vld [vmem:[#allocation16 + $0x2c0] sm:$0xf] }
 0x184   :  { %v508_v14 = vmul.f32 %v11683_v8, %v11675_v36  ;;  %v501_v16 = vsub.f32 1.5, %v500_v2  ;;  %vm514_vm3 = vweird.f32 %v11683_v8  ;;  %994 = vmatpush.bf16.msrb.mxu3 %v7267_v23  ;;  %v7252_v36 = vld [vmem:[#allocation12 + $0x58] sm:$0xf0]  ;;  %1020 = vmatpush.bf16.msra.mxu1 %v7271_v29  ;;  %v7218_v2 = vld [vmem:[#allocation12 + $0x8] sm:$0xf] }
 0x185   :  { %vm11692_vm5 = vmor %vm513_vm4, %vm514_vm3  ;;  %1033 = vmatpush.bf16.msra.mxu2 %v7399_v32  ;;  %v7255_v49 = vor.u32 %v10311_v41, %v7252_v36  ;;  %v7219_v17 = vor.u32 %v10305_v5, %v7218_v2  ;;  %v7690_v41 = vld [vmem:[#allocation16 + $0x1c0] sm:$0xf] }
 0x186   :  { %v509_v18 = vmul.f32 %v11683_v8, %v508_v14  ;;  %v502_v42 = vmul.f32 %v11677_v46, %v501_v16  ;;  %1008 = vmatpush.bf16.msra.mxu0 %v7379_v44  ;;  %v10335_v14 = vld [vmem:[#allocation12 + $0x10c] sm:$0xf]  ;;  %v10490_v36 = vld [vmem:[#allocation16 + $0x3dc] sm:$0xf0] }
 0x187   :  { %v7351_v22 = vor.u32 %v10335_v14, %v7348_v15 }
 0x188   :  { %v510_v27 = vmul.f32 0.5, %v509_v18  ;;  %995 = vmatpush.bf16.msrb.mxu3 %v7251_v43  ;;  %v506_v3 = vsel %vm11705_vm9, %v11677_v46, %v502_v42  ;;  %1021 = vmatpush.bf16.msra.mxu1 %v7255_v49  ;;  %v7347_v18 = vor.u32 %v10337_v10, %v7346_v9  ;;  %v7223_v46 = vor.u32 %v10303_v11, %v7220_v13  ;;  %v7946_v42 = vld [vmem:[#allocation16 + $0x3c0] sm:$0xf] }
 0x189   :  { %1034 = vmatpush.bf16.msra.mxu2 %v7383_v50  ;;  %v8203_v49 = vor.u32 %v10554_v47, %v8202_v45  ;;  %v8458_v50 = vld [vmem:[#allocation16 + $0x7c0] sm:$0xf] }
 0x18a   :  { %v511_v4 = vsub.f32 1.5, %v510_v27  ;;  %1009 = vmatpush.bf16.msra.mxu0 %v7363_v1  ;;  %v8459_v52 = vor.u32 %v10618_v51, %v8458_v50  ;;  %v10610_v1 = vld [vmem:[#allocation16 + $0x79c] sm:$0xf0] }
 0x18b   :  { %v7626_v9 = vld [vmem:[#allocation16 + $0x140] sm:$0xf] }
 0x18c   :  { %v512_v48 = vmul.f32 %v11683_v8, %v511_v4  ;;  %996 = vmatpush.bf16.msrb.mxu3 %v7235_v63  ;;  %1022 = vmatpush.bf16.msra.mxu1 %v7239_v7  ;;  %v8426_v63 = vld [vmem:[#allocation16 + $0x780] sm:$0xf] }
 0x18d   :  { %v10410_v10 = vld [vmem:[#allocation16 + $0x15c] sm:$0xf0] }
 0x18e   :  { %v516_v58 = vsel %vm11692_vm5, %v11683_v8, %v512_v48  ;;  %v7367_v8 = vor.u32 %v10339_v59, %v7364_v60  ;;  %1010 = vmatpush.bf16.msra.mxu0 %v7347_v18  ;;  %v7947_v48 = vor.u32 %v10490_v36, %v7946_v42  ;;  %v10546_v59 = vld [vmem:[#allocation16 + $0x59c] sm:$0xf0]  ;;  %v7627_v15 = vor.u32 %v10410_v10, %v7626_v9 }
 0x18f   :  { %v519_v62 = vrot.slane %v516_v58, 7  ;;  %v8170_v58 = vld [vmem:[#allocation16 + $0x580] sm:$0xf] }
 0x190   :  { %1035 = vmatpush.bf16.msra.mxu2 %v7367_v8  ;;  %997 = vmatpush.bf16.msrb.mxu3 %v7219_v17  ;;  %v7882_v11 = vld [vmem:[#allocation16 + $0x340] sm:$0xf] }
 0x191   :  { %v521_v12 = vsel %vm520_vm8, %v506_v3, %v519_v62  ;;  %1023 = vmatpush.bf16.msra.mxu1 %v7223_v46  ;;  %v8171_v62 = vor.u32 %v10546_v59, %v8170_v58  ;;  %v8427_v3 = vor.u32 %v10610_v1, %v8426_v63  ;;  %v8138_v17 = vld [vmem:[#allocation16 + $0x540] sm:$0xf] }
 0x192   :  { %v523_v16 = vmul.f32 %v521_v12, %v329_v54  ;;  %v10418_v54 = vld [vmem:[#allocation16 + $0x19c] sm:$0xf0] }
 0x193   :  { %v7659_v56 = vor.u32 %v10418_v54, %v7658_v53  ;;  %v10538_v46 = vld [vmem:[#allocation16 + $0x55c] sm:$0xf0] }
 0x194   :  { %v525_v19 = vperm.slane %v523_v16, 0  ;;  %v526_v20 = vperm.slane %v523_v16, 1  ;;  %1036 = vmatpush.bf16.msra.mxu2 %v7351_v22  ;;  %v10474_v16 = vld [vmem:[#allocation16 + $0x35c] sm:$0xf0] }
 0x195   :  { %v8394_v22 = vld [vmem:[#allocation16 + $0x740] sm:$0xf] }
 0x196   :  { %v530_v23 = vmul.f32 %v526_v20, %v11669_v6  ;;  %v529_v25 = vmul.f32 %v525_v19, %v11661_v37  ;;  %v538_v29 = vmul.f32 %v526_v20, %v11649_v0  ;;  %v537_v31 = vmul.f32 %v525_v19, %v11640_v38  ;;  %v10426_v38 = vld [vmem:[#allocation16 + $0x1dc] sm:$0xf0] }
 0x197   :  { %v7691_v44 = vor.u32 %v10426_v38, %v7690_v41  ;;  %v7883_v20 = vor.u32 %v10474_v16, %v7882_v11  ;;  %v10530_v41 = vld [vmem:[#allocation16 + $0x51c] sm:$0xf0] }
 0x198   :  { %v533_v26 = vrot.slane %v530_v23, 7  ;;  %v8362_v36 = vld [vmem:[#allocation16 + $0x700] sm:$0xf] }
 0x199   :  { %v10594_v45 = vld [vmem:[#allocation16 + $0x71c] sm:$0xf0] }
 0x19a   :  { %v534_v27 = vsel %vm520_vm8, %v529_v25, %v533_v26  ;;  %v8139_v25 = vor.u32 %v10538_v46, %v8138_v17  ;;  %v10602_v26 = vld [vmem:[#allocation16 + $0x75c] sm:$0xf0]  ;;  %v8363_v50 = vor.u32 %v10594_v45, %v8362_v36 }
 0x19b   :  { %v536_v28 = vsub.f32 %v330_v24, %v534_v27  ;;  %v7562_v51 = vld [vmem:[#allocation16 + $0xc0] sm:$0xf] }
 0x19c   :  { %v10458_v58 = vld [vmem:[#allocation16 + $0x2dc] sm:$0xf0] }
 0x19d   :  { %v541_v30 = vperm.slane %v536_v28, 1  ;;  %v540_v32 = vperm.slane %v536_v28, 0  ;;  %v10522_v63 = vld [vmem:[#allocation16 + $0x4dc] sm:$0xf0] }
 0x19e   :  { %v10586_v9 = vld [vmem:[#allocation16 + $0x6dc] sm:$0xf0] }
 0x19f   :  { %v545_v33 = vadd.f32 %v541_v30, %v538_v29  ;;  %v544_v34 = vadd.f32 %v540_v32, %v537_v31  ;;  %v8395_v29 = vor.u32 %v10602_v26, %v8394_v22  ;;  %v7594_v30 = vld [vmem:[#allocation16 + $0x100] sm:$0xf] }
 0x1a0   :  { %v10402_v31 = vld [vmem:[#allocation16 + $0x11c] sm:$0xf0] }
 0x1a1   :  { %v547_v6 = vmul.f32 0.2, %v545_v33  ;;  %v546_v35 = vmul.f32 0.2, %v544_v34  ;;  %v8298_v26 = vld [vmem:[#allocation16 + $0x680] sm:$0xf] }
 0x1a3   :  { %v548_v4 = vmax.f32 %v544_v34, %v546_v35  ;;  %v549_v39 = vmax.f32 %v545_v33, %v547_v6  ;;  %v7595_v34 = vor.u32 %v10402_v31, %v7594_v30  ;;  %v7850_v6 = vld [vmem:[#allocation16 + $0x300] sm:$0xf] }
 0x1a4   :  { %v10466_v35 = vld [vmem:[#allocation16 + $0x31c] sm:$0xf0] }
 0x1a5   :  { %v552_v40 = vpack.c.bf16 %v548_v4, %v548_v4  ;;  %v553_v37 = vpack.c.bf16 %v549_v39, %v549_v39 }
 0x1a7   :  { %946 = vmatmul.bf16.vlgmr.msra.gmra.mxu3 %v552_v40  ;;  %959 = vmatmul.bf16.vlgmr.msrb.gmra.mxu0 %v553_v37 }
 0x1a8   :  { %972 = vmatmul.bf16.vlgmr.msrb.gmra.mxu1 %v552_v40  ;;  %985 = vmatmul.bf16.vlgmr.msrb.gmra.mxu2 %v553_v37 }
 0x1a9   :  { %2759 = vmatpush.bf16.msra.mxu3 %v7691_v44  ;;  %2772 = vmatpush.bf16.msrb.mxu0 %v7947_v48 }
 0x1aa   :  { %2785 = vmatpush.bf16.msrb.mxu1 %v8203_v49  ;;  %2798 = vmatpush.bf16.msrb.mxu2 %v8459_v52  ;;  %v10394_v52 = vld [vmem:[#allocation16 + $0xdc] sm:$0xf0] }
 0x1ad   :  { %2760 = vmatpush.bf16.msra.mxu3 %v7659_v56  ;;  %2773 = vmatpush.bf16.msrb.mxu0 %v7915_v61  ;;  %v7563_v56 = vor.u32 %v10394_v52, %v7562_v51  ;;  %v7819_v61 = vor.u32 %v10458_v58, %v7818_v57 }
 0x1ae   :  { %2786 = vmatpush.bf16.msrb.mxu1 %v8171_v62  ;;  %2799 = vmatpush.bf16.msrb.mxu2 %v8427_v3  ;;  %v8074_v62 = vld [vmem:[#allocation16 + $0x4c0] sm:$0xf] }
 0x1af   :  { %v8075_v3 = vor.u32 %v10522_v63, %v8074_v62 }
 0x1b1   :  { %2761 = vmatpush.bf16.msra.mxu3 %v7627_v15  ;;  %2774 = vmatpush.bf16.msrb.mxu0 %v7883_v20  ;;  %v8042_v20 = vld [vmem:[#allocation16 + $0x480] sm:$0xf] }
 0x1b2   :  { %2787 = vmatpush.bf16.msrb.mxu1 %v8139_v25  ;;  %2800 = vmatpush.bf16.msrb.mxu2 %v8395_v29  ;;  %v10514_v25 = vld [vmem:[#allocation16 + $0x49c] sm:$0xf0] }
 0x1b3   :  { %v8043_v31 = vor.u32 %v10514_v25, %v8042_v20  ;;  %v8234_v20 = vld [vmem:[#allocation16 + $0x600] sm:$0xf] }
 0x1b5   :  { %2762 = vmatpush.bf16.msra.mxu3 %v7595_v34 }
 0x1b6   :  { %2801 = vmatpush.bf16.msrb.mxu2 %v8363_v50  ;;  %v8266_v50 = vld [vmem:[#allocation16 + $0x640] sm:$0xf] }
 0x1b7   :  { %998 = vmatmul.bf16.vlgmr.msrb.gmra.mxu3 %v552_v40  ;;  %1011 = vmatmul.bf16.vlgmr.msra.gmra.mxu0 %v553_v37 }
 0x1b8   :  { %1024 = vmatmul.bf16.vlgmr.msra.gmra.mxu1 %v552_v40  ;;  %1037 = vmatmul.bf16.vlgmr.msra.gmra.mxu2 %v553_v37  ;;  %v7851_v37 = vor.u32 %v10466_v35, %v7850_v6 }
 0x1b9   :  { %2763 = vmatpush.bf16.msra.mxu3 %v7563_v56 }
 0x1ba   :  { %2775 = vmatpush.bf16.msrb.mxu0 %v7851_v37 }
 0x1be   :  { %2776 = vmatpush.bf16.msrb.mxu0 %v7819_v61  ;;  %v10370_v61 = vld [vmem:[#allocation16 + $0x1c] sm:$0xf0] }
 0x224   :  { %v960_v0 = vpop.f32.mrf.mxu0 }
 0x225   :  { %v973_v43 = vpop.f32.mrf.mxu1 }
 0x22a   :  { %v947_v60 = vpop.f32.mrf.mxu3 }
 0x22b   :  { %v11718_v2 = vadd.f32 %v960_v0, %v947_v60  ;;  %v986_v5 = vpop.f32.mrf.mxu2  ;;  %v8106_v0 = vld [vmem:[#allocation16 + $0x500] sm:$0xf] }
 0x22c   :  { %v11720_v7 = vadd.f32 %v986_v5, %v973_v43  ;;  %v962_v8 = vpop.f32.mrf.mxu0  ;;  %v8107_v44 = vor.u32 %v10530_v41, %v8106_v0 }
 0x22d   :  { %v1042_v12 = vrot.slane %v11718_v2, 4  ;;  %v1070_v13 = vmul.f32 %v11718_v2, %v11718_v2  ;;  %v975_v14 = vpop.f32.mrf.mxu1  ;;  %v8330_v8 = vld [vmem:[#allocation16 + $0x6c0] sm:$0xf] }
 0x22e   :  { %v1048_v18 = vrot.slane %v11720_v7, 4  ;;  %v1071_v19 = vmul.f32 %v11720_v7, %v11720_v7  ;;  %2788 = vmatpush.bf16.msrb.mxu1 %v8107_v44  ;;  %v10386_v14 = vld [vmem:[#allocation16 + $0x9c] sm:$0xf0] }
 0x22f   :  { %v1043_v23 = vadd.f32 %v1042_v12, %v11718_v2  ;;  %v1074_v24 = vrot.slane %v1070_v13, 4  ;;  %v8331_v12 = vor.u32 %v10586_v9, %v8330_v8  ;;  %v8010_v44 = vld [vmem:[#allocation16 + $0x440] sm:$0xf] }
 0x230   :  { %v1049_v27 = vadd.f32 %v1048_v18, %v11720_v7  ;;  %v1080_v28 = vrot.slane %v1071_v19, 4  ;;  %v7786_v18 = vld [vmem:[#allocation16 + $0x280] sm:$0xf] }
 0x231   :  { %v1044_v32 = vrot.slane %v1043_v23, 2  ;;  %v1075_v33 = vadd.f32 %v1074_v24, %v1070_v13  ;;  %v7530_v13 = vld [vmem:[#allocation16 + $0x80] sm:$0xf]  ;;  %2802 = vmatpush.bf16.msrb.mxu2 %v8331_v12 }
 0x232   :  { %v1050_v4 = vrot.slane %v1049_v27, 2  ;;  %v1081_v39 = vadd.f32 %v1080_v28, %v1071_v19  ;;  %v949_v40 = vpop.f32.mrf.mxu3  ;;  %2789 = vmatpush.bf16.msrb.mxu1 %v8075_v3  ;;  %v7531_v17 = vor.u32 %v10386_v14, %v7530_v13  ;;  %v10450_v19 = vld [vmem:[#allocation16 + $0x29c] sm:$0xf0] }
 0x233   :  { %v1045_v38 = vadd.f32 %v1044_v32, %v1043_v23  ;;  %v1076_v42 = vrot.slane %v1075_v33, 2  ;;  %v988_v43 = vpop.f32.mrf.mxu2  ;;  %v7787_v24 = vor.u32 %v10450_v19, %v7786_v18  ;;  %v7754_v40 = vld [vmem:[#allocation16 + $0x240] sm:$0xf] }
 0x234   :  { %v1051_v47 = vadd.f32 %v1050_v4, %v1049_v27  ;;  %v1082_v48 = vrot.slane %v1081_v39, 2  ;;  %v1012_v49 = vpop.f32.mrf.mxu0  ;;  %v10578_v27 = vld [vmem:[#allocation16 + $0x69c] sm:$0xf0]  ;;  %2764 = vmatpush.bf16.msra.mxu3 %v7531_v17 }
 0x235   :  { %v1046_v53 = vrot.slane %v1045_v38, 1  ;;  %v1077_v54 = vadd.f32 %v1076_v42, %v1075_v33  ;;  %v1025_v55 = vpop.f32.mrf.mxu1  ;;  %2777 = vmatpush.bf16.msrb.mxu0 %v7787_v24  ;;  %v8299_v35 = vor.u32 %v10578_v27, %v8298_v26  ;;  %v7498_v4 = vld [vmem:[#allocation16 + $0x40] sm:$0xf]  ;;  %v7692_v27 = vld [vmem:[#allocation16 + $0x1e0] sm:$0xf0] }
 0x236   :  { %v1052_v59 = vrot.slane %v1051_v47, 1  ;;  %v1083_v60 = vadd.f32 %v1082_v48, %v1081_v39  ;;  %v10378_v39 = vld [vmem:[#allocation16 + $0x5c] sm:$0xf0]  ;;  %2790 = vmatpush.bf16.msrb.mxu1 %v8043_v31 }
 0x237   :  { %v1047_v1 = vadd.f32 %v1046_v53, %v1045_v38  ;;  %v1078_v5 = vrot.slane %v1077_v54, 1  ;;  %v7499_v42 = vor.u32 %v10378_v39, %v7498_v4  ;;  %v10442_v43 = vld [vmem:[#allocation16 + $0x25c] sm:$0xf0]  ;;  %2803 = vmatpush.bf16.msrb.mxu2 %v8299_v35 }
 0x238   :  { %v1053_v10 = vadd.f32 %v1052_v59, %v1051_v47  ;;  %v1084_v11 = vrot.slane %v1083_v60, 1  ;;  %v7755_v48 = vor.u32 %v10442_v43, %v7754_v40  ;;  %v7722_v3 = vld [vmem:[#allocation16 + $0x200] sm:$0xf]  ;;  %v10550_v40 = vld [vmem:[#allocation16 + $0x5c4] sm:$0xf] }
 0x239   :  { %v11731_v15 = vmul.f32 %v1047_v1, %v11658_v21  ;;  %v1079_v16 = vadd.f32 %v1078_v5, %v1077_v54  ;;  %2765 = vmatpush.bf16.msra.mxu3 %v7499_v42  ;;  %v10570_v54 = vld [vmem:[#allocation16 + $0x65c] sm:$0xf0]  ;;  %v8460_v42 = vld [vmem:[#allocation16 + $0x7e0] sm:$0xf0] }
 0x23a   :  { %v11734_v46 = vmul.f32 %v1053_v10, %v11658_v21  ;;  %v1085_v22 = vadd.f32 %v1084_v11, %v1083_v60  ;;  %v999_v23 = vpop.f32.mrf.mxu3  ;;  %2778 = vmatpush.bf16.msrb.mxu0 %v7755_v48  ;;  %v8267_v57 = vor.u32 %v10570_v54, %v8266_v50  ;;  %v7466_v60 = vld [vmem:[#allocation16] sm:$0xf] }
 0x23b   :  { %v11737_v28 = vmul.f32 %v1079_v16, %v11658_v21  ;;  %v11739_v29 = vadd.f32 %v1012_v49, %v999_v23  ;;  %v1038_v30 = vpop.f32.mrf.mxu2  ;;  %v1102_v37 = vmul.f32 %v11731_v15, %v11731_v15  ;;  %v10506_v49 = vld [vmem:[#allocation16 + $0x45c] sm:$0xf0]  ;;  %v7467_v12 = vor.u32 %v10370_v61, %v7466_v60  ;;  %v10422_v23 = vld [vmem:[#allocation16 + $0x1c4] sm:$0xf] }
 0x23c   :  { %v1099_v32 = vmul.f32 %v1085_v22, %v11658_v21  ;;  %v1103_v33 = vmul.f32 %v11734_v46, %v11734_v46  ;;  %v11744_v34 = vadd.f32 %v1038_v30, %v1025_v55  ;;  %v1014_v6 = vpop.f32.mrf.mxu0  ;;  %v8011_v53 = vor.u32 %v10506_v49, %v8010_v44  ;;  %2804 = vmatpush.bf16.msrb.mxu2 %v8267_v57  ;;  %v10434_v8 = vld [vmem:[#allocation16 + $0x21c] sm:$0xf0]  ;;  %v8428_v60 = vld [vmem:[#allocation16 + $0x7a0] sm:$0xf0] }
 0x23d   :  { %v1054_v0 = vrot.slane %v11739_v29, 4  ;;  %v1072_v41 = vmul.f32 %v11739_v29, %v11739_v29  ;;  %v1027_v38 = vpop.f32.mrf.mxu1  ;;  %v1106_v62 = vsub.f32 %v11737_v28, %v1102_v37  ;;  %v7723_v13 = vor.u32 %v10434_v8, %v7722_v3  ;;  %v7978_v14 = vld [vmem:[#allocation16 + $0x400] sm:$0xf]  ;;  %2766 = vmatpush.bf16.msra.mxu3 %v7467_v12  ;;  %v10486_v28 = vld [vmem:[#allocation16 + $0x3c4] sm:$0xf] }
 0x23e   :  { %v1107_v36 = vsub.f32 %v1099_v32, %v1103_v33  ;;  %v1060_v45 = vrot.slane %v11744_v34, 4  ;;  %v1073_v47 = vmul.f32 %v11744_v34, %v11744_v34  ;;  %2791 = vmatpush.bf16.msrb.mxu1 %v8011_v53  ;;  %v10498_v16 = vld [vmem:[#allocation16 + $0x41c] sm:$0xf0]  ;;  %v7695_v33 = vor.u32 %v10422_v23, %v7692_v27  ;;  %v7948_v6 = vld [vmem:[#allocation16 + $0x3e0] sm:$0xf0] }
 0x23f   :  { %v1055_v51 = vadd.f32 %v1054_v0, %v11739_v29  ;;  %v1086_v52 = vrot.slane %v1072_v41, 4  ;;  %v7979_v19 = vor.u32 %v10498_v16, %v7978_v14  ;;  %v10562_v22 = vld [vmem:[#allocation16 + $0x61c] sm:$0xf0]  ;;  %2779 = vmatpush.bf16.msrb.mxu0 %v7723_v13  ;;  %v11760_v30 = vadd.f32 0.8, %v1106_v62 }
 0x240   :  { %v11755_v55 = vadd.f32 0.8, %v1107_v36  ;;  %v1061_v56 = vadd.f32 %v1060_v45, %v11744_v34  ;;  %v1092_v1 = vrot.slane %v1073_v47, 4  ;;  %v8235_v26 = vor.u32 %v10562_v22, %v8234_v20  ;;  %v8204_v37 = vld [vmem:[#allocation16 + $0x5e0] sm:$0xf0] }
 0x241   :  { %v1056_v58 = vrot.slane %v1055_v51, 2  ;;  %v1087_v59 = vadd.f32 %v1086_v52, %v1072_v41  ;;  %v7951_v39 = vor.u32 %v10486_v28, %v7948_v6  ;;  %2811 = vmatpush.bf16.msrb.mxu3 %v7695_v33  ;;  %v10614_v38 = vld [vmem:[#allocation16 + $0x7c4] sm:$0xf]  ;;  %vm1120_vm5 = vweird.f32 %v11760_v30 }
 0x242   :  { %v1062_v63 = vrot.slane %v1061_v56, 2  ;;  %v1001_v5 = vpop.f32.mrf.mxu3  ;;  %11102 = vrsqrt.f32 %v11755_v55  ;;  %v1093_v18 = vadd.f32 %v1092_v1, %v1073_v47  ;;  %2792 = vmatpush.bf16.msrb.mxu1 %v7979_v19  ;;  %2805 = vmatpush.bf16.msrb.mxu2 %v8235_v26  ;;  %v10414_v36 = vld [vmem:[#allocation16 + $0x184] sm:$0xf]  ;;  %v8463_v57 = vor.u32 %v10614_v38, %v8460_v42 }
 0x243   :  { %v1057_v9 = vadd.f32 %v1056_v58, %v1055_v51  ;;  %v1088_v10 = vrot.slane %v1087_v59, 2  ;;  %v1040_v11 = vpop.f32.mrf.mxu2  ;;  %2824 = vmatpush.bf16.msra.mxu0 %v7951_v39  ;;  %v7660_v45 = vld [vmem:[#allocation16 + $0x1a0] sm:$0xf0]  ;;  %11104 = vrsqrt.f32 %v11760_v30  ;;  %v8207_v51 = vor.u32 %v10550_v40, %v8204_v37 }
 0x244   :  { %v1063_v17 = vadd.f32 %v1062_v63, %v1061_v56  ;;  %v1094_v32 = vrot.slane %v1093_v18, 2  ;;  %v10478_v47 = vld [vmem:[#allocation16 + $0x384] sm:$0xf]  ;;  %v7663_v63 = vor.u32 %v10414_v36, %v7660_v45  ;;  %vm1130_vm12 = vweird.f32 %v11755_v55 }
 0x245   :  { %v1058_v24 = vrot.slane %v1057_v9, 1  ;;  %v1089_v25 = vadd.f32 %v1088_v10, %v1087_v59  ;;  %v7916_v52 = vld [vmem:[#allocation16 + $0x3a0] sm:$0xf0] }
 0x246   :  { %v1064_v31 = vrot.slane %v1063_v17, 1  ;;  %v1095_v41 = vadd.f32 %v1094_v32, %v1093_v18  ;;  %v10542_v53 = vld [vmem:[#allocation16 + $0x584] sm:$0xf]  ;;  %2837 = vmatpush.bf16.msra.mxu1 %v8207_v51  ;;  %2850 = vmatpush.bf16.msra.mxu2 %v8463_v57 }
 0x247   :  { %v1059_v35 = vadd.f32 %v1058_v24, %v1057_v9  ;;  %v1090_v4 = vrot.slane %v1089_v25, 1  ;;  %v8172_v58 = vld [vmem:[#allocation16 + $0x5a0] sm:$0xf0]  ;;  %v7919_v9 = vor.u32 %v10478_v47, %v7916_v52  ;;  %2812 = vmatpush.bf16.msrb.mxu3 %v7663_v63 }
 0x248   :  { %v1065_v0 = vadd.f32 %v1064_v31, %v1063_v17  ;;  %v11765_v48 = vpop.eup %11102  ;;  %v1096_v50 = vrot.slane %v1095_v41, 1  ;;  %v10606_v59 = vld [vmem:[#allocation16 + $0x784] sm:$0xf]  ;;  %v8175_v10 = vor.u32 %v10542_v53, %v8172_v58 }
 0x249   :  { %v11763_v43 = vmul.f32 %v1059_v35, %v11658_v21  ;;  %v1091_v44 = vadd.f32 %v1090_v4, %v1089_v25  ;;  %v10406_v1 = vld [vmem:[#allocation16 + $0x144] sm:$0xf]  ;;  %v1125_v3 = vmul.f32 %v11765_v48, %v11755_v55  ;;  %v8431_v14 = vor.u32 %v10606_v59, %v8428_v60  ;;  %2825 = vmatpush.bf16.msra.mxu0 %v7919_v9  ;;  %v11781_v23 = vpop.eup %11104  ;;  %v8210_v55 = vld [vmem:[#allocation16 + $0x5c8] sm:$0xf] }
 0x24a   :  { %v11769_v49 = vmul.f32 %v1065_v0, %v11658_v21  ;;  %v1097_v61 = vadd.f32 %v1096_v50, %v1095_v41  ;;  %v7628_v5 = vld [vmem:[#allocation16 + $0x160] sm:$0xf0]  ;;  %2838 = vmatpush.bf16.msra.mxu1 %v8175_v10  ;;  %v1115_v0 = vmul.f32 %v11781_v23, %v11760_v30  ;;  %vm1131_vm10 = vweird.f32 %v11765_v48 }
 0x24b   :  { %v1100_v54 = vmul.f32 %v1091_v44, %v11658_v21  ;;  %v1104_v56 = vmul.f32 %v11763_v43, %v11763_v43  ;;  %v10470_v11 = vld [vmem:[#allocation16 + $0x344] sm:$0xf]  ;;  %v7631_v16 = vor.u32 %v10406_v1, %v7628_v5  ;;  %v1126_v31 = vmul.f32 %v11765_v48, %v1125_v3  ;;  %2851 = vmatpush.bf16.msra.mxu2 %v8431_v14  ;;  %vm11807_vm13 = vmor %vm1130_vm12, %vm1131_vm10 }
 0x24c   :  { %v1105_v62 = vmul.f32 %v11769_v49, %v11769_v49  ;;  %v7884_v12 = vld [vmem:[#allocation16 + $0x360] sm:$0xf0]  ;;  %v1101_v13 = vmul.f32 %v1097_v61, %v11658_v21  ;;  %v1116_v59 = vmul.f32 %v11781_v23, %v1115_v0  ;;  %vm1121_vm2 = vweird.f32 %v11781_v23 }
 0x24d   :  { %v1108_v8 = vsub.f32 %v1100_v54, %v1104_v56  ;;  %v10534_v17 = vld [vmem:[#allocation16 + $0x544] sm:$0xf]  ;;  %v7887_v20 = vor.u32 %v10470_v11, %v7884_v12  ;;  %2813 = vmatpush.bf16.msrb.mxu3 %v7631_v16  ;;  %v1127_v50 = vmul.f32 0.5, %v1126_v31  ;;  %vm1122_vm7 = vmor %vm1120_vm5, %vm1121_vm2 }
 0x24e   :  { %v8140_v18 = vld [vmem:[#allocation16 + $0x560] sm:$0xf0]  ;;  %v1109_v24 = vsub.f32 %v1101_v13, %v1105_v62 }
 0x24f   :  { %v11779_v19 = vadd.f32 0.8, %v1108_v8  ;;  %v10598_v22 = vld [vmem:[#allocation16 + $0x744] sm:$0xf]  ;;  %v8143_v25 = vor.u32 %v10534_v17, %v8140_v18  ;;  %2826 = vmatpush.bf16.msra.mxu0 %v7887_v20  ;;  %v1128_v8 = vsub.f32 1.5, %v1127_v50  ;;  %v1117_v18 = vmul.f32 0.5, %v1116_v59 }
 0x250   :  { %v8396_v26 = vld [vmem:[#allocation16 + $0x760] sm:$0xf0]  ;;  %v11785_v4 = vadd.f32 0.8, %v1109_v24 }
 0x251   :  { %v10398_v27 = vld [vmem:[#allocation16 + $0x104] sm:$0xf]  ;;  %11106 = vrsqrt.f32 %v11779_v19  ;;  %v8399_v32 = vor.u32 %v10598_v22, %v8396_v26  ;;  %2839 = vmatpush.bf16.msra.mxu1 %v8143_v25  ;;  %vm1140_vm14 = vweird.f32 %v11779_v19 }
 0x252   :  { %v7596_v28 = vld [vmem:[#allocation16 + $0x120] sm:$0xf0]  ;;  %11108 = vrsqrt.f32 %v11785_v4  ;;  %vm1150_vm3 = vweird.f32 %v11785_v4 }
 0x253   :  { %v10462_v33 = vld [vmem:[#allocation16 + $0x304] sm:$0xf]  ;;  %v7599_v39 = vor.u32 %v10398_v27, %v7596_v28  ;;  %2852 = vmatpush.bf16.msra.mxu2 %v8399_v32  ;;  %v1129_v32 = vmul.f32 %v11765_v48, %v1128_v8 }
 0x254   :  { %v7852_v6 = vld [vmem:[#allocation16 + $0x320] sm:$0xf0] }
 0x255   :  { %v10526_v35 = vld [vmem:[#allocation16 + $0x504] sm:$0xf]  ;;  %v7855_v41 = vor.u32 %v10462_v33, %v7852_v6  ;;  %2814 = vmatpush.bf16.msrb.mxu3 %v7599_v39 }
 0x256   :  { %v8108_v40 = vld [vmem:[#allocation16 + $0x520] sm:$0xf0] }
 0x257   :  { %v10590_v37 = vld [vmem:[#allocation16 + $0x704] sm:$0xf]  ;;  %v8111_v36 = vor.u32 %v10526_v35, %v8108_v40  ;;  %v11790_v58 = vpop.eup %11106  ;;  %2827 = vmatpush.bf16.msra.mxu0 %v7855_v41 }
 0x258   :  { %v8364_v38 = vld [vmem:[#allocation16 + $0x720] sm:$0xf0]  ;;  %v1135_v63 = vmul.f32 %v11790_v58, %v11779_v19  ;;  %v11795_v12 = vpop.eup %11108  ;;  %vm1141_vm11 = vweird.f32 %v11790_v58 }
 0x259   :  { %v10390_v42 = vld [vmem:[#allocation16 + $0xc4] sm:$0xf]  ;;  %v8367_v51 = vor.u32 %v10590_v37, %v8364_v38  ;;  %2840 = vmatpush.bf16.msra.mxu1 %v8111_v36  ;;  %v1145_v20 = vmul.f32 %v11795_v12, %v11785_v4  ;;  %v1118_v38 = vsub.f32 1.5, %v1117_v18  ;;  %vm11815_vm15 = vmor %vm1140_vm14, %vm1141_vm11  ;;  %vm1151_vm1 = vweird.f32 %v11795_v12 }
 0x25a   :  { %v7564_v44 = vld [vmem:[#allocation16 + $0xe0] sm:$0xf0]  ;;  %v1136_v13 = vmul.f32 %v11790_v58, %v1135_v63  ;;  %vm1152_vm4 = vmor %vm1150_vm3, %vm1151_vm1 }
 0x25b   :  { %v10454_v45 = vld [vmem:[#allocation16 + $0x2c4] sm:$0xf]  ;;  %v7567_v54 = vor.u32 %v10390_v42, %v7564_v44  ;;  %2853 = vmatpush.bf16.msra.mxu2 %v8367_v51  ;;  %v1146_v33 = vmul.f32 %v11795_v12, %v1145_v20 }
 0x25c   :  { %v7820_v47 = vld [vmem:[#allocation16 + $0x2e0] sm:$0xf0]  ;;  %v1137_v26 = vmul.f32 0.5, %v1136_v13 }
 0x25d   :  { %v10518_v52 = vld [vmem:[#allocation16 + $0x4c4] sm:$0xf]  ;;  %v7823_v60 = vor.u32 %v10454_v45, %v7820_v47  ;;  %2815 = vmatpush.bf16.msrb.mxu3 %v7567_v54  ;;  %v1147_v42 = vmul.f32 0.5, %v1146_v33  ;;  %v1133_v54 = vsel %vm11807_vm13, %v11765_v48, %v1129_v32  ;;  %v551_v32 = vld [vmem:[#allocation15] sm:$0xf] }
 0x25e   :  { %v8076_v53 = vld [vmem:[#allocation16 + $0x4e0] sm:$0xf0]  ;;  %v1138_v40 = vsub.f32 1.5, %v1137_v26  ;;  %v10427_v47 = vld [vmem:[#allocation16 + $0x1e4] sm:$0xf0] }
 0x25f   :  { %v10582_v56 = vld [vmem:[#allocation16 + $0x6c4] sm:$0xf]  ;;  %v8079_v1 = vor.u32 %v10518_v52, %v8076_v53  ;;  %2828 = vmatpush.bf16.msra.mxu0 %v7823_v60 }
 0x260   :  { %v8332_v57 = vld [vmem:[#allocation16 + $0x6e0] sm:$0xf0]  ;;  %v1139_v50 = vmul.f32 %v11790_v58, %v1138_v40 }
 0x261   :  { %v10382_v61 = vld [vmem:[#allocation16 + $0x84] sm:$0xf]  ;;  %v8335_v9 = vor.u32 %v10582_v56, %v8332_v57  ;;  %2841 = vmatpush.bf16.msra.mxu1 %v8079_v1  ;;  %v1148_v56 = vsub.f32 1.5, %v1147_v42  ;;  %v1119_v1 = vmul.f32 %v11781_v23, %v1118_v38 }
 0x262   :  { %v7532_v62 = vld [vmem:[#allocation16 + $0xa0] sm:$0xf0]  ;;  %v1143_v60 = vsel %vm11815_vm15, %v11790_v58, %v1139_v50  ;;  %v7954_v50 = vld [vmem:[#allocation16 + $0x3c8] sm:$0xf] }
 0x263   :  { %v10446_v5 = vld [vmem:[#allocation16 + $0x284] sm:$0xf]  ;;  %v7535_v14 = vor.u32 %v10382_v61, %v7532_v62  ;;  %2854 = vmatpush.bf16.msra.mxu2 %v8335_v9  ;;  %v1149_v48 = vmul.f32 %v11795_v12, %v1148_v56  ;;  %v1159_v8 = vrot.slane %v1143_v60, 6  ;;  %v1123_v13 = vsel %vm1122_vm7, %v11781_v23, %v1119_v1  ;;  %v10555_v56 = vld [vmem:[#allocation16 + $0x5e4] sm:$0xf0] }
 0x264   :  { %v7788_v3 = vld [vmem:[#allocation16 + $0x2a0] sm:$0xf0] }
 0x265   :  { %v10510_v10 = vld [vmem:[#allocation16 + $0x484] sm:$0xf]  ;;  %v7791_v22 = vor.u32 %v10446_v5, %v7788_v3  ;;  %2816 = vmatpush.bf16.msrb.mxu3 %v7535_v14  ;;  %v1158_v3 = vrot.slane %v1133_v54, 7  ;;  %v1153_v58 = vsel %vm1152_vm4, %v11795_v12, %v1149_v48  ;;  %v7666_v48 = vld [vmem:[#allocation16 + $0x188] sm:$0xf] }
 0x266   :  { %v8044_v11 = vld [vmem:[#allocation16 + $0x4a0] sm:$0xf0]  ;;  %v1160_v4 = vrot.slane %v1153_v58, 5  ;;  %v7922_v58 = vld [vmem:[#allocation16 + $0x388] sm:$0xf] }
 0x267   :  { %v10574_v16 = vld [vmem:[#allocation16 + $0x684] sm:$0xf]  ;;  %v8047_v27 = vor.u32 %v10510_v10, %v8044_v11  ;;  %2829 = vmatpush.bf16.msra.mxu0 %v7791_v22  ;;  %v550_v11 = vld [vmem:[#allocation13] sm:$0xf]  ;;  %v1161_v14 = vsel %vm520_vm8, %v1123_v13, %v1158_v3  ;;  %v8434_v13 = vld [vmem:[#allocation16 + $0x788] sm:$0xf] }
 0x268   :  { %v8300_v17 = vld [vmem:[#allocation16 + $0x6a0] sm:$0xf0] }
 0x269   :  { %v10374_v24 = vld [vmem:[#allocation16 + $0x44] sm:$0xf]  ;;  %v8303_v6 = vor.u32 %v10574_v16, %v8300_v17  ;;  %2842 = vmatpush.bf16.msra.mxu1 %v8047_v27  ;;  %v1163_v16 = vsel %vm1162_vm6, %v1159_v8, %v1160_v4  ;;  %v8211_v8 = vor.u32 %v10555_v56, %v8210_v55  ;;  %v8178_v4 = vld [vmem:[#allocation16 + $0x588] sm:$0xf] }
 0x26a   :  { %v7500_v25 = vld [vmem:[#allocation16 + $0x60] sm:$0xf0]  ;;  %v1164_v30 = vsel %vm310_vm0, %v1161_v14, %v1163_v16  ;;  %v10611_v14 = vld [vmem:[#allocation16 + $0x7a4] sm:$0xf0] }
 0x26b   :  { %v10438_v28 = vld [vmem:[#allocation16 + $0x244] sm:$0xf]  ;;  %v7503_v37 = vor.u32 %v10374_v24, %v7500_v25  ;;  %2855 = vmatpush.bf16.msra.mxu2 %v8303_v6  ;;  %v1166_v12 = vmul.f32 %v1164_v30, %v550_v11  ;;  %v10547_v11 = vld [vmem:[#allocation16 + $0x5a4] sm:$0xf0] }
 0x26c   :  { %v7756_v31 = vld [vmem:[#allocation16 + $0x260] sm:$0xf0]  ;;  %v10387_v55 = vld [vmem:[#allocation16 + $0xa4] sm:$0xf0] }
 0x26d   :  { %v10502_v35 = vld [vmem:[#allocation16 + $0x444] sm:$0xf]  ;;  %v7759_v44 = vor.u32 %v10438_v28, %v7756_v31  ;;  %2817 = vmatpush.bf16.msrb.mxu3 %v7503_v37  ;;  %v1168_v17 = vperm.slane %v1166_v12, 0  ;;  %v1169_v18 = vperm.slane %v1166_v12, 1  ;;  %v1170_v20 = vperm.slane %v1166_v12, 2 }
 0x26e   :  { %v8012_v39 = vld [vmem:[#allocation16 + $0x460] sm:$0xf0]  ;;  %v1171_v22 = vperm.slane %v1166_v12, 3  ;;  %v7634_v12 = vld [vmem:[#allocation16 + $0x148] sm:$0xf] }
 0x26f   :  { %v10566_v0 = vld [vmem:[#allocation16 + $0x644] sm:$0xf]  ;;  %v8015_v51 = vor.u32 %v10502_v35, %v8012_v39  ;;  %2830 = vmatpush.bf16.msra.mxu0 %v7759_v44  ;;  %v1177_v24 = vmul.f32 %v1169_v18, %v11734_v46  ;;  %v1178_v25 = vmul.f32 %v1170_v20, %v11763_v43  ;;  %v1176_v26 = vmul.f32 %v1168_v17, %v11731_v15  ;;  %v10451_v56 = vld [vmem:[#allocation16 + $0x2a4] sm:$0xf0] }
 0x270   :  { %v8268_v41 = vld [vmem:[#allocation16 + $0x660] sm:$0xf0]  ;;  %v1179_v23 = vmul.f32 %v1171_v22, %v11769_v49  ;;  %v1192_v40 = vmul.f32 %v1168_v17, %v11718_v2  ;;  %v1193_v46 = vmul.f32 %v1169_v18, %v11720_v7  ;;  %v1194_v43 = vmul.f32 %v1170_v20, %v11739_v29  ;;  %v10491_v7 = vld [vmem:[#allocation16 + $0x3e4] sm:$0xf0] }
 0x271   :  { %v10366_v36 = vld [vmem:[#allocation16 + $0x4] sm:$0xf]  ;;  %v8271_v57 = vor.u32 %v10566_v0, %v8268_v41  ;;  %2843 = vmatpush.bf16.msra.mxu1 %v8015_v51  ;;  %v1184_v27 = vrot.slane %v1177_v24, 7  ;;  %v1185_v28 = vrot.slane %v1178_v25, 6  ;;  %v1195_v49 = vmul.f32 %v1171_v22, %v11744_v34  ;;  %v10411_v17 = vld [vmem:[#allocation16 + $0x164] sm:$0xf0] }
 0x272   :  { %v7468_v45 = vld [vmem:[#allocation16 + $0x20] sm:$0xf0]  ;;  %v1186_v31 = vrot.slane %v1179_v23, 5  ;;  %v7955_v1 = vor.u32 %v10491_v7, %v7954_v50  ;;  %v8179_v18 = vor.u32 %v10547_v11, %v8178_v4  ;;  %v8435_v20 = vor.u32 %v10611_v14, %v8434_v13  ;;  %v7890_v22 = vld [vmem:[#allocation16 + $0x348] sm:$0xf] }
 0x273   :  { %v10430_v52 = vld [vmem:[#allocation16 + $0x204] sm:$0xf]  ;;  %v7471_v61 = vor.u32 %v10366_v36, %v7468_v45  ;;  %2856 = vmatpush.bf16.msra.mxu2 %v8271_v57  ;;  %v1187_v33 = vsel %vm520_vm8, %v1176_v26, %v1184_v27  ;;  %v7698_v45 = vld [vmem:[#allocation16 + $0x1c8] sm:$0xf] }
 0x274   :  { %v7724_v53 = vld [vmem:[#allocation16 + $0x220] sm:$0xf0]  ;;  %v1188_v6 = vsel %vm1162_vm6, %v1185_v28, %v1186_v31  ;;  %v8466_v57 = vld [vmem:[#allocation16 + $0x7c8] sm:$0xf]  ;;  %v7699_v60 = vor.u32 %v10427_v47, %v7698_v45  ;;  %v7635_v28 = vor.u32 %v10411_v17, %v7634_v12 }
 0x275   :  { %v10494_v19 = vld [vmem:[#allocation16 + $0x404] sm:$0xf]  ;;  %v7727_v5 = vor.u32 %v10430_v52, %v7724_v53  ;;  %2818 = vmatpush.bf16.msrb.mxu3 %v7471_v61  ;;  %v1189_v35 = vsel %vm310_vm0, %v1187_v33, %v1188_v6  ;;  %v10475_v24 = vld [vmem:[#allocation16 + $0x364] sm:$0xf0] }
 0x276   :  { %v7980_v59 = vld [vmem:[#allocation16 + $0x420] sm:$0xf0]  ;;  %v1191_v39 = vsub.f32 %v551_v32, %v1189_v35  ;;  %v8146_v25 = vld [vmem:[#allocation16 + $0x548] sm:$0xf]  ;;  %v7891_v31 = vor.u32 %v10475_v24, %v7890_v22 }
 0x277   :  { %v10558_v62 = vld [vmem:[#allocation16 + $0x604] sm:$0xf]  ;;  %v7983_v9 = vor.u32 %v10494_v19, %v7980_v59  ;;  %2831 = vmatpush.bf16.msra.mxu0 %v7727_v5  ;;  %v10619_v19 = vld [vmem:[#allocation16 + $0x7e4] sm:$0xf0] }
 0x278   :  { %v8236_v63 = vld [vmem:[#allocation16 + $0x620] sm:$0xf0]  ;;  %v1197_v15 = vperm.slane %v1191_v39, 0  ;;  %v1198_v37 = vperm.slane %v1191_v39, 1  ;;  %v1199_v0 = vperm.slane %v1191_v39, 2  ;;  %v1200_v41 = vperm.slane %v1191_v39, 3 }
 0x279   :  { %v8239_v10 = vor.u32 %v10558_v62, %v8236_v63  ;;  %2844 = vmatpush.bf16.msra.mxu1 %v7983_v9  ;;  %v10419_v5 = vld [vmem:[#allocation16 + $0x1a4] sm:$0xf0]  ;;  %v8467_v9 = vor.u32 %v10619_v19, %v8466_v57 }
 0x27a   :  { %v1205_v38 = vadd.f32 %v1197_v15, %v1192_v40  ;;  %v1206_v42 = vadd.f32 %v1198_v37, %v1193_v46  ;;  %v1207_v44 = vadd.f32 %v1199_v0, %v1194_v43  ;;  %v1208_v36 = vadd.f32 %v1200_v41, %v1195_v49  ;;  %v10539_v23 = vld [vmem:[#allocation16 + $0x564] sm:$0xf0] }
 0x27b   :  { %2857 = vmatpush.bf16.msra.mxu2 %v8239_v10  ;;  %v10483_v10 = vld [vmem:[#allocation16 + $0x3a4] sm:$0xf0]  ;;  %v7667_v16 = vor.u32 %v10419_v5, %v7666_v48  ;;  %v8147_v6 = vor.u32 %v10539_v23, %v8146_v25 }
 0x27c   :  { %v1209_v51 = vmul.f32 0.2, %v1205_v38  ;;  %v1210_v52 = vmul.f32 0.2, %v1206_v42  ;;  %v1211_v2 = vmul.f32 0.2, %v1207_v44  ;;  %v7923_v30 = vor.u32 %v10483_v10, %v7922_v58 }
 0x27d   :  { %v1212_v53 = vmul.f32 0.2, %v1208_v36  ;;  %v8402_v26 = vld [vmem:[#allocation16 + $0x748] sm:$0xf] }
 0x27e   :  { %v1215_v29 = vmax.f32 %v1207_v44, %v1211_v2  ;;  %v1213_v54 = vmax.f32 %v1205_v38, %v1209_v51  ;;  %v1214_v34 = vmax.f32 %v1206_v42, %v1210_v52  ;;  %v10603_v27 = vld [vmem:[#allocation16 + $0x764] sm:$0xf0] }
 0x27f   :  { %v1216_v59 = vmax.f32 %v1208_v36, %v1212_v53  ;;  %v7602_v32 = vld [vmem:[#allocation16 + $0x108] sm:$0xf]  ;;  %v8403_v35 = vor.u32 %v10603_v27, %v8402_v26 }
 0x280   :  { %v11851_v61 = vpack.c.bf16 %v1215_v29, %v1215_v29  ;;  %v11853_v62 = vpack.c.bf16 %v1213_v54, %v1213_v54  ;;  %v11855_v63 = vpack.c.bf16 %v1214_v34, %v1214_v34  ;;  %v10403_v33 = vld [vmem:[#allocation16 + $0x124] sm:$0xf0] }
 0x281   :  { %v11857_v3 = vpack.c.bf16 %v1216_v59, %v1216_v59  ;;  %v7858_v39 = vld [vmem:[#allocation16 + $0x308] sm:$0xf]  ;;  %v7603_v37 = vor.u32 %v10403_v33, %v7602_v32  ;;  %v7700_v32 = vld [vmem:[#allocation16 + $0x1e8] sm:$0xf0] }
 0x282   :  { %2767 = vmatmul.bf16.vlgmr.msra.gmra.mxu3 %v11853_v62  ;;  %2780 = vmatmul.bf16.vlgmr.msrb.gmra.mxu0 %v11855_v63  ;;  %v10467_v40 = vld [vmem:[#allocation16 + $0x324] sm:$0xf0]  ;;  %v10487_v33 = vld [vmem:[#allocation16 + $0x3cc] sm:$0xf] }
 0x283   :  { %2793 = vmatmul.bf16.vlgmr.msrb.gmra.mxu1 %v11851_v61  ;;  %2806 = vmatmul.bf16.vlgmr.msrb.gmra.mxu2 %v11857_v3  ;;  %v8114_v46 = vld [vmem:[#allocation16 + $0x508] sm:$0xf]  ;;  %v7859_v0 = vor.u32 %v10467_v40, %v7858_v39 }
 0x284   :  { %2863 = vmatpush.bf16.msra.mxu3 %v7699_v60  ;;  %2876 = vmatpush.bf16.msrb.mxu0 %v7955_v1  ;;  %v10531_v43 = vld [vmem:[#allocation16 + $0x524] sm:$0xf0] }
 0x285   :  { %2889 = vmatpush.bf16.msrb.mxu1 %v8211_v8  ;;  %2902 = vmatpush.bf16.msrb.mxu2 %v8467_v9  ;;  %v8370_v49 = vld [vmem:[#allocation16 + $0x708] sm:$0xf]  ;;  %v8115_v42 = vor.u32 %v10531_v43, %v8114_v46  ;;  %v8212_v46 = vld [vmem:[#allocation16 + $0x5e8] sm:$0xf0] }
 0x286   :  { %v10595_v15 = vld [vmem:[#allocation16 + $0x724] sm:$0xf0]  ;;  %v10615_v43 = vld [vmem:[#allocation16 + $0x7cc] sm:$0xf] }
 0x287   :  { %v7570_v41 = vld [vmem:[#allocation16 + $0xc8] sm:$0xf]  ;;  %v8371_v44 = vor.u32 %v10595_v15, %v8370_v49  ;;  %v8468_v49 = vld [vmem:[#allocation16 + $0x7e8] sm:$0xf0] }
 0x288   :  { %2864 = vmatpush.bf16.msra.mxu3 %v7667_v16  ;;  %2877 = vmatpush.bf16.msrb.mxu0 %v7923_v30  ;;  %v10395_v38 = vld [vmem:[#allocation16 + $0xe4] sm:$0xf0] }
 0x289   :  { %2890 = vmatpush.bf16.msrb.mxu1 %v8179_v18  ;;  %2903 = vmatpush.bf16.msrb.mxu2 %v8435_v20  ;;  %v7826_v36 = vld [vmem:[#allocation16 + $0x2c8] sm:$0xf]  ;;  %v7571_v2 = vor.u32 %v10395_v38, %v7570_v41  ;;  %v10415_v38 = vld [vmem:[#allocation16 + $0x18c] sm:$0xf] }
 0x28a   :  { %v10459_v45 = vld [vmem:[#allocation16 + $0x2e4] sm:$0xf0] }
 0x28b   :  { %v8082_v47 = vld [vmem:[#allocation16 + $0x4c8] sm:$0xf]  ;;  %v7827_v53 = vor.u32 %v10459_v45, %v7826_v36  ;;  %v8471_v36 = vor.u32 %v10615_v43, %v8468_v49  ;;  %v10479_v45 = vld [vmem:[#allocation16 + $0x38c] sm:$0xf] }
 0x28c   :  { %2865 = vmatpush.bf16.msra.mxu3 %v7635_v28  ;;  %2878 = vmatpush.bf16.msrb.mxu0 %v7891_v31  ;;  %v10523_v50 = vld [vmem:[#allocation16 + $0x4e4] sm:$0xf0]  ;;  %v10423_v31 = vld [vmem:[#allocation16 + $0x1cc] sm:$0xf] }
 0x28d   :  { %2891 = vmatpush.bf16.msrb.mxu1 %v8147_v6  ;;  %2904 = vmatpush.bf16.msrb.mxu2 %v8403_v35  ;;  %v8338_v51 = vld [vmem:[#allocation16 + $0x6c8] sm:$0xf]  ;;  %v8083_v29 = vor.u32 %v10523_v50, %v8082_v47  ;;  %v7956_v6 = vld [vmem:[#allocation16 + $0x3e8] sm:$0xf0] }
 0x28e   :  { %v10587_v52 = vld [vmem:[#allocation16 + $0x6e4] sm:$0xf0]  ;;  %v10551_v35 = vld [vmem:[#allocation16 + $0x5cc] sm:$0xf]  ;;  %v7959_v41 = vor.u32 %v10487_v33, %v7956_v6 }
 0x28f   :  { %v7538_v7 = vld [vmem:[#allocation16 + $0x88] sm:$0xf]  ;;  %v8339_v54 = vor.u32 %v10587_v52, %v8338_v51  ;;  %v7924_v47 = vld [vmem:[#allocation16 + $0x3a8] sm:$0xf0] }
 0x290   :  { %2866 = vmatpush.bf16.msra.mxu3 %v7603_v37  ;;  %2879 = vmatpush.bf16.msrb.mxu0 %v7859_v0  ;;  %v7794_v34 = vld [vmem:[#allocation16 + $0x288] sm:$0xf]  ;;  %v7539_v1 = vor.u32 %v10387_v55, %v7538_v7  ;;  %v7703_v0 = vor.u32 %v10423_v31, %v7700_v32  ;;  %v10543_v50 = vld [vmem:[#allocation16 + $0x58c] sm:$0xf]  ;;  %v7927_v7 = vor.u32 %v10479_v45, %v7924_v47 }
 0x291   :  { %2892 = vmatpush.bf16.msrb.mxu1 %v8115_v42  ;;  %2905 = vmatpush.bf16.msrb.mxu2 %v8371_v44  ;;  %v8050_v57 = vld [vmem:[#allocation16 + $0x488] sm:$0xf]  ;;  %v7795_v48 = vor.u32 %v10451_v56, %v7794_v34  ;;  %v7668_v42 = vld [vmem:[#allocation16 + $0x1a8] sm:$0xf0]  ;;  %v8215_v44 = vor.u32 %v10551_v35, %v8212_v46 }
 0x292   :  { %2819 = vmatmul.bf16.vlgmr.msrb.gmra.mxu3 %v11853_v62  ;;  %2832 = vmatmul.bf16.vlgmr.msra.gmra.mxu0 %v11855_v63  ;;  %v10515_v19 = vld [vmem:[#allocation16 + $0x4a4] sm:$0xf0]  ;;  %v8180_v51 = vld [vmem:[#allocation16 + $0x5a8] sm:$0xf0] }
 0x293   :  { %v8306_v59 = vld [vmem:[#allocation16 + $0x688] sm:$0xf]  ;;  %2845 = vmatmul.bf16.vlgmr.msra.gmra.mxu1 %v11851_v61  ;;  %2858 = vmatmul.bf16.vlgmr.msra.gmra.mxu2 %v11857_v3  ;;  %v8051_v9 = vor.u32 %v10515_v19, %v8050_v57  ;;  %v10607_v52 = vld [vmem:[#allocation16 + $0x78c] sm:$0xf] }
 0x294   :  { %v10579_v60 = vld [vmem:[#allocation16 + $0x6a4] sm:$0xf0]  ;;  %2867 = vmatpush.bf16.msra.mxu3 %v7571_v2  ;;  %2880 = vmatpush.bf16.msrb.mxu0 %v7827_v53  ;;  %v8436_v2 = vld [vmem:[#allocation16 + $0x7a8] sm:$0xf0]  ;;  %v7671_v53 = vor.u32 %v10415_v38, %v7668_v42 }
 0x295   :  { %v7506_v5 = vld [vmem:[#allocation16 + $0x48] sm:$0xf]  ;;  %2893 = vmatpush.bf16.msrb.mxu1 %v8083_v29  ;;  %2906 = vmatpush.bf16.msrb.mxu2 %v8339_v54  ;;  %v8307_v58 = vor.u32 %v10579_v60, %v8306_v59  ;;  %v10407_v55 = vld [vmem:[#allocation16 + $0x14c] sm:$0xf]  ;;  %v8183_v54 = vor.u32 %v10543_v50, %v8180_v51  ;;  %v8439_v34 = vor.u32 %v10607_v52, %v8436_v2 }
 0x296   :  { %v10379_v8 = vld [vmem:[#allocation16 + $0x64] sm:$0xf0]  ;;  %v7636_v29 = vld [vmem:[#allocation16 + $0x168] sm:$0xf0] }
 0x297   :  { %v7762_v10 = vld [vmem:[#allocation16 + $0x248] sm:$0xf]  ;;  %v7507_v12 = vor.u32 %v10379_v8, %v7506_v5  ;;  %v10471_v56 = vld [vmem:[#allocation16 + $0x34c] sm:$0xf] }
 0x298   :  { %v10443_v4 = vld [vmem:[#allocation16 + $0x264] sm:$0xf0]  ;;  %2868 = vmatpush.bf16.msra.mxu3 %v7539_v1  ;;  %2881 = vmatpush.bf16.msrb.mxu0 %v7795_v48  ;;  %v7892_v57 = vld [vmem:[#allocation16 + $0x368] sm:$0xf0]  ;;  %v7639_v48 = vor.u32 %v10407_v55, %v7636_v29 }
 0x299   :  { %v8018_v11 = vld [vmem:[#allocation16 + $0x448] sm:$0xf]  ;;  %v7763_v17 = vor.u32 %v10443_v4, %v7762_v10  ;;  %2894 = vmatpush.bf16.msrb.mxu1 %v8051_v9  ;;  %2907 = vmatpush.bf16.msrb.mxu2 %v8307_v58  ;;  %v10535_v19 = vld [vmem:[#allocation16 + $0x54c] sm:$0xf]  ;;  %v7895_v5 = vor.u32 %v10471_v56, %v7892_v57 }
 0x29a   :  { %v10507_v13 = vld [vmem:[#allocation16 + $0x464] sm:$0xf0]  ;;  %v8148_v59 = vld [vmem:[#allocation16 + $0x568] sm:$0xf0] }
 0x29b   :  { %v8274_v14 = vld [vmem:[#allocation16 + $0x648] sm:$0xf]  ;;  %v8019_v24 = vor.u32 %v10507_v13, %v8018_v11  ;;  %v10599_v60 = vld [vmem:[#allocation16 + $0x74c] sm:$0xf]  ;;  %v8151_v58 = vor.u32 %v10535_v19, %v8148_v59 }
 0x29c   :  { %v10571_v16 = vld [vmem:[#allocation16 + $0x664] sm:$0xf0]  ;;  %2869 = vmatpush.bf16.msra.mxu3 %v7507_v12  ;;  %2882 = vmatpush.bf16.msrb.mxu0 %v7763_v17  ;;  %v8404_v1 = vld [vmem:[#allocation16 + $0x768] sm:$0xf0] }
 0x29d   :  { %v7474_v30 = vld [vmem:[#allocation16 + $0x8] sm:$0xf]  ;;  %v8275_v25 = vor.u32 %v10571_v16, %v8274_v14  ;;  %2895 = vmatpush.bf16.msrb.mxu1 %v8019_v24  ;;  %v10399_v8 = vld [vmem:[#allocation16 + $0x10c] sm:$0xf]  ;;  %v8407_v10 = vor.u32 %v10599_v60, %v8404_v1 }
 0x29e   :  { %v10371_v18 = vld [vmem:[#allocation16 + $0x24] sm:$0xf0]  ;;  %v7604_v9 = vld [vmem:[#allocation16 + $0x128] sm:$0xf0] }
 0x29f   :  { %v7730_v20 = vld [vmem:[#allocation16 + $0x208] sm:$0xf]  ;;  %v7475_v39 = vor.u32 %v10371_v18, %v7474_v30  ;;  %2908 = vmatpush.bf16.msrb.mxu2 %v8275_v25  ;;  %v10463_v4 = vld [vmem:[#allocation16 + $0x30c] sm:$0xf]  ;;  %v7607_v12 = vor.u32 %v10399_v8, %v7604_v9  ;;  %v10428_v8 = vld [vmem:[#allocation16 + $0x1ec] sm:$0xf0] }
 0x2a0   :  { %v10435_v22 = vld [vmem:[#allocation16 + $0x224] sm:$0xf0]  ;;  %v7860_v11 = vld [vmem:[#allocation16 + $0x328] sm:$0xf0]  ;;  %v7962_v9 = vld [vmem:[#allocation16 + $0x3d0] sm:$0xf] }
 0x2a1   :  { %v7986_v23 = vld [vmem:[#allocation16 + $0x408] sm:$0xf]  ;;  %v7731_v40 = vor.u32 %v10435_v22, %v7730_v20  ;;  %2870 = vmatpush.bf16.msra.mxu3 %v7475_v39  ;;  %v10527_v13 = vld [vmem:[#allocation16 + $0x50c] sm:$0xf]  ;;  %v7863_v17 = vor.u32 %v10463_v4, %v7860_v11 }
 0x2a2   :  { %v10499_v26 = vld [vmem:[#allocation16 + $0x424] sm:$0xf0]  ;;  %v8116_v14 = vld [vmem:[#allocation16 + $0x528] sm:$0xf0] }
 0x2a3   :  { %v8242_v27 = vld [vmem:[#allocation16 + $0x608] sm:$0xf]  ;;  %v7987_v15 = vor.u32 %v10499_v26, %v7986_v23  ;;  %2883 = vmatpush.bf16.msrb.mxu0 %v7731_v40  ;;  %v10591_v16 = vld [vmem:[#allocation16 + $0x70c] sm:$0xf]  ;;  %v8119_v22 = vor.u32 %v10527_v13, %v8116_v14  ;;  %v10556_v13 = vld [vmem:[#allocation16 + $0x5ec] sm:$0xf0] }
 0x2a4   :  { %v10563_v28 = vld [vmem:[#allocation16 + $0x624] sm:$0xf0]  ;;  %2871 = vmatmul.bf16.vlgmr.msra.gmra.mxu3 %v11853_v62  ;;  %v8372_v30 = vld [vmem:[#allocation16 + $0x728] sm:$0xf0]  ;;  %v8474_v14 = vld [vmem:[#allocation16 + $0x7d0] sm:$0xf] }
 0x2a5   :  { %v8243_v37 = vor.u32 %v10563_v28, %v8242_v27  ;;  %2896 = vmatpush.bf16.msrb.mxu1 %v7987_v15  ;;  %2915 = vmatpush.bf16.msrb.mxu3 %v7703_v0  ;;  %v10391_v18 = vld [vmem:[#allocation16 + $0xcc] sm:$0xf]  ;;  %v8375_v24 = vor.u32 %v10591_v16, %v8372_v30  ;;  %v10620_v16 = vld [vmem:[#allocation16 + $0x7ec] sm:$0xf0] }
 0x2a6   :  { %2884 = vmatmul.bf16.vlgmr.msrb.gmra.mxu0 %v11855_v63  ;;  %v7572_v20 = vld [vmem:[#allocation16 + $0xe8] sm:$0xf0] }
 0x2a7   :  { %2909 = vmatpush.bf16.msrb.mxu2 %v8243_v37  ;;  %2928 = vmatpush.bf16.msra.mxu0 %v7959_v41  ;;  %v10455_v25 = vld [vmem:[#allocation16 + $0x2cc] sm:$0xf]  ;;  %v7575_v32 = vor.u32 %v10391_v18, %v7572_v20  ;;  %v7674_v20 = vld [vmem:[#allocation16 + $0x190] sm:$0xf] }
 0x2a8   :  { %2897 = vmatmul.bf16.vlgmr.msrb.gmra.mxu1 %v11851_v61  ;;  %v7828_v23 = vld [vmem:[#allocation16 + $0x2e8] sm:$0xf0] }
 0x2a9   :  { %2941 = vmatpush.bf16.msra.mxu1 %v8215_v44  ;;  %2916 = vmatpush.bf16.msrb.mxu3 %v7671_v53  ;;  %v10519_v26 = vld [vmem:[#allocation16 + $0x4cc] sm:$0xf]  ;;  %v7831_v33 = vor.u32 %v10455_v25, %v7828_v23  ;;  %v8475_v25 = vor.u32 %v10620_v16, %v8474_v14  ;;  %v7930_v23 = vld [vmem:[#allocation16 + $0x390] sm:$0xf] }
 0x2aa   :  { %2910 = vmatmul.bf16.vlgmr.msrb.gmra.mxu2 %v11857_v3  ;;  %v8084_v27 = vld [vmem:[#allocation16 + $0x4e8] sm:$0xf0]  ;;  %v10452_v14 = vld [vmem:[#allocation16 + $0x2ac] sm:$0xf0] }
 0x2ab   :  { %2954 = vmatpush.bf16.msra.mxu2 %v8471_v36  ;;  %2929 = vmatpush.bf16.msra.mxu0 %v7927_v7  ;;  %v10583_v28 = vld [vmem:[#allocation16 + $0x6cc] sm:$0xf]  ;;  %v8087_v39 = vor.u32 %v10519_v26, %v8084_v27  ;;  %v10484_v26 = vld [vmem:[#allocation16 + $0x3ac] sm:$0xf0] }
 0x2ac   :  { %v8340_v31 = vld [vmem:[#allocation16 + $0x6e8] sm:$0xf0]  ;;  %v8186_v27 = vld [vmem:[#allocation16 + $0x590] sm:$0xf] }
 0x2ad   :  { %2942 = vmatpush.bf16.msra.mxu1 %v8183_v54  ;;  %2917 = vmatpush.bf16.msrb.mxu3 %v7639_v48  ;;  %v10383_v6 = vld [vmem:[#allocation16 + $0x8c] sm:$0xf]  ;;  %v8343_v40 = vor.u32 %v10583_v28, %v8340_v31  ;;  %v10548_v28 = vld [vmem:[#allocation16 + $0x5ac] sm:$0xf0] }
 0x2ae   :  { %v7540_v35 = vld [vmem:[#allocation16 + $0xa8] sm:$0xf0]  ;;  %v8442_v31 = vld [vmem:[#allocation16 + $0x790] sm:$0xf] }
 0x2af   :  { %2955 = vmatpush.bf16.msra.mxu2 %v8439_v34  ;;  %2930 = vmatpush.bf16.msra.mxu0 %v7895_v5  ;;  %v10447_v46 = vld [vmem:[#allocation16 + $0x28c] sm:$0xf]  ;;  %v7543_v41 = vor.u32 %v10383_v6, %v7540_v35  ;;  %v7706_v5 = vld [vmem:[#allocation16 + $0x1d0] sm:$0xf]  ;;  %v7931_v6 = vor.u32 %v10484_v26, %v7930_v23 }
 0x2b0   :  { %v7796_v43 = vld [vmem:[#allocation16 + $0x2a8] sm:$0xf0]  ;;  %v7642_v35 = vld [vmem:[#allocation16 + $0x150] sm:$0xf] }
 0x2b1   :  { %2943 = vmatpush.bf16.msra.mxu1 %v8151_v58  ;;  %2918 = vmatpush.bf16.msrb.mxu3 %v7607_v12  ;;  %v10511_v49 = vld [vmem:[#allocation16 + $0x48c] sm:$0xf]  ;;  %v7799_v38 = vor.u32 %v10447_v46, %v7796_v43  ;;  %v10492_v58 = vld [vmem:[#allocation16 + $0x3ec] sm:$0xf0] }
 0x2b2   :  { %v8052_v15 = vld [vmem:[#allocation16 + $0x4a8] sm:$0xf0]  ;;  %v7963_v18 = vor.u32 %v10492_v58, %v7962_v9  ;;  %v7898_v43 = vld [vmem:[#allocation16 + $0x350] sm:$0xf] }
 0x2b3   :  { %2956 = vmatpush.bf16.msra.mxu2 %v8407_v10  ;;  %2931 = vmatpush.bf16.msra.mxu0 %v7863_v17  ;;  %v10575_v37 = vld [vmem:[#allocation16 + $0x68c] sm:$0xf]  ;;  %v8055_v36 = vor.u32 %v10511_v49, %v8052_v15  ;;  %v8218_v10 = vld [vmem:[#allocation16 + $0x5d0] sm:$0xf]  ;;  %v7707_v17 = vor.u32 %v10428_v8, %v7706_v5 }
 0x2b4   :  { %v8308_v0 = vld [vmem:[#allocation16 + $0x6a8] sm:$0xf0]  ;;  %v10476_v49 = vld [vmem:[#allocation16 + $0x36c] sm:$0xf0] }
 0x2b5   :  { %2944 = vmatpush.bf16.msra.mxu1 %v8119_v22  ;;  %2919 = vmatpush.bf16.msrb.mxu3 %v7575_v32  ;;  %v10375_v42 = vld [vmem:[#allocation16 + $0x4c] sm:$0xf]  ;;  %v8311_v45 = vor.u32 %v10575_v37, %v8308_v0  ;;  %v10420_v22 = vld [vmem:[#allocation16 + $0x1ac] sm:$0xf0] }
 0x2b6   :  { %v7508_v44 = vld [vmem:[#allocation16 + $0x68] sm:$0xf0]  ;;  %v10612_v32 = vld [vmem:[#allocation16 + $0x7ac] sm:$0xf0] }
 0x2b7   :  { %2957 = vmatpush.bf16.msra.mxu2 %v8375_v24  ;;  %2932 = vmatpush.bf16.msra.mxu0 %v7831_v33  ;;  %v10439_v47 = vld [vmem:[#allocation16 + $0x24c] sm:$0xf]  ;;  %v7511_v55 = vor.u32 %v10375_v42, %v7508_v44  ;;  %v8219_v24 = vor.u32 %v10556_v13, %v8218_v10  ;;  %v7675_v33 = vor.u32 %v10420_v22, %v7674_v20  ;;  %v8154_v15 = vld [vmem:[#allocation16 + $0x550] sm:$0xf] }
 0x2b8   :  { %v7764_v50 = vld [vmem:[#allocation16 + $0x268] sm:$0xf0]  ;;  %v8443_v46 = vor.u32 %v10612_v32, %v8442_v31  ;;  %v10540_v37 = vld [vmem:[#allocation16 + $0x56c] sm:$0xf0]  ;;  %v7899_v42 = vor.u32 %v10476_v49, %v7898_v43 }
 0x2b9   :  { %2945 = vmatpush.bf16.msra.mxu1 %v8087_v39  ;;  %v10503_v51 = vld [vmem:[#allocation16 + $0x44c] sm:$0xf]  ;;  %2920 = vmatpush.bf16.msrb.mxu3 %v7543_v41  ;;  %v7767_v29 = vor.u32 %v10439_v47, %v7764_v50  ;;  %v10412_v39 = vld [vmem:[#allocation16 + $0x16c] sm:$0xf0] }
 0x2ba   :  { %v8020_v52 = vld [vmem:[#allocation16 + $0x468] sm:$0xf0]  ;;  %v8410_v0 = vld [vmem:[#allocation16 + $0x750] sm:$0xf] }
 0x2bb   :  { %2958 = vmatpush.bf16.msra.mxu2 %v8343_v40  ;;  %v10567_v2 = vld [vmem:[#allocation16 + $0x64c] sm:$0xf]  ;;  %2933 = vmatpush.bf16.msra.mxu0 %v7799_v38  ;;  %v8023_v57 = vor.u32 %v10503_v51, %v8020_v52  ;;  %v8187_v40 = vor.u32 %v10548_v28, %v8186_v27  ;;  %v10604_v41 = vld [vmem:[#allocation16 + $0x76c] sm:$0xf0]  ;;  %v7643_v38 = vor.u32 %v10412_v39, %v7642_v35 }
 0x2bc   :  { %v8276_v53 = vld [vmem:[#allocation16 + $0x668] sm:$0xf0]  ;;  %v7610_v44 = vld [vmem:[#allocation16 + $0x110] sm:$0xf]  ;;  %v8411_v47 = vor.u32 %v10604_v41, %v8410_v0 }
 0x2bd   :  { %v10367_v7 = vld [vmem:[#allocation16 + $0xc] sm:$0xf]  ;;  %2946 = vmatpush.bf16.msra.mxu1 %v8055_v36  ;;  %v8279_v19 = vor.u32 %v10567_v2, %v8276_v53  ;;  %2921 = vmatpush.bf16.msrb.mxu3 %v7511_v55  ;;  %v10404_v36 = vld [vmem:[#allocation16 + $0x12c] sm:$0xf0] }
 0x2be   :  { %v7476_v54 = vld [vmem:[#allocation16 + $0x28] sm:$0xf0]  ;;  %v7866_v50 = vld [vmem:[#allocation16 + $0x310] sm:$0xf]  ;;  %v7611_v55 = vor.u32 %v10404_v36, %v7610_v44  ;;  %v7708_v44 = vld [vmem:[#allocation16 + $0x1f0] sm:$0xf0] }
 0x2bf   :  { %v10431_v34 = vld [vmem:[#allocation16 + $0x20c] sm:$0xf]  ;;  %2959 = vmatpush.bf16.msra.mxu2 %v8311_v45  ;;  %2934 = vmatpush.bf16.msra.mxu0 %v7767_v29  ;;  %v7479_v4 = vor.u32 %v10367_v7, %v7476_v54  ;;  %v8155_v45 = vor.u32 %v10540_v37, %v8154_v15  ;;  %v10468_v51 = vld [vmem:[#allocation16 + $0x32c] sm:$0xf0]  ;;  %v10488_v36 = vld [vmem:[#allocation16 + $0x3d4] sm:$0xf] }
 0x2c0   :  { %v7732_v56 = vld [vmem:[#allocation16 + $0x228] sm:$0xf0]  ;;  %v8122_v52 = vld [vmem:[#allocation16 + $0x510] sm:$0xf]  ;;  %v7867_v29 = vor.u32 %v10468_v51, %v7866_v50 }
 0x2c1   :  { %v10495_v59 = vld [vmem:[#allocation16 + $0x40c] sm:$0xf]  ;;  %v7735_v11 = vor.u32 %v10431_v34, %v7732_v56  ;;  %2947 = vmatpush.bf16.msra.mxu1 %v8023_v57  ;;  %2922 = vmatpush.bf16.msrb.mxu3 %v7479_v4  ;;  %v10532_v2 = vld [vmem:[#allocation16 + $0x52c] sm:$0xf0] }
 0x2c2   :  { %v7988_v60 = vld [vmem:[#allocation16 + $0x428] sm:$0xf0]  ;;  %v8378_v53 = vld [vmem:[#allocation16 + $0x710] sm:$0xf]  ;;  %v8123_v56 = vor.u32 %v10532_v2, %v8122_v52  ;;  %v8220_v52 = vld [vmem:[#allocation16 + $0x5f0] sm:$0xf0] }
 0x2c3   :  { %v10559_v1 = vld [vmem:[#allocation16 + $0x60c] sm:$0xf]  ;;  %2960 = vmatpush.bf16.msra.mxu2 %v8279_v19  ;;  %v7991_v30 = vor.u32 %v10495_v59, %v7988_v60  ;;  %2935 = vmatpush.bf16.msra.mxu0 %v7735_v11  ;;  %v10596_v7 = vld [vmem:[#allocation16 + $0x72c] sm:$0xf0]  ;;  %v10616_v2 = vld [vmem:[#allocation16 + $0x7d4] sm:$0xf] }
 0x2c4   :  { %v8244_v48 = vld [vmem:[#allocation16 + $0x628] sm:$0xf0]  ;;  %2923 = vmatmul.bf16.vlgmr.msrb.gmra.mxu3 %v11853_v62  ;;  %v7578_v54 = vld [vmem:[#allocation16 + $0xd0] sm:$0xf]  ;;  %v8379_v57 = vor.u32 %v10596_v7, %v8378_v53  ;;  %v8476_v53 = vld [vmem:[#allocation16 + $0x7f0] sm:$0xf0] }
 0x2c5   :  { %v8247_v12 = vor.u32 %v10559_v1, %v8244_v48  ;;  %2948 = vmatpush.bf16.msra.mxu1 %v7991_v30  ;;  %2967 = vmatpush.bf16.msra.mxu3 %v7707_v17  ;;  %v10396_v34 = vld [vmem:[#allocation16 + $0xec] sm:$0xf0] }
 0x2c6   :  { %2936 = vmatmul.bf16.vlgmr.msra.gmra.mxu0 %v11855_v63  ;;  %v7834_v19 = vld [vmem:[#allocation16 + $0x2d0] sm:$0xf]  ;;  %v7579_v8 = vor.u32 %v10396_v34, %v7578_v54  ;;  %v10416_v34 = vld [vmem:[#allocation16 + $0x194] sm:$0xf] }
 0x2c7   :  { %2961 = vmatpush.bf16.msra.mxu2 %v8247_v12  ;;  %2980 = vmatpush.bf16.msrb.mxu0 %v7963_v18  ;;  %v10460_v59 = vld [vmem:[#allocation16 + $0x2ec] sm:$0xf0] }
 0x2c8   :  { %2949 = vmatmul.bf16.vlgmr.msra.gmra.mxu1 %v11851_v61  ;;  %v8090_v60 = vld [vmem:[#allocation16 + $0x4d0] sm:$0xf]  ;;  %v7835_v9 = vor.u32 %v10460_v59, %v7834_v19  ;;  %v8479_v19 = vor.u32 %v10616_v2, %v8476_v53  ;;  %v10480_v59 = vld [vmem:[#allocation16 + $0x394] sm:$0xf] }
 0x2c9   :  { %2993 = vmatpush.bf16.msrb.mxu1 %v8219_v24  ;;  %2968 = vmatpush.bf16.msra.mxu3 %v7675_v33  ;;  %v10524_v1 = vld [vmem:[#allocation16 + $0x4ec] sm:$0xf0]  ;;  %v7804_v2 = vld [vmem:[#allocation16 + $0x2b0] sm:$0xf0] }
 0x2ca   :  { %2962 = vmatmul.bf16.vlgmr.msra.gmra.mxu2 %v11857_v3  ;;  %v8346_v48 = vld [vmem:[#allocation16 + $0x6d0] sm:$0xf]  ;;  %v8091_v4 = vor.u32 %v10524_v1, %v8090_v60  ;;  %v7932_v60 = vld [vmem:[#allocation16 + $0x3b0] sm:$0xf0] }
 0x2cb   :  { %3006 = vmatpush.bf16.msrb.mxu2 %v8475_v25  ;;  %2981 = vmatpush.bf16.msrb.mxu0 %v7931_v6  ;;  %v10588_v5 = vld [vmem:[#allocation16 + $0x6ec] sm:$0xf0]  ;;  %v10544_v1 = vld [vmem:[#allocation16 + $0x594] sm:$0xf] }
 0x2cc   :  { %v7546_v58 = vld [vmem:[#allocation16 + $0x90] sm:$0xf]  ;;  %v8347_v11 = vor.u32 %v10588_v5, %v8346_v48  ;;  %v8188_v48 = vld [vmem:[#allocation16 + $0x5b0] sm:$0xf0] }
 0x2cd   :  { %2994 = vmatpush.bf16.msrb.mxu1 %v8187_v40  ;;  %2969 = vmatpush.bf16.msra.mxu3 %v7643_v38  ;;  %v10388_v10 = vld [vmem:[#allocation16 + $0xac] sm:$0xf0]  ;;  %v10608_v5 = vld [vmem:[#allocation16 + $0x794] sm:$0xf] }
 0x2ce   :  { %v7802_v13 = vld [vmem:[#allocation16 + $0x290] sm:$0xf]  ;;  %v7547_v18 = vor.u32 %v10388_v10, %v7546_v58  ;;  %v7935_v58 = vor.u32 %v10480_v59, %v7932_v60  ;;  %v10408_v10 = vld [vmem:[#allocation16 + $0x154] sm:$0xf] }
 0x2cf   :  { %3007 = vmatpush.bf16.msrb.mxu2 %v8443_v46  ;;  %2982 = vmatpush.bf16.msrb.mxu0 %v7899_v42  ;;  %v8058_v16 = vld [vmem:[#allocation16 + $0x490] sm:$0xf]  ;;  %v7803_v20 = vor.u32 %v10452_v14, %v7802_v13  ;;  %v10424_v42 = vld [vmem:[#allocation16 + $0x1d4] sm:$0xf] }
 0x2d0   :  { %v10516_v30 = vld [vmem:[#allocation16 + $0x4ac] sm:$0xf0]  ;;  %v10472_v14 = vld [vmem:[#allocation16 + $0x354] sm:$0xf] }
 0x2d1   :  { %2995 = vmatpush.bf16.msrb.mxu1 %v8155_v45  ;;  %2970 = vmatpush.bf16.msra.mxu3 %v7611_v55  ;;  %v8314_v12 = vld [vmem:[#allocation16 + $0x690] sm:$0xf]  ;;  %v8059_v25 = vor.u32 %v10516_v30, %v8058_v16  ;;  %v7964_v45 = vld [vmem:[#allocation16 + $0x3f0] sm:$0xf0] }
 0x2d2   :  { %v10580_v17 = vld [vmem:[#allocation16 + $0x6ac] sm:$0xf0]  ;;  %v7967_v54 = vor.u32 %v10488_v36, %v7964_v45  ;;  %v7900_v16 = vld [vmem:[#allocation16 + $0x370] sm:$0xf0] }
 0x2d3   :  { %3008 = vmatpush.bf16.msrb.mxu2 %v8411_v47  ;;  %2983 = vmatpush.bf16.msrb.mxu0 %v7867_v29  ;;  %v7514_v22 = vld [vmem:[#allocation16 + $0x50] sm:$0xf]  ;;  %v8315_v23 = vor.u32 %v10580_v17, %v8314_v12  ;;  %v10552_v47 = vld [vmem:[#allocation16 + $0x5d4] sm:$0xf]  ;;  %v7711_v29 = vor.u32 %v10424_v42, %v7708_v44 }
 0x2d4   :  { %v10380_v24 = vld [vmem:[#allocation16 + $0x6c] sm:$0xf0]  ;;  %v10536_v30 = vld [vmem:[#allocation16 + $0x554] sm:$0xf] }
 0x2d5   :  { %2996 = vmatpush.bf16.msrb.mxu1 %v8123_v56  ;;  %2971 = vmatpush.bf16.msra.mxu3 %v7579_v8  ;;  %v7770_v26 = vld [vmem:[#allocation16 + $0x250] sm:$0xf]  ;;  %v7515_v35 = vor.u32 %v10380_v24, %v7514_v22  ;;  %v7676_v56 = vld [vmem:[#allocation16 + $0x1b0] sm:$0xf0]  ;;  %v7903_v22 = vor.u32 %v10472_v14, %v7900_v16 }
 0x2d6   :  { %v10444_v27 = vld [vmem:[#allocation16 + $0x26c] sm:$0xf0]  ;;  %v8444_v8 = vld [vmem:[#allocation16 + $0x7b0] sm:$0xf0] }
 0x2d7   :  { %3009 = vmatpush.bf16.msrb.mxu2 %v8379_v57  ;;  %2984 = vmatpush.bf16.msrb.mxu0 %v7835_v9  ;;  %v8026_v28 = vld [vmem:[#allocation16 + $0x450] sm:$0xf]  ;;  %v7771_v39 = vor.u32 %v10444_v27, %v7770_v26  ;;  %v8223_v57 = vor.u32 %v10552_v47, %v8220_v52  ;;  %v7679_v9 = vor.u32 %v10416_v34, %v7676_v56  ;;  %v8156_v12 = vld [vmem:[#allocation16 + $0x570] sm:$0xf0] }
 0x2d8   :  { %v10508_v31 = vld [vmem:[#allocation16 + $0x46c] sm:$0xf0]  ;;  %v8447_v13 = vor.u32 %v10608_v5, %v8444_v8  ;;  %v10600_v17 = vld [vmem:[#allocation16 + $0x754] sm:$0xf] }
 0x2d9   :  { %2997 = vmatpush.bf16.msrb.mxu1 %v8091_v4  ;;  %v8282_v32 = vld [vmem:[#allocation16 + $0x650] sm:$0xf]  ;;  %2972 = vmatpush.bf16.msra.mxu3 %v7547_v18  ;;  %v8027_v49 = vor.u32 %v10508_v31, %v8026_v28  ;;  %v7644_v4 = vld [vmem:[#allocation16 + $0x170] sm:$0xf0] }
 0x2da   :  { %v10572_v33 = vld [vmem:[#allocation16 + $0x66c] sm:$0xf0]  ;;  %v8412_v18 = vld [vmem:[#allocation16 + $0x770] sm:$0xf0] }
 0x2db   :  { %3010 = vmatpush.bf16.msrb.mxu2 %v8347_v11  ;;  %v7482_v6 = vld [vmem:[#allocation16 + $0x10] sm:$0xf]  ;;  %2985 = vmatpush.bf16.msrb.mxu0 %v7803_v20  ;;  %v8283_v15 = vor.u32 %v10572_v33, %v8282_v32  ;;  %v8191_v11 = vor.u32 %v10544_v1, %v8188_v48  ;;  %v7647_v20 = vor.u32 %v10408_v10, %v7644_v4  ;;  %v10400_v24 = vld [vmem:[#allocation16 + $0x114] sm:$0xf] }
 0x2dc   :  { %v10372_v40 = vld [vmem:[#allocation16 + $0x2c] sm:$0xf0]  ;;  %v8415_v26 = vor.u32 %v10600_v17, %v8412_v18  ;;  %v10464_v27 = vld [vmem:[#allocation16 + $0x314] sm:$0xf] }
 0x2dd   :  { %v7738_v46 = vld [vmem:[#allocation16 + $0x210] sm:$0xf]  ;;  %2998 = vmatpush.bf16.msrb.mxu1 %v8059_v25  ;;  %2973 = vmatpush.bf16.msra.mxu3 %v7515_v35  ;;  %v7483_v50 = vor.u32 %v10372_v40, %v7482_v6  ;;  %v7612_v25 = vld [vmem:[#allocation16 + $0x130] sm:$0xf0] }
 0x2de   :  { %v10436_v43 = vld [vmem:[#allocation16 + $0x22c] sm:$0xf0]  ;;  %v7868_v28 = vld [vmem:[#allocation16 + $0x330] sm:$0xf0]  ;;  %v7615_v35 = vor.u32 %v10400_v24, %v7612_v25  ;;  %v10429_v24 = vld [vmem:[#allocation16 + $0x1f4] sm:$0xf0] }
 0x2df   :  { %3011 = vmatpush.bf16.msrb.mxu2 %v8315_v23  ;;  %v7994_v37 = vld [vmem:[#allocation16 + $0x410] sm:$0xf]  ;;  %2986 = vmatpush.bf16.msrb.mxu0 %v7771_v39  ;;  %v7739_v51 = vor.u32 %v10436_v43, %v7738_v46  ;;  %v8159_v23 = vor.u32 %v10536_v30, %v8156_v12  ;;  %v10528_v31 = vld [vmem:[#allocation16 + $0x514] sm:$0xf]  ;;  %v7871_v39 = vor.u32 %v10464_v27, %v7868_v28  ;;  %v7970_v25 = vld [vmem:[#allocation16 + $0x3d8] sm:$0xf] }
 0x2e0   :  { %v10500_v0 = vld [vmem:[#allocation16 + $0x42c] sm:$0xf0]  ;;  %v8124_v32 = vld [vmem:[#allocation16 + $0x530] sm:$0xf0] }
 0x2e1   :  { %v8250_v41 = vld [vmem:[#allocation16 + $0x610] sm:$0xf]  ;;  %2999 = vmatpush.bf16.msrb.mxu1 %v8027_v49  ;;  %v7995_v7 = vor.u32 %v10500_v0, %v7994_v37  ;;  %2974 = vmatpush.bf16.msra.mxu3 %v7483_v50  ;;  %v10592_v33 = vld [vmem:[#allocation16 + $0x714] sm:$0xf]  ;;  %v8127_v43 = vor.u32 %v10528_v31, %v8124_v32  ;;  %v10557_v31 = vld [vmem:[#allocation16 + $0x5f4] sm:$0xf0] }
 0x2e2   :  { %v10564_v38 = vld [vmem:[#allocation16 + $0x62c] sm:$0xf0]  ;;  %v8380_v6 = vld [vmem:[#allocation16 + $0x730] sm:$0xf0]  ;;  %v8482_v32 = vld [vmem:[#allocation16 + $0x7d8] sm:$0xf] }
 0x2e3   :  { %3012 = vmatpush.bf16.msrb.mxu2 %v8283_v15  ;;  %v8251_v55 = vor.u32 %v10564_v38, %v8250_v41  ;;  %2987 = vmatpush.bf16.msrb.mxu0 %v7739_v51  ;;  %v10392_v40 = vld [vmem:[#allocation16 + $0xd4] sm:$0xf]  ;;  %v8383_v49 = vor.u32 %v10592_v33, %v8380_v6  ;;  %v10621_v33 = vld [vmem:[#allocation16 + $0x7f4] sm:$0xf0] }
 0x2e4   :  { %2975 = vmatmul.bf16.vlgmr.msra.gmra.mxu3 %v11853_v62  ;;  %v7580_v46 = vld [vmem:[#allocation16 + $0xf0] sm:$0xf0] }
 0x2e5   :  { %3000 = vmatpush.bf16.msrb.mxu1 %v7995_v7  ;;  %3019 = vmatpush.bf16.msrb.mxu3 %v7711_v29  ;;  %v10456_v15 = vld [vmem:[#allocation16 + $0x2d4] sm:$0xf]  ;;  %v7583_v44 = vor.u32 %v10392_v40, %v7580_v46  ;;  %v7682_v46 = vld [vmem:[#allocation16 + $0x198] sm:$0xf] }
 0x2e6   :  { %2988 = vmatmul.bf16.vlgmr.msrb.gmra.mxu0 %v11855_v63  ;;  %v7836_v37 = vld [vmem:[#allocation16 + $0x2f0] sm:$0xf0] }
 0x2e7   :  { %3013 = vmatpush.bf16.msrb.mxu2 %v8251_v55  ;;  %3032 = vmatpush.bf16.msra.mxu0 %v7967_v54  ;;  %v10520_v0 = vld [vmem:[#allocation16 + $0x4d4] sm:$0xf]  ;;  %v7839_v36 = vor.u32 %v10456_v15, %v7836_v37  ;;  %v8483_v15 = vor.u32 %v10621_v33, %v8482_v32  ;;  %v7938_v37 = vld [vmem:[#allocation16 + $0x398] sm:$0xf] }
 0x2e8   :  { %3001 = vmatmul.bf16.vlgmr.msrb.gmra.mxu1 %v11851_v61  ;;  %v8092_v41 = vld [vmem:[#allocation16 + $0x4f0] sm:$0xf0] }
 0x2e9   :  { %3045 = vmatpush.bf16.msra.mxu1 %v8223_v57  ;;  %3020 = vmatpush.bf16.msrb.mxu3 %v7679_v9  ;;  %v10584_v38 = vld [vmem:[#allocation16 + $0x6d4] sm:$0xf]  ;;  %v8095_v50 = vor.u32 %v10520_v0, %v8092_v41  ;;  %v10485_v0 = vld [vmem:[#allocation16 + $0x3b4] sm:$0xf0] }
 0x2ea   :  { %3014 = vmatmul.bf16.vlgmr.msrb.gmra.mxu2 %v11857_v3  ;;  %v8348_v42 = vld [vmem:[#allocation16 + $0x6f0] sm:$0xf0]  ;;  %v8194_v41 = vld [vmem:[#allocation16 + $0x598] sm:$0xf] }
 0x2eb   :  { %3058 = vmatpush.bf16.msra.mxu2 %v8479_v19  ;;  %3033 = vmatpush.bf16.msra.mxu0 %v7935_v58  ;;  %v10384_v45 = vld [vmem:[#allocation16 + $0x94] sm:$0xf]  ;;  %v8351_v51 = vor.u32 %v10584_v38, %v8348_v42  ;;  %v10549_v38 = vld [vmem:[#allocation16 + $0x5b4] sm:$0xf0] }
 0x2ec   :  { %v7548_v47 = vld [vmem:[#allocation16 + $0xb0] sm:$0xf0]  ;;  %v8450_v42 = vld [vmem:[#allocation16 + $0x798] sm:$0xf] }
 0x2ed   :  { %3046 = vmatpush.bf16.msra.mxu1 %v8191_v11  ;;  %3021 = vmatpush.bf16.msrb.mxu3 %v7647_v20  ;;  %v10448_v52 = vld [vmem:[#allocation16 + $0x294] sm:$0xf]  ;;  %v7551_v54 = vor.u32 %v10384_v45, %v7548_v47  ;;  %v7939_v45 = vor.u32 %v10485_v0, %v7938_v37  ;;  %v7650_v47 = vld [vmem:[#allocation16 + $0x158] sm:$0xf] }
 0x2ee   :  { %v10512_v53 = vld [vmem:[#allocation16 + $0x494] sm:$0xf]  ;;  %v7807_v34 = vor.u32 %v10448_v52, %v7804_v2  ;;  %v7906_v2 = vld [vmem:[#allocation16 + $0x358] sm:$0xf] }
 0x2ef   :  { %3059 = vmatpush.bf16.msra.mxu2 %v8447_v13  ;;  %3034 = vmatpush.bf16.msra.mxu0 %v7903_v22  ;;  %v8060_v7 = vld [vmem:[#allocation16 + $0x4b0] sm:$0xf0]  ;;  %v7714_v22 = vld [vmem:[#allocation16 + $0x1d8] sm:$0xf] }
 0x2f0   :  { %v10576_v55 = vld [vmem:[#allocation16 + $0x694] sm:$0xf]  ;;  %v8063_v19 = vor.u32 %v10512_v53, %v8060_v7  ;;  %v10477_v53 = vld [vmem:[#allocation16 + $0x374] sm:$0xf0] }
 0x2f1   :  { %3047 = vmatpush.bf16.msra.mxu1 %v8159_v23  ;;  %3022 = vmatpush.bf16.msrb.mxu3 %v7615_v35  ;;  %v8316_v29 = vld [vmem:[#allocation16 + $0x6b0] sm:$0xf0]  ;;  %v10493_v23 = vld [vmem:[#allocation16 + $0x3f4] sm:$0xf0] }
 0x2f2   :  { %v10376_v56 = vld [vmem:[#allocation16 + $0x54] sm:$0xf]  ;;  %v8319_v59 = vor.u32 %v10576_v55, %v8316_v29  ;;  %v7971_v40 = vor.u32 %v10493_v23, %v7970_v25  ;;  %v8162_v7 = vld [vmem:[#allocation16 + $0x558] sm:$0xf] }
 0x2f3   :  { %3060 = vmatpush.bf16.msra.mxu2 %v8415_v26  ;;  %3035 = vmatpush.bf16.msra.mxu0 %v7871_v39  ;;  %v7516_v57 = vld [vmem:[#allocation16 + $0x70] sm:$0xf0]  ;;  %v8226_v26 = vld [vmem:[#allocation16 + $0x5d8] sm:$0xf]  ;;  %v7715_v39 = vor.u32 %v10429_v24, %v7714_v22 }
 0x2f4   :  { %v10440_v60 = vld [vmem:[#allocation16 + $0x254] sm:$0xf]  ;;  %v7519_v10 = vor.u32 %v10376_v56, %v7516_v57  ;;  %v10541_v55 = vld [vmem:[#allocation16 + $0x574] sm:$0xf0]  ;;  %v7907_v57 = vor.u32 %v10477_v53, %v7906_v2 }
 0x2f5   :  { %3048 = vmatpush.bf16.msra.mxu1 %v8127_v43  ;;  %3023 = vmatpush.bf16.msrb.mxu3 %v7583_v44  ;;  %v7772_v1 = vld [vmem:[#allocation16 + $0x270] sm:$0xf0]  ;;  %v10421_v43 = vld [vmem:[#allocation16 + $0x1b4] sm:$0xf0] }
 0x2f6   :  { %v10504_v48 = vld [vmem:[#allocation16 + $0x454] sm:$0xf]  ;;  %v7775_v4 = vor.u32 %v10440_v60, %v7772_v1  ;;  %v10613_v44 = vld [vmem:[#allocation16 + $0x7b4] sm:$0xf0]  ;;  %v8163_v1 = vor.u32 %v10541_v55, %v8162_v7 }
 0x2f7   :  { %3061 = vmatpush.bf16.msra.mxu2 %v8383_v49  ;;  %3036 = vmatpush.bf16.msra.mxu0 %v7839_v36  ;;  %v8028_v5 = vld [vmem:[#allocation16 + $0x470] sm:$0xf0]  ;;  %v8227_v49 = vor.u32 %v10557_v31, %v8226_v26  ;;  %v7683_v36 = vor.u32 %v10421_v43, %v7682_v46  ;;  %v8451_v52 = vor.u32 %v10613_v44, %v8450_v42  ;;  %v8418_v29 = vld [vmem:[#allocation16 + $0x758] sm:$0xf] }
 0x2f8   :  { %v10568_v8 = vld [vmem:[#allocation16 + $0x654] sm:$0xf]  ;;  %v8031_v16 = vor.u32 %v10504_v48, %v8028_v5  ;;  %v10405_v60 = vld [vmem:[#allocation16 + $0x134] sm:$0xf0] }
 0x2f9   :  { %3049 = vmatpush.bf16.msra.mxu1 %v8095_v50  ;;  %v8284_v9 = vld [vmem:[#allocation16 + $0x670] sm:$0xf0]  ;;  %3024 = vmatpush.bf16.msrb.mxu3 %v7551_v54  ;;  %v10413_v50 = vld [vmem:[#allocation16 + $0x174] sm:$0xf0] }
 0x2fa   :  { %v10368_v58 = vld [vmem:[#allocation16 + $0x14] sm:$0xf]  ;;  %v8287_v30 = vor.u32 %v10568_v8, %v8284_v9  ;;  %v10605_v54 = vld [vmem:[#allocation16 + $0x774] sm:$0xf0]  ;;  %v7651_v56 = vor.u32 %v10413_v50, %v7650_v47 }
 0x2fb   :  { %3062 = vmatpush.bf16.msra.mxu2 %v8351_v51  ;;  %3037 = vmatpush.bf16.msra.mxu0 %v7807_v34  ;;  %v7484_v11 = vld [vmem:[#allocation16 + $0x30] sm:$0xf0]  ;;  %v8195_v51 = vor.u32 %v10549_v38, %v8194_v41  ;;  %v8419_v48 = vor.u32 %v10605_v54, %v8418_v29  ;;  %v7874_v5 = vld [vmem:[#allocation16 + $0x318] sm:$0xf] }
 0x2fc   :  { %v10432_v13 = vld [vmem:[#allocation16 + $0x214] sm:$0xf]  ;;  %v7487_v27 = vor.u32 %v10368_v58, %v7484_v11  ;;  %v10469_v8 = vld [vmem:[#allocation16 + $0x334] sm:$0xf0] }
 0x2fd   :  { %v7740_v14 = vld [vmem:[#allocation16 + $0x230] sm:$0xf0]  ;;  %3050 = vmatpush.bf16.msra.mxu1 %v8063_v19  ;;  %3025 = vmatpush.bf16.msrb.mxu3 %v7519_v10  ;;  %v8130_v9 = vld [vmem:[#allocation16 + $0x518] sm:$0xf] }
 0x2fe   :  { %v10496_v12 = vld [vmem:[#allocation16 + $0x414] sm:$0xf]  ;;  %v7743_v28 = vor.u32 %v10432_v13, %v7740_v14  ;;  %v10533_v58 = vld [vmem:[#allocation16 + $0x534] sm:$0xf0]  ;;  %v7875_v13 = vor.u32 %v10469_v8, %v7874_v5 }
 0x2ff   :  { %3063 = vmatpush.bf16.msra.mxu2 %v8319_v59  ;;  %v7996_v17 = vld [vmem:[#allocation16 + $0x430] sm:$0xf0]  ;;  %3038 = vmatpush.bf16.msra.mxu0 %v7775_v4  ;;  %v2781_v34 = vpop.f32.mrf.mxu0  ;;  %v7618_v59 = vld [vmem:[#allocation16 + $0x118] sm:$0xf] }
 0x300   :  { %v10560_v18 = vld [vmem:[#allocation16 + $0x614] sm:$0xf]  ;;  %v7999_v6 = vor.u32 %v10496_v12, %v7996_v17  ;;  %v2794_v19 = vpop.f32.mrf.mxu1  ;;  %v8386_v10 = vld [vmem:[#allocation16 + $0x718] sm:$0xf]  ;;  %v7619_v11 = vor.u32 %v10405_v60, %v7618_v59 }
 0x301   :  { %v8252_v20 = vld [vmem:[#allocation16 + $0x630] sm:$0xf0]  ;;  %3051 = vmatpush.bf16.msra.mxu1 %v8031_v16  ;;  %3026 = vmatpush.bf16.msrb.mxu3 %v7487_v27  ;;  %v10597_v4 = vld [vmem:[#allocation16 + $0x734] sm:$0xf0] }
 0x302   :  { %v8255_v35 = vor.u32 %v10560_v18, %v8252_v20  ;;  %v7586_v14 = vld [vmem:[#allocation16 + $0xd8] sm:$0xf]  ;;  %v8387_v12 = vor.u32 %v10597_v4, %v8386_v10 }
 0x303   :  { %3064 = vmatpush.bf16.msra.mxu2 %v8287_v30  ;;  %3039 = vmatpush.bf16.msra.mxu0 %v7743_v28  ;;  %v10397_v16 = vld [vmem:[#allocation16 + $0xf4] sm:$0xf0]  ;;  %v8131_v30 = vor.u32 %v10533_v58, %v8130_v9 }
 0x304   :  { %3027 = vmatmul.bf16.vlgmr.msrb.gmra.mxu3 %v11853_v62  ;;  %v7842_v18 = vld [vmem:[#allocation16 + $0x2d8] sm:$0xf]  ;;  %v7587_v32 = vor.u32 %v10397_v16, %v7586_v14 }
 0x305   :  { %3052 = vmatpush.bf16.msra.mxu1 %v7999_v6  ;;  %3071 = vmatpush.bf16.msra.mxu3 %v7715_v39  ;;  %v2768_v17 = vpop.f32.mrf.mxu3  ;;  %v10461_v20 = vld [vmem:[#allocation16 + $0x2f4] sm:$0xf0] }
 0x306   :  { %3040 = vmatmul.bf16.vlgmr.msra.gmra.mxu0 %v11855_v63  ;;  %v8098_v22 = vld [vmem:[#allocation16 + $0x4d8] sm:$0xf]  ;;  %v2782_v24 = vadd.f32 %v2781_v34, %v2768_v17  ;;  %v2807_v25 = vpop.f32.mrf.mxu2  ;;  %v7843_v33 = vor.u32 %v10461_v20, %v7842_v18  ;;  %v10425_v17 = vld [vmem:[#allocation16 + $0x1dc] sm:$0xf] }
 0x307   :  { %3065 = vmatpush.bf16.msra.mxu2 %v8255_v35  ;;  %3084 = vmatpush.bf16.msrb.mxu0 %v7971_v40  ;;  %v10525_v23 = vld [vmem:[#allocation16 + $0x4f4] sm:$0xf0]  ;;  %v2783_v28 = vpop.f32.mrf.mxu0 }
 0x308   :  { %3053 = vmatmul.bf16.vlgmr.msra.gmra.mxu1 %v11851_v61  ;;  %v8354_v26 = vld [vmem:[#allocation16 + $0x6d8] sm:$0xf]  ;;  %v2795_v31 = vadd.f32 %v2794_v19, %v2782_v24  ;;  %v2796_v6 = vpop.f32.mrf.mxu1  ;;  %v8099_v40 = vor.u32 %v10525_v23, %v8098_v22  ;;  %v7716_v22 = vld [vmem:[#allocation16 + $0x1f8] sm:$0xf0] }
 0x309   :  { %3097 = vmatpush.bf16.msrb.mxu1 %v8227_v49  ;;  %3072 = vmatpush.bf16.msra.mxu3 %v7683_v36  ;;  %v10589_v27 = vld [vmem:[#allocation16 + $0x6f4] sm:$0xf0]  ;;  %v10489_v24 = vld [vmem:[#allocation16 + $0x3dc] sm:$0xf] }
 0x30a   :  { %3066 = vmatmul.bf16.vlgmr.msra.gmra.mxu2 %v11857_v3  ;;  %v7554_v35 = vld [vmem:[#allocation16 + $0x98] sm:$0xf]  ;;  %v8355_v46 = vor.u32 %v10589_v27, %v8354_v26  ;;  %v11883_v37 = vadd.f32 %v2807_v25, %v2795_v31  ;;  %v7972_v25 = vld [vmem:[#allocation16 + $0x3f8] sm:$0xf0] }
 0x30b   :  { %3110 = vmatpush.bf16.msrb.mxu2 %v8483_v15  ;;  %3085 = vmatpush.bf16.msrb.mxu0 %v7939_v45  ;;  %v10389_v39 = vld [vmem:[#allocation16 + $0xb4] sm:$0xf0]  ;;  %v10553_v23 = vld [vmem:[#allocation16 + $0x5dc] sm:$0xf] }
 0x30c   :  { %v7810_v43 = vld [vmem:[#allocation16 + $0x298] sm:$0xf]  ;;  %v3175_v44 = vrot.slane %v11883_v37, 4  ;;  %v3231_v36 = vmul.f32 %v11883_v37, %v11883_v37  ;;  %v7555_v45 = vor.u32 %v10389_v39, %v7554_v35  ;;  %v8228_v26 = vld [vmem:[#allocation16 + $0x5f8] sm:$0xf0] }
 0x30d   :  { %3098 = vmatpush.bf16.msrb.mxu1 %v8195_v51  ;;  %3073 = vmatpush.bf16.msra.mxu3 %v7651_v56  ;;  %v10453_v49 = vld [vmem:[#allocation16 + $0x2b4] sm:$0xf0]  ;;  %v2770_v53 = vpop.f32.mrf.mxu3  ;;  %v8484_v6 = vld [vmem:[#allocation16 + $0x7f8] sm:$0xf0] }
 0x30e   :  { %v8066_v15 = vld [vmem:[#allocation16 + $0x498] sm:$0xf]  ;;  %v7811_v47 = vor.u32 %v10453_v49, %v7810_v43  ;;  %v3176_v54 = vadd.f32 %v3175_v44, %v11883_v37  ;;  %v3239_v34 = vrot.slane %v3231_v36, 4  ;;  %v2809_v56 = vpop.f32.mrf.mxu2  ;;  %v10417_v43 = vld [vmem:[#allocation16 + $0x19c] sm:$0xf] }
 0x30f   :  { %3111 = vmatpush.bf16.msrb.mxu2 %v8451_v52  ;;  %3086 = vmatpush.bf16.msrb.mxu0 %v7907_v57  ;;  %v10517_v0 = vld [vmem:[#allocation16 + $0x4b4] sm:$0xf0]  ;;  %v2833_v59 = vpop.f32.mrf.mxu0  ;;  %v7684_v49 = vld [vmem:[#allocation16 + $0x1b8] sm:$0xf0] }
 0x310   :  { %v8322_v41 = vld [vmem:[#allocation16 + $0x698] sm:$0xf]  ;;  %v8067_v52 = vor.u32 %v10517_v0, %v8066_v15  ;;  %v3177_v8 = vrot.slane %v3176_v54, 2  ;;  %v3240_v9 = vadd.f32 %v3239_v34, %v3231_v36  ;;  %v2846_v4 = vpop.f32.mrf.mxu1  ;;  %v10481_v44 = vld [vmem:[#allocation16 + $0x39c] sm:$0xf]  ;;  %v7687_v34 = vor.u32 %v10417_v43, %v7684_v49 }
 0x311   :  { %3099 = vmatpush.bf16.msrb.mxu1 %v8163_v1  ;;  %3074 = vmatpush.bf16.msra.mxu3 %v7619_v11  ;;  %v10581_v38 = vld [vmem:[#allocation16 + $0x6b4] sm:$0xf0]  ;;  %v7940_v36 = vld [vmem:[#allocation16 + $0x3b8] sm:$0xf0] }
 0x312   :  { %v7522_v42 = vld [vmem:[#allocation16 + $0x58] sm:$0xf]  ;;  %v8323_v2 = vor.u32 %v10581_v38, %v8322_v41  ;;  %v3178_v18 = vadd.f32 %v3177_v8, %v3176_v54  ;;  %v3241_v20 = vrot.slane %v3240_v9, 2  ;;  %v7975_v41 = vor.u32 %v10489_v24, %v7972_v25  ;;  %v8452_v54 = vld [vmem:[#allocation16 + $0x7b8] sm:$0xf0] }
 0x313   :  { %3112 = vmatpush.bf16.msrb.mxu2 %v8419_v48  ;;  %3087 = vmatpush.bf16.msrb.mxu0 %v7875_v13  ;;  %v10381_v50 = vld [vmem:[#allocation16 + $0x74] sm:$0xf0]  ;;  %v7943_v56 = vor.u32 %v10481_v44, %v7940_v36  ;;  %v7620_v25 = vld [vmem:[#allocation16 + $0x138] sm:$0xf0] }
 0x314   :  { %v7778_v51 = vld [vmem:[#allocation16 + $0x258] sm:$0xf]  ;;  %v7523_v58 = vor.u32 %v10381_v50, %v7522_v42  ;;  %v3179_v27 = vrot.slane %v3178_v18, 1  ;;  %v3242_v28 = vadd.f32 %v3241_v20, %v3240_v9  ;;  %v7908_v9 = vld [vmem:[#allocation16 + $0x378] sm:$0xf0] }
 0x315   :  { %3100 = vmatpush.bf16.msrb.mxu1 %v8131_v30  ;;  %3075 = vmatpush.bf16.msra.mxu3 %v7587_v32  ;;  %v10445_v7 = vld [vmem:[#allocation16 + $0x274] sm:$0xf0]  ;;  %v10393_v43 = vld [vmem:[#allocation16 + $0xdc] sm:$0xf] }
 0x316   :  { %v8034_v55 = vld [vmem:[#allocation16 + $0x458] sm:$0xf]  ;;  %v7779_v10 = vor.u32 %v10445_v7, %v7778_v51  ;;  %v3180_v15 = vadd.f32 %v3179_v27, %v3178_v18  ;;  %v3243_v0 = vrot.slane %v3242_v28, 1  ;;  %v2859_v42 = vpop.f32.mrf.mxu2  ;;  %v10545_v51 = vld [vmem:[#allocation16 + $0x59c] sm:$0xf] }
 0x317   :  { %3113 = vmatpush.bf16.msrb.mxu2 %v8387_v12  ;;  %3088 = vmatpush.bf16.msrb.mxu0 %v7843_v33  ;;  %v10509_v29 = vld [vmem:[#allocation16 + $0x474] sm:$0xf0]  ;;  %v10617_v33 = vld [vmem:[#allocation16 + $0x7dc] sm:$0xf]  ;;  %v2835_v50 = vpop.f32.mrf.mxu0 }
 0x318   :  { %v8290_v57 = vld [vmem:[#allocation16 + $0x658] sm:$0xf]  ;;  %v8035_v14 = vor.u32 %v10509_v29, %v8034_v55  ;;  %v2848_v7 = vpop.f32.mrf.mxu1  ;;  %v8196_v55 = vld [vmem:[#allocation16 + $0x5b8] sm:$0xf0] }
 0x319   :  { %3101 = vmatpush.bf16.msrb.mxu1 %v8099_v40  ;;  %v10573_v19 = vld [vmem:[#allocation16 + $0x674] sm:$0xf0]  ;;  %3076 = vmatpush.bf16.msra.mxu3 %v7555_v45  ;;  %v7719_v40 = vor.u32 %v10425_v17, %v7716_v22  ;;  %v8231_v45 = vor.u32 %v10553_v23, %v8228_v26  ;;  %v10609_v29 = vld [vmem:[#allocation16 + $0x79c] sm:$0xf] }
 0x31a   :  { %v7490_v60 = vld [vmem:[#allocation16 + $0x18] sm:$0xf]  ;;  %v8291_v16 = vor.u32 %v10573_v19, %v8290_v57  ;;  %v8455_v8 = vor.u32 %v10609_v29, %v8452_v54  ;;  %v10465_v23 = vld [vmem:[#allocation16 + $0x31c] sm:$0xf] }
 0x31b   :  { %3114 = vmatpush.bf16.msrb.mxu2 %v8355_v46  ;;  %v10373_v1 = vld [vmem:[#allocation16 + $0x34] sm:$0xf0]  ;;  %3089 = vmatpush.bf16.msrb.mxu0 %v7811_v47  ;;  %v2820_v46 = vpop.f32.mrf.mxu3  ;;  %v8487_v47 = vor.u32 %v10617_v33, %v8484_v6  ;;  %v7588_v49 = vld [vmem:[#allocation16 + $0xf8] sm:$0xf0] }
 0x31c   :  { %v7746_v48 = vld [vmem:[#allocation16 + $0x218] sm:$0xf]  ;;  %v7491_v31 = vor.u32 %v10373_v1, %v7490_v60  ;;  %v2834_v38 = vadd.f32 %v2833_v59, %v2820_v46  ;;  %v10409_v60 = vld [vmem:[#allocation16 + $0x15c] sm:$0xf]  ;;  %v7591_v29 = vor.u32 %v10393_v43, %v7588_v49 }
 0x31d   :  { %v10437_v5 = vld [vmem:[#allocation16 + $0x234] sm:$0xf0]  ;;  %3102 = vmatpush.bf16.msrb.mxu1 %v8067_v52  ;;  %3077 = vmatpush.bf16.msra.mxu3 %v7523_v58  ;;  %v11890_v52 = vmul.f32 %v3180_v15, %v11658_v21  ;;  %v7652_v1 = vld [vmem:[#allocation16 + $0x178] sm:$0xf0] }
 0x31e   :  { %v8002_v11 = vld [vmem:[#allocation16 + $0x418] sm:$0xf]  ;;  %v7747_v32 = vor.u32 %v10437_v5, %v7746_v48  ;;  %v2847_v53 = vadd.f32 %v2846_v4, %v2834_v38  ;;  %v10473_v48 = vld [vmem:[#allocation16 + $0x35c] sm:$0xf]  ;;  %v8199_v5 = vor.u32 %v10545_v51, %v8196_v55  ;;  %v2861_v24 = vpop.f32.mrf.mxu2 }
 0x31f   :  { %v10501_v13 = vld [vmem:[#allocation16 + $0x434] sm:$0xf0]  ;;  %3115 = vmatpush.bf16.msrb.mxu2 %v8323_v2  ;;  %3090 = vmatpush.bf16.msrb.mxu0 %v7779_v10  ;;  %v3244_v2 = vadd.f32 %v3243_v0, %v3242_v28  ;;  %v3295_v19 = vmul.f32 %v11890_v52, %v11890_v52  ;;  %v10537_v58 = vld [vmem:[#allocation16 + $0x55c] sm:$0xf]  ;;  %v7911_v22 = vor.u32 %v10473_v48, %v7908_v9 }
 0x320   :  { %v8258_v30 = vld [vmem:[#allocation16 + $0x618] sm:$0xf]  ;;  %v8003_v35 = vor.u32 %v10501_v13, %v8002_v11  ;;  %v11895_v59 = vadd.f32 %v2859_v42, %v2847_v53  ;;  %v8164_v10 = vld [vmem:[#allocation16 + $0x578] sm:$0xf0] }
 0x321   :  { %v10565_v12 = vld [vmem:[#allocation16 + $0x634] sm:$0xf0]  ;;  %3103 = vmatpush.bf16.msrb.mxu1 %v8035_v14  ;;  %3078 = vmatpush.bf16.msra.mxu3 %v7491_v31  ;;  %v3287_v57 = vmul.f32 %v3244_v2, %v11658_v21  ;;  %v10601_v13 = vld [vmem:[#allocation16 + $0x75c] sm:$0xf]  ;;  %v8167_v26 = vor.u32 %v10537_v58, %v8164_v10 }
 0x322   :  { %v8259_v39 = vor.u32 %v10565_v12, %v8258_v30  ;;  %v3181_v4 = vrot.slane %v11895_v59, 4  ;;  %v3232_v11 = vmul.f32 %v11895_v59, %v11895_v59  ;;  %v8420_v14 = vld [vmem:[#allocation16 + $0x778] sm:$0xf0] }
 0x323   :  { %3116 = vmatpush.bf16.msrb.mxu2 %v8291_v16  ;;  %3091 = vmatpush.bf16.msrb.mxu0 %v7747_v32  ;;  %v7655_v16 = vor.u32 %v10409_v60, %v7652_v1  ;;  %v2822_v30 = vpop.f32.mrf.mxu3  ;;  %v10401_v12 = vld [vmem:[#allocation16 + $0x11c] sm:$0xf]  ;;  %v3303_v17 = vsub.f32 %v3287_v57, %v3295_v19  ;;  %v8423_v27 = vor.u32 %v10601_v13, %v8420_v14 }
 0x324   :  { %3079 = vmatmul.bf16.vlgmr.msra.gmra.mxu3 %v11853_v62  ;;  %v3182_v18 = vadd.f32 %v3181_v4, %v11895_v59  ;;  %v3245_v20 = vrot.slane %v3232_v11, 4  ;;  %v7876_v28 = vld [vmem:[#allocation16 + $0x338] sm:$0xf0]  ;;  %v7623_v46 = vor.u32 %v10401_v12, %v7620_v25 }
 0x325   :  { %3104 = vmatpush.bf16.msrb.mxu1 %v8003_v35  ;;  %3123 = vmatpush.bf16.msrb.mxu3 %v7719_v40  ;;  %v10529_v31 = vld [vmem:[#allocation16 + $0x51c] sm:$0xf]  ;;  %v2885_v40 = vpop.f32.mrf.mxu0  ;;  %v11905_v15 = vadd.f32 0.8, %v3303_v17  ;;  %v2898_v38 = vpop.f32.mrf.mxu1  ;;  %v7879_v42 = vor.u32 %v10465_v23, %v7876_v28 }
 0x326   :  { %3092 = vmatmul.bf16.vlgmr.msrb.gmra.mxu0 %v11855_v63  ;;  %v8132_v32 = vld [vmem:[#allocation16 + $0x538] sm:$0xf0]  ;;  %v3183_v33 = vrot.slane %v3182_v18, 2  ;;  %v3246_v6 = vadd.f32 %v3245_v20, %v3232_v11 }
 0x327   :  { %3117 = vmatpush.bf16.msrb.mxu2 %v8259_v39  ;;  %3136 = vmatpush.bf16.msra.mxu0 %v7975_v41  ;;  %v10593_v35 = vld [vmem:[#allocation16 + $0x71c] sm:$0xf]  ;;  %v8135_v36 = vor.u32 %v10529_v31, %v8132_v32  ;;  %11110 = vrsqrt.f32 %v11905_v15  ;;  %vm3325_vm13 = vweird.f32 %v11905_v15 }
 0x328   :  { %3105 = vmatmul.bf16.vlgmr.msrb.gmra.mxu1 %v11851_v61  ;;  %v8388_v39 = vld [vmem:[#allocation16 + $0x738] sm:$0xf0]  ;;  %v3184_v0 = vadd.f32 %v3183_v33, %v3182_v18  ;;  %v3247_v41 = vrot.slane %v3246_v6, 2 }
 0x329   :  { %3149 = vmatpush.bf16.msra.mxu1 %v8231_v45  ;;  %3124 = vmatpush.bf16.msrb.mxu3 %v7687_v34  ;;  %v10457_v44 = vld [vmem:[#allocation16 + $0x2dc] sm:$0xf]  ;;  %v8391_v45 = vor.u32 %v10593_v35, %v8388_v39 }
 0x32a   :  { %3118 = vmatmul.bf16.vlgmr.msrb.gmra.mxu2 %v11857_v3  ;;  %v10521_v50 = vld [vmem:[#allocation16 + $0x4dc] sm:$0xf]  ;;  %v3185_v2 = vrot.slane %v3184_v0, 1  ;;  %v3248_v53 = vadd.f32 %v3247_v41, %v3246_v6 }
 0x32b   :  { %3162 = vmatpush.bf16.msra.mxu2 %v8487_v47  ;;  %3137 = vmatpush.bf16.msra.mxu0 %v7943_v56  ;;  %v7844_v47 = vld [vmem:[#allocation16 + $0x2f8] sm:$0xf0] }
 0x32c   :  { %v8100_v51 = vld [vmem:[#allocation16 + $0x4f8] sm:$0xf0]  ;;  %v3186_v56 = vadd.f32 %v3185_v2, %v3184_v0  ;;  %v3249_v57 = vrot.slane %v3248_v53, 1  ;;  %v7847_v19 = vor.u32 %v10457_v44, %v7844_v47 }
 0x32d   :  { %3150 = vmatpush.bf16.msra.mxu1 %v8199_v5  ;;  %3125 = vmatpush.bf16.msrb.mxu3 %v7655_v16  ;;  %v10585_v7 = vld [vmem:[#allocation16 + $0x6dc] sm:$0xf]  ;;  %v8103_v48 = vor.u32 %v10521_v50, %v8100_v51  ;;  %v2911_v11 = vpop.f32.mrf.mxu2  ;;  %v2887_v30 = vpop.f32.mrf.mxu0 }
 0x32e   :  { %v8356_v55 = vld [vmem:[#allocation16 + $0x6f8] sm:$0xf0]  ;;  %v11909_v58 = vmul.f32 %v3186_v56, %v11658_v21  ;;  %v3250_v10 = vadd.f32 %v3249_v57, %v3248_v53  ;;  %v2900_v24 = vpop.f32.mrf.mxu1  ;;  %v11914_v33 = vpop.eup %11110 }
 0x32f   :  { %3163 = vmatpush.bf16.msra.mxu2 %v8455_v8  ;;  %3138 = vmatpush.bf16.msra.mxu0 %v7911_v22  ;;  %v10385_v54 = vld [vmem:[#allocation16 + $0x9c] sm:$0xf]  ;;  %v8359_v5 = vor.u32 %v10585_v7, %v8356_v55  ;;  %v2872_v8 = vpop.f32.mrf.mxu3  ;;  %vm3326_vm10 = vweird.f32 %v11914_v33 }
 0x330   :  { %v7556_v34 = vld [vmem:[#allocation16 + $0xb8] sm:$0xf0]  ;;  %v2886_v4 = vadd.f32 %v2885_v40, %v2872_v8  ;;  %v3288_v18 = vmul.f32 %v3250_v10, %v11658_v21  ;;  %v3296_v20 = vmul.f32 %v11909_v58, %v11909_v58  ;;  %vm3327_vm14 = vmor %vm3325_vm13, %vm3326_vm10 }
 0x331   :  { %3151 = vmatpush.bf16.msra.mxu1 %v8167_v26  ;;  %3126 = vmatpush.bf16.msrb.mxu3 %v7623_v46  ;;  %v10449_v60 = vld [vmem:[#allocation16 + $0x29c] sm:$0xf]  ;;  %v7559_v12 = vor.u32 %v10385_v54, %v7556_v34 }
 0x332   :  { %v7812_v1 = vld [vmem:[#allocation16 + $0x2b8] sm:$0xf0]  ;;  %v2899_v22 = vadd.f32 %v2898_v38, %v2886_v4  ;;  %v3304_v6 = vsub.f32 %v3288_v18, %v3296_v20 }
 0x333   :  { %3164 = vmatpush.bf16.msra.mxu2 %v8423_v27  ;;  %3139 = vmatpush.bf16.msra.mxu0 %v7879_v42  ;;  %v10513_v9 = vld [vmem:[#allocation16 + $0x49c] sm:$0xf]  ;;  %v7815_v17 = vor.u32 %v10449_v60, %v7812_v1 }
 0x334   :  { %v8068_v13 = vld [vmem:[#allocation16 + $0x4b8] sm:$0xf0]  ;;  %v11916_v35 = vadd.f32 %v2911_v11, %v2899_v22  ;;  %v3312_v41 = vadd.f32 0.8, %v3304_v6 }
 0x335   :  { %3152 = vmatpush.bf16.msra.mxu1 %v8135_v36  ;;  %v10577_v14 = vld [vmem:[#allocation16 + $0x69c] sm:$0xf]  ;;  %3127 = vmatpush.bf16.msrb.mxu3 %v7591_v29  ;;  %v8071_v26 = vor.u32 %v10513_v9, %v8068_v13  ;;  %v2913_v54 = vpop.f32.mrf.mxu2 }
 0x336   :  { %v8324_v16 = vld [vmem:[#allocation16 + $0x6b8] sm:$0xf0]  ;;  %v3187_v38 = vrot.slane %v11916_v35, 4  ;;  %v3233_v42 = vmul.f32 %v11916_v35, %v11916_v35  ;;  %11112 = vrsqrt.f32 %v3312_v41  ;;  %vm3335_vm11 = vweird.f32 %v3312_v41 }
 0x337   :  { %3165 = vmatpush.bf16.msra.mxu2 %v8391_v45  ;;  %3140 = vmatpush.bf16.msra.mxu0 %v7847_v19  ;;  %v10377_v25 = vld [vmem:[#allocation16 + $0x5c] sm:$0xf]  ;;  %v8327_v27 = vor.u32 %v10577_v14, %v8324_v16  ;;  %v3320_v45 = vmul.f32 %v11914_v33, %v11905_v15  ;;  %v2874_v51 = vpop.f32.mrf.mxu3 }
 0x338   :  { %v7524_v23 = vld [vmem:[#allocation16 + $0x78] sm:$0xf0]  ;;  %v3188_v55 = vadd.f32 %v3187_v38, %v11916_v35  ;;  %v3251_v29 = vrot.slane %v3233_v42, 4 }
 0x339   :  { %3153 = vmatpush.bf16.msra.mxu1 %v8103_v48  ;;  %v10441_v28 = vld [vmem:[#allocation16 + $0x25c] sm:$0xf]  ;;  %v7527_v43 = vor.u32 %v10377_v25, %v7524_v23  ;;  %3128 = vmatpush.bf16.msrb.mxu3 %v7559_v12  ;;  %v3321_v48 = vmul.f32 %v11914_v33, %v3320_v45 }
 0x33a   :  { %v7780_v31 = vld [vmem:[#allocation16 + $0x278] sm:$0xf0]  ;;  %v3189_v57 = vrot.slane %v3188_v55, 2  ;;  %v3252_v19 = vadd.f32 %v3251_v29, %v3233_v42 }
 0x33b   :  { %3166 = vmatpush.bf16.msra.mxu2 %v8359_v5  ;;  %v10505_v32 = vld [vmem:[#allocation16 + $0x45c] sm:$0xf]  ;;  %3141 = vmatpush.bf16.msra.mxu0 %v7815_v17  ;;  %v7783_v44 = vor.u32 %v10441_v28, %v7780_v31  ;;  %v3322_v11 = vmul.f32 0.5, %v3321_v48 }
 0x33c   :  { %v8036_v39 = vld [vmem:[#allocation16 + $0x478] sm:$0xf0]  ;;  %v11113_v9 = vpop.eup %11112  ;;  %v3190_v10 = vadd.f32 %v3189_v57, %v3188_v55  ;;  %v3253_v4 = vrot.slane %v3252_v19, 2 }
 0x33d   :  { %v10569_v40 = vld [vmem:[#allocation16 + $0x65c] sm:$0xf]  ;;  %3154 = vmatpush.bf16.msra.mxu1 %v8071_v26  ;;  %v8039_v47 = vor.u32 %v10505_v32, %v8036_v39  ;;  %3129 = vmatpush.bf16.msrb.mxu3 %v7527_v43  ;;  %v3330_v13 = vmul.f32 %v11113_v9, %v3312_v41  ;;  %v3323_v12 = vsub.f32 1.5, %v3322_v11  ;;  %vm3336_vm9 = vweird.f32 %v11113_v9 }
 0x33e   :  { %v8292_v46 = vld [vmem:[#allocation16 + $0x678] sm:$0xf0]  ;;  %v3191_v16 = vrot.slane %v3190_v10, 1  ;;  %v3254_v30 = vadd.f32 %v3253_v4, %v3252_v19  ;;  %vm3337_vm12 = vmor %vm3335_vm11, %vm3336_vm9 }
 0x33f   :  { %v10369_v49 = vld [vmem:[#allocation16 + $0x1c] sm:$0xf]  ;;  %3167 = vmatpush.bf16.msra.mxu2 %v8327_v27  ;;  %v8295_v50 = vor.u32 %v10569_v40, %v8292_v46  ;;  %3142 = vmatpush.bf16.msra.mxu0 %v7783_v44  ;;  %v3331_v14 = vmul.f32 %v11113_v9, %v3330_v13  ;;  %v3324_v24 = vmul.f32 %v11914_v33, %v3323_v12 }
 0x340   :  { %v7492_v0 = vld [vmem:[#allocation16 + $0x38] sm:$0xf0]  ;;  %v3192_v20 = vadd.f32 %v3191_v16, %v3190_v10  ;;  %v3255_v22 = vrot.slane %v3254_v30, 1 }
 0x341   :  { %v10433_v36 = vld [vmem:[#allocation16 + $0x21c] sm:$0xf]  ;;  %v7495_v60 = vor.u32 %v10369_v49, %v7492_v0  ;;  %3155 = vmatpush.bf16.msra.mxu1 %v8039_v47  ;;  %v3332_v17 = vmul.f32 0.5, %v3331_v14  ;;  %v3328_v27 = vsel %vm3327_vm14, %v11914_v33, %v3324_v24 }
 0x342   :  { %v7748_v2 = vld [vmem:[#allocation16 + $0x238] sm:$0xf0]  ;;  %v11933_v23 = vmul.f32 %v3192_v20, %v11658_v21  ;;  %v3256_v26 = vadd.f32 %v3255_v22, %v3254_v30 }
 0x343   :  { %v10497_v53 = vld [vmem:[#allocation16 + $0x41c] sm:$0xf]  ;;  %v7751_v1 = vor.u32 %v10433_v36, %v7748_v2  ;;  %3168 = vmatpush.bf16.msra.mxu2 %v8295_v50  ;;  %3130 = vmatpush.bf16.msrb.mxu3 %v7495_v60  ;;  %v3333_v18 = vsub.f32 1.5, %v3332_v17 }
 0x344   :  { %v8004_v7 = vld [vmem:[#allocation16 + $0x438] sm:$0xf0]  ;;  %v3289_v32 = vmul.f32 %v3256_v26, %v11658_v21  ;;  %v3297_v6 = vmul.f32 %v11933_v23, %v11933_v23 }
 0x345   :  { %v10561_v34 = vld [vmem:[#allocation16 + $0x61c] sm:$0xf]  ;;  %v8007_v5 = vor.u32 %v10497_v53, %v8004_v7  ;;  %3143 = vmatpush.bf16.msra.mxu0 %v7751_v1  ;;  %v3334_v25 = vmul.f32 %v11113_v9, %v3333_v18 }
 0x346   :  { %v8260_v56 = vld [vmem:[#allocation16 + $0x638] sm:$0xf0]  ;;  %3131 = vmatmul.bf16.vlgmr.msrb.gmra.mxu3 %v11853_v62  ;;  %v2937_v62 = vpop.f32.mrf.mxu0  ;;  %v3305_v49 = vsub.f32 %v3289_v32, %v3297_v6 }
 0x347   :  { %v8263_v8 = vor.u32 %v10561_v34, %v8260_v56  ;;  %3156 = vmatpush.bf16.msra.mxu1 %v8007_v5  ;;  %v2924_v31 = vpop.f32.mrf.mxu3 }
 0x348   :  { %3144 = vmatmul.bf16.vlgmr.msra.gmra.mxu0 %v11855_v63  ;;  %v2950_v63 = vpop.f32.mrf.mxu1  ;;  %v2938_v39 = vadd.f32 %v2937_v62, %v2924_v31  ;;  %v3313_v42 = vadd.f32 0.8, %v3305_v49 }
 0x349   :  { %3169 = vmatpush.bf16.msra.mxu2 %v8263_v8 }
 0x34a   :  { %3157 = vmatmul.bf16.vlgmr.msra.gmra.mxu1 %v11851_v61  ;;  %v3338_v61 = vsel %vm3337_vm12, %v11113_v9, %v3334_v25  ;;  %v2951_v46 = vadd.f32 %v2950_v63, %v2938_v39  ;;  %11114 = vrsqrt.f32 %v3313_v42  ;;  %vm3345_vm1 = vweird.f32 %v3313_v42 }
 0x34c   :  { %3170 = vmatmul.bf16.vlgmr.msra.gmra.mxu2 %v11857_v3  ;;  %v3407_v3 = vrot.slane %v3338_v61, 7 }
 0x34d   :  { %v2963_v15 = vpop.f32.mrf.mxu2 }
 0x34e   :  { %v11937_v28 = vsel %vm520_vm8, %v3328_v27, %v3407_v3  ;;  %v2939_v40 = vpop.f32.mrf.mxu0  ;;  %v11942_v0 = vadd.f32 %v2963_v15, %v2951_v46 }
 0x34f   :  { %v2926_v38 = vpop.f32.mrf.mxu3 }
 0x350   :  { %v2952_v43 = vpop.f32.mrf.mxu1  ;;  %v3193_v41 = vrot.slane %v11942_v0, 4  ;;  %v3234_v33 = vmul.f32 %v11942_v0, %v11942_v0  ;;  %v11115_v54 = vpop.eup %11114 }
 0x351   :  { %v3340_v60 = vmul.f32 %v11115_v54, %v3313_v42  ;;  %vm3346_vm15 = vweird.f32 %v11115_v54 }
 0x352   :  { %v3194_v44 = vadd.f32 %v3193_v41, %v11942_v0  ;;  %v3257_v36 = vrot.slane %v3234_v33, 4  ;;  %vm3347_vm3 = vmor %vm3345_vm1, %vm3346_vm15 }
 0x353   :  { %v3341_v9 = vmul.f32 %v11115_v54, %v3340_v60 }
 0x354   :  { %v3195_v47 = vrot.slane %v3194_v44, 2  ;;  %v3258_v50 = vadd.f32 %v3257_v36, %v3234_v33 }
 0x355   :  { %v2965_v45 = vpop.f32.mrf.mxu2  ;;  %v3342_v10 = vmul.f32 0.5, %v3341_v9 }
 0x356   :  { %v3196_v51 = vadd.f32 %v3195_v47, %v3194_v44  ;;  %v3259_v2 = vrot.slane %v3258_v50, 2 }
 0x357   :  { %v3343_v17 = vsub.f32 1.5, %v3342_v10 }
 0x358   :  { %v3197_v53 = vrot.slane %v3196_v51, 1  ;;  %v3260_v7 = vadd.f32 %v3259_v2, %v3258_v50 }
 0x359   :  { %v3344_v24 = vmul.f32 %v11115_v54, %v3343_v17 }
 0x35a   :  { %v3198_v55 = vadd.f32 %v3197_v53, %v3196_v51  ;;  %v3261_v29 = vrot.slane %v3260_v7, 1 }
 0x35b   :  { %v3348_v3 = vsel %vm3347_vm3, %v11115_v54, %v3344_v24 }
 0x35c   :  { %v11949_v34 = vmul.f32 %v3198_v55, %v11658_v21  ;;  %v3262_v56 = vadd.f32 %v3261_v29, %v3260_v7  ;;  %v3408_v31 = vrot.slane %v3348_v3, 6 }
 0x35e   :  { %v3290_v57 = vmul.f32 %v3262_v56, %v11658_v21  ;;  %v3298_v19 = vmul.f32 %v11949_v34, %v11949_v34 }
 0x360   :  { %v3306_v1 = vsub.f32 %v3290_v57, %v3298_v19 }
 0x362   :  { %v3314_v5 = vadd.f32 0.8, %v3306_v1 }
 0x363   :  { %v2989_v48 = vpop.f32.mrf.mxu0 }
 0x364   :  { %11116 = vrsqrt.f32 %v3314_v5  ;;  %vm3355_vm4 = vweird.f32 %v3314_v5 }
 0x365   :  { %v3002_v8 = vpop.f32.mrf.mxu1 }
 0x367   :  { %v2976_v4 = vpop.f32.mrf.mxu3 }
 0x368   :  { %v2990_v11 = vadd.f32 %v2989_v48, %v2976_v4 }
 0x36a   :  { %v11117_v16 = vpop.eup %11116  ;;  %v3003_v30 = vadd.f32 %v3002_v8, %v2990_v11 }
 0x36b   :  { %v2991_v14 = vpop.f32.mrf.mxu0  ;;  %v3350_v18 = vmul.f32 %v11117_v16, %v3314_v5  ;;  %vm3356_vm2 = vweird.f32 %v11117_v16 }
 0x36c   :  { %vm3357_vm5 = vmor %vm3355_vm4, %vm3356_vm2 }
 0x36d   :  { %v3015_v13 = vpop.f32.mrf.mxu2  ;;  %v3004_v12 = vpop.f32.mrf.mxu1  ;;  %v3351_v22 = vmul.f32 %v11117_v16, %v3350_v18 }
 0x36e   :  { %v11954_v20 = vadd.f32 %v3015_v13, %v3003_v30 }
 0x36f   :  { %v3352_v25 = vmul.f32 0.5, %v3351_v22  ;;  %v2978_v62 = vpop.f32.mrf.mxu3 }
 0x370   :  { %v3199_v36 = vrot.slane %v11954_v20, 4  ;;  %v3235_v45 = vmul.f32 %v11954_v20, %v11954_v20 }
 0x371   :  { %v3353_v61 = vsub.f32 1.5, %v3352_v25 }
 0x372   :  { %v3200_v47 = vadd.f32 %v3199_v36, %v11954_v20  ;;  %v3263_v50 = vrot.slane %v3235_v45, 4 }
 0x373   :  { %v3354_v26 = vmul.f32 %v11117_v16, %v3353_v61 }
 0x374   :  { %v3201_v53 = vrot.slane %v3200_v47, 2  ;;  %v3264_v7 = vadd.f32 %v3263_v50, %v3235_v45  ;;  %v10842_v50 = vld [vmem:[#allocation21 + $0x6e0] sm:$0xf0] }
 0x375   :  { %v3017_v63 = vpop.f32.mrf.mxu2  ;;  %v3358_v27 = vsel %vm3357_vm5, %v11117_v16, %v3354_v26  ;;  %vm3417_vm5 = vcmask 1044484  }
 0x376   :  { %v3409_v32 = vrot.slane %v3358_v27, 5  ;;  %v3202_v54 = vadd.f32 %v3201_v53, %v3200_v47  ;;  %v3265_v57 = vrot.slane %v3264_v7, 2 }
 0x378   :  { %v3415_v6 = vsel %vm1162_vm6, %v3408_v31, %v3409_v32  ;;  %v3203_v10 = vrot.slane %v3202_v54, 1  ;;  %v3266_v4 = vadd.f32 %v3265_v57, %v3264_v7  ;;  %v10723_v57 = vld [vmem:[#allocation21 + $0x328] sm:$0xf0] }
 0x379   :  { %v11959_v39 = vsel %vm310_vm0, %v11937_v28, %v3415_v6 }
 0x37a   :  { %v3204_v12 = vadd.f32 %v3203_v10, %v3202_v54  ;;  %v3267_v18 = vrot.slane %v3266_v4, 1 }
 0x37c   :  { %v11978_v26 = vmul.f32 %v3204_v12, %v11658_v21  ;;  %v3268_v27 = vadd.f32 %v3267_v18, %v3266_v4  ;;  %v8854_v12 = vld [vmem:[#allocation21 + $0x2d8] sm:$0xf]  ;;  %v10716_v18 = vld [vmem:[#allocation21 + $0x2f0] sm:$0xf0] }
 0x383   :  { %v3041_v15 = vpop.f32.mrf.mxu0 }
 0x385   :  { %v3054_v40 = vpop.f32.mrf.mxu1 }
 0x387   :  { %v3028_v46 = vpop.f32.mrf.mxu3 }
 0x388   :  { %v3042_v43 = vadd.f32 %v3041_v15, %v3028_v46  ;;  %v8686_v15 = vld [vmem:[#allocation21 + $0x188] sm:$0xf] }
 0x38a   :  { %v3055_v33 = vadd.f32 %v3054_v40, %v3042_v43  ;;  %v10674_v40 = vld [vmem:[#allocation21 + $0x1a0] sm:$0xf0]  ;;  %v8910_v43 = vld [vmem:[#allocation21 + $0x348] sm:$0xf] }
 0x38b   :  { %v3043_v41 = vpop.f32.mrf.mxu0  ;;  %v8687_v46 = vor.u32 %v10674_v40, %v8686_v15 }
 0x38c   :  { %v9134_v41 = vld [vmem:[#allocation21 + $0x508] sm:$0xf] }
 0x38d   :  { %v3067_v49 = vpop.f32.mrf.mxu2  ;;  %v3056_v38 = vpop.f32.mrf.mxu1  ;;  %6365 = vmatpush.bf16.msra.mxu3 %v8687_v46 }
 0x38e   :  { %v11965_v28 = vadd.f32 %v3067_v49, %v3055_v33  ;;  %v10730_v49 = vld [vmem:[#allocation21 + $0x360] sm:$0xf0] }
 0x38f   :  { %v3030_v42 = vpop.f32.mrf.mxu3  ;;  %v8911_v38 = vor.u32 %v10730_v49, %v8910_v43  ;;  %v8602_v49 = vld [vmem:[#allocation21 + $0xe0] sm:$0xf] }
 0x390   :  { %v3236_v55 = vmul.f32 %v11965_v28, %v11965_v28  ;;  %v3205_v29 = vrot.slane %v11965_v28, 4  ;;  %v10786_v42 = vld [vmem:[#allocation21 + $0x520] sm:$0xf0] }
 0x391   :  { %v9135_v47 = vor.u32 %v10786_v42, %v9134_v41  ;;  %6378 = vmatpush.bf16.msrb.mxu0 %v8911_v38  ;;  %v10653_v41 = vld [vmem:[#allocation21 + $0xf8] sm:$0xf0]  ;;  %v9050_v42 = vld [vmem:[#allocation21 + $0x460] sm:$0xf] }
 0x392   :  { %v3269_v19 = vrot.slane %v3236_v55, 4  ;;  %v3206_v5 = vadd.f32 %v3205_v29, %v11965_v28  ;;  %v10667_v29 = vld [vmem:[#allocation21 + $0x168] sm:$0xf0]  ;;  %v10709_v38 = vld [vmem:[#allocation21 + $0x2b8] sm:$0xf0] }
 0x393   :  { %6391 = vmatpush.bf16.msrb.mxu1 %v9135_v47  ;;  %v10765_v47 = vld [vmem:[#allocation21 + $0x478] sm:$0xf0] }
 0x394   :  { %v3270_v11 = vadd.f32 %v3269_v19, %v3236_v55  ;;  %v3207_v14 = vrot.slane %v3206_v5, 2  ;;  %v8658_v55 = vld [vmem:[#allocation21 + $0x150] sm:$0xf] }
 0x395   :  { %v3069_v44 = vpop.f32.mrf.mxu2  ;;  %v8659_v54 = vor.u32 %v10667_v29, %v8658_v55  ;;  %v9106_v19 = vld [vmem:[#allocation21 + $0x4d0] sm:$0xf] }
 0x396   :  { %v3271_v22 = vrot.slane %v3270_v11, 2  ;;  %v3208_v63 = vadd.f32 %v3207_v14, %v3206_v5  ;;  %v9358_v44 = vld [vmem:[#allocation21 + $0x6c8] sm:$0xf]  ;;  %v9330_v5 = vld [vmem:[#allocation21 + $0x690] sm:$0xf] }
 0x397   :  { %v9359_v7 = vor.u32 %v10842_v50, %v9358_v44  ;;  %6366 = vmatpush.bf16.msra.mxu3 %v8659_v54  ;;  %v9274_v50 = vld [vmem:[#allocation21 + $0x620] sm:$0xf]  ;;  %v8574_v54 = vld [vmem:[#allocation21 + $0xa8] sm:$0xf] }
 0x398   :  { %v3272_v31 = vadd.f32 %v3271_v22, %v3270_v11  ;;  %v3209_v33 = vrot.slane %v3208_v63, 1  ;;  %v9078_v22 = vld [vmem:[#allocation21 + $0x498] sm:$0xf] }
 0x399   :  { %6404 = vmatpush.bf16.msrb.mxu2 %v9359_v7  ;;  %v9051_v7 = vor.u32 %v10765_v47, %v9050_v42  ;;  %v8742_v47 = vld [vmem:[#allocation21 + $0x1f8] sm:$0xf] }
 0x39a   :  { %v3273_v53 = vrot.slane %v3272_v31, 1 }
 0x3a3   :  { %v3093_v51 = vpop.f32.mrf.mxu0 }
 0x3a5   :  { %v3106_v2 = vpop.f32.mrf.mxu1 }
 0x3a7   :  { %v3080_v56 = vpop.f32.mrf.mxu3 }
 0x3a8   :  { %v3094_v60 = vadd.f32 %v3093_v51, %v3080_v56  ;;  %v3291_v51 = vmul.f32 %v3268_v27, %v11658_v21  ;;  %v8882_v56 = vld [vmem:[#allocation21 + $0x310] sm:$0xf]  ;;  %v9302_v27 = vld [vmem:[#allocation21 + $0x658] sm:$0xf] }
 0x3aa   :  { %v3107_v8 = vadd.f32 %v3106_v2, %v3094_v60  ;;  %v3299_v2 = vmul.f32 %v11978_v26, %v11978_v26  ;;  %v3210_v60 = vadd.f32 %v3209_v33, %v3208_v63  ;;  %v8826_v33 = vld [vmem:[#allocation21 + $0x2a0] sm:$0xf] }
 0x3ab   :  { %v3095_v48 = vpop.f32.mrf.mxu0 }
 0x3ac   :  { %v10779_v48 = vld [vmem:[#allocation21 + $0x4e8] sm:$0xf0]  ;;  %v3307_v14 = vsub.f32 %v3291_v51, %v3299_v2  ;;  %v10821_v51 = vld [vmem:[#allocation21 + $0x638] sm:$0xf0] }
 0x3ad   :  { %v3119_v1 = vpop.f32.mrf.mxu2  ;;  %v3108_v9 = vpop.f32.mrf.mxu1  ;;  %v9107_v4 = vor.u32 %v10779_v48, %v9106_v19  ;;  %v9275_v55 = vor.u32 %v10821_v51, %v9274_v50  ;;  %v10702_v48 = vld [vmem:[#allocation21 + $0x280] sm:$0xf0] }
 0x3ae   :  { %v11971_v13 = vadd.f32 %v3119_v1, %v3107_v8  ;;  %v8883_v1 = vor.u32 %v10723_v57, %v8882_v56  ;;  %v10835_v8 = vld [vmem:[#allocation21 + $0x6a8] sm:$0xf0]  ;;  %v11989_v43 = vadd.f32 0.8, %v3307_v14  ;;  %v10646_v56 = vld [vmem:[#allocation21 + $0xc0] sm:$0xf0] }
 0x3af   :  { %v3082_v17 = vpop.f32.mrf.mxu3  ;;  %v9331_v11 = vor.u32 %v10835_v8, %v9330_v5  ;;  %6392 = vmatpush.bf16.msrb.mxu1 %v9107_v4  ;;  %v8798_v57 = vld [vmem:[#allocation21 + $0x268] sm:$0xf]  ;;  %v10758_v8 = vld [vmem:[#allocation21 + $0x440] sm:$0xf0] }
 0x3b0   :  { %v3211_v16 = vrot.slane %v11971_v13, 4  ;;  %v3237_v30 = vmul.f32 %v11971_v13, %v11971_v13  ;;  %6379 = vmatpush.bf16.msrb.mxu0 %v8883_v1  ;;  %v8575_v1 = vor.u32 %v10646_v56, %v8574_v54  ;;  %v9022_v5 = vld [vmem:[#allocation21 + $0x428] sm:$0xf]  ;;  %v8799_v4 = vor.u32 %v10702_v48, %v8798_v57  ;;  %v10744_v54 = vld [vmem:[#allocation21 + $0x3d0] sm:$0xf0] }
 0x3b1   :  { %6405 = vmatpush.bf16.msrb.mxu2 %v9331_v11  ;;  %v9023_v11 = vor.u32 %v10758_v8, %v9022_v5  ;;  %v9246_v14 = vld [vmem:[#allocation21 + $0x5e8] sm:$0xf]  ;;  %11118 = vrsqrt.f32 %v11989_v43  ;;  %v9190_v56 = vld [vmem:[#allocation21 + $0x578] sm:$0xf]  ;;  %v10800_v57 = vld [vmem:[#allocation21 + $0x590] sm:$0xf0]  ;;  %vm3365_vm9 = vweird.f32 %v11989_v43 }
 0x3b2   :  { %v3212_v24 = vadd.f32 %v3211_v16, %v11971_v13  ;;  %v3275_v25 = vrot.slane %v3237_v30, 4  ;;  %v8630_v16 = vld [vmem:[#allocation21 + $0x118] sm:$0xf]  ;;  %v9191_v5 = vor.u32 %v10800_v57, %v9190_v56  ;;  %v8490_v8 = vld [vmem:[#allocation21] sm:$0xf] }
 0x3b3   :  { %v10891_v56 = vld [vmem:[#allocation21 + $0x868] sm:$0xf0]  ;;  %v9778_v57 = vld [vmem:[#allocation21 + $0xa10] sm:$0xf] }
 0x3b4   :  { %v3213_v61 = vrot.slane %v3212_v24, 2  ;;  %v3276_v3 = vadd.f32 %v3275_v25, %v3237_v30  ;;  %v10660_v30 = vld [vmem:[#allocation21 + $0x130] sm:$0xf0]  ;;  %v11984_v25 = vmul.f32 %v3210_v60, %v11658_v21 }
 0x3b5   :  { %v3121_v62 = vpop.f32.mrf.mxu2  ;;  %v8631_v17 = vor.u32 %v10660_v30, %v8630_v16  ;;  %v10814_v16 = vld [vmem:[#allocation21 + $0x600] sm:$0xf0] }
 0x3b6   :  { %v3214_v32 = vadd.f32 %v3213_v61, %v3212_v24  ;;  %v3277_v6 = vrot.slane %v3276_v3, 2  ;;  %v10772_v24 = vld [vmem:[#allocation21 + $0x4b0] sm:$0xf0]  ;;  %v3274_v62 = vadd.f32 %v3273_v53, %v3272_v31  ;;  %v8855_v61 = vor.u32 %v10716_v18, %v8854_v12 }
 0x3b7   :  { %6367 = vmatpush.bf16.msra.mxu3 %v8631_v17  ;;  %v8603_v31 = vor.u32 %v10653_v41, %v8602_v49  ;;  %v9247_v18 = vor.u32 %v10814_v16, %v9246_v14  ;;  %v9218_v49 = vld [vmem:[#allocation21 + $0x5b0] sm:$0xf]  ;;  %v10807_v41 = vld [vmem:[#allocation21 + $0x5c8] sm:$0xf0]  ;;  %v10681_v14 = vld [vmem:[#allocation21 + $0x1d8] sm:$0xf0] }
 0x3b8   :  { %v3215_v36 = vrot.slane %v3214_v32, 1  ;;  %v3278_v45 = vadd.f32 %v3277_v6, %v3276_v3  ;;  %v9079_v3 = vor.u32 %v10772_v24, %v9078_v22  ;;  %6380 = vmatpush.bf16.msrb.mxu0 %v8855_v61  ;;  %v3292_v44 = vmul.f32 %v3274_v62, %v11658_v21  ;;  %v8546_v22 = vld [vmem:[#allocation21 + $0x70] sm:$0xf]  ;;  %v10639_v24 = vld [vmem:[#allocation21 + $0x88] sm:$0xf0] }
 0x3b9   :  { %v8770_v62 = vld [vmem:[#allocation21 + $0x230] sm:$0xf]  ;;  %v8547_v61 = vor.u32 %v10639_v24, %v8546_v22  ;;  %v9219_v42 = vor.u32 %v10807_v41, %v9218_v49  ;;  %v8938_v16 = vld [vmem:[#allocation21 + $0x380] sm:$0xf]  ;;  %v10793_v24 = vld [vmem:[#allocation21 + $0x558] sm:$0xf0] }
 0x3ba   :  { %v3216_v9 = vadd.f32 %v3215_v36, %v3214_v32  ;;  %v3279_v10 = vrot.slane %v3278_v45, 1  ;;  %v10828_v32 = vld [vmem:[#allocation21 + $0x670] sm:$0xf0]  ;;  %6393 = vmatpush.bf16.msrb.mxu1 %v9079_v3  ;;  %v3300_v36 = vmul.f32 %v11984_v25, %v11984_v25  ;;  %v10695_v3 = vld [vmem:[#allocation21 + $0x248] sm:$0xf0] }
 0x3bb   :  { %v9303_v46 = vor.u32 %v10828_v32, %v9302_v27  ;;  %6368 = vmatpush.bf16.msra.mxu3 %v8603_v31  ;;  %v8994_v27 = vld [vmem:[#allocation21 + $0x3f0] sm:$0xf]  ;;  %v10751_v32 = vld [vmem:[#allocation21 + $0x408] sm:$0xf0]  ;;  %v9162_v22 = vld [vmem:[#allocation21 + $0x540] sm:$0xf] }
 0x3bc   :  { %v11987_v6 = vmul.f32 %v3216_v9, %v11658_v21  ;;  %v3280_v15 = vadd.f32 %v3279_v10, %v3278_v45  ;;  %v8827_v45 = vor.u32 %v10709_v38, %v8826_v33  ;;  %v3308_v9 = vsub.f32 %v3292_v44, %v3300_v36  ;;  %v8518_v36 = vld [vmem:[#allocation21 + $0x38] sm:$0xf]  ;;  %v9806_v49 = vld [vmem:[#allocation21 + $0xa48] sm:$0xf]  ;;  %v10954_v41 = vld [vmem:[#allocation21 + $0xa60] sm:$0xf0] }
 0x3bd   :  { %6406 = vmatpush.bf16.msrb.mxu2 %v9303_v46  ;;  %v8995_v46 = vor.u32 %v10751_v32, %v8994_v27  ;;  %v10898_v27 = vld [vmem:[#allocation21 + $0x8a0] sm:$0xf0] }
 0x3be   :  { %v3293_v2 = vmul.f32 %v3280_v15, %v11658_v21  ;;  %v3301_v53 = vmul.f32 %v11987_v6, %v11987_v6  ;;  %6381 = vmatpush.bf16.msrb.mxu0 %v8827_v45  ;;  %6394 = vmatpush.bf16.msrb.mxu1 %v9051_v7  ;;  %v12000_v15 = vadd.f32 0.8, %v3308_v9  ;;  %v10632_v45 = vld [vmem:[#allocation21 + $0x50] sm:$0xf0]  ;;  %v10625_v9 = vld [vmem:[#allocation21 + $0x18] sm:$0xf0] }
 0x3bf   :  { %6369 = vmatpush.bf16.msra.mxu3 %v8575_v1  ;;  %v10688_v7 = vld [vmem:[#allocation21 + $0x210] sm:$0xf0] }
 0x3c0   :  { %v3309_v30 = vsub.f32 %v3293_v2, %v3301_v53  ;;  %v8519_v53 = vor.u32 %v10632_v45, %v8518_v36  ;;  %11120 = vrsqrt.f32 %v12000_v15  ;;  %v9807_v36 = vor.u32 %v10954_v41, %v9806_v49  ;;  %v10030_v45 = vld [vmem:[#allocation21 + $0xc08] sm:$0xf] }
 0x3c1   :  { %6407 = vmatpush.bf16.msrb.mxu2 %v9275_v55  ;;  %v8966_v55 = vld [vmem:[#allocation21 + $0x3b8] sm:$0xf]  ;;  %vm3375_vm12 = vweird.f32 %v12000_v15 }
 0x3c2   :  { %6382 = vmatpush.bf16.msrb.mxu0 %v8799_v4  ;;  %6395 = vmatpush.bf16.msrb.mxu1 %v9023_v11  ;;  %v12002_v31 = vadd.f32 0.8, %v3309_v30  ;;  %v8967_v48 = vor.u32 %v10744_v54, %v8966_v55 }
 0x3c3   :  { %6370 = vmatpush.bf16.msra.mxu3 %v8547_v61 }
 0x3c4   :  { %11122 = vrsqrt.f32 %v12002_v31  ;;  %vm3385_vm15 = vweird.f32 %v12002_v31 }
 0x3c5   :  { %v3145_v63 = vpop.f32.mrf.mxu0  ;;  %6408 = vmatpush.bf16.msrb.mxu2 %v9247_v18  ;;  %v10737_v18 = vld [vmem:[#allocation21 + $0x398] sm:$0xf0] }
 0x3c6   :  { %6396 = vmatpush.bf16.msrb.mxu1 %v8995_v46  ;;  %v9163_v46 = vor.u32 %v10793_v24, %v9162_v22  ;;  %v9750_v22 = vld [vmem:[#allocation21 + $0x9d8] sm:$0xf]  ;;  %v10940_v24 = vld [vmem:[#allocation21 + $0x9f0] sm:$0xf0] }
 0x3c7   :  { %v3158_v40 = vpop.f32.mrf.mxu1  ;;  %6371 = vmatpush.bf16.msra.mxu3 %v8519_v53  ;;  %v11066_v53 = vld [vmem:[#allocation21 + $0xde0] sm:$0xf0] }
 0x3c9   :  { %v3132_v29 = vpop.f32.mrf.mxu3  ;;  %6409 = vmatpush.bf16.msrb.mxu2 %v9219_v42 }
 0x3ca   :  { %v3146_v19 = vadd.f32 %v3145_v63, %v3132_v29  ;;  %v8743_v29 = vor.u32 %v10688_v7, %v8742_v47  ;;  %6397 = vmatpush.bf16.msrb.mxu1 %v8967_v48  ;;  %v11010_v47 = vld [vmem:[#allocation21 + $0xc20] sm:$0xf0]  ;;  %v9554_v7 = vld [vmem:[#allocation21 + $0x850] sm:$0xf] }
 0x3cc   :  { %v3159_v12 = vadd.f32 %v3158_v40, %v3146_v19  ;;  %v8771_v40 = vor.u32 %v10695_v3, %v8770_v62  ;;  %v12009_v19 = vpop.eup %11118  ;;  %v9582_v3 = vld [vmem:[#allocation21 + $0x888] sm:$0xf] }
 0x3cd   :  { %v3147_v10 = vpop.f32.mrf.mxu0  ;;  %v3360_v30 = vmul.f32 %v12009_v19, %v11989_v43  ;;  %6410 = vmatpush.bf16.msrb.mxu2 %v9191_v5  ;;  %v12014_v32 = vpop.eup %11120  ;;  %v9555_v5 = vor.u32 %v10891_v56, %v9554_v7  ;;  %v11045_v56 = vld [vmem:[#allocation21 + $0xd38] sm:$0xf0]  ;;  %vm3366_vm7 = vweird.f32 %v12009_v19 }
 0x3ce   :  { %6383 = vmatpush.bf16.msrb.mxu0 %v8771_v40  ;;  %v8714_v10 = vld [vmem:[#allocation21 + $0x1c0] sm:$0xf]  ;;  %v8939_v40 = vor.u32 %v10737_v18, %v8938_v16  ;;  %vm3376_vm10 = vweird.f32 %v12014_v32  ;;  %vm12044_vm11 = vmor %vm3365_vm9, %vm3366_vm7  ;;  %vm3419_vm7 = vcmask 1046534   ;;  %vm3421_vm9 = vcmask 1045508  }
 0x3cf   :  { %v3171_v60 = vpop.f32.mrf.mxu2  ;;  %v3160_v17 = vpop.f32.mrf.mxu1  ;;  %vm12054_vm14 = vmor %vm3375_vm12, %vm3376_vm10  ;;  %vm3423_vm10 = vcmask 1043456  }
 0x3d0   :  { %v11998_v63 = vadd.f32 %v3171_v60, %v3159_v12  ;;  %v8491_v12 = vor.u32 %v10625_v9, %v8490_v8  ;;  %v8715_v17 = vor.u32 %v10681_v14, %v8714_v10  ;;  %6398 = vmatpush.bf16.msrb.mxu1 %v8939_v40  ;;  %v10002_v9 = vld [vmem:[#allocation21 + $0xbd0] sm:$0xf]  ;;  %v11003_v10 = vld [vmem:[#allocation21 + $0xbe8] sm:$0xf0]  ;;  %v10996_v40 = vld [vmem:[#allocation21 + $0xbb0] sm:$0xf0] }
 0x3d1   :  { %v3134_v44 = vpop.f32.mrf.mxu3  ;;  %6411 = vmatpush.bf16.msrb.mxu2 %v9163_v46  ;;  %v10003_v16 = vor.u32 %v11003_v10, %v10002_v9  ;;  %v10198_v46 = vld [vmem:[#allocation21 + $0xd58] sm:$0xf]  ;;  %v9694_v9 = vld [vmem:[#allocation21 + $0x968] sm:$0xf]  ;;  %v10926_v10 = vld [vmem:[#allocation21 + $0x980] sm:$0xf0] }
 0x3d2   :  { %v3217_v33 = vrot.slane %v11998_v63, 4  ;;  %v3238_v38 = vmul.f32 %v11998_v63, %v11998_v63  ;;  %6384 = vmatpush.bf16.msrb.mxu0 %v8743_v29  ;;  %6372 = vmatpush.bf16.msra.mxu3 %v8491_v12  ;;  %v9583_v44 = vor.u32 %v10898_v27, %v9582_v3  ;;  %v9526_v12 = vld [vmem:[#allocation21 + $0x818] sm:$0xf]  ;;  %v9751_v27 = vor.u32 %v10940_v24, %v9750_v22 }
 0x3d4   :  { %v3218_v50 = vadd.f32 %v3217_v33, %v11998_v63  ;;  %v3281_v51 = vrot.slane %v3238_v38, 4  ;;  %v12016_v33 = vpop.eup %11122 }
 0x3d5   :  { %v3380_v48 = vmul.f32 %v12016_v33, %v12002_v31  ;;  %vm3386_vm13 = vweird.f32 %v12016_v33 }
 0x3d6   :  { %v3219_v60 = vrot.slane %v3218_v50, 2  ;;  %v3282_v1 = vadd.f32 %v3281_v51, %v3238_v38  ;;  %6385 = vmatpush.bf16.msrb.mxu0 %v8715_v17  ;;  %v10031_v51 = vor.u32 %v11010_v47, %v10030_v45  ;;  %6417 = vmatpush.bf16.msrb.mxu3 %v9583_v44  ;;  %v10884_v17 = vld [vmem:[#allocation21 + $0x830] sm:$0xf0]  ;;  %v9498_v45 = vld [vmem:[#allocation21 + $0x7e0] sm:$0xf]  ;;  %vm12068_vm1 = vmor %vm3385_vm15, %vm3386_vm13 }
 0x3d7   :  { %v3173_v2 = vpop.f32.mrf.mxu2  ;;  %v9527_v3 = vor.u32 %v10884_v17, %v9526_v12  ;;  %v10877_v47 = vld [vmem:[#allocation21 + $0x7f8] sm:$0xf0]  ;;  %v10142_v12 = vld [vmem:[#allocation21 + $0xce8] sm:$0xf]  ;;  %v11038_v17 = vld [vmem:[#allocation21 + $0xd00] sm:$0xf0] }
 0x3d8   :  { %v3220_v4 = vadd.f32 %v3219_v60, %v3218_v50  ;;  %v3283_v11 = vrot.slane %v3282_v1, 2  ;;  %v3361_v50 = vmul.f32 %v12009_v19, %v3360_v30  ;;  %v10254_v2 = vld [vmem:[#allocation21 + $0xdc8] sm:$0xf]  ;;  %v10947_v60 = vld [vmem:[#allocation21 + $0xa28] sm:$0xf0]  ;;  %6443 = vmatpush.bf16.msra.mxu1 %v10031_v51 }
 0x3d9   :  { %v10255_v54 = vor.u32 %v11066_v53, %v10254_v2  ;;  %v9779_v8 = vor.u32 %v10947_v60, %v9778_v57  ;;  %v11059_v30 = vld [vmem:[#allocation21 + $0xda8] sm:$0xf0]  ;;  %v9722_v51 = vld [vmem:[#allocation21 + $0x9a0] sm:$0xf]  ;;  %v10933_v2 = vld [vmem:[#allocation21 + $0x9b8] sm:$0xf0] }
 0x3da   :  { %v3221_v62 = vrot.slane %v3220_v4, 1  ;;  %v3284_v61 = vadd.f32 %v3283_v11, %v3282_v1  ;;  %6430 = vmatpush.bf16.msra.mxu0 %v9807_v36  ;;  %v3370_v1 = vmul.f32 %v12014_v32, %v12000_v15  ;;  %6418 = vmatpush.bf16.msrb.mxu3 %v9555_v5  ;;  %v3362_v49 = vmul.f32 0.5, %v3361_v50  ;;  %v9946_v53 = vld [vmem:[#allocation21 + $0xb60] sm:$0xf]  ;;  %v9470_v5 = vld [vmem:[#allocation21 + $0x7a8] sm:$0xf] }
 0x3db   :  { %6456 = vmatpush.bf16.msra.mxu2 %v10255_v54  ;;  %v9499_v50 = vor.u32 %v10877_v47, %v9498_v45  ;;  %v9723_v7 = vor.u32 %v10933_v2, %v9722_v51  ;;  %v10170_v54 = vld [vmem:[#allocation21 + $0xd20] sm:$0xf]  ;;  %v10114_v45 = vld [vmem:[#allocation21 + $0xcb0] sm:$0xf]  ;;  %v11031_v47 = vld [vmem:[#allocation21 + $0xcc8] sm:$0xf0] }
 0x3dc   :  { %v3222_v38 = vadd.f32 %v3221_v62, %v3220_v4  ;;  %v3285_v42 = vrot.slane %v3284_v61, 1  ;;  %v10226_v4 = vld [vmem:[#allocation21 + $0xd90] sm:$0xf]  ;;  %v9974_v62 = vld [vmem:[#allocation21 + $0xb98] sm:$0xf]  ;;  %v3371_v41 = vmul.f32 %v12014_v32, %v3370_v1  ;;  %6444 = vmatpush.bf16.msra.mxu1 %v10003_v16 }
 0x3dd   :  { %v10227_v18 = vor.u32 %v11059_v30, %v10226_v4  ;;  %v9918_v4 = vld [vmem:[#allocation21 + $0xb28] sm:$0xf]  ;;  %v9695_v30 = vor.u32 %v10926_v10, %v9694_v9  ;;  %v10968_v9 = vld [vmem:[#allocation21 + $0xad0] sm:$0xf0]  ;;  %v10086_v10 = vld [vmem:[#allocation21 + $0xc78] sm:$0xf] }
 0x3de   :  { %v12020_v55 = vmul.f32 %v3222_v38, %v11658_v21  ;;  %v3286_v29 = vadd.f32 %v3285_v42, %v3284_v61  ;;  %6431 = vmatpush.bf16.msra.mxu0 %v9779_v8  ;;  %v3381_v38 = vmul.f32 %v12016_v33, %v3380_v48  ;;  %v9975_v42 = vor.u32 %v10996_v40, %v9974_v62  ;;  %v10870_v8 = vld [vmem:[#allocation21 + $0x7c0] sm:$0xf0]  ;;  %v9666_v40 = vld [vmem:[#allocation21 + $0x930] sm:$0xf] }
 0x3df   :  { %6457 = vmatpush.bf16.msra.mxu2 %v10227_v18  ;;  %6419 = vmatpush.bf16.msrb.mxu3 %v9527_v3  ;;  %v3372_v57 = vmul.f32 0.5, %v3371_v41  ;;  %v10171_v48 = vor.u32 %v11045_v56, %v10170_v54  ;;  %v9471_v16 = vor.u32 %v10870_v8, %v9470_v5  ;;  %v9442_v3 = vld [vmem:[#allocation21 + $0x770] sm:$0xf]  ;;  %v10975_v41 = vld [vmem:[#allocation21 + $0xb08] sm:$0xf0] }
 0x3e0   :  { %v3294_v11 = vmul.f32 %v3286_v29, %v11658_v21  ;;  %v3302_v14 = vmul.f32 %v12020_v55, %v12020_v55  ;;  %v11052_v21 = vld [vmem:[#allocation21 + $0xd70] sm:$0xf0]  ;;  %v10989_v29 = vld [vmem:[#allocation21 + $0xb78] sm:$0xf0]  ;;  %v3382_v60 = vmul.f32 0.5, %v3381_v38  ;;  %6445 = vmatpush.bf16.msra.mxu1 %v9975_v42 }
 0x3e1   :  { %v10199_v36 = vor.u32 %v11052_v21, %v10198_v46  ;;  %v9947_v1 = vor.u32 %v10989_v29, %v9946_v53  ;;  %v3373_v18 = vsub.f32 1.5, %v3372_v57  ;;  %v10919_v21 = vld [vmem:[#allocation21 + $0x948] sm:$0xf0]  ;;  %v10856_v29 = vld [vmem:[#allocation21 + $0x750] sm:$0xf0] }
 0x3e2   :  { %v3310_v61 = vsub.f32 %v3294_v11, %v3302_v14  ;;  %6432 = vmatpush.bf16.msra.mxu0 %v9751_v27  ;;  %v10982_v11 = vld [vmem:[#allocation21 + $0xb40] sm:$0xf0]  ;;  %v3363_v14 = vsub.f32 1.5, %v3362_v49  ;;  %v3383_v22 = vsub.f32 1.5, %v3382_v60  ;;  %v10863_v27 = vld [vmem:[#allocation21 + $0x788] sm:$0xf0] }
 0x3e3   :  { %6458 = vmatpush.bf16.msra.mxu2 %v10199_v36  ;;  %6420 = vmatpush.bf16.msrb.mxu3 %v9499_v50  ;;  %v9919_v24 = vor.u32 %v10982_v11, %v9918_v4  ;;  %v9890_v49 = vld [vmem:[#allocation21 + $0xaf0] sm:$0xf]  ;;  %v9443_v42 = vor.u32 %v10863_v27, %v9442_v3  ;;  %v9667_v36 = vor.u32 %v10919_v21, %v9666_v40  ;;  %v9638_v54 = vld [vmem:[#allocation21 + $0x8f8] sm:$0xf]  ;;  %v11024_v4 = vld [vmem:[#allocation21 + $0xc90] sm:$0xf0] }
 0x3e4   :  { %v12031_v44 = vadd.f32 0.8, %v3310_v61  ;;  %6446 = vmatpush.bf16.msra.mxu1 %v9947_v1  ;;  %v10143_v61 = vor.u32 %v11038_v17, %v10142_v12  ;;  %v3364_v38 = vmul.f32 %v12009_v19, %v3363_v14  ;;  %v3374_v51 = vmul.f32 %v12014_v32, %v3373_v18  ;;  %v10912_v1 = vld [vmem:[#allocation21 + $0x910] sm:$0xf0]  ;;  %v9610_v17 = vld [vmem:[#allocation21 + $0x8c0] sm:$0xf] }
 0x3e5   :  { %v9891_v53 = vor.u32 %v10975_v41, %v9890_v49  ;;  %v10115_v50 = vor.u32 %v11031_v47, %v10114_v45  ;;  %v3384_v57 = vmul.f32 %v12016_v33, %v3383_v22  ;;  %v9639_v8 = vor.u32 %v10912_v1, %v9638_v54  ;;  %v10905_v18 = vld [vmem:[#allocation21 + $0x8d8] sm:$0xf0]  ;;  %v9834_v22 = vld [vmem:[#allocation21 + $0xa80] sm:$0xf] }
 0x3e6   :  { %11124 = vrsqrt.f32 %v12031_v44  ;;  %6433 = vmatpush.bf16.msra.mxu0 %v9723_v7  ;;  %v9414_v7 = vld [vmem:[#allocation21 + $0x738] sm:$0xf]  ;;  %v3368_v15 = vsel %vm12044_vm11, %v12009_v19, %v3364_v38  ;;  %v3378_v11 = vsel %vm12054_vm14, %v12014_v32, %v3374_v51  ;;  %v10087_v12 = vor.u32 %v11024_v4, %v10086_v10  ;;  %v10058_v3 = vld [vmem:[#allocation21 + $0xc40] sm:$0xf]  ;;  %v11017_v27 = vld [vmem:[#allocation21 + $0xc58] sm:$0xf0] }
 0x3e7   :  { %6459 = vmatpush.bf16.msra.mxu2 %v10171_v48  ;;  %6421 = vmatpush.bf16.msrb.mxu3 %v9471_v16  ;;  %v9862_v48 = vld [vmem:[#allocation21 + $0xab8] sm:$0xf]  ;;  %v9415_v5 = vor.u32 %v10856_v29, %v9414_v7  ;;  %v9386_v16 = vld [vmem:[#allocation21 + $0x700] sm:$0xf]  ;;  %v3388_v32 = vsel %vm12068_vm1, %v12016_v33, %v3384_v57  ;;  %vm3395_vm3 = vweird.f32 %v12031_v44  ;;  %v3410_v40 = vrot.slane %v3368_v15, 4 }
 0x3e8   :  { %6447 = vmatpush.bf16.msra.mxu1 %v9919_v24  ;;  %v9863_v31 = vor.u32 %v10968_v9, %v9862_v48  ;;  %v9611_v49 = vor.u32 %v10905_v18, %v9610_v17  ;;  %v3412_v38 = vrot.slane %v3388_v32, 2 }
 0x3ea   :  { %6434 = vmatpush.bf16.msra.mxu0 %v9695_v30  ;;  %v10849_v30 = vld [vmem:[#allocation21 + $0x718] sm:$0xf0] }
 0x3eb   :  { %6460 = vmatpush.bf16.msra.mxu2 %v10143_v61  ;;  %6422 = vmatpush.bf16.msrb.mxu3 %v9443_v42  ;;  %v10961_v61 = vld [vmem:[#allocation21 + $0xa98] sm:$0xf0]  ;;  %v9387_v21 = vor.u32 %v10849_v30, %v9386_v16  ;;  %v10059_v42 = vor.u32 %v11017_v27, %v10058_v3 }
 0x3ec   :  { %v12034_v62 = vpop.eup %11124  ;;  %6448 = vmatpush.bf16.msra.mxu1 %v9891_v53  ;;  %v9835_v33 = vor.u32 %v10961_v61, %v9834_v22 }
 0x3ed   :  { %v3390_v46 = vmul.f32 %v12034_v62, %v12031_v44  ;;  %vm3396_vm2 = vweird.f32 %v12034_v62 }
 0x3ee   :  { %6435 = vmatpush.bf16.msra.mxu0 %v9667_v36  ;;  %vm3397_vm4 = vmor %vm3395_vm3, %vm3396_vm2  ;;  %v1217_v36 = vld [vmem:[#allocation18] sm:$0xff] }
 0x3ef   :  { %v3391_v2 = vmul.f32 %v12034_v62, %v3390_v46  ;;  %6461 = vmatpush.bf16.msra.mxu2 %v10115_v50  ;;  %v3411_v46 = vrot.slane %v3378_v11, 3  ;;  %6423 = vmatpush.bf16.msrb.mxu3 %v9415_v5 }
 0x3f0   :  { %6449 = vmatpush.bf16.msra.mxu1 %v9863_v31 }
 0x3f1   :  { %v3392_v60 = vmul.f32 0.5, %v3391_v2  ;;  %v3418_v45 = vsel %vm3417_vm5, %v3410_v40, %v3411_v46 }
 0x3f2   :  { %6436 = vmatpush.bf16.msra.mxu0 %v9639_v8 }
 0x3f3   :  { %v3393_v19 = vsub.f32 1.5, %v3392_v60  ;;  %6462 = vmatpush.bf16.msra.mxu2 %v10087_v12  ;;  %6424 = vmatpush.bf16.msrb.mxu3 %v9387_v21 }
 0x3f4   :  { %6450 = vmatpush.bf16.msra.mxu1 %v9835_v33 }
 0x3f5   :  { %v3394_v24 = vmul.f32 %v12034_v62, %v3393_v19 }
 0x3f6   :  { %6437 = vmatpush.bf16.msra.mxu0 %v9611_v49 }
 0x3f7   :  { %v3398_v41 = vsel %vm3397_vm4, %v12034_v62, %v3394_v24  ;;  %6463 = vmatpush.bf16.msra.mxu2 %v10059_v42  ;;  %v10727_v42 = vld [vmem:[#allocation21 + $0x34c] sm:$0xf] }
 0x3f8   :  { %v3413_v44 = vrot.slane %v3398_v41, 1 }
 0x3fa   :  { %v3420_v47 = vsel %vm3419_vm7, %v3412_v38, %v3413_v44  ;;  %v10671_v44 = vld [vmem:[#allocation21 + $0x18c] sm:$0xf] }
 0x3fb   :  { %v3422_v43 = vsel %vm3421_vm9, %v3418_v45, %v3420_v47 }
 0x3fc   :  { %v3424_v62 = vsel %vm3423_vm10, %v11959_v39, %v3422_v43  ;;  %v8912_v43 = vld [vmem:[#allocation21 + $0x364] sm:$0xf0] }
 0x3fd   :  { %v3426_v51 = vmul.f32 %v3424_v62, %v1217_v36 }
 0x3ff   :  { %v3428_v2 = vperm.slane %v3426_v51, 0  ;;  %v3429_v53 = vperm.slane %v3426_v51, 1  ;;  %v3430_v50 = vperm.slane %v3426_v51, 2  ;;  %v3431_v7 = vperm.slane %v3426_v51, 3 }
 0x400   :  { %v3432_v29 = vperm.slane %v3426_v51, 4  ;;  %v3433_v54 = vperm.slane %v3426_v51, 5  ;;  %v3434_v56 = vperm.slane %v3426_v51, 6  ;;  %v3435_v57 = vperm.slane %v3426_v51, 7 }
 0x401   :  { %v3444_v60 = vmul.f32 %v3428_v2, %v11890_v52  ;;  %v3445_v1 = vmul.f32 %v3429_v53, %v11909_v58  ;;  %v3446_v48 = vmul.f32 %v3430_v50, %v11933_v23  ;;  %v3447_v15 = vmul.f32 %v3431_v7, %v11949_v34 }
 0x402   :  { %v3448_v39 = vmul.f32 %v3432_v29, %v11978_v26  ;;  %v3449_v5 = vmul.f32 %v3433_v54, %v11984_v25  ;;  %v3450_v8 = vmul.f32 %v3434_v56, %v11987_v6  ;;  %v3451_v9 = vmul.f32 %v3435_v57, %v12020_v55  ;;  %v1218_v25 = vld [vmem:[#allocation19] sm:$0xff] }
 0x403   :  { %v3460_v10 = vrot.slane %v3445_v1, 7  ;;  %v3461_v4 = vrot.slane %v3446_v48, 6  ;;  %v3462_v11 = vrot.slane %v3447_v15, 5  ;;  %v3483_v34 = vmul.f32 %v3435_v57, %v11998_v63 }
 0x404   :  { %v3463_v14 = vrot.slane %v3448_v39, 4  ;;  %v3464_v19 = vrot.slane %v3449_v5, 3  ;;  %v3465_v52 = vrot.slane %v3450_v8, 2  ;;  %v3466_v31 = vrot.slane %v3451_v9, 1  ;;  %v10664_v39 = vld [vmem:[#allocation21 + $0x154] sm:$0xf] }
 0x405   :  { %v3467_v58 = vsel %vm520_vm8, %v3444_v60, %v3460_v10  ;;  %v3468_v23 = vsel %vm1162_vm6, %v3461_v4, %v3462_v11  ;;  %v3476_v26 = vmul.f32 %v3428_v2, %v11883_v37  ;;  %v3477_v30 = vmul.f32 %v3429_v53, %v11895_v59  ;;  %v10783_v2 = vld [vmem:[#allocation21 + $0x50c] sm:$0xf]  ;;  %v8660_v5 = vld [vmem:[#allocation21 + $0x16c] sm:$0xf0]  ;;  %v10720_v11 = vld [vmem:[#allocation21 + $0x314] sm:$0xf] }
 0x406   :  { %v3469_v6 = vsel %vm310_vm0, %v3467_v58, %v3468_v23  ;;  %v3470_v55 = vsel %vm3417_vm5, %v3463_v14, %v3464_v19  ;;  %v3471_v16 = vsel %vm3419_vm7, %v3465_v52, %v3466_v31  ;;  %v3478_v17 = vmul.f32 %v3430_v50, %v11916_v35  ;;  %v8884_v14 = vld [vmem:[#allocation21 + $0x32c] sm:$0xf0]  ;;  %v10776_v19 = vld [vmem:[#allocation21 + $0x4d4] sm:$0xf] }
 0x407   :  { %v3472_v12 = vsel %vm3421_vm9, %v3470_v55, %v3471_v16  ;;  %v3479_v18 = vmul.f32 %v3431_v7, %v11942_v0  ;;  %v3482_v37 = vmul.f32 %v3434_v56, %v11971_v13  ;;  %v3480_v32 = vmul.f32 %v3432_v29, %v11954_v20  ;;  %v8688_v13 = vld [vmem:[#allocation21 + $0x1a4] sm:$0xf0]  ;;  %v10839_v29 = vld [vmem:[#allocation21 + $0x6cc] sm:$0xf]  ;;  %v9108_v52 = vld [vmem:[#allocation21 + $0x4ec] sm:$0xf0] }
 0x408   :  { %v3473_v22 = vsel %vm3423_vm10, %v3469_v6, %v3472_v12  ;;  %v3481_v24 = vmul.f32 %v3433_v54, %v11965_v28  ;;  %v9136_v7 = vld [vmem:[#allocation21 + $0x524] sm:$0xf0]  ;;  %v8691_v48 = vor.u32 %v10671_v44, %v8688_v13  ;;  %v8915_v15 = vor.u32 %v10727_v42, %v8912_v43  ;;  %v10832_v31 = vld [vmem:[#allocation21 + $0x694] sm:$0xf]  ;;  %v9332_v58 = vld [vmem:[#allocation21 + $0x6ac] sm:$0xf0] }
 0x409   :  { %v3475_v63 = vsub.f32 %v1218_v25, %v3473_v22  ;;  %v9360_v54 = vld [vmem:[#allocation21 + $0x6e4] sm:$0xf0]  ;;  %v9139_v10 = vor.u32 %v10783_v2, %v9136_v7  ;;  %v8663_v23 = vor.u32 %v10664_v39, %v8660_v5  ;;  %v8632_v25 = vld [vmem:[#allocation21 + $0x134] sm:$0xf0]  ;;  %v10713_v6 = vld [vmem:[#allocation21 + $0x2dc] sm:$0xf]  ;;  %v9111_v55 = vor.u32 %v10776_v19, %v9108_v52 }
 0x40a   :  { %v9363_v4 = vor.u32 %v10839_v29, %v9360_v54  ;;  %v9335_v16 = vor.u32 %v10832_v31, %v9332_v58  ;;  %v10769_v12 = vld [vmem:[#allocation21 + $0x49c] sm:$0xf]  ;;  %v9304_v22 = vld [vmem:[#allocation21 + $0x674] sm:$0xf0]  ;;  %v10643_v42 = vld [vmem:[#allocation21 + $0xac] sm:$0xf] }
 0x40b   :  { %v3492_v61 = vperm.slane %v3475_v63, 7  ;;  %v3485_v3 = vperm.slane %v3475_v63, 0  ;;  %v3486_v27 = vperm.slane %v3475_v63, 1  ;;  %v3487_v40 = vperm.slane %v3475_v63, 2  ;;  %v8800_v2 = vld [vmem:[#allocation21 + $0x284] sm:$0xf0] }
 0x40c   :  { %v3488_v59 = vperm.slane %v3475_v63, 3  ;;  %v3489_v46 = vperm.slane %v3475_v63, 4  ;;  %v3490_v21 = vperm.slane %v3475_v63, 5  ;;  %v3491_v49 = vperm.slane %v3475_v63, 6  ;;  %v10650_v63 = vld [vmem:[#allocation21 + $0xe4] sm:$0xf] }
 0x40d   :  { %v12109_v35 = vadd.f32 %v3492_v61, %v3483_v34  ;;  %v3501_v0 = vadd.f32 %v3485_v3, %v3476_v26  ;;  %v3502_v41 = vadd.f32 %v3486_v27, %v3477_v30  ;;  %v3503_v33 = vadd.f32 %v3487_v40, %v3478_v17  ;;  %v10657_v26 = vld [vmem:[#allocation21 + $0x11c] sm:$0xf]  ;;  %v8856_v30 = vld [vmem:[#allocation21 + $0x2f4] sm:$0xf0]  ;;  %v10762_v27 = vld [vmem:[#allocation21 + $0x464] sm:$0xf] }
 0x40e   :  { %v3504_v38 = vadd.f32 %v3488_v59, %v3479_v18  ;;  %v12111_v20 = vadd.f32 %v3489_v46, %v3480_v32  ;;  %v12113_v28 = vadd.f32 %v3490_v21, %v3481_v24  ;;  %v12115_v36 = vadd.f32 %v3491_v49, %v3482_v37  ;;  %v9080_v17 = vld [vmem:[#allocation21 + $0x4b4] sm:$0xf0]  ;;  %v10825_v18 = vld [vmem:[#allocation21 + $0x65c] sm:$0xf]  ;;  %v8604_v37 = vld [vmem:[#allocation21 + $0xfc] sm:$0xf0] }
 0x40f   :  { %v3509_v45 = vmul.f32 0.2, %v3501_v0  ;;  %v3510_v47 = vmul.f32 0.2, %v3502_v41  ;;  %v3511_v62 = vmul.f32 0.2, %v3503_v33  ;;  %v8887_v34 = vor.u32 %v10720_v11, %v8884_v14 }
 0x410   :  { %v3512_v51 = vmul.f32 0.2, %v3504_v38  ;;  %v10706_v32 = vld [vmem:[#allocation21 + $0x2a4] sm:$0xf]  ;;  %v8828_v24 = vld [vmem:[#allocation21 + $0x2bc] sm:$0xf0]  ;;  %v8635_v61 = vor.u32 %v10657_v26, %v8632_v25  ;;  %v8859_v3 = vor.u32 %v10713_v6, %v8856_v30  ;;  %v9083_v21 = vor.u32 %v10769_v12, %v9080_v17 }
 0x411   :  { %v3517_v53 = vmax.f32 %v3501_v0, %v3509_v45  ;;  %v3518_v50 = vmax.f32 %v3502_v41, %v3510_v47  ;;  %v3519_v56 = vmax.f32 %v3503_v33, %v3511_v62  ;;  %v3513_v40 = vmul.f32 0.2, %v12111_v20  ;;  %v9052_v0 = vld [vmem:[#allocation21 + $0x47c] sm:$0xf0]  ;;  %v10818_v33 = vld [vmem:[#allocation21 + $0x624] sm:$0xf] }
 0x412   :  { %v3520_v57 = vmax.f32 %v3504_v38, %v3512_v51  ;;  %v3514_v59 = vmul.f32 0.2, %v12113_v28  ;;  %v3516_v46 = vmul.f32 0.2, %v12109_v35  ;;  %v9307_v49 = vor.u32 %v10825_v18, %v9304_v22  ;;  %v9276_v38 = vld [vmem:[#allocation21 + $0x63c] sm:$0xf0] }
 0x413   :  { %v12117_v60 = vpack.c.bf16 %v3517_v53, %v3517_v53  ;;  %v12119_v1 = vpack.c.bf16 %v3518_v50, %v3518_v50  ;;  %v12121_v8 = vpack.c.bf16 %v3519_v56, %v3519_v56  ;;  %v3515_v41 = vmul.f32 0.2, %v12115_v36  ;;  %v8576_v62 = vld [vmem:[#allocation21 + $0xc4] sm:$0xf0]  ;;  %v10699_v51 = vld [vmem:[#allocation21 + $0x26c] sm:$0xf] }
 0x414   :  { %v12123_v9 = vpack.c.bf16 %v3520_v57, %v3520_v57  ;;  %v8607_v44 = vor.u32 %v10650_v63, %v8604_v37  ;;  %v8831_v13 = vor.u32 %v10706_v32, %v8828_v24  ;;  %v9055_v45 = vor.u32 %v10762_v27, %v9052_v0  ;;  %v10755_v29 = vld [vmem:[#allocation21 + $0x42c] sm:$0xf]  ;;  %v9024_v54 = vld [vmem:[#allocation21 + $0x444] sm:$0xf0]  ;;  %v10636_v5 = vld [vmem:[#allocation21 + $0x74] sm:$0xf] }
 0x415   :  { %6373 = vmatmul.bf16.vlgmr.msra.gmra.mxu3 %v12117_v60  ;;  %6386 = vmatmul.bf16.vlgmr.msrb.gmra.mxu0 %v12119_v1  ;;  %v3521_v47 = vmax.f32 %v12111_v20, %v3513_v40  ;;  %v3522_v43 = vmax.f32 %v12113_v28, %v3514_v59  ;;  %v3524_v53 = vmax.f32 %v12109_v35, %v3516_v46  ;;  %v10811_v56 = vld [vmem:[#allocation21 + $0x5ec] sm:$0xf]  ;;  %v9248_v57 = vld [vmem:[#allocation21 + $0x604] sm:$0xf0]  ;;  %v8548_v35 = vld [vmem:[#allocation21 + $0x8c] sm:$0xf0] }
 0x416   :  { %6399 = vmatmul.bf16.vlgmr.msrb.gmra.mxu1 %v12121_v8  ;;  %6412 = vmatmul.bf16.vlgmr.msrb.gmra.mxu2 %v12123_v9  ;;  %v9279_v50 = vor.u32 %v10818_v33, %v9276_v38  ;;  %v3523_v7 = vmax.f32 %v12115_v36, %v3515_v41  ;;  %v9027_v39 = vor.u32 %v10755_v29, %v9024_v54  ;;  %v10692_v11 = vld [vmem:[#allocation21 + $0x234] sm:$0xf]  ;;  %v8772_v14 = vld [vmem:[#allocation21 + $0x24c] sm:$0xf0]  ;;  %v10629_v26 = vld [vmem:[#allocation21 + $0x3c] sm:$0xf] }
 0x417   :  { %6469 = vmatpush.bf16.msra.mxu3 %v8691_v48  ;;  %6482 = vmatpush.bf16.msrb.mxu0 %v8915_v15  ;;  %v8579_v48 = vor.u32 %v10643_v42, %v8576_v62  ;;  %v8803_v15 = vor.u32 %v10699_v51, %v8800_v2  ;;  %v12137_v20 = vpack.c.bf16 %v3521_v47, %v3521_v47  ;;  %v10748_v19 = vld [vmem:[#allocation21 + $0x3f4] sm:$0xf]  ;;  %v8996_v52 = vld [vmem:[#allocation21 + $0x40c] sm:$0xf0]  ;;  %v8520_v25 = vld [vmem:[#allocation21 + $0x54] sm:$0xf0] }
 0x418   :  { %6495 = vmatpush.bf16.msrb.mxu1 %v9139_v10  ;;  %6508 = vmatpush.bf16.msrb.mxu2 %v9363_v4  ;;  %v12139_v28 = vpack.c.bf16 %v3522_v43, %v3522_v43  ;;  %v12141_v10 = vpack.c.bf16 %v3524_v53, %v3524_v53  ;;  %v12143_v36 = vpack.c.bf16 %v3523_v7, %v3523_v7  ;;  %v10804_v31 = vld [vmem:[#allocation21 + $0x5b4] sm:$0xf]  ;;  %v9220_v58 = vld [vmem:[#allocation21 + $0x5cc] sm:$0xf0]  ;;  %v8744_v30 = vld [vmem:[#allocation21 + $0x214] sm:$0xf0] }
 0x419   :  { %v9251_v4 = vor.u32 %v10811_v56, %v9248_v57  ;;  %v8999_v6 = vor.u32 %v10748_v19, %v8996_v52  ;;  %v10741_v12 = vld [vmem:[#allocation21 + $0x3bc] sm:$0xf]  ;;  %v8968_v17 = vld [vmem:[#allocation21 + $0x3d4] sm:$0xf0]  ;;  %v10622_v63 = vld [vmem:[#allocation21 + $0x4] sm:$0xf]  ;;  %v8523_v37 = vor.u32 %v10629_v26, %v8520_v25 }
 0x41a   :  { %v10797_v18 = vld [vmem:[#allocation21 + $0x57c] sm:$0xf]  ;;  %v9192_v22 = vld [vmem:[#allocation21 + $0x594] sm:$0xf0]  ;;  %v8492_v24 = vld [vmem:[#allocation21 + $0x1c] sm:$0xf0]  ;;  %v8971_v27 = vor.u32 %v10741_v12, %v8968_v17 }
 0x41b   :  { %6470 = vmatpush.bf16.msra.mxu3 %v8663_v23  ;;  %6483 = vmatpush.bf16.msrb.mxu0 %v8887_v34  ;;  %v8551_v23 = vor.u32 %v10636_v5, %v8548_v35  ;;  %v8775_v34 = vor.u32 %v10692_v11, %v8772_v14  ;;  %v9195_v40 = vor.u32 %v10797_v18, %v9192_v22  ;;  %v10734_v59 = vld [vmem:[#allocation21 + $0x384] sm:$0xf]  ;;  %v8940_v46 = vld [vmem:[#allocation21 + $0x39c] sm:$0xf0]  ;;  %v10895_v0 = vld [vmem:[#allocation21 + $0x88c] sm:$0xf] }
 0x41c   :  { %6496 = vmatpush.bf16.msrb.mxu1 %v9111_v55  ;;  %6509 = vmatpush.bf16.msrb.mxu2 %v9335_v16  ;;  %v9223_v55 = vor.u32 %v10804_v31, %v9220_v58  ;;  %v10685_v16 = vld [vmem:[#allocation21 + $0x1fc] sm:$0xf]  ;;  %v9584_v41 = vld [vmem:[#allocation21 + $0x8a4] sm:$0xf0]  ;;  %v10951_v33 = vld [vmem:[#allocation21 + $0xa4c] sm:$0xf]  ;;  %v8943_v62 = vor.u32 %v10734_v59, %v8940_v46 }
 0x41d   :  { %v8747_v32 = vor.u32 %v10685_v16, %v8744_v30  ;;  %v9808_v38 = vld [vmem:[#allocation21 + $0xa64] sm:$0xf0]  ;;  %v11063_v47 = vld [vmem:[#allocation21 + $0xdcc] sm:$0xf]  ;;  %v9587_v2 = vor.u32 %v10895_v0, %v9584_v41  ;;  %v9556_v7 = vld [vmem:[#allocation21 + $0x86c] sm:$0xf0] }
 0x41e   :  { %v10256_v43 = vld [vmem:[#allocation21 + $0xde4] sm:$0xf0]  ;;  %v9811_v53 = vor.u32 %v10951_v33, %v9808_v38  ;;  %v10944_v56 = vld [vmem:[#allocation21 + $0xa14] sm:$0xf]  ;;  %v9780_v57 = vld [vmem:[#allocation21 + $0xa2c] sm:$0xf0] }
 0x41f   :  { %6471 = vmatpush.bf16.msra.mxu3 %v8635_v61  ;;  %6484 = vmatpush.bf16.msrb.mxu0 %v8859_v3  ;;  %v10678_v61 = vld [vmem:[#allocation21 + $0x1c4] sm:$0xf]  ;;  %v8716_v3 = vld [vmem:[#allocation21 + $0x1dc] sm:$0xf0]  ;;  %v10259_v54 = vor.u32 %v11063_v47, %v10256_v43  ;;  %v10228_v5 = vld [vmem:[#allocation21 + $0xdac] sm:$0xf0] }
 0x420   :  { %6497 = vmatpush.bf16.msrb.mxu1 %v9083_v21  ;;  %6510 = vmatpush.bf16.msrb.mxu2 %v9307_v49  ;;  %v10790_v21 = vld [vmem:[#allocation21 + $0x544] sm:$0xf]  ;;  %v9164_v49 = vld [vmem:[#allocation21 + $0x55c] sm:$0xf0]  ;;  %v8719_v42 = vor.u32 %v10678_v61, %v8716_v3  ;;  %v10881_v11 = vld [vmem:[#allocation21 + $0x81c] sm:$0xf] }
 0x421   :  { %v9167_v51 = vor.u32 %v10790_v21, %v9164_v49  ;;  %v9528_v14 = vld [vmem:[#allocation21 + $0x834] sm:$0xf0]  ;;  %v10937_v31 = vld [vmem:[#allocation21 + $0x9dc] sm:$0xf]  ;;  %v10874_v16 = vld [vmem:[#allocation21 + $0x7e4] sm:$0xf] }
 0x422   :  { %v9752_v58 = vld [vmem:[#allocation21 + $0x9f4] sm:$0xf0]  ;;  %v11049_v26 = vld [vmem:[#allocation21 + $0xd5c] sm:$0xf]  ;;  %v9500_v30 = vld [vmem:[#allocation21 + $0x7fc] sm:$0xf0] }
 0x423   :  { %6472 = vmatpush.bf16.msra.mxu3 %v8607_v44  ;;  %6485 = vmatpush.bf16.msrb.mxu0 %v8831_v13  ;;  %v11007_v44 = vld [vmem:[#allocation21 + $0xc0c] sm:$0xf]  ;;  %v8495_v13 = vor.u32 %v10622_v63, %v8492_v24  ;;  %v10200_v25 = vld [vmem:[#allocation21 + $0xd74] sm:$0xf0]  ;;  %v10930_v18 = vld [vmem:[#allocation21 + $0x9a4] sm:$0xf]  ;;  %v9503_v61 = vor.u32 %v10874_v16, %v9500_v30 }
 0x424   :  { %6498 = vmatpush.bf16.msrb.mxu1 %v9055_v45  ;;  %6511 = vmatpush.bf16.msrb.mxu2 %v9279_v50  ;;  %v10032_v45 = vld [vmem:[#allocation21 + $0xc24] sm:$0xf0]  ;;  %v10888_v50 = vld [vmem:[#allocation21 + $0x854] sm:$0xf]  ;;  %v10203_v17 = vor.u32 %v11049_v26, %v10200_v25  ;;  %v9724_v22 = vld [vmem:[#allocation21 + $0x9bc] sm:$0xf0] }
 0x425   :  { %6425 = vmatmul.bf16.vlgmr.msrb.gmra.mxu3 %v12137_v20  ;;  %6438 = vmatmul.bf16.vlgmr.msra.gmra.mxu0 %v12139_v28  ;;  %v10035_v29 = vor.u32 %v11007_v44, %v10032_v45  ;;  %v9559_v35 = vor.u32 %v10888_v50, %v9556_v7  ;;  %v10986_v63 = vld [vmem:[#allocation21 + $0xb64] sm:$0xf]  ;;  %v10172_v24 = vld [vmem:[#allocation21 + $0xd3c] sm:$0xf0]  ;;  %v9727_v3 = vor.u32 %v10930_v18, %v9724_v22  ;;  %v10923_v21 = vld [vmem:[#allocation21 + $0x96c] sm:$0xf] }
 0x426   :  { %6451 = vmatmul.bf16.vlgmr.msra.gmra.mxu1 %v12143_v36  ;;  %6464 = vmatmul.bf16.vlgmr.msra.gmra.mxu2 %v12141_v10  ;;  %v9696_v49 = vld [vmem:[#allocation21 + $0x984] sm:$0xf0]  ;;  %v10979_v0 = vld [vmem:[#allocation21 + $0xb2c] sm:$0xf]  ;;  %v9444_v45 = vld [vmem:[#allocation21 + $0x78c] sm:$0xf0] }
 0x427   :  { %6473 = vmatpush.bf16.msra.mxu3 %v8579_v48  ;;  %6486 = vmatpush.bf16.msrb.mxu0 %v8803_v15  ;;  %v11000_v48 = vld [vmem:[#allocation21 + $0xbd4] sm:$0xf]  ;;  %v10004_v15 = vld [vmem:[#allocation21 + $0xbec] sm:$0xf0]  ;;  %v9920_v41 = vld [vmem:[#allocation21 + $0xb44] sm:$0xf0] }
 0x428   :  { %6499 = vmatpush.bf16.msrb.mxu1 %v9027_v39  ;;  %6512 = vmatpush.bf16.msrb.mxu2 %v9251_v4  ;;  %v11056_v39 = vld [vmem:[#allocation21 + $0xd94] sm:$0xf]  ;;  %v9783_v4 = vor.u32 %v10944_v56, %v9780_v57  ;;  %v10007_v19 = vor.u32 %v11000_v48, %v10004_v15  ;;  %v11035_v33 = vld [vmem:[#allocation21 + $0xcec] sm:$0xf]  ;;  %v10144_v38 = vld [vmem:[#allocation21 + $0xd04] sm:$0xf0]  ;;  %v9923_v47 = vor.u32 %v10979_v0, %v9920_v41 }
 0x429   :  { %v10231_v52 = vor.u32 %v11056_v39, %v10228_v5  ;;  %v10147_v43 = vor.u32 %v11035_v33, %v10144_v38  ;;  %v11028_v50 = vld [vmem:[#allocation21 + $0xcb4] sm:$0xf]  ;;  %v10116_v7 = vld [vmem:[#allocation21 + $0xccc] sm:$0xf0]  ;;  %v10853_v56 = vld [vmem:[#allocation21 + $0x73c] sm:$0xf] }
 0x42a   :  { %v9416_v57 = vld [vmem:[#allocation21 + $0x754] sm:$0xf0]  ;;  %v10119_v15 = vor.u32 %v11028_v50, %v10116_v7  ;;  %v10909_v39 = vld [vmem:[#allocation21 + $0x8fc] sm:$0xf]  ;;  %v11014_v16 = vld [vmem:[#allocation21 + $0xc44] sm:$0xf] }
 0x42b   :  { %6474 = vmatpush.bf16.msra.mxu3 %v8551_v23  ;;  %6487 = vmatpush.bf16.msrb.mxu0 %v8775_v34  ;;  %v10993_v23 = vld [vmem:[#allocation21 + $0xb9c] sm:$0xf]  ;;  %v9976_v34 = vld [vmem:[#allocation21 + $0xbb4] sm:$0xf0]  ;;  %v10060_v30 = vld [vmem:[#allocation21 + $0xc5c] sm:$0xf0] }
 0x42c   :  { %6500 = vmatpush.bf16.msrb.mxu1 %v8999_v6  ;;  %6513 = vmatpush.bf16.msrb.mxu2 %v9223_v55  ;;  %v9531_v6 = vor.u32 %v10881_v11, %v9528_v14  ;;  %v9755_v55 = vor.u32 %v10937_v31, %v9752_v58  ;;  %v9979_v12 = vor.u32 %v10993_v23, %v9976_v34  ;;  %v9640_v5 = vld [vmem:[#allocation21 + $0x914] sm:$0xf0]  ;;  %v11021_v11 = vld [vmem:[#allocation21 + $0xc7c] sm:$0xf]  ;;  %v9388_v58 = vld [vmem:[#allocation21 + $0x71c] sm:$0xf0] }
 0x42d   :  { %v10088_v14 = vld [vmem:[#allocation21 + $0xc94] sm:$0xf0]  ;;  %v9643_v31 = vor.u32 %v10909_v39, %v9640_v5  ;;  %v10902_v23 = vld [vmem:[#allocation21 + $0x8c4] sm:$0xf]  ;;  %v9612_v34 = vld [vmem:[#allocation21 + $0x8dc] sm:$0xf0] }
 0x42e   :  { %v10091_v25 = vor.u32 %v11021_v11, %v10088_v14  ;;  %v8918_v18 = vld [vmem:[#allocation21 + $0x350] sm:$0xf]  ;;  %v10731_v22 = vld [vmem:[#allocation21 + $0x368] sm:$0xf0]  ;;  %v8890_v33 = vld [vmem:[#allocation21 + $0x318] sm:$0xf] }
 0x42f   :  { %6475 = vmatpush.bf16.msra.mxu3 %v8523_v37  ;;  %6488 = vmatpush.bf16.msrb.mxu0 %v8747_v32  ;;  %v9948_v37 = vld [vmem:[#allocation21 + $0xb7c] sm:$0xf0]  ;;  %v11042_v32 = vld [vmem:[#allocation21 + $0xd24] sm:$0xf]  ;;  %v10724_v38 = vld [vmem:[#allocation21 + $0x330] sm:$0xf0] }
 0x430   :  { %6501 = vmatpush.bf16.msrb.mxu1 %v8971_v27  ;;  %6514 = vmatpush.bf16.msrb.mxu2 %v9195_v40  ;;  %v10867_v27 = vld [vmem:[#allocation21 + $0x7ac] sm:$0xf]  ;;  %v9472_v40 = vld [vmem:[#allocation21 + $0x7c4] sm:$0xf0]  ;;  %v9951_v59 = vor.u32 %v10986_v63, %v9948_v37  ;;  %v10175_v46 = vor.u32 %v11042_v32, %v10172_v24  ;;  %v9142_v63 = vld [vmem:[#allocation21 + $0x510] sm:$0xf]  ;;  %v9615_v32 = vor.u32 %v10902_v23, %v9612_v34 }
 0x431   :  { %v9475_v44 = vor.u32 %v10867_v27, %v9472_v40  ;;  %v10787_v24 = vld [vmem:[#allocation21 + $0x528] sm:$0xf0]  ;;  %v10063_v40 = vor.u32 %v11014_v16, %v10060_v30  ;;  %v8862_v50 = vld [vmem:[#allocation21 + $0x2e0] sm:$0xf]  ;;  %v10717_v7 = vld [vmem:[#allocation21 + $0x2f8] sm:$0xf0] }
 0x432   :  { %v9143_v0 = vor.u32 %v10787_v24, %v9142_v63  ;;  %v8610_v39 = vld [vmem:[#allocation21 + $0xe8] sm:$0xf]  ;;  %v10654_v5 = vld [vmem:[#allocation21 + $0x100] sm:$0xf0]  ;;  %v8806_v16 = vld [vmem:[#allocation21 + $0x270] sm:$0xf] }
 0x433   :  { %6476 = vmatpush.bf16.msra.mxu3 %v8495_v13  ;;  %6489 = vmatpush.bf16.msrb.mxu0 %v8719_v42  ;;  %v9699_v13 = vor.u32 %v10923_v21, %v9696_v49  ;;  %v10860_v42 = vld [vmem:[#allocation21 + $0x774] sm:$0xf]  ;;  %v8666_v21 = vld [vmem:[#allocation21 + $0x158] sm:$0xf]  ;;  %v8834_v11 = vld [vmem:[#allocation21 + $0x2a8] sm:$0xf]  ;;  %v8611_v23 = vor.u32 %v10654_v5, %v8610_v39 }
 0x434   :  { %6502 = vmatpush.bf16.msrb.mxu1 %v8943_v62  ;;  %6515 = vmatpush.bf16.msrb.mxu2 %v9167_v51  ;;  %v10916_v62 = vld [vmem:[#allocation21 + $0x934] sm:$0xf]  ;;  %v9668_v51 = vld [vmem:[#allocation21 + $0x94c] sm:$0xf0]  ;;  %v10710_v14 = vld [vmem:[#allocation21 + $0x2c0] sm:$0xf0] }
 0x435   :  { %v10668_v49 = vld [vmem:[#allocation21 + $0x170] sm:$0xf0]  ;;  %v8835_v34 = vor.u32 %v10710_v14, %v8834_v11  ;;  %v10703_v30 = vld [vmem:[#allocation21 + $0x288] sm:$0xf0]  ;;  %v9170_v39 = vld [vmem:[#allocation21 + $0x548] sm:$0xf] }
 0x436   :  { %6477 = vmatmul.bf16.vlgmr.msra.gmra.mxu3 %v12117_v60  ;;  %6490 = vmatmul.bf16.vlgmr.msrb.gmra.mxu0 %v12119_v1  ;;  %v10640_v24 = vld [vmem:[#allocation21 + $0x90] sm:$0xf0]  ;;  %v10794_v5 = vld [vmem:[#allocation21 + $0x560] sm:$0xf0]  ;;  %v9814_v11 = vld [vmem:[#allocation21 + $0xa50] sm:$0xf] }
 0x437   :  { %6521 = vmatpush.bf16.msrb.mxu3 %v9587_v2  ;;  %6534 = vmatpush.bf16.msra.mxu0 %v9811_v53  ;;  %v10972_v2 = vld [vmem:[#allocation21 + $0xaf4] sm:$0xf]  ;;  %v9892_v53 = vld [vmem:[#allocation21 + $0xb0c] sm:$0xf0]  ;;  %v10955_v14 = vld [vmem:[#allocation21 + $0xa68] sm:$0xf0] }
 0x438   :  { %6547 = vmatpush.bf16.msra.mxu1 %v10035_v29  ;;  %6560 = vmatpush.bf16.msra.mxu2 %v10259_v54  ;;  %v9447_v29 = vor.u32 %v10860_v42, %v9444_v45  ;;  %v9671_v54 = vor.u32 %v10916_v62, %v9668_v51  ;;  %v9895_v48 = vor.u32 %v10972_v2, %v9892_v53  ;;  %v9338_v42 = vld [vmem:[#allocation21 + $0x698] sm:$0xf]  ;;  %v10836_v45 = vld [vmem:[#allocation21 + $0x6b0] sm:$0xf0]  ;;  %v8638_v62 = vld [vmem:[#allocation21 + $0x120] sm:$0xf] }
 0x439   :  { %6503 = vmatmul.bf16.vlgmr.msrb.gmra.mxu1 %v12121_v8  ;;  %6516 = vmatmul.bf16.vlgmr.msrb.gmra.mxu2 %v12123_v9  ;;  %v10661_v51 = vld [vmem:[#allocation21 + $0x138] sm:$0xf0]  ;;  %v9339_v53 = vor.u32 %v10836_v45, %v9338_v42  ;;  %v8750_v42 = vld [vmem:[#allocation21 + $0x200] sm:$0xf] }
 0x43a   :  { %v10689_v45 = vld [vmem:[#allocation21 + $0x218] sm:$0xf0] }
 0x43b   :  { %6522 = vmatpush.bf16.msrb.mxu3 %v9559_v35  ;;  %6535 = vmatpush.bf16.msra.mxu0 %v9783_v4  ;;  %v10965_v35 = vld [vmem:[#allocation21 + $0xabc] sm:$0xf]  ;;  %v9864_v4 = vld [vmem:[#allocation21 + $0xad4] sm:$0xf0] }
 0x43c   :  { %6548 = vmatpush.bf16.msra.mxu1 %v10007_v19  ;;  %6561 = vmatpush.bf16.msra.mxu2 %v10231_v52  ;;  %v10846_v19 = vld [vmem:[#allocation21 + $0x704] sm:$0xf]  ;;  %v9419_v52 = vor.u32 %v10853_v56, %v9416_v57  ;;  %v9867_v26 = vor.u32 %v10965_v35, %v9864_v4  ;;  %v9310_v56 = vld [vmem:[#allocation21 + $0x660] sm:$0xf]  ;;  %v10829_v57 = vld [vmem:[#allocation21 + $0x678] sm:$0xf0] }
 0x43d   :  { %v9391_v37 = vor.u32 %v10846_v19, %v9388_v58  ;;  %v9311_v4 = vor.u32 %v10829_v57, %v9310_v56  ;;  %v9058_v19 = vld [vmem:[#allocation21 + $0x468] sm:$0xf]  ;;  %v10822_v58 = vld [vmem:[#allocation21 + $0x640] sm:$0xf0] }
 0x43f   :  { %6523 = vmatpush.bf16.msrb.mxu3 %v9531_v6  ;;  %6536 = vmatpush.bf16.msra.mxu0 %v9755_v55  ;;  %v10958_v6 = vld [vmem:[#allocation21 + $0xa84] sm:$0xf]  ;;  %v9836_v55 = vld [vmem:[#allocation21 + $0xa9c] sm:$0xf0] }
 0x440   :  { %6549 = vmatpush.bf16.msra.mxu1 %v9979_v12  ;;  %6562 = vmatpush.bf16.msra.mxu2 %v10203_v17  ;;  %v8694_v12 = vld [vmem:[#allocation21 + $0x190] sm:$0xf]  ;;  %v10675_v17 = vld [vmem:[#allocation21 + $0x1a8] sm:$0xf0]  ;;  %v9839_v27 = vor.u32 %v10958_v6, %v9836_v55 }
 0x443   :  { %6524 = vmatpush.bf16.msrb.mxu3 %v9503_v61  ;;  %6537 = vmatpush.bf16.msra.mxu0 %v9727_v3  ;;  %v9366_v61 = vld [vmem:[#allocation21 + $0x6d0] sm:$0xf]  ;;  %v10843_v3 = vld [vmem:[#allocation21 + $0x6e8] sm:$0xf0] }
 0x444   :  { %6550 = vmatpush.bf16.msra.mxu1 %v9951_v59  ;;  %6563 = vmatpush.bf16.msra.mxu2 %v10175_v46  ;;  %v8695_v59 = vor.u32 %v10675_v17, %v8694_v12  ;;  %v8919_v46 = vor.u32 %v10731_v22, %v8918_v18  ;;  %v9367_v41 = vor.u32 %v10843_v3, %v9366_v61  ;;  %v9030_v12 = vld [vmem:[#allocation21 + $0x430] sm:$0xf]  ;;  %v10759_v17 = vld [vmem:[#allocation21 + $0x448] sm:$0xf0] }
 0x445   :  { %v9254_v18 = vld [vmem:[#allocation21 + $0x5f0] sm:$0xf]  ;;  %v10815_v22 = vld [vmem:[#allocation21 + $0x608] sm:$0xf0]  ;;  %v9031_v61 = vor.u32 %v10759_v17, %v9030_v12 }
 0x446   :  { %v9255_v3 = vor.u32 %v10815_v22, %v9254_v18  ;;  %v9786_v18 = vld [vmem:[#allocation21 + $0xa18] sm:$0xf]  ;;  %v10948_v22 = vld [vmem:[#allocation21 + $0xa30] sm:$0xf0] }
 0x447   :  { %6525 = vmatpush.bf16.msrb.mxu3 %v9475_v44  ;;  %6538 = vmatpush.bf16.msra.mxu0 %v9699_v13  ;;  %v9114_v44 = vld [vmem:[#allocation21 + $0x4d8] sm:$0xf]  ;;  %v10780_v13 = vld [vmem:[#allocation21 + $0x4f0] sm:$0xf0] }
 0x448   :  { %6551 = vmatpush.bf16.msra.mxu1 %v9923_v47  ;;  %6564 = vmatpush.bf16.msra.mxu2 %v10147_v43  ;;  %v8667_v47 = vor.u32 %v10668_v49, %v8666_v21  ;;  %v8891_v43 = vor.u32 %v10724_v38, %v8890_v33  ;;  %v9115_v2 = vor.u32 %v10780_v13, %v9114_v44  ;;  %v9226_v21 = vld [vmem:[#allocation21 + $0x5b8] sm:$0xf]  ;;  %v10808_v49 = vld [vmem:[#allocation21 + $0x5d0] sm:$0xf0]  ;;  %v8526_v33 = vld [vmem:[#allocation21 + $0x40] sm:$0xf] }
 0x449   :  { %v10633_v38 = vld [vmem:[#allocation21 + $0x58] sm:$0xf0]  ;;  %v9227_v13 = vor.u32 %v10808_v49, %v9226_v21  ;;  %v9758_v21 = vld [vmem:[#allocation21 + $0x9e0] sm:$0xf] }
 0x44a   :  { %v10941_v49 = vld [vmem:[#allocation21 + $0x9f8] sm:$0xf0] }
 0x44b   :  { %6526 = vmatpush.bf16.msrb.mxu3 %v9447_v29  ;;  %6539 = vmatpush.bf16.msra.mxu0 %v9671_v54  ;;  %v9086_v29 = vld [vmem:[#allocation21 + $0x4a0] sm:$0xf]  ;;  %v10773_v54 = vld [vmem:[#allocation21 + $0x4b8] sm:$0xf0] }
 0x44c   :  { %6552 = vmatpush.bf16.msra.mxu1 %v9895_v48  ;;  %6565 = vmatpush.bf16.msra.mxu2 %v10119_v15  ;;  %v8639_v48 = vor.u32 %v10661_v51, %v8638_v62  ;;  %v8863_v15 = vor.u32 %v10717_v7, %v8862_v50  ;;  %v9087_v35 = vor.u32 %v10773_v54, %v9086_v29  ;;  %v9198_v62 = vld [vmem:[#allocation21 + $0x580] sm:$0xf]  ;;  %v10801_v51 = vld [vmem:[#allocation21 + $0x598] sm:$0xf0]  ;;  %v10626_v7 = vld [vmem:[#allocation21 + $0x20] sm:$0xf0] }
 0x44d   :  { %v8751_v50 = vor.u32 %v10689_v45, %v8750_v42  ;;  %v8722_v29 = vld [vmem:[#allocation21 + $0x1c8] sm:$0xf]  ;;  %v10682_v54 = vld [vmem:[#allocation21 + $0x1e0] sm:$0xf0]  ;;  %v9199_v57 = vor.u32 %v10801_v51, %v9198_v62 }
 0x44e   :  { %v9506_v42 = vld [vmem:[#allocation21 + $0x7e8] sm:$0xf]  ;;  %v10878_v45 = vld [vmem:[#allocation21 + $0x800] sm:$0xf0] }
 0x44f   :  { %6527 = vmatpush.bf16.msrb.mxu3 %v9419_v52  ;;  %6540 = vmatpush.bf16.msra.mxu0 %v9643_v31  ;;  %v10766_v52 = vld [vmem:[#allocation21 + $0x480] sm:$0xf0]  ;;  %v9282_v31 = vld [vmem:[#allocation21 + $0x628] sm:$0xf] }
 0x450   :  { %6553 = vmatpush.bf16.msra.mxu1 %v9867_v26  ;;  %6566 = vmatpush.bf16.msra.mxu2 %v10091_v25  ;;  %v8582_v26 = vld [vmem:[#allocation21 + $0xb0] sm:$0xf]  ;;  %v10647_v25 = vld [vmem:[#allocation21 + $0xc8] sm:$0xf0]  ;;  %v9059_v6 = vor.u32 %v10766_v52, %v9058_v19  ;;  %v9283_v55 = vor.u32 %v10822_v58, %v9282_v31  ;;  %v8723_v31 = vor.u32 %v10682_v54, %v8722_v29  ;;  %v9730_v62 = vld [vmem:[#allocation21 + $0x9a8] sm:$0xf] }
 0x451   :  { %v8583_v63 = vor.u32 %v10647_v25, %v8582_v26  ;;  %v10038_v19 = vld [vmem:[#allocation21 + $0xc10] sm:$0xf]  ;;  %v11011_v58 = vld [vmem:[#allocation21 + $0xc28] sm:$0xf0]  ;;  %v9171_v25 = vor.u32 %v10794_v5, %v9170_v39  ;;  %v10934_v51 = vld [vmem:[#allocation21 + $0x9c0] sm:$0xf0]  ;;  %v9507_v29 = vor.u32 %v10878_v45, %v9506_v42 }
 0x452   :  { %v10039_v12 = vor.u32 %v11011_v58, %v10038_v19  ;;  %v9731_v54 = vor.u32 %v10934_v51, %v9730_v62  ;;  %v9702_v39 = vld [vmem:[#allocation21 + $0x970] sm:$0xf]  ;;  %v10927_v5 = vld [vmem:[#allocation21 + $0x988] sm:$0xf0]  ;;  %v10864_v58 = vld [vmem:[#allocation21 + $0x790] sm:$0xf0] }
 0x453   :  { %6528 = vmatpush.bf16.msrb.mxu3 %v9391_v37  ;;  %6541 = vmatpush.bf16.msra.mxu0 %v9615_v32  ;;  %v8807_v37 = vor.u32 %v10703_v30, %v8806_v16  ;;  %v8554_v32 = vld [vmem:[#allocation21 + $0x78] sm:$0xf]  ;;  %v10892_v30 = vld [vmem:[#allocation21 + $0x870] sm:$0xf0]  ;;  %v10066_v42 = vld [vmem:[#allocation21 + $0xc48] sm:$0xf] }
 0x454   :  { %6554 = vmatpush.bf16.msra.mxu1 %v9839_v27  ;;  %6567 = vmatpush.bf16.msra.mxu2 %v10063_v40  ;;  %v8778_v27 = vld [vmem:[#allocation21 + $0x238] sm:$0xf]  ;;  %v10696_v40 = vld [vmem:[#allocation21 + $0x250] sm:$0xf0]  ;;  %v11018_v45 = vld [vmem:[#allocation21 + $0xc60] sm:$0xf0] }
 0x455   :  { %v9562_v16 = vld [vmem:[#allocation21 + $0x858] sm:$0xf]  ;;  %v10728_v62 = vld [vmem:[#allocation21 + $0x354] sm:$0xf]  ;;  %v8920_v51 = vld [vmem:[#allocation21 + $0x36c] sm:$0xf0] }
 0x456   :  { %6529 = vmatmul.bf16.vlgmr.msrb.gmra.mxu3 %v12137_v20  ;;  %6542 = vmatmul.bf16.vlgmr.msra.gmra.mxu0 %v12139_v28 }
 0x457   :  { %6573 = vmatpush.bf16.msra.mxu3 %v8695_v59  ;;  %6586 = vmatpush.bf16.msrb.mxu0 %v8919_v46  ;;  %v9002_v59 = vld [vmem:[#allocation21 + $0x3f8] sm:$0xf]  ;;  %v10752_v46 = vld [vmem:[#allocation21 + $0x410] sm:$0xf0] }
 0x458   :  { %6599 = vmatpush.bf16.msrb.mxu1 %v9143_v0  ;;  %6612 = vmatpush.bf16.msrb.mxu2 %v9367_v41  ;;  %v8555_v0 = vor.u32 %v10640_v24, %v8554_v32  ;;  %v8779_v41 = vor.u32 %v10696_v40, %v8778_v27  ;;  %v9003_v44 = vor.u32 %v10752_v46, %v9002_v59  ;;  %v10234_v32 = vld [vmem:[#allocation21 + $0xd98] sm:$0xf]  ;;  %v11060_v24 = vld [vmem:[#allocation21 + $0xdb0] sm:$0xf0]  ;;  %v9534_v27 = vld [vmem:[#allocation21 + $0x820] sm:$0xf] }
 0x459   :  { %6555 = vmatmul.bf16.vlgmr.msra.gmra.mxu1 %v12143_v36  ;;  %6568 = vmatmul.bf16.vlgmr.msra.gmra.mxu2 %v12141_v10  ;;  %v10885_v40 = vld [vmem:[#allocation21 + $0x838] sm:$0xf0]  ;;  %v10235_v46 = vor.u32 %v11060_v24, %v10234_v32  ;;  %v9646_v32 = vld [vmem:[#allocation21 + $0x900] sm:$0xf] }
 0x45a   :  { %v10913_v24 = vld [vmem:[#allocation21 + $0x918] sm:$0xf0] }
 0x45b   :  { %6574 = vmatpush.bf16.msra.mxu3 %v8667_v47  ;;  %6587 = vmatpush.bf16.msrb.mxu0 %v8891_v43  ;;  %v8974_v47 = vld [vmem:[#allocation21 + $0x3c0] sm:$0xf]  ;;  %v10745_v43 = vld [vmem:[#allocation21 + $0x3d8] sm:$0xf0] }
 0x45c   :  { %6600 = vmatpush.bf16.msrb.mxu1 %v9115_v2  ;;  %6613 = vmatpush.bf16.msrb.mxu2 %v9339_v53  ;;  %v8498_v2 = vld [vmem:[#allocation21 + $0x8] sm:$0xf]  ;;  %v8527_v53 = vor.u32 %v10633_v38, %v8526_v33  ;;  %v8975_v56 = vor.u32 %v10745_v43, %v8974_v47  ;;  %v10206_v33 = vld [vmem:[#allocation21 + $0xd60] sm:$0xf]  ;;  %v11053_v38 = vld [vmem:[#allocation21 + $0xd78] sm:$0xf0] }
 0x45d   :  { %v8499_v52 = vor.u32 %v10626_v7, %v8498_v2  ;;  %v10207_v43 = vor.u32 %v11053_v38, %v10206_v33  ;;  %v9954_v2 = vld [vmem:[#allocation21 + $0xb68] sm:$0xf]  ;;  %v11046_v7 = vld [vmem:[#allocation21 + $0xd40] sm:$0xf0] }
 0x45f   :  { %6575 = vmatpush.bf16.msra.mxu3 %v8639_v48  ;;  %6588 = vmatpush.bf16.msrb.mxu0 %v8863_v15  ;;  %v8946_v48 = vld [vmem:[#allocation21 + $0x388] sm:$0xf]  ;;  %v10738_v15 = vld [vmem:[#allocation21 + $0x3a0] sm:$0xf0] }
 0x460   :  { %6601 = vmatpush.bf16.msrb.mxu1 %v9087_v35  ;;  %6614 = vmatpush.bf16.msrb.mxu2 %v9311_v4  ;;  %v9590_v35 = vld [vmem:[#allocation21 + $0x890] sm:$0xf]  ;;  %v10899_v4 = vld [vmem:[#allocation21 + $0x8a8] sm:$0xf0]  ;;  %v8947_v26 = vor.u32 %v10738_v15, %v8946_v48 }
 0x463   :  { %6576 = vmatpush.bf16.msra.mxu3 %v8611_v23  ;;  %6589 = vmatpush.bf16.msrb.mxu0 %v8835_v34  ;;  %v10262_v23 = vld [vmem:[#allocation21 + $0xdd0] sm:$0xf]  ;;  %v11067_v34 = vld [vmem:[#allocation21 + $0xde8] sm:$0xf0] }
 0x464   :  { %6602 = vmatpush.bf16.msrb.mxu1 %v9059_v6  ;;  %6615 = vmatpush.bf16.msrb.mxu2 %v9283_v55  ;;  %v9591_v6 = vor.u32 %v10899_v4, %v9590_v35  ;;  %v9815_v55 = vor.u32 %v10955_v14, %v9814_v11  ;;  %v10263_v17 = vor.u32 %v11067_v34, %v10262_v23  ;;  %v9926_v35 = vld [vmem:[#allocation21 + $0xb30] sm:$0xf]  ;;  %v10983_v4 = vld [vmem:[#allocation21 + $0xb48] sm:$0xf0] }
 0x465   :  { %v10150_v11 = vld [vmem:[#allocation21 + $0xcf0] sm:$0xf]  ;;  %v11039_v14 = vld [vmem:[#allocation21 + $0xd08] sm:$0xf0]  ;;  %v9927_v23 = vor.u32 %v10983_v4, %v9926_v35 }
 0x466   :  { %v10151_v34 = vor.u32 %v11039_v14, %v10150_v11  ;;  %v10721_v11 = vld [vmem:[#allocation21 + $0x31c] sm:$0xf]  ;;  %v8892_v14 = vld [vmem:[#allocation21 + $0x334] sm:$0xf0] }
 0x467   :  { %6577 = vmatpush.bf16.msra.mxu3 %v8583_v63  ;;  %6590 = vmatpush.bf16.msrb.mxu0 %v8807_v37  ;;  %v10010_v63 = vld [vmem:[#allocation21 + $0xbd8] sm:$0xf]  ;;  %v11004_v37 = vld [vmem:[#allocation21 + $0xbf0] sm:$0xf0] }
 0x468   :  { %6603 = vmatpush.bf16.msrb.mxu1 %v9031_v61  ;;  %6616 = vmatpush.bf16.msrb.mxu2 %v9255_v3  ;;  %v9563_v61 = vor.u32 %v10892_v30, %v9562_v16  ;;  %v9787_v3 = vor.u32 %v10948_v22, %v9786_v18  ;;  %v10011_v59 = vor.u32 %v11004_v37, %v10010_v63  ;;  %v10122_v16 = vld [vmem:[#allocation21 + $0xcb8] sm:$0xf]  ;;  %v11032_v30 = vld [vmem:[#allocation21 + $0xcd0] sm:$0xf0]  ;;  %v9422_v18 = vld [vmem:[#allocation21 + $0x740] sm:$0xf] }
 0x469   :  { %v10857_v22 = vld [vmem:[#allocation21 + $0x758] sm:$0xf0]  ;;  %v10123_v37 = vor.u32 %v11032_v30, %v10122_v16  ;;  %v10714_v16 = vld [vmem:[#allocation21 + $0x2e4] sm:$0xf]  ;;  %v8864_v30 = vld [vmem:[#allocation21 + $0x2fc] sm:$0xf0] }
 0x46b   :  { %6578 = vmatpush.bf16.msra.mxu3 %v8555_v0  ;;  %6591 = vmatpush.bf16.msrb.mxu0 %v8779_v41  ;;  %v9982_v0 = vld [vmem:[#allocation21 + $0xba0] sm:$0xf]  ;;  %v10997_v41 = vld [vmem:[#allocation21 + $0xbb8] sm:$0xf0] }
 0x46c   :  { %6604 = vmatpush.bf16.msrb.mxu1 %v9003_v44  ;;  %6617 = vmatpush.bf16.msrb.mxu2 %v9227_v13  ;;  %v9535_v44 = vor.u32 %v10885_v40, %v9534_v27  ;;  %v9759_v13 = vor.u32 %v10941_v49, %v9758_v21  ;;  %v9983_v47 = vor.u32 %v10997_v41, %v9982_v0  ;;  %v10094_v27 = vld [vmem:[#allocation21 + $0xc80] sm:$0xf]  ;;  %v11025_v40 = vld [vmem:[#allocation21 + $0xc98] sm:$0xf0]  ;;  %v10850_v49 = vld [vmem:[#allocation21 + $0x720] sm:$0xf0] }
 0x46d   :  { %v9647_v21 = vor.u32 %v10913_v24, %v9646_v32  ;;  %v9618_v0 = vld [vmem:[#allocation21 + $0x8c8] sm:$0xf]  ;;  %v10906_v41 = vld [vmem:[#allocation21 + $0x8e0] sm:$0xf0]  ;;  %v10095_v38 = vor.u32 %v11025_v40, %v10094_v27  ;;  %v8867_v32 = vor.u32 %v10714_v16, %v8864_v30  ;;  %v10707_v27 = vld [vmem:[#allocation21 + $0x2ac] sm:$0xf] }
 0x46f   :  { %6579 = vmatpush.bf16.msra.mxu3 %v8527_v53  ;;  %6592 = vmatpush.bf16.msrb.mxu0 %v8751_v50  ;;  %v10990_v53 = vld [vmem:[#allocation21 + $0xb80] sm:$0xf0]  ;;  %v10178_v50 = vld [vmem:[#allocation21 + $0xd28] sm:$0xf] }
 0x470   :  { %6605 = vmatpush.bf16.msrb.mxu1 %v8975_v56  ;;  %6618 = vmatpush.bf16.msrb.mxu2 %v9199_v57  ;;  %v9478_v56 = vld [vmem:[#allocation21 + $0x7b0] sm:$0xf]  ;;  %v10871_v57 = vld [vmem:[#allocation21 + $0x7c8] sm:$0xf0]  ;;  %v9955_v48 = vor.u32 %v10990_v53, %v9954_v2  ;;  %v10179_v15 = vor.u32 %v11046_v7, %v10178_v50  ;;  %v10784_v2 = vld [vmem:[#allocation21 + $0x514] sm:$0xf]  ;;  %v9619_v50 = vor.u32 %v10906_v41, %v9618_v0 }
 0x471   :  { %v9479_v19 = vor.u32 %v10871_v57, %v9478_v56  ;;  %v9144_v7 = vld [vmem:[#allocation21 + $0x52c] sm:$0xf0]  ;;  %v10067_v57 = vor.u32 %v11018_v45, %v10066_v42  ;;  %v9060_v0 = vld [vmem:[#allocation21 + $0x484] sm:$0xf0]  ;;  %v10819_v41 = vld [vmem:[#allocation21 + $0x62c] sm:$0xf] }
 0x472   :  { %v9147_v35 = vor.u32 %v10784_v2, %v9144_v7  ;;  %v10644_v42 = vld [vmem:[#allocation21 + $0xb4] sm:$0xf]  ;;  %v8584_v45 = vld [vmem:[#allocation21 + $0xcc] sm:$0xf0] }
 0x473   :  { %6580 = vmatpush.bf16.msra.mxu3 %v8499_v52  ;;  %6593 = vmatpush.bf16.msrb.mxu0 %v8723_v31  ;;  %v9703_v52 = vor.u32 %v10927_v5, %v9702_v39  ;;  %v9450_v31 = vld [vmem:[#allocation21 + $0x778] sm:$0xf]  ;;  %v10665_v39 = vld [vmem:[#allocation21 + $0x15c] sm:$0xf]  ;;  %v8808_v2 = vld [vmem:[#allocation21 + $0x28c] sm:$0xf0] }
 0x474   :  { %6606 = vmatpush.bf16.msrb.mxu1 %v8947_v26  ;;  %6619 = vmatpush.bf16.msrb.mxu2 %v9171_v25  ;;  %v9674_v26 = vld [vmem:[#allocation21 + $0x938] sm:$0xf]  ;;  %v10920_v25 = vld [vmem:[#allocation21 + $0x950] sm:$0xf0]  ;;  %v9032_v7 = vld [vmem:[#allocation21 + $0x44c] sm:$0xf0] }
 0x475   :  { %v8668_v5 = vld [vmem:[#allocation21 + $0x174] sm:$0xf0] }
 0x476   :  { %6581 = vmatmul.bf16.vlgmr.msra.gmra.mxu3 %v12117_v60  ;;  %6594 = vmatmul.bf16.vlgmr.msrb.gmra.mxu0 %v12119_v1 }
 0x477   :  { %6625 = vmatpush.bf16.msrb.mxu3 %v9591_v6  ;;  %6638 = vmatpush.bf16.msra.mxu0 %v9815_v55  ;;  %v9898_v6 = vld [vmem:[#allocation21 + $0xaf8] sm:$0xf]  ;;  %v10976_v55 = vld [vmem:[#allocation21 + $0xb10] sm:$0xf0] }
 0x478   :  { %6651 = vmatpush.bf16.msra.mxu1 %v10039_v12  ;;  %6664 = vmatpush.bf16.msra.mxu2 %v10263_v17  ;;  %v9451_v12 = vor.u32 %v10864_v58, %v9450_v31  ;;  %v9675_v17 = vor.u32 %v10920_v25, %v9674_v26  ;;  %v9899_v63 = vor.u32 %v10976_v55, %v9898_v6  ;;  %v10833_v31 = vld [vmem:[#allocation21 + $0x69c] sm:$0xf]  ;;  %v9340_v58 = vld [vmem:[#allocation21 + $0x6b4] sm:$0xf0]  ;;  %v10658_v26 = vld [vmem:[#allocation21 + $0x124] sm:$0xf] }
 0x479   :  { %6607 = vmatmul.bf16.vlgmr.msrb.gmra.mxu1 %v12121_v8  ;;  %6620 = vmatmul.bf16.vlgmr.msrb.gmra.mxu2 %v12123_v9  ;;  %v8640_v25 = vld [vmem:[#allocation21 + $0x13c] sm:$0xf0]  ;;  %v9343_v55 = vor.u32 %v10833_v31, %v9340_v58  ;;  %v9004_v31 = vld [vmem:[#allocation21 + $0x414] sm:$0xf0]  ;;  %v10805_v58 = vld [vmem:[#allocation21 + $0x5bc] sm:$0xf] }
 0x47b   :  { %6626 = vmatpush.bf16.msrb.mxu3 %v9563_v61  ;;  %6639 = vmatpush.bf16.msra.mxu0 %v9787_v3  ;;  %v9870_v61 = vld [vmem:[#allocation21 + $0xac0] sm:$0xf]  ;;  %v10969_v3 = vld [vmem:[#allocation21 + $0xad8] sm:$0xf0] }
 0x47c   :  { %6652 = vmatpush.bf16.msra.mxu1 %v10011_v59  ;;  %6665 = vmatpush.bf16.msra.mxu2 %v10235_v46  ;;  %v9394_v59 = vld [vmem:[#allocation21 + $0x708] sm:$0xf]  ;;  %v9423_v46 = vor.u32 %v10857_v22, %v9422_v18  ;;  %v9871_v33 = vor.u32 %v10969_v3, %v9870_v61  ;;  %v10826_v18 = vld [vmem:[#allocation21 + $0x664] sm:$0xf]  ;;  %v9312_v22 = vld [vmem:[#allocation21 + $0x67c] sm:$0xf0] }
 0x47d   :  { %v9395_v53 = vor.u32 %v10850_v49, %v9394_v59  ;;  %v10651_v61 = vld [vmem:[#allocation21 + $0xec] sm:$0xf]  ;;  %v8612_v3 = vld [vmem:[#allocation21 + $0x104] sm:$0xf0]  ;;  %v9315_v59 = vor.u32 %v10826_v18, %v9312_v22  ;;  %v12167_v49 = vld [vmem:[#allocation22] sm:$0xff] }
 0x47e   :  { %v8752_v18 = vld [vmem:[#allocation21 + $0x21c] sm:$0xf0]  ;;  %v10742_v22 = vld [vmem:[#allocation21 + $0x3c4] sm:$0xf] }
 0x47f   :  { %6627 = vmatpush.bf16.msrb.mxu3 %v9535_v44  ;;  %6640 = vmatpush.bf16.msra.mxu0 %v9759_v13  ;;  %v9842_v44 = vld [vmem:[#allocation21 + $0xa88] sm:$0xf]  ;;  %v10962_v13 = vld [vmem:[#allocation21 + $0xaa0] sm:$0xf0] }
 0x480   :  { %6653 = vmatpush.bf16.msra.mxu1 %v9983_v47  ;;  %6666 = vmatpush.bf16.msra.mxu2 %v10207_v43  ;;  %v10672_v47 = vld [vmem:[#allocation21 + $0x194] sm:$0xf]  ;;  %v8696_v43 = vld [vmem:[#allocation21 + $0x1ac] sm:$0xf0]  ;;  %v9843_v56 = vor.u32 %v10962_v13, %v9842_v44  ;;  %v4047_v13 = vperm.slane %v12167_v49, 0 }
 0x483   :  { %6628 = vmatpush.bf16.msrb.mxu3 %v9507_v29  ;;  %6641 = vmatpush.bf16.msra.mxu0 %v9731_v54  ;;  %v10840_v29 = vld [vmem:[#allocation21 + $0x6d4] sm:$0xf]  ;;  %v9368_v54 = vld [vmem:[#allocation21 + $0x6ec] sm:$0xf0] }
 0x484   :  { %6654 = vmatpush.bf16.msra.mxu1 %v9955_v48  ;;  %6667 = vmatpush.bf16.msra.mxu2 %v10179_v15  ;;  %v8699_v48 = vor.u32 %v10672_v47, %v8696_v43  ;;  %v8923_v15 = vor.u32 %v10728_v62, %v8920_v51  ;;  %v9371_v4 = vor.u32 %v10840_v29, %v9368_v54  ;;  %v10700_v51 = vld [vmem:[#allocation21 + $0x274] sm:$0xf]  ;;  %v9256_v54 = vld [vmem:[#allocation21 + $0x60c] sm:$0xf0] }
 0x485   :  { %v10812_v29 = vld [vmem:[#allocation21 + $0x5f4] sm:$0xf] }
 0x487   :  { %6629 = vmatpush.bf16.msrb.mxu3 %v9479_v19  ;;  %6642 = vmatpush.bf16.msra.mxu0 %v9703_v52  ;;  %v10777_v19 = vld [vmem:[#allocation21 + $0x4dc] sm:$0xf]  ;;  %v9116_v52 = vld [vmem:[#allocation21 + $0x4f4] sm:$0xf0] }
 0x488   :  { %6655 = vmatpush.bf16.msra.mxu1 %v9927_v23  ;;  %6668 = vmatpush.bf16.msra.mxu2 %v10151_v34  ;;  %v8671_v23 = vor.u32 %v10665_v39, %v8668_v5  ;;  %v8895_v34 = vor.u32 %v10721_v11, %v8892_v14  ;;  %v9119_v6 = vor.u32 %v10777_v19, %v9116_v52  ;;  %v10637_v5 = vld [vmem:[#allocation21 + $0x7c] sm:$0xf]  ;;  %v8780_v19 = vld [vmem:[#allocation21 + $0x254] sm:$0xf0] }
 0x489   :  { %v9259_v11 = vor.u32 %v10812_v29, %v9256_v54  ;;  %v10693_v14 = vld [vmem:[#allocation21 + $0x23c] sm:$0xf]  ;;  %v10040_v54 = vld [vmem:[#allocation21 + $0xc2c] sm:$0xf0] }
 0x48a   :  { %v10749_v52 = vld [vmem:[#allocation21 + $0x3fc] sm:$0xf] }
 0x48b   :  { %6630 = vmatpush.bf16.msrb.mxu3 %v9451_v12  ;;  %6643 = vmatpush.bf16.msra.mxu0 %v9675_v17  ;;  %v10770_v12 = vld [vmem:[#allocation21 + $0x4a4] sm:$0xf]  ;;  %v9088_v17 = vld [vmem:[#allocation21 + $0x4bc] sm:$0xf0]  ;;  %v9007_v16 = vor.u32 %v10749_v52, %v9004_v31 }
 0x48c   :  { %6656 = vmatpush.bf16.msra.mxu1 %v9899_v63  ;;  %6669 = vmatpush.bf16.msra.mxu2 %v10123_v37  ;;  %v8643_v37 = vor.u32 %v10658_v26, %v8640_v25  ;;  %v9091_v40 = vor.u32 %v10770_v12, %v9088_v17  ;;  %v8783_v25 = vor.u32 %v10693_v14, %v8780_v19  ;;  %v10686_v17 = vld [vmem:[#allocation21 + $0x204] sm:$0xf]  ;;  %v10889_v14 = vld [vmem:[#allocation21 + $0x85c] sm:$0xf]  ;;  %v9564_v19 = vld [vmem:[#allocation21 + $0x874] sm:$0xf0] }
 0x48f   :  { %6631 = vmatpush.bf16.msrb.mxu3 %v9423_v46  ;;  %6644 = vmatpush.bf16.msra.mxu0 %v9647_v21  ;;  %v8836_v46 = vld [vmem:[#allocation21 + $0x2c4] sm:$0xf0]  ;;  %v10763_v21 = vld [vmem:[#allocation21 + $0x46c] sm:$0xf] }
 0x490   :  { %6657 = vmatpush.bf16.msra.mxu1 %v9871_v33  ;;  %6670 = vmatpush.bf16.msra.mxu2 %v10095_v38  ;;  %v9284_v33 = vld [vmem:[#allocation21 + $0x644] sm:$0xf0]  ;;  %v8615_v38 = vor.u32 %v10651_v61, %v8612_v3  ;;  %v8839_v44 = vor.u32 %v10707_v27, %v8836_v46  ;;  %v9063_v47 = vor.u32 %v10763_v21, %v9060_v0  ;;  %v10798_v61 = vld [vmem:[#allocation21 + $0x584] sm:$0xf]  ;;  %v9200_v3 = vld [vmem:[#allocation21 + $0x59c] sm:$0xf0] }
 0x491   :  { %v9287_v43 = vor.u32 %v10819_v41, %v9284_v33  ;;  %v8755_v46 = vor.u32 %v10686_v17, %v8752_v18  ;;  %v8500_v0 = vld [vmem:[#allocation21 + $0x24] sm:$0xf0]  ;;  %v10679_v41 = vld [vmem:[#allocation21 + $0x1cc] sm:$0xf]  ;;  %v10882_v18 = vld [vmem:[#allocation21 + $0x824] sm:$0xf] }
 0x492   :  { %v6387_v63 = vpop.f32.mrf.mxu0  ;;  %v8724_v33 = vld [vmem:[#allocation21 + $0x1e4] sm:$0xf0] }
 0x493   :  { %6632 = vmatpush.bf16.msrb.mxu3 %v9395_v53  ;;  %6645 = vmatpush.bf16.msra.mxu0 %v9619_v50  ;;  %v12165_v24 = vpop.f32.mrf.mxu1  ;;  %v10756_v53 = vld [vmem:[#allocation21 + $0x434] sm:$0xf]  ;;  %v8727_v29 = vor.u32 %v10679_v41, %v8724_v33 }
 0x494   :  { %6658 = vmatpush.bf16.msra.mxu1 %v9843_v56  ;;  %6671 = vmatpush.bf16.msra.mxu2 %v10067_v57 }
 0x496   :  { %6633 = vmatmul.bf16.vlgmr.msrb.gmra.mxu3 %v12137_v20  ;;  %6646 = vmatmul.bf16.vlgmr.msra.gmra.mxu0 %v12139_v28 }
 0x497   :  { %6677 = vmatpush.bf16.msra.mxu3 %v8699_v48  ;;  %6690 = vmatpush.bf16.msrb.mxu0 %v8923_v15  ;;  %v8587_v48 = vor.u32 %v10644_v42, %v8584_v45  ;;  %v8811_v15 = vor.u32 %v10700_v51, %v8808_v2  ;;  %v8948_v42 = vld [vmem:[#allocation21 + $0x3a4] sm:$0xf0]  ;;  %v10791_v45 = vld [vmem:[#allocation21 + $0x54c] sm:$0xf]  ;;  %v10952_v51 = vld [vmem:[#allocation21 + $0xa54] sm:$0xf] }
 0x498   :  { %6703 = vmatpush.bf16.msrb.mxu1 %v9147_v35  ;;  %6716 = vmatpush.bf16.msrb.mxu2 %v9371_v4  ;;  %v6374_v62 = vpop.f32.mrf.mxu3  ;;  %v8556_v35 = vld [vmem:[#allocation21 + $0x94] sm:$0xf0]  ;;  %v9035_v4 = vor.u32 %v10756_v53, %v9032_v7  ;;  %v11008_v2 = vld [vmem:[#allocation21 + $0xc14] sm:$0xf] }
 0x499   :  { %6659 = vmatmul.bf16.vlgmr.msra.gmra.mxu1 %v12143_v36  ;;  %6672 = vmatmul.bf16.vlgmr.msra.gmra.mxu2 %v12141_v10  ;;  %v12170_v50 = vpop.f32.mrf.mxu2  ;;  %v6375_v57 = vadd.f32 %v6374_v62, %v4047_v13  ;;  %v8559_v26 = vor.u32 %v10637_v5, %v8556_v35  ;;  %v10735_v13 = vld [vmem:[#allocation21 + $0x38c] sm:$0xf]  ;;  %v9592_v62 = vld [vmem:[#allocation21 + $0x8ac] sm:$0xf0]  ;;  %v10043_v52 = vor.u32 %v11008_v2, %v10040_v54  ;;  %v10868_v54 = vld [vmem:[#allocation21 + $0x7b4] sm:$0xf] }
 0x49a   :  { %v6389_v56 = vpop.f32.mrf.mxu0 }
 0x49b   :  { %6678 = vmatpush.bf16.msra.mxu3 %v8671_v23  ;;  %6691 = vmatpush.bf16.msrb.mxu0 %v8895_v34  ;;  %v6402_v39 = vpop.f32.mrf.mxu1  ;;  %v9228_v23 = vld [vmem:[#allocation21 + $0x5d4] sm:$0xf0]  ;;  %v6388_v34 = vadd.f32 %v6387_v63, %v6375_v57  ;;  %v10623_v63 = vld [vmem:[#allocation21 + $0xc] sm:$0xf]  ;;  %v11064_v56 = vld [vmem:[#allocation21 + $0xdd4] sm:$0xf] }
 0x49c   :  { %6704 = vmatpush.bf16.msrb.mxu1 %v9119_v6  ;;  %6717 = vmatpush.bf16.msrb.mxu2 %v9343_v55  ;;  %v10630_v6 = vld [vmem:[#allocation21 + $0x44] sm:$0xf]  ;;  %v8528_v55 = vld [vmem:[#allocation21 + $0x5c] sm:$0xf0]  ;;  %v9231_v30 = vor.u32 %v10805_v58, %v9228_v23  ;;  %v8503_v7 = vor.u32 %v10623_v63, %v8500_v0  ;;  %v10264_v57 = vld [vmem:[#allocation21 + $0xdec] sm:$0xf0] }
 0x49d   :  { %v10945_v58 = vld [vmem:[#allocation21 + $0xa1c] sm:$0xf]  ;;  %v9788_v23 = vld [vmem:[#allocation21 + $0xa34] sm:$0xf0] }
 0x49e   :  { %v9791_v17 = vor.u32 %v10945_v58, %v9788_v23 }
 0x49f   :  { %6679 = vmatpush.bf16.msra.mxu3 %v8643_v37  ;;  %6692 = vmatpush.bf16.msrb.mxu0 %v8867_v32  ;;  %v8976_v32 = vld [vmem:[#allocation21 + $0x3dc] sm:$0xf0] }
 0x4a0   :  { %6705 = vmatpush.bf16.msrb.mxu1 %v9091_v40  ;;  %6718 = vmatpush.bf16.msrb.mxu2 %v9315_v59  ;;  %v6376_v12 = vpop.f32.mrf.mxu3  ;;  %v6401_v40 = vadd.f32 %v12165_v24, %v6388_v34  ;;  %v8531_v59 = vor.u32 %v10630_v6, %v8528_v55  ;;  %v9816_v24 = vld [vmem:[#allocation21 + $0xa6c] sm:$0xf0]  ;;  %v11001_v34 = vld [vmem:[#allocation21 + $0xbdc] sm:$0xf]  ;;  %v10012_v6 = vld [vmem:[#allocation21 + $0xbf4] sm:$0xf0] }
 0x4a1   :  { %v6415_v37 = vpop.f32.mrf.mxu2  ;;  %v9819_v35 = vor.u32 %v10952_v51, %v9816_v24  ;;  %v11057_v55 = vld [vmem:[#allocation21 + $0xd9c] sm:$0xf]  ;;  %v9567_v12 = vor.u32 %v10889_v14, %v9564_v19  ;;  %v11043_v51 = vld [vmem:[#allocation21 + $0xd2c] sm:$0xf]  ;;  %v10180_v24 = vld [vmem:[#allocation21 + $0xd44] sm:$0xf0] }
 0x4a2   :  { %v6439_v27 = vpop.f32.mrf.mxu0  ;;  %v6414_v53 = vadd.f32 %v12170_v50, %v6401_v40  ;;  %v10267_v50 = vor.u32 %v11064_v56, %v10264_v57  ;;  %v10015_v37 = vor.u32 %v11001_v34, %v10012_v6  ;;  %v9984_v40 = vld [vmem:[#allocation21 + $0xbbc] sm:$0xf0]  ;;  %v9480_v56 = vld [vmem:[#allocation21 + $0x7cc] sm:$0xf0]  ;;  %v10973_v6 = vld [vmem:[#allocation21 + $0xafc] sm:$0xf] }
 0x4a3   :  { %6680 = vmatpush.bf16.msra.mxu3 %v8615_v38  ;;  %6693 = vmatpush.bf16.msrb.mxu0 %v8839_v44  ;;  %v6452_v21 = vpop.f32.mrf.mxu1  ;;  %v8979_v38 = vor.u32 %v10742_v22, %v8976_v32  ;;  %v9203_v44 = vor.u32 %v10798_v61, %v9200_v3  ;;  %v9536_v22 = vld [vmem:[#allocation21 + $0x83c] sm:$0xf0]  ;;  %v10938_v61 = vld [vmem:[#allocation21 + $0x9e4] sm:$0xf]  ;;  %v10152_v14 = vld [vmem:[#allocation21 + $0xd0c] sm:$0xf0]  ;;  %v9483_v19 = vor.u32 %v10868_v54, %v9480_v56 }
 0x4a4   :  { %6706 = vmatpush.bf16.msrb.mxu1 %v9063_v47  ;;  %6719 = vmatpush.bf16.msrb.mxu2 %v9287_v43  ;;  %v9172_v47 = vld [vmem:[#allocation21 + $0x564] sm:$0xf0]  ;;  %v10896_v43 = vld [vmem:[#allocation21 + $0x894] sm:$0xf]  ;;  %v9760_v3 = vld [vmem:[#allocation21 + $0x9fc] sm:$0xf0]  ;;  %v9539_v0 = vor.u32 %v10882_v18, %v9536_v22 }
 0x4a5   :  { %v9595_v5 = vor.u32 %v10896_v43, %v9592_v62  ;;  %v9763_v41 = vor.u32 %v10938_v61, %v9760_v3  ;;  %v10987_v43 = vld [vmem:[#allocation21 + $0xb6c] sm:$0xf]  ;;  %v9956_v62 = vld [vmem:[#allocation21 + $0xb84] sm:$0xf0]  ;;  %v9424_v61 = vld [vmem:[#allocation21 + $0x75c] sm:$0xf0] }
 0x4a6   :  { %v9959_v57 = vor.u32 %v10987_v43, %v9956_v62  ;;  %v10959_v62 = vld [vmem:[#allocation21 + $0xa8c] sm:$0xf]  ;;  %v8702_v54 = vld [vmem:[#allocation21 + $0x198] sm:$0xf]  ;;  %v10676_v56 = vld [vmem:[#allocation21 + $0x1b0] sm:$0xf0] }
 0x4a7   :  { %6681 = vmatpush.bf16.msra.mxu3 %v8587_v48  ;;  %6694 = vmatpush.bf16.msrb.mxu0 %v8811_v15  ;;  %v8951_v48 = vor.u32 %v10735_v13, %v8948_v42  ;;  %v9175_v15 = vor.u32 %v10791_v45, %v9172_v47  ;;  %v10931_v45 = vld [vmem:[#allocation21 + $0x9ac] sm:$0xf]  ;;  %v9732_v47 = vld [vmem:[#allocation21 + $0x9c4] sm:$0xf0] }
 0x4a8   :  { %6707 = vmatpush.bf16.msrb.mxu1 %v9035_v4  ;;  %6720 = vmatpush.bf16.msrb.mxu2 %v9259_v11  ;;  %v6426_v39 = vpop.f32.mrf.mxu3 }
 0x4a9   :  { %v6427_v4 = vadd.f32 %v6426_v39, %v6414_v53  ;;  %v6465_v11 = vpop.f32.mrf.mxu2  ;;  %v9704_v39 = vld [vmem:[#allocation21 + $0x98c] sm:$0xf0] }
 0x4aa   :  { %v6441_v31 = vpop.f32.mrf.mxu0 }
 0x4ab   :  { %6682 = vmatpush.bf16.msra.mxu3 %v8559_v26  ;;  %6695 = vmatpush.bf16.msrb.mxu0 %v8783_v25  ;;  %v6440_v26 = vadd.f32 %v6439_v27, %v6427_v4  ;;  %v6454_v25 = vpop.f32.mrf.mxu1  ;;  %v10994_v27 = vld [vmem:[#allocation21 + $0xba4] sm:$0xf]  ;;  %v9928_v4 = vld [vmem:[#allocation21 + $0xb4c] sm:$0xf0]  ;;  %v9452_v31 = vld [vmem:[#allocation21 + $0x794] sm:$0xf0] }
 0x4ac   :  { %6708 = vmatpush.bf16.msrb.mxu1 %v9007_v16  ;;  %6721 = vmatpush.bf16.msrb.mxu2 %v9231_v30  ;;  %v10236_v16 = vld [vmem:[#allocation21 + $0xdb4] sm:$0xf0]  ;;  %v9987_v13 = vor.u32 %v10994_v27, %v9984_v40  ;;  %v9648_v40 = vld [vmem:[#allocation21 + $0x91c] sm:$0xf0] }
 0x4ad   :  { %v6453_v30 = vadd.f32 %v6452_v21, %v6440_v26  ;;  %v10239_v32 = vor.u32 %v11057_v55, %v10236_v16  ;;  %v10917_v26 = vld [vmem:[#allocation21 + $0x93c] sm:$0xf]  ;;  %v9676_v25 = vld [vmem:[#allocation21 + $0x954] sm:$0xf0] }
 0x4ae   :  { %v9900_v16 = vld [vmem:[#allocation21 + $0xb14] sm:$0xf0] }
 0x4af   :  { %6683 = vmatpush.bf16.msra.mxu3 %v8531_v59  ;;  %6696 = vmatpush.bf16.msrb.mxu0 %v8755_v46  ;;  %v6466_v63 = vadd.f32 %v6465_v11, %v6453_v30  ;;  %v11050_v59 = vld [vmem:[#allocation21 + $0xd64] sm:$0xf]  ;;  %v10208_v46 = vld [vmem:[#allocation21 + $0xd7c] sm:$0xf0]  ;;  %v11036_v11 = vld [vmem:[#allocation21 + $0xcf4] sm:$0xf]  ;;  %v9903_v3 = vor.u32 %v10973_v6, %v9900_v16 }
 0x4b0   :  { %6709 = vmatpush.bf16.msrb.mxu1 %v8979_v38  ;;  %6722 = vmatpush.bf16.msrb.mxu2 %v9203_v44  ;;  %v6428_v21 = vpop.f32.mrf.mxu3  ;;  %v10875_v38 = vld [vmem:[#allocation21 + $0x7ec] sm:$0xf]  ;;  %v9508_v44 = vld [vmem:[#allocation21 + $0x804] sm:$0xf0]  ;;  %v10211_v42 = vor.u32 %v11050_v59, %v10208_v46  ;;  %v10155_v23 = vor.u32 %v11036_v11, %v10152_v14  ;;  %v11029_v30 = vld [vmem:[#allocation21 + $0xcbc] sm:$0xf] }
 0x4b1   :  { %11126 = vtanh.f32 %v6466_v63  ;;  %v6467_v33 = vpop.f32.mrf.mxu2  ;;  %v10910_v63 = vld [vmem:[#allocation21 + $0x904] sm:$0xf]  ;;  %v9872_v46 = vld [vmem:[#allocation21 + $0xadc] sm:$0xf0]  ;;  %v10844_v11 = vld [vmem:[#allocation21 + $0x6f0] sm:$0xf0] }
 0x4b2   :  { %v10966_v59 = vld [vmem:[#allocation21 + $0xac4] sm:$0xf]  ;;  %v8898_v6 = vld [vmem:[#allocation21 + $0x320] sm:$0xf]  ;;  %v10725_v16 = vld [vmem:[#allocation21 + $0x338] sm:$0xf0] }
 0x4b3   :  { %6684 = vmatpush.bf16.msra.mxu3 %v8503_v7  ;;  %6697 = vmatpush.bf16.msrb.mxu0 %v8727_v29  ;;  %v12178_v2 = vpop.f32.mrf.mxu0  ;;  %v9511_v7 = vor.u32 %v10875_v38, %v9508_v44  ;;  %v9735_v29 = vor.u32 %v10931_v45, %v9732_v47  ;;  %v11022_v21 = vld [vmem:[#allocation21 + $0xc84] sm:$0xf]  ;;  %v9651_v38 = vor.u32 %v10910_v63, %v9648_v40  ;;  %v9396_v44 = vld [vmem:[#allocation21 + $0x724] sm:$0xf0] }
 0x4b4   :  { %6710 = vmatpush.bf16.msrb.mxu1 %v8951_v48  ;;  %6723 = vmatpush.bf16.msrb.mxu2 %v9175_v15  ;;  %v10183_v48 = vor.u32 %v11043_v51, %v10180_v24  ;;  %v10924_v15 = vld [vmem:[#allocation21 + $0x974] sm:$0xf]  ;;  %v9875_v45 = vor.u32 %v10966_v59, %v9872_v46  ;;  %v9844_v51 = vld [vmem:[#allocation21 + $0xaa4] sm:$0xf0]  ;;  %v11015_v24 = vld [vmem:[#allocation21 + $0xc4c] sm:$0xf] }
 0x4b5   :  { %v9847_v14 = vor.u32 %v10959_v62, %v9844_v51  ;;  %v8870_v63 = vld [vmem:[#allocation21 + $0x2e8] sm:$0xf]  ;;  %v10718_v40 = vld [vmem:[#allocation21 + $0x300] sm:$0xf0]  ;;  %v10767_v62 = vld [vmem:[#allocation21 + $0x488] sm:$0xf0] }
 0x4b6   :  { %6685 = vmatmul.bf16.vlgmr.msra.gmra.mxu3 %v12117_v60  ;;  %6698 = vmatmul.bf16.vlgmr.msrb.gmra.mxu0 %v12119_v1  ;;  %v12180_v53 = vpop.f32.mrf.mxu1  ;;  %v9094_v59 = vld [vmem:[#allocation21 + $0x4a8] sm:$0xf]  ;;  %v10774_v46 = vld [vmem:[#allocation21 + $0x4c0] sm:$0xf0]  ;;  %v9290_v51 = vld [vmem:[#allocation21 + $0x630] sm:$0xf] }
 0x4b7   :  { %6729 = vmatpush.bf16.msrb.mxu3 %v9595_v5  ;;  %6742 = vmatpush.bf16.msra.mxu0 %v9819_v35  ;;  %v10980_v5 = vld [vmem:[#allocation21 + $0xb34] sm:$0xf]  ;;  %v11127_v35 = vpop.eup %11126 }
 0x4b8   :  { %6755 = vmatpush.bf16.msra.mxu1 %v10043_v52  ;;  %6768 = vmatpush.bf16.msra.mxu2 %v10267_v50  ;;  %7100 = vst [vmem:[%s12296_s14] sm:$0xff] %v11127_v35  ;;  %v9707_v52 = vor.u32 %v10924_v15, %v9704_v39  ;;  %v10861_v50 = vld [vmem:[#allocation21 + $0x77c] sm:$0xf]  ;;  %v9931_v58 = vor.u32 %v10980_v5, %v9928_v4  ;;  %v9150_v15 = vld [vmem:[#allocation21 + $0x518] sm:$0xf]  ;;  %v10788_v35 = vld [vmem:[#allocation21 + $0x530] sm:$0xf0] }
 0x4b9   :  { %6711 = vmatmul.bf16.vlgmr.msrb.gmra.mxu1 %v12121_v8  ;;  %6724 = vmatmul.bf16.vlgmr.msrb.gmra.mxu2 %v12123_v9  ;;  %v12185_v34 = vpop.f32.mrf.mxu3  ;;  %v9455_v22 = vor.u32 %v10861_v50, %v9452_v31  ;;  %v9374_v4 = vld [vmem:[#allocation21 + $0x6d8] sm:$0xf]  ;;  %v8703_v50 = vor.u32 %v10676_v56, %v8702_v54 }
 0x4bb   :  { %6730 = vmatpush.bf16.msrb.mxu3 %v9567_v12  ;;  %6743 = vmatpush.bf16.msra.mxu0 %v9791_v17  ;;  %v10124_v12 = vld [vmem:[#allocation21 + $0xcd4] sm:$0xf0]  ;;  %v6493_v17 = vpop.f32.mrf.mxu0 }
 0x4bc   :  { %6756 = vmatpush.bf16.msra.mxu1 %v10015_v37  ;;  %6769 = vmatpush.bf16.msra.mxu2 %v10239_v32  ;;  %v12187_v55 = vpop.f32.mrf.mxu2  ;;  %v9679_v37 = vor.u32 %v10917_v26, %v9676_v25  ;;  %v10854_v32 = vld [vmem:[#allocation21 + $0x744] sm:$0xf]  ;;  %v10127_v27 = vor.u32 %v11029_v30, %v10124_v12  ;;  %v9151_v26 = vor.u32 %v10788_v35, %v9150_v15  ;;  %v9122_v30 = vld [vmem:[#allocation21 + $0x4e0] sm:$0xf]  ;;  %v10781_v12 = vld [vmem:[#allocation21 + $0x4f8] sm:$0xf0] }
 0x4bd   :  { %v9427_v33 = vor.u32 %v10854_v32, %v9424_v61  ;;  %v9375_v25 = vor.u32 %v10844_v11, %v9374_v4  ;;  %v9346_v17 = vld [vmem:[#allocation21 + $0x6a0] sm:$0xf]  ;;  %v8646_v32 = vld [vmem:[#allocation21 + $0x128] sm:$0xf]  ;;  %v10662_v61 = vld [vmem:[#allocation21 + $0x140] sm:$0xf0] }
 0x4be   :  { %v6506_v18 = vpop.f32.mrf.mxu1  ;;  %v10704_v35 = vld [vmem:[#allocation21 + $0x290] sm:$0xf0]  ;;  %v9038_v4 = vld [vmem:[#allocation21 + $0x438] sm:$0xf] }
 0x4bf   :  { %6731 = vmatpush.bf16.msrb.mxu3 %v9539_v0  ;;  %6744 = vmatpush.bf16.msra.mxu0 %v9763_v41  ;;  %v10096_v0 = vld [vmem:[#allocation21 + $0xc9c] sm:$0xf0]  ;;  %v10847_v41 = vld [vmem:[#allocation21 + $0x70c] sm:$0xf]  ;;  %v10837_v18 = vld [vmem:[#allocation21 + $0x6b8] sm:$0xf0] }
 0x4c0   :  { %6757 = vmatpush.bf16.msra.mxu1 %v9987_v13  ;;  %6770 = vmatpush.bf16.msra.mxu2 %v10211_v42  ;;  %v10903_v13 = vld [vmem:[#allocation21 + $0x8cc] sm:$0xf]  ;;  %v9620_v42 = vld [vmem:[#allocation21 + $0x8e4] sm:$0xf0]  ;;  %v10099_v47 = vor.u32 %v11022_v21, %v10096_v0  ;;  %v9399_v39 = vor.u32 %v10847_v41, %v9396_v44  ;;  %v8647_v41 = vor.u32 %v10662_v61, %v8646_v32  ;;  %v10760_v11 = vld [vmem:[#allocation21 + $0x450] sm:$0xf0] }
 0x4c1   :  { %v6480_v43 = vpop.f32.mrf.mxu3  ;;  %v9623_v5 = vor.u32 %v10903_v13, %v9620_v42  ;;  %v9318_v21 = vld [vmem:[#allocation21 + $0x668] sm:$0xf]  ;;  %v10655_v44 = vld [vmem:[#allocation21 + $0x108] sm:$0xf0]  ;;  %v9095_v13 = vor.u32 %v10774_v46, %v9094_v59 }
 0x4c2   :  { %v9066_v43 = vld [vmem:[#allocation21 + $0x470] sm:$0xf]  ;;  %v8758_v46 = vld [vmem:[#allocation21 + $0x208] sm:$0xf] }
 0x4c3   :  { %6732 = vmatpush.bf16.msrb.mxu3 %v9511_v7  ;;  %6745 = vmatpush.bf16.msra.mxu0 %v9735_v29  ;;  %v10068_v29 = vld [vmem:[#allocation21 + $0xc64] sm:$0xf0]  ;;  %v9067_v15 = vor.u32 %v10767_v62, %v9066_v43  ;;  %v8730_v43 = vld [vmem:[#allocation21 + $0x1d0] sm:$0xf]  ;;  %v10683_v62 = vld [vmem:[#allocation21 + $0x1e8] sm:$0xf0] }
 0x4c4   :  { %6758 = vmatpush.bf16.msra.mxu1 %v9959_v57  ;;  %6771 = vmatpush.bf16.msra.mxu2 %v10183_v48  ;;  %v6519_v7 = vpop.f32.mrf.mxu2  ;;  %v8926_v57 = vld [vmem:[#allocation21 + $0x358] sm:$0xf]  ;;  %v10732_v48 = vld [vmem:[#allocation21 + $0x370] sm:$0xf0] }
 0x4c5   :  { %v8927_v31 = vor.u32 %v10732_v48, %v8926_v57  ;;  %v8590_v57 = vld [vmem:[#allocation21 + $0xb8] sm:$0xf]  ;;  %v10648_v48 = vld [vmem:[#allocation21 + $0xd0] sm:$0xf0] }
 0x4c7   :  { %6733 = vmatpush.bf16.msrb.mxu3 %v9483_v19  ;;  %6746 = vmatpush.bf16.msra.mxu0 %v9707_v52  ;;  %v10071_v19 = vor.u32 %v11015_v24, %v10068_v29  ;;  %v4048_v52 = vperm.slane %v12167_v49, 1  ;;  %v10823_v24 = vld [vmem:[#allocation21 + $0x648] sm:$0xf0] }
 0x4c8   :  { %6759 = vmatpush.bf16.msra.mxu1 %v9931_v58  ;;  %6772 = vmatpush.bf16.msra.mxu2 %v10155_v23  ;;  %v8674_v58 = vld [vmem:[#allocation21 + $0x160] sm:$0xf]  ;;  %v10669_v23 = vld [vmem:[#allocation21 + $0x178] sm:$0xf0] }
 0x4c9   :  { %v8675_v49 = vor.u32 %v10669_v23, %v8674_v58  ;;  %v10641_v58 = vld [vmem:[#allocation21 + $0x98] sm:$0xf0]  ;;  %v9039_v23 = vor.u32 %v10760_v11, %v9038_v4  ;;  %v8731_v11 = vor.u32 %v10683_v62, %v8730_v43  ;;  %v10991_v43 = vld [vmem:[#allocation21 + $0xb88] sm:$0xf0]  ;;  %v10186_v62 = vld [vmem:[#allocation21 + $0xd30] sm:$0xf] }
 0x4cb   :  { %6734 = vmatpush.bf16.msrb.mxu3 %v9455_v22  ;;  %6747 = vmatpush.bf16.msra.mxu0 %v9679_v37  ;;  %v6479_v22 = vadd.f32 %v12185_v34, %v4048_v52  ;;  %v8899_v37 = vor.u32 %v10725_v16, %v8898_v6  ;;  %v10830_v34 = vld [vmem:[#allocation21 + $0x680] sm:$0xf0]  ;;  %v8786_v6 = vld [vmem:[#allocation21 + $0x240] sm:$0xf]  ;;  %v10697_v16 = vld [vmem:[#allocation21 + $0x258] sm:$0xf0] }
 0x4cc   :  { %6760 = vmatpush.bf16.msra.mxu1 %v9903_v3  ;;  %6773 = vmatpush.bf16.msra.mxu2 %v10127_v27  ;;  %v9123_v3 = vor.u32 %v10781_v12, %v9122_v30  ;;  %v9347_v27 = vor.u32 %v10837_v18, %v9346_v17  ;;  %v9319_v42 = vor.u32 %v10830_v34, %v9318_v21  ;;  %v9010_v30 = vld [vmem:[#allocation21 + $0x400] sm:$0xf]  ;;  %v10753_v18 = vld [vmem:[#allocation21 + $0x418] sm:$0xf0]  ;;  %v10690_v21 = vld [vmem:[#allocation21 + $0x220] sm:$0xf0] }
 0x4cd   :  { %v6492_v0 = vadd.f32 %v12178_v2, %v6479_v22  ;;  %v9234_v22 = vld [vmem:[#allocation21 + $0x5c0] sm:$0xf]  ;;  %v8982_v34 = vld [vmem:[#allocation21 + $0x3c8] sm:$0xf] }
 0x4cf   :  { %6735 = vmatpush.bf16.msrb.mxu3 %v9427_v33  ;;  %6748 = vmatpush.bf16.msra.mxu0 %v9651_v38  ;;  %v8871_v33 = vor.u32 %v10718_v40, %v8870_v63  ;;  %v8618_v38 = vld [vmem:[#allocation21 + $0xf0] sm:$0xf]  ;;  %v6505_v29 = vadd.f32 %v12180_v53, %v6492_v0  ;;  %v8591_v53 = vor.u32 %v10648_v48, %v8590_v57  ;;  %v10634_v63 = vld [vmem:[#allocation21 + $0x60] sm:$0xf0]  ;;  %v10795_v57 = vld [vmem:[#allocation21 + $0x568] sm:$0xf0] }
 0x4d0   :  { %6761 = vmatpush.bf16.msra.mxu1 %v9875_v45  ;;  %6774 = vmatpush.bf16.msra.mxu2 %v10099_v47  ;;  %v8842_v45 = vld [vmem:[#allocation21 + $0x2b0] sm:$0xf]  ;;  %v10711_v47 = vld [vmem:[#allocation21 + $0x2c8] sm:$0xf0]  ;;  %v8619_v54 = vor.u32 %v10655_v44, %v8618_v38  ;;  %v9011_v40 = vor.u32 %v10753_v18, %v9010_v30  ;;  %v10802_v38 = vld [vmem:[#allocation21 + $0x5a0] sm:$0xf0] }
 0x4d1   :  { %v8843_v56 = vor.u32 %v10711_v47, %v8842_v45  ;;  %v6518_v52 = vadd.f32 %v12187_v55, %v6505_v29  ;;  %v8506_v44 = vld [vmem:[#allocation21 + $0x10] sm:$0xf]  ;;  %v8759_v45 = vor.u32 %v10690_v21, %v8758_v46  ;;  %v10627_v47 = vld [vmem:[#allocation21 + $0x28] sm:$0xf0]  ;;  %v9598_v48 = vld [vmem:[#allocation21 + $0x898] sm:$0xf] }
 0x4d2   :  { %v8954_v29 = vld [vmem:[#allocation21 + $0x390] sm:$0xf]  ;;  %v8507_v4 = vor.u32 %v10627_v47, %v8506_v44  ;;  %v10949_v30 = vld [vmem:[#allocation21 + $0xa38] sm:$0xf0]  ;;  %v10998_v46 = vld [vmem:[#allocation21 + $0xbc0] sm:$0xf0] }
 0x4d3   :  { %6736 = vmatpush.bf16.msrb.mxu3 %v9399_v39  ;;  %6749 = vmatpush.bf16.msra.mxu0 %v9623_v5  ;;  %v6543_v7 = vpop.f32.mrf.mxu0  ;;  %v9291_v39 = vor.u32 %v10823_v24, %v9290_v51  ;;  %v8814_v5 = vld [vmem:[#allocation21 + $0x278] sm:$0xf]  ;;  %v11005_v18 = vld [vmem:[#allocation21 + $0xbf8] sm:$0xf0]  ;;  %v10214_v21 = vld [vmem:[#allocation21 + $0xd68] sm:$0xf] }
 0x4d4   :  { %6762 = vmatpush.bf16.msra.mxu1 %v9847_v14  ;;  %6775 = vmatpush.bf16.msra.mxu2 %v10071_v19  ;;  %v9262_v14 = vld [vmem:[#allocation21 + $0x5f8] sm:$0xf]  ;;  %v10816_v19 = vld [vmem:[#allocation21 + $0x610] sm:$0xf0]  ;;  %v9962_v47 = vld [vmem:[#allocation21 + $0xb70] sm:$0xf] }
 0x4d6   :  { %6737 = vmatmul.bf16.vlgmr.msrb.gmra.mxu3 %v12137_v20  ;;  %6750 = vmatmul.bf16.vlgmr.msra.gmra.mxu0 %v12139_v28  ;;  %v6556_v2 = vpop.f32.mrf.mxu1 }
 0x4d7   :  { %6781 = vmatpush.bf16.msra.mxu3 %v8703_v50  ;;  %6794 = vmatpush.bf16.msrb.mxu0 %v8927_v31  ;;  %v8815_v50 = vor.u32 %v10704_v35, %v8814_v5  ;;  %v8562_v31 = vld [vmem:[#allocation21 + $0x80] sm:$0xf]  ;;  %v10956_v5 = vld [vmem:[#allocation21 + $0xa70] sm:$0xf0]  ;;  %v10046_v35 = vld [vmem:[#allocation21 + $0xc18] sm:$0xf] }
 0x4d8   :  { %6807 = vmatpush.bf16.msrb.mxu1 %v9151_v26  ;;  %6820 = vmatpush.bf16.msrb.mxu2 %v9375_v25  ;;  %v9263_v26 = vor.u32 %v10816_v19, %v9262_v14  ;;  %v8563_v61 = vor.u32 %v10641_v58, %v8562_v31  ;;  %v11012_v14 = vld [vmem:[#allocation21 + $0xc30] sm:$0xf0]  ;;  %v10270_v19 = vld [vmem:[#allocation21 + $0xdd8] sm:$0xf] }
 0x4d9   :  { %6763 = vmatmul.bf16.vlgmr.msra.gmra.mxu1 %v12143_v36  ;;  %6776 = vmatmul.bf16.vlgmr.msra.gmra.mxu2 %v12141_v10  ;;  %v6530_v25 = vpop.f32.mrf.mxu3 }
 0x4da   :  { %v6531_v12 = vadd.f32 %v6530_v25, %v6518_v52  ;;  %v11068_v52 = vld [vmem:[#allocation21 + $0xdf0] sm:$0xf0]  ;;  %v10047_v25 = vor.u32 %v11012_v14, %v10046_v35 }
 0x4db   :  { %6782 = vmatpush.bf16.msra.mxu3 %v8675_v49  ;;  %6795 = vmatpush.bf16.msrb.mxu0 %v8899_v37  ;;  %v10809_v49 = vld [vmem:[#allocation21 + $0x5d8] sm:$0xf0]  ;;  %v6545_v55 = vpop.f32.mrf.mxu0  ;;  %v10984_v35 = vld [vmem:[#allocation21 + $0xb50] sm:$0xf0] }
 0x4dc   :  { %6808 = vmatpush.bf16.msrb.mxu1 %v9123_v3  ;;  %6821 = vmatpush.bf16.msrb.mxu2 %v9347_v27  ;;  %v6569_v17 = vpop.f32.mrf.mxu2  ;;  %v6544_v37 = vadd.f32 %v6543_v7, %v6531_v12  ;;  %v8787_v3 = vor.u32 %v10697_v16, %v8786_v6  ;;  %v8534_v27 = vld [vmem:[#allocation21 + $0x48] sm:$0xf]  ;;  %v9235_v59 = vor.u32 %v10809_v49, %v9234_v22  ;;  %v9794_v16 = vld [vmem:[#allocation21 + $0xa20] sm:$0xf]  ;;  %v11061_v49 = vld [vmem:[#allocation21 + $0xdb8] sm:$0xf0] }
 0x4dd   :  { %v10271_v6 = vor.u32 %v11068_v52, %v10270_v19  ;;  %v10018_v12 = vld [vmem:[#allocation21 + $0xbe0] sm:$0xf] }
 0x4de   :  { %v6558_v32 = vpop.f32.mrf.mxu1  ;;  %v6557_v0 = vadd.f32 %v6556_v2, %v6544_v37  ;;  %v9178_v2 = vld [vmem:[#allocation21 + $0x550] sm:$0xf]  ;;  %v10242_v22 = vld [vmem:[#allocation21 + $0xda0] sm:$0xf]  ;;  %v9795_v37 = vor.u32 %v10949_v30, %v9794_v16  ;;  %v10977_v16 = vld [vmem:[#allocation21 + $0xb18] sm:$0xf0] }
 0x4df   :  { %6783 = vmatpush.bf16.msra.mxu3 %v8647_v41  ;;  %6796 = vmatpush.bf16.msrb.mxu0 %v8871_v33  ;;  %v10746_v41 = vld [vmem:[#allocation21 + $0x3e0] sm:$0xf0]  ;;  %v9206_v33 = vld [vmem:[#allocation21 + $0x588] sm:$0xf]  ;;  %v9458_v52 = vld [vmem:[#allocation21 + $0x780] sm:$0xf] }
 0x4e0   :  { %6809 = vmatpush.bf16.msrb.mxu1 %v9095_v13  ;;  %6822 = vmatpush.bf16.msrb.mxu2 %v9319_v42  ;;  %v6570_v13 = vadd.f32 %v6569_v17, %v6557_v0  ;;  %v8535_v42 = vor.u32 %v10634_v63, %v8534_v27  ;;  %v8983_v51 = vor.u32 %v10746_v41, %v8982_v34  ;;  %v9542_v32 = vld [vmem:[#allocation21 + $0x828] sm:$0xf]  ;;  %v11054_v34 = vld [vmem:[#allocation21 + $0xd80] sm:$0xf0]  ;;  %v10130_v30 = vld [vmem:[#allocation21 + $0xcc0] sm:$0xf] }
 0x4e1   :  { %v9207_v24 = vor.u32 %v10802_v38, %v9206_v33  ;;  %v6532_v7 = vpop.f32.mrf.mxu3  ;;  %v10243_v27 = vor.u32 %v11061_v49, %v10242_v22  ;;  %v9766_v63 = vld [vmem:[#allocation21 + $0x9e8] sm:$0xf]  ;;  %v9514_v33 = vld [vmem:[#allocation21 + $0x7f0] sm:$0xf]  ;;  %v10879_v38 = vld [vmem:[#allocation21 + $0x808] sm:$0xf0] }
 0x4e2   :  { %11128 = vtanh.f32 %v6570_v13  ;;  %v10215_v13 = vor.u32 %v11054_v34, %v10214_v21  ;;  %v9402_v21 = vld [vmem:[#allocation21 + $0x710] sm:$0xf] }
 0x4e3   :  { %6784 = vmatpush.bf16.msra.mxu3 %v8619_v54  ;;  %6797 = vmatpush.bf16.msrb.mxu0 %v8843_v56  ;;  %v10739_v54 = vld [vmem:[#allocation21 + $0x3a8] sm:$0xf0] }
 0x4e4   :  { %6810 = vmatpush.bf16.msrb.mxu1 %v9067_v15  ;;  %6823 = vmatpush.bf16.msrb.mxu2 %v9291_v39  ;;  %v6571_v56 = vpop.f32.mrf.mxu2  ;;  %v10900_v15 = vld [vmem:[#allocation21 + $0x8b0] sm:$0xf0]  ;;  %v9822_v39 = vld [vmem:[#allocation21 + $0xa58] sm:$0xf] }
 0x4e5   :  { %v9599_v31 = vor.u32 %v10900_v15, %v9598_v48  ;;  %v9823_v58 = vor.u32 %v10956_v5, %v9822_v39  ;;  %v10872_v56 = vld [vmem:[#allocation21 + $0x7d0] sm:$0xf0]  ;;  %v9710_v15 = vld [vmem:[#allocation21 + $0x978] sm:$0xf] }
 0x4e6   :  { %v10928_v39 = vld [vmem:[#allocation21 + $0x990] sm:$0xf0]  ;;  %v9934_v5 = vld [vmem:[#allocation21 + $0xb38] sm:$0xf] }
 0x4e7   :  { %6785 = vmatpush.bf16.msra.mxu3 %v8591_v53  ;;  %6798 = vmatpush.bf16.msrb.mxu0 %v8815_v50  ;;  %v8955_v53 = vor.u32 %v10739_v54, %v8954_v29  ;;  %v9179_v50 = vor.u32 %v10795_v57, %v9178_v2  ;;  %v9515_v29 = vor.u32 %v10879_v38, %v9514_v33  ;;  %v9486_v2 = vld [vmem:[#allocation21 + $0x7b8] sm:$0xf]  ;;  %v9626_v33 = vld [vmem:[#allocation21 + $0x8d0] sm:$0xf]  ;;  %v10907_v38 = vld [vmem:[#allocation21 + $0x8e8] sm:$0xf0] }
 0x4e8   :  { %6811 = vmatpush.bf16.msrb.mxu1 %v9039_v23  ;;  %6824 = vmatpush.bf16.msrb.mxu2 %v9263_v26  ;;  %v9570_v23 = vld [vmem:[#allocation21 + $0x860] sm:$0xf]  ;;  %v10893_v26 = vld [vmem:[#allocation21 + $0x878] sm:$0xf0]  ;;  %v11129_v17 = vpop.eup %11128  ;;  %v9963_v57 = vor.u32 %v10991_v43, %v9962_v47  ;;  %v9487_v14 = vor.u32 %v10872_v56, %v9486_v2  ;;  %v9711_v19 = vor.u32 %v10928_v39, %v9710_v15  ;;  %v10963_v47 = vld [vmem:[#allocation21 + $0xaa8] sm:$0xf0] }
 0x4e9   :  { %7101 = vst [vmem:[%s12296_s14 + $0x8] sm:$0xff] %v11129_v17  ;;  %v9571_v55 = vor.u32 %v10893_v26, %v9570_v23  ;;  %v9682_v23 = vld [vmem:[#allocation21 + $0x940] sm:$0xf]  ;;  %v10921_v26 = vld [vmem:[#allocation21 + $0x958] sm:$0xf0]  ;;  %v9627_v15 = vor.u32 %v10907_v38, %v9626_v33 }
 0x4ea   :  { %v9683_v49 = vor.u32 %v10921_v26, %v9682_v23  ;;  %v10074_v43 = vld [vmem:[#allocation21 + $0xc50] sm:$0xf]  ;;  %v10729_v2 = vld [vmem:[#allocation21 + $0x35c] sm:$0xf]  ;;  %v8928_v56 = vld [vmem:[#allocation21 + $0x374] sm:$0xf0] }
 0x4eb   :  { %6786 = vmatpush.bf16.msra.mxu3 %v8563_v61  ;;  %6799 = vmatpush.bf16.msrb.mxu0 %v8787_v3  ;;  %v10886_v61 = vld [vmem:[#allocation21 + $0x840] sm:$0xf0]  ;;  %v10019_v3 = vor.u32 %v11005_v18, %v10018_v12  ;;  %v11033_v12 = vld [vmem:[#allocation21 + $0xcd8] sm:$0xf0]  ;;  %v9152_v39 = vld [vmem:[#allocation21 + $0x534] sm:$0xf0] }
 0x4ec   :  { %6812 = vmatpush.bf16.msrb.mxu1 %v9011_v40  ;;  %6825 = vmatpush.bf16.msrb.mxu2 %v9235_v59  ;;  %v10942_v40 = vld [vmem:[#allocation21 + $0xa00] sm:$0xf0]  ;;  %v9990_v59 = vld [vmem:[#allocation21 + $0xba8] sm:$0xf]  ;;  %v9543_v0 = vor.u32 %v10886_v61, %v9542_v32  ;;  %v10131_v61 = vor.u32 %v11033_v12, %v10130_v30  ;;  %v9124_v12 = vld [vmem:[#allocation21 + $0x4fc] sm:$0xf0] }
 0x4ed   :  { %v9767_v41 = vor.u32 %v10942_v40, %v9766_v63  ;;  %v9991_v44 = vor.u32 %v10998_v46, %v9990_v59  ;;  %v9878_v63 = vld [vmem:[#allocation21 + $0xac8] sm:$0xf]  ;;  %v10970_v40 = vld [vmem:[#allocation21 + $0xae0] sm:$0xf0]  ;;  %v8620_v33 = vld [vmem:[#allocation21 + $0x10c] sm:$0xf0] }
 0x4ee   :  { %v10102_v59 = vld [vmem:[#allocation21 + $0xc88] sm:$0xf]  ;;  %v11026_v46 = vld [vmem:[#allocation21 + $0xca0] sm:$0xf0] }
 0x4ef   :  { %6787 = vmatpush.bf16.msra.mxu3 %v8535_v42  ;;  %6800 = vmatpush.bf16.msrb.mxu0 %v8759_v45  ;;  %v9738_v42 = vld [vmem:[#allocation21 + $0x9b0] sm:$0xf]  ;;  %v10935_v45 = vld [vmem:[#allocation21 + $0x9c8] sm:$0xf0]  ;;  %v10778_v30 = vld [vmem:[#allocation21 + $0x4e4] sm:$0xf] }
 0x4f0   :  { %6813 = vmatpush.bf16.msrb.mxu1 %v8983_v51  ;;  %6826 = vmatpush.bf16.msrb.mxu2 %v9207_v24  ;;  %v11047_v51 = vld [vmem:[#allocation21 + $0xd48] sm:$0xf0]  ;;  %v9739_v54 = vor.u32 %v10935_v45, %v9738_v42  ;;  %v9850_v45 = vld [vmem:[#allocation21 + $0xa90] sm:$0xf] }
 0x4f1   :  { %v10187_v48 = vor.u32 %v11047_v51, %v10186_v62  ;;  %v11019_v51 = vld [vmem:[#allocation21 + $0xc68] sm:$0xf0] }
 0x4f3   :  { %6788 = vmatpush.bf16.msra.mxu3 %v8507_v4  ;;  %6801 = vmatpush.bf16.msrb.mxu0 %v8731_v11  ;;  %v12205_v24 = vpop.f32.mrf.mxu0  ;;  %v10158_v4 = vld [vmem:[#allocation21 + $0xcf8] sm:$0xf]  ;;  %v11040_v11 = vld [vmem:[#allocation21 + $0xd10] sm:$0xf0] }
 0x4f4   :  { %6814 = vmatpush.bf16.msrb.mxu1 %v8955_v53  ;;  %6827 = vmatpush.bf16.msrb.mxu2 %v9179_v50  ;;  %v10865_v53 = vld [vmem:[#allocation21 + $0x798] sm:$0xf0]  ;;  %v9935_v50 = vor.u32 %v10984_v35, %v9934_v5  ;;  %v9376_v35 = vld [vmem:[#allocation21 + $0x6f4] sm:$0xf0] }
 0x4f5   :  { %v9459_v22 = vor.u32 %v10865_v53, %v9458_v52  ;;  %v10841_v5 = vld [vmem:[#allocation21 + $0x6dc] sm:$0xf]  ;;  %v8931_v53 = vor.u32 %v10729_v2, %v8928_v56 }
 0x4f6   :  { %6789 = vmatmul.bf16.vlgmr.msra.gmra.mxu3 %v12117_v60  ;;  %6802 = vmatmul.bf16.vlgmr.msrb.gmra.mxu0 %v12119_v1  ;;  %v12207_v7 = vpop.f32.mrf.mxu1  ;;  %v9379_v26 = vor.u32 %v10841_v5, %v9376_v35  ;;  %v10645_v56 = vld [vmem:[#allocation21 + $0xbc] sm:$0xf]  ;;  %v8816_v5 = vld [vmem:[#allocation21 + $0x294] sm:$0xf0] }
 0x4f7   :  { %6833 = vmatpush.bf16.msrb.mxu3 %v9599_v31  ;;  %6846 = vmatpush.bf16.msra.mxu0 %v9823_v58  ;;  %v10159_v31 = vor.u32 %v11040_v11, %v10158_v4  ;;  %v9851_v4 = vor.u32 %v10963_v47, %v9850_v45  ;;  %v10075_v11 = vor.u32 %v11019_v51, %v10074_v43  ;;  %v10764_v45 = vld [vmem:[#allocation21 + $0x474] sm:$0xf]  ;;  %v9068_v47 = vld [vmem:[#allocation21 + $0x48c] sm:$0xf0]  ;;  %v10757_v35 = vld [vmem:[#allocation21 + $0x43c] sm:$0xf] }
 0x4f8   :  { %6859 = vmatpush.bf16.msra.mxu1 %v10047_v25  ;;  %6872 = vmatpush.bf16.msra.mxu2 %v10271_v6  ;;  %v9906_v25 = vld [vmem:[#allocation21 + $0xb00] sm:$0xf]  ;;  %v10820_v43 = vld [vmem:[#allocation21 + $0x634] sm:$0xf] }
 0x4f9   :  { %6815 = vmatmul.bf16.vlgmr.msrb.gmra.mxu1 %v12121_v8  ;;  %6828 = vmatmul.bf16.vlgmr.msrb.gmra.mxu2 %v12123_v9  ;;  %v12209_v58 = vpop.f32.mrf.mxu3  ;;  %v9907_v32 = vor.u32 %v10977_v16, %v9906_v25  ;;  %v10722_v25 = vld [vmem:[#allocation21 + $0x324] sm:$0xf]  ;;  %v8900_v16 = vld [vmem:[#allocation21 + $0x33c] sm:$0xf0] }
 0x4fb   :  { %6834 = vmatpush.bf16.msrb.mxu3 %v9571_v55  ;;  %6847 = vmatpush.bf16.msra.mxu0 %v9795_v37  ;;  %v6597_v17 = vpop.f32.mrf.mxu0  ;;  %v9430_v55 = vld [vmem:[#allocation21 + $0x748] sm:$0xf]  ;;  %v10858_v37 = vld [vmem:[#allocation21 + $0x760] sm:$0xf0] }
 0x4fc   :  { %6860 = vmatpush.bf16.msra.mxu1 %v10019_v3  ;;  %6873 = vmatpush.bf16.msra.mxu2 %v10243_v27  ;;  %v12211_v6 = vpop.f32.mrf.mxu2  ;;  %v9654_v3 = vld [vmem:[#allocation21 + $0x908] sm:$0xf]  ;;  %v10914_v27 = vld [vmem:[#allocation21 + $0x920] sm:$0xf0]  ;;  %v9431_v34 = vor.u32 %v10858_v37, %v9430_v55  ;;  %v8903_v55 = vor.u32 %v10722_v25, %v8900_v16  ;;  %v10659_v37 = vld [vmem:[#allocation21 + $0x12c] sm:$0xf] }
 0x4fd   :  { %v10834_v17 = vld [vmem:[#allocation21 + $0x6a4] sm:$0xf] }
 0x4fe   :  { %v6610_v18 = vpop.f32.mrf.mxu1  ;;  %v10694_v16 = vld [vmem:[#allocation21 + $0x244] sm:$0xf] }
 0x4ff   :  { %6835 = vmatpush.bf16.msrb.mxu3 %v9543_v0  ;;  %6848 = vmatpush.bf16.msra.mxu0 %v9767_v41  ;;  %v9655_v0 = vor.u32 %v10914_v27, %v9654_v3  ;;  %v10851_v41 = vld [vmem:[#allocation21 + $0x728] sm:$0xf0]  ;;  %v9348_v18 = vld [vmem:[#allocation21 + $0x6bc] sm:$0xf0] }
 0x500   :  { %6861 = vmatpush.bf16.msra.mxu1 %v9991_v44  ;;  %6874 = vmatpush.bf16.msra.mxu2 %v10215_v13  ;;  %v9879_v44 = vor.u32 %v10970_v40, %v9878_v63  ;;  %v10103_v13 = vor.u32 %v11026_v46, %v10102_v59  ;;  %v9351_v3 = vor.u32 %v10834_v17, %v9348_v18  ;;  %v10715_v27 = vld [vmem:[#allocation21 + $0x2ec] sm:$0xf]  ;;  %v8872_v63 = vld [vmem:[#allocation21 + $0x304] sm:$0xf0] }
 0x501   :  { %v6584_v42 = vpop.f32.mrf.mxu3  ;;  %v10771_v40 = vld [vmem:[#allocation21 + $0x4ac] sm:$0xf]  ;;  %v9096_v59 = vld [vmem:[#allocation21 + $0x4c4] sm:$0xf0] }
 0x502   :  { %v10827_v46 = vld [vmem:[#allocation21 + $0x66c] sm:$0xf]  ;;  %v9099_v38 = vor.u32 %v10771_v40, %v9096_v59  ;;  %v8844_v42 = vld [vmem:[#allocation21 + $0x2cc] sm:$0xf0] }
 0x503   :  { %6836 = vmatpush.bf16.msrb.mxu3 %v9515_v29  ;;  %6849 = vmatpush.bf16.msra.mxu0 %v9739_v54  ;;  %v10673_v29 = vld [vmem:[#allocation21 + $0x19c] sm:$0xf]  ;;  %v8704_v54 = vld [vmem:[#allocation21 + $0x1b4] sm:$0xf0] }
 0x504   :  { %6862 = vmatpush.bf16.msra.mxu1 %v9963_v57  ;;  %6875 = vmatpush.bf16.msra.mxu2 %v10187_v48  ;;  %v6623_v62 = vpop.f32.mrf.mxu2  ;;  %v10785_v57 = vld [vmem:[#allocation21 + $0x51c] sm:$0xf]  ;;  %v9403_v48 = vor.u32 %v10851_v41, %v9402_v21  ;;  %v8707_v52 = vor.u32 %v10673_v29, %v8704_v54  ;;  %v10652_v41 = vld [vmem:[#allocation21 + $0xf4] sm:$0xf] }
 0x505   :  { %v9155_v23 = vor.u32 %v10785_v57, %v9152_v39  ;;  %v9292_v62 = vld [vmem:[#allocation21 + $0x64c] sm:$0xf0]  ;;  %v8623_v54 = vor.u32 %v10652_v41, %v8620_v33  ;;  %v8592_v57 = vld [vmem:[#allocation21 + $0xd4] sm:$0xf0]  ;;  %v10701_v39 = vld [vmem:[#allocation21 + $0x27c] sm:$0xf] }
 0x506   :  { %v10799_v41 = vld [vmem:[#allocation21 + $0x58c] sm:$0xf]  ;;  %v9208_v33 = vld [vmem:[#allocation21 + $0x5a4] sm:$0xf0] }
 0x507   :  { %6837 = vmatpush.bf16.msrb.mxu3 %v9487_v14  ;;  %6850 = vmatpush.bf16.msra.mxu0 %v9711_v19  ;;  %v12213_v14 = vld [vmem:[#allocation22] sm:$0xff] }
 0x508   :  { %6863 = vmatpush.bf16.msra.mxu1 %v9935_v50  ;;  %6876 = vmatpush.bf16.msra.mxu2 %v10159_v31  ;;  %v4049_v19 = vperm.slane %v12213_v14, 2  ;;  %v10666_v50 = vld [vmem:[#allocation21 + $0x164] sm:$0xf]  ;;  %v8676_v31 = vld [vmem:[#allocation21 + $0x17c] sm:$0xf0] }
 0x50b   :  { %6838 = vmatpush.bf16.msrb.mxu3 %v9459_v22  ;;  %6851 = vmatpush.bf16.msra.mxu0 %v9683_v49  ;;  %v6583_v22 = vadd.f32 %v12209_v58, %v4049_v19  ;;  %v8679_v49 = vor.u32 %v10666_v50, %v8676_v31  ;;  %v9320_v58 = vld [vmem:[#allocation21 + $0x684] sm:$0xf0]  ;;  %v9264_v19 = vld [vmem:[#allocation21 + $0x614] sm:$0xf0]  ;;  %v10638_v50 = vld [vmem:[#allocation21 + $0x84] sm:$0xf] }
 0x50c   :  { %6864 = vmatpush.bf16.msra.mxu1 %v9907_v32  ;;  %6877 = vmatpush.bf16.msra.mxu2 %v10131_v61  ;;  %v8648_v32 = vld [vmem:[#allocation21 + $0x144] sm:$0xf0]  ;;  %v9127_v61 = vor.u32 %v10778_v30, %v9124_v12  ;;  %v8564_v31 = vld [vmem:[#allocation21 + $0x9c] sm:$0xf0]  ;;  %v10750_v12 = vld [vmem:[#allocation21 + $0x404] sm:$0xf] }
 0x50d   :  { %v6596_v21 = vadd.f32 %v12205_v24, %v6583_v22  ;;  %v8788_v30 = vld [vmem:[#allocation21 + $0x25c] sm:$0xf0] }
 0x50e   :  { %v9012_v22 = vld [vmem:[#allocation21 + $0x41c] sm:$0xf0] }
 0x50f   :  { %6839 = vmatpush.bf16.msrb.mxu3 %v9431_v34  ;;  %6852 = vmatpush.bf16.msra.mxu0 %v9655_v0  ;;  %v8651_v34 = vor.u32 %v10659_v37, %v8648_v32  ;;  %v8875_v0 = vor.u32 %v10715_v27, %v8872_v63  ;;  %v6609_v29 = vadd.f32 %v12207_v7, %v6596_v21  ;;  %v10631_v27 = vld [vmem:[#allocation21 + $0x4c] sm:$0xf]  ;;  %v8536_v63 = vld [vmem:[#allocation21 + $0x64] sm:$0xf0] }
 0x510   :  { %6865 = vmatpush.bf16.msra.mxu1 %v9879_v44  ;;  %6878 = vmatpush.bf16.msra.mxu2 %v10103_v13  ;;  %v9323_v44 = vor.u32 %v10827_v46, %v9320_v58  ;;  %v10708_v13 = vld [vmem:[#allocation21 + $0x2b4] sm:$0xf]  ;;  %v8595_v7 = vor.u32 %v10645_v56, %v8592_v57  ;;  %v9015_v40 = vor.u32 %v10750_v12, %v9012_v22  ;;  %v10687_v46 = vld [vmem:[#allocation21 + $0x20c] sm:$0xf]  ;;  %v8760_v58 = vld [vmem:[#allocation21 + $0x224] sm:$0xf0] }
 0x511   :  { %v8847_v2 = vor.u32 %v10708_v13, %v8844_v42  ;;  %v10743_v21 = vld [vmem:[#allocation21 + $0x3cc] sm:$0xf]  ;;  %v8539_v13 = vor.u32 %v10631_v27, %v8536_v63  ;;  %v8763_v42 = vor.u32 %v10687_v46, %v8760_v58  ;;  %v9180_v57 = vld [vmem:[#allocation21 + $0x56c] sm:$0xf0]  ;;  %v10946_v12 = vld [vmem:[#allocation21 + $0xa24] sm:$0xf] }
 0x512   :  { %v10995_v46 = vld [vmem:[#allocation21 + $0xbac] sm:$0xf]  ;;  %v9992_v58 = vld [vmem:[#allocation21 + $0xbc4] sm:$0xf0] }
 0x513   :  { %6840 = vmatpush.bf16.msrb.mxu3 %v9403_v48  ;;  %6853 = vmatpush.bf16.msra.mxu0 %v9627_v15  ;;  %v6647_v51 = vpop.f32.mrf.mxu0  ;;  %v9071_v48 = vor.u32 %v10764_v45, %v9068_v47  ;;  %v9295_v15 = vor.u32 %v10820_v43, %v9292_v62  ;;  %v8508_v45 = vld [vmem:[#allocation21 + $0x2c] sm:$0xf0]  ;;  %v10680_v47 = vld [vmem:[#allocation21 + $0x1d4] sm:$0xf] }
 0x514   :  { %6866 = vmatpush.bf16.msra.mxu1 %v9851_v4  ;;  %6879 = vmatpush.bf16.msra.mxu2 %v10075_v11  ;;  %v9040_v4 = vld [vmem:[#allocation21 + $0x454] sm:$0xf0]  ;;  %v10813_v11 = vld [vmem:[#allocation21 + $0x5fc] sm:$0xf]  ;;  %v8732_v43 = vld [vmem:[#allocation21 + $0x1ec] sm:$0xf0] }
 0x516   :  { %6841 = vmatmul.bf16.vlgmr.msrb.gmra.mxu3 %v12137_v20  ;;  %6854 = vmatmul.bf16.vlgmr.msra.gmra.mxu0 %v12139_v28  ;;  %v6660_v24 = vpop.f32.mrf.mxu1 }
 0x517   :  { %6885 = vmatpush.bf16.msra.mxu3 %v8707_v52  ;;  %6898 = vmatpush.bf16.msrb.mxu0 %v8931_v53  ;;  %v6622_v52 = vadd.f32 %v12211_v6, %v6609_v29  ;;  %v8819_v53 = vor.u32 %v10701_v39, %v8816_v5  ;;  %v10953_v39 = vld [vmem:[#allocation21 + $0xa5c] sm:$0xf]  ;;  %v9824_v5 = vld [vmem:[#allocation21 + $0xa74] sm:$0xf0] }
 0x518   :  { %6911 = vmatpush.bf16.msrb.mxu1 %v9155_v23  ;;  %6924 = vmatpush.bf16.msrb.mxu2 %v9379_v26  ;;  %v9043_v23 = vor.u32 %v10757_v35, %v9040_v4  ;;  %v9267_v26 = vor.u32 %v10813_v11, %v9264_v19  ;;  %v11009_v35 = vld [vmem:[#allocation21 + $0xc1c] sm:$0xf]  ;;  %v8735_v11 = vor.u32 %v10680_v47, %v8732_v43  ;;  %v10048_v19 = vld [vmem:[#allocation21 + $0xc34] sm:$0xf0]  ;;  %v10988_v47 = vld [vmem:[#allocation21 + $0xb74] sm:$0xf] }
 0x519   :  { %6867 = vmatmul.bf16.vlgmr.msra.gmra.mxu1 %v12143_v36  ;;  %6880 = vmatmul.bf16.vlgmr.msra.gmra.mxu2 %v12141_v10  ;;  %v6634_v25 = vpop.f32.mrf.mxu3  ;;  %v9964_v43 = vld [vmem:[#allocation21 + $0xb8c] sm:$0xf0] }
 0x51a   :  { %v6635_v17 = vadd.f32 %v6634_v25, %v6622_v52  ;;  %v11065_v52 = vld [vmem:[#allocation21 + $0xddc] sm:$0xf]  ;;  %v9572_v25 = vld [vmem:[#allocation21 + $0x87c] sm:$0xf0] }
 0x51b   :  { %6886 = vmatpush.bf16.msra.mxu3 %v8679_v49  ;;  %6899 = vmatpush.bf16.msrb.mxu0 %v8903_v55  ;;  %v10806_v49 = vld [vmem:[#allocation21 + $0x5c4] sm:$0xf]  ;;  %v9236_v55 = vld [vmem:[#allocation21 + $0x5dc] sm:$0xf0]  ;;  %v6649_v6 = vpop.f32.mrf.mxu0 }
 0x51c   :  { %6912 = vmatpush.bf16.msrb.mxu1 %v9127_v61  ;;  %6925 = vmatpush.bf16.msrb.mxu2 %v9351_v3  ;;  %v6673_v18 = vpop.f32.mrf.mxu2  ;;  %v6648_v37 = vadd.f32 %v6647_v51, %v6635_v17  ;;  %v8567_v61 = vor.u32 %v10638_v50, %v8564_v31  ;;  %v8791_v3 = vor.u32 %v10694_v16, %v8788_v30  ;;  %v9796_v17 = vld [vmem:[#allocation21 + $0xa3c] sm:$0xf0] }
 0x51d   :  { %v9239_v59 = vor.u32 %v10806_v49, %v9236_v55  ;;  %v9211_v51 = vor.u32 %v10799_v41, %v9208_v33  ;;  %v10051_v16 = vor.u32 %v11009_v35, %v10048_v19  ;;  %v10020_v49 = vld [vmem:[#allocation21 + $0xbfc] sm:$0xf0]  ;;  %v11058_v55 = vld [vmem:[#allocation21 + $0xda4] sm:$0xf]  ;;  %v10876_v33 = vld [vmem:[#allocation21 + $0x7f4] sm:$0xf] }
 0x51e   :  { %v6662_v32 = vpop.f32.mrf.mxu1  ;;  %v10244_v6 = vld [vmem:[#allocation21 + $0xdbc] sm:$0xf0]  ;;  %v10981_v35 = vld [vmem:[#allocation21 + $0xb3c] sm:$0xf]  ;;  %v10160_v19 = vld [vmem:[#allocation21 + $0xd14] sm:$0xf0] }
 0x51f   :  { %6887 = vmatpush.bf16.msra.mxu3 %v8651_v34  ;;  %6900 = vmatpush.bf16.msrb.mxu0 %v8875_v0  ;;  %v6661_v34 = vadd.f32 %v6660_v24, %v6648_v37  ;;  %v8984_v0 = vld [vmem:[#allocation21 + $0x3e4] sm:$0xf0]  ;;  %v10792_v24 = vld [vmem:[#allocation21 + $0x554] sm:$0xf]  ;;  %v9799_v32 = vor.u32 %v10946_v12, %v9796_v17  ;;  %v10247_v63 = vor.u32 %v11058_v55, %v10244_v6  ;;  %v9908_v17 = vld [vmem:[#allocation21 + $0xb1c] sm:$0xf0] }
 0x520   :  { %6913 = vmatpush.bf16.msrb.mxu1 %v9099_v38  ;;  %6926 = vmatpush.bf16.msrb.mxu2 %v9323_v44  ;;  %v10624_v38 = vld [vmem:[#allocation21 + $0x14] sm:$0xf]  ;;  %v8987_v62 = vor.u32 %v10743_v21, %v8984_v0  ;;  %v9183_v50 = vor.u32 %v10792_v24, %v9180_v57  ;;  %v11051_v21 = vld [vmem:[#allocation21 + $0xd6c] sm:$0xf]  ;;  %v9488_v57 = vld [vmem:[#allocation21 + $0x7d4] sm:$0xf0] }
 0x521   :  { %v6674_v44 = vadd.f32 %v6673_v18, %v6661_v34  ;;  %v6636_v29 = vpop.f32.mrf.mxu3  ;;  %v8511_v4 = vor.u32 %v10624_v38, %v8508_v45  ;;  %v11002_v18 = vld [vmem:[#allocation21 + $0xbe4] sm:$0xf]  ;;  %v10216_v34 = vld [vmem:[#allocation21 + $0xd84] sm:$0xf0]  ;;  %v9516_v38 = vld [vmem:[#allocation21 + $0x80c] sm:$0xf0] }
 0x522   :  { %v10023_v27 = vor.u32 %v11002_v18, %v10020_v49  ;;  %v9740_v45 = vld [vmem:[#allocation21 + $0x9cc] sm:$0xf0]  ;;  %v11030_v18 = vld [vmem:[#allocation21 + $0xcc4] sm:$0xf] }
 0x523   :  { %6888 = vmatpush.bf16.msra.mxu3 %v8623_v54  ;;  %6901 = vmatpush.bf16.msrb.mxu0 %v8847_v2  ;;  %v10736_v54 = vld [vmem:[#allocation21 + $0x394] sm:$0xf]  ;;  %v8956_v2 = vld [vmem:[#allocation21 + $0x3ac] sm:$0xf0]  ;;  %11130 = vtanh.f32 %v6674_v44  ;;  %v9995_v44 = vor.u32 %v10995_v46, %v9992_v58  ;;  %v9880_v46 = vld [vmem:[#allocation21 + $0xae4] sm:$0xf0] }
 0x524   :  { %6914 = vmatpush.bf16.msrb.mxu1 %v9071_v48  ;;  %6927 = vmatpush.bf16.msrb.mxu2 %v9295_v15  ;;  %v6675_v56 = vpop.f32.mrf.mxu2  ;;  %v10897_v48 = vld [vmem:[#allocation21 + $0x89c] sm:$0xf]  ;;  %v9600_v15 = vld [vmem:[#allocation21 + $0x8b4] sm:$0xf0]  ;;  %v11023_v58 = vld [vmem:[#allocation21 + $0xc8c] sm:$0xf] }
 0x525   :  { %v9603_v31 = vor.u32 %v10897_v48, %v9600_v15  ;;  %v10869_v56 = vld [vmem:[#allocation21 + $0x7bc] sm:$0xf]  ;;  %v9967_v48 = vor.u32 %v10988_v47, %v9964_v43  ;;  %v10960_v47 = vld [vmem:[#allocation21 + $0xa94] sm:$0xf]  ;;  %v9852_v43 = vld [vmem:[#allocation21 + $0xaac] sm:$0xf0] }
 0x527   :  { %6889 = vmatpush.bf16.msra.mxu3 %v8595_v7  ;;  %6902 = vmatpush.bf16.msrb.mxu0 %v8819_v53  ;;  %v10272_v7 = vld [vmem:[#allocation21 + $0xdf4] sm:$0xf0]  ;;  %v8959_v53 = vor.u32 %v10736_v54, %v8956_v2  ;;  %v9519_v2 = vor.u32 %v10876_v33, %v9516_v38  ;;  %v9404_v33 = vld [vmem:[#allocation21 + $0x72c] sm:$0xf0]  ;;  %v10904_v38 = vld [vmem:[#allocation21 + $0x8d4] sm:$0xf] }
 0x528   :  { %6915 = vmatpush.bf16.msrb.mxu1 %v9043_v23  ;;  %6928 = vmatpush.bf16.msrb.mxu2 %v9267_v26  ;;  %v9827_v23 = vor.u32 %v10953_v39, %v9824_v5  ;;  %v10890_v26 = vld [vmem:[#allocation21 + $0x864] sm:$0xf]  ;;  %v10275_v30 = vor.u32 %v11065_v52, %v10272_v7  ;;  %v10925_v39 = vld [vmem:[#allocation21 + $0x97c] sm:$0xf]  ;;  %v9712_v5 = vld [vmem:[#allocation21 + $0x994] sm:$0xf0]  ;;  %v9491_v52 = vor.u32 %v10869_v56, %v9488_v57 }
 0x529   :  { %v11131_v22 = vpop.eup %11130  ;;  %v9575_v37 = vor.u32 %v10890_v26, %v9572_v25  ;;  %v9715_v7 = vor.u32 %v10925_v39, %v9712_v5  ;;  %v10918_v25 = vld [vmem:[#allocation21 + $0x944] sm:$0xf]  ;;  %v10677_v56 = vld [vmem:[#allocation21 + $0x1b8] sm:$0xf0]  ;;  %v8934_v57 = vld [vmem:[#allocation21 + $0x360] sm:$0xf] }
 0x52a   :  { %7102 = vst [vmem:[%s12296_s14 + $0x10] sm:$0xff] %v11131_v22  ;;  %v10132_v22 = vld [vmem:[#allocation21 + $0xcdc] sm:$0xf0] }
 0x52b   :  { %6890 = vmatpush.bf16.msra.mxu3 %v8567_v61  ;;  %6903 = vmatpush.bf16.msrb.mxu0 %v8791_v3  ;;  %v10883_v61 = vld [vmem:[#allocation21 + $0x82c] sm:$0xf]  ;;  %v9544_v3 = vld [vmem:[#allocation21 + $0x844] sm:$0xf0] }
 0x52c   :  { %6916 = vmatpush.bf16.msrb.mxu1 %v9015_v40  ;;  %6929 = vmatpush.bf16.msrb.mxu2 %v9239_v59  ;;  %v10939_v40 = vld [vmem:[#allocation21 + $0x9ec] sm:$0xf]  ;;  %v9768_v59 = vld [vmem:[#allocation21 + $0xa04] sm:$0xf0]  ;;  %v9547_v0 = vor.u32 %v10883_v61, %v9544_v3 }
 0x52d   :  { %v9771_v41 = vor.u32 %v10939_v40, %v9768_v59  ;;  %v9432_v61 = vld [vmem:[#allocation21 + $0x764] sm:$0xf0]  ;;  %v10967_v59 = vld [vmem:[#allocation21 + $0xacc] sm:$0xf] }
 0x52e   :  { %v9656_v40 = vld [vmem:[#allocation21 + $0x924] sm:$0xf0] }
 0x52f   :  { %6891 = vmatpush.bf16.msra.mxu3 %v8539_v13  ;;  %6904 = vmatpush.bf16.msrb.mxu0 %v8763_v42  ;;  %v10219_v13 = vor.u32 %v11051_v21, %v10216_v34  ;;  %v10932_v42 = vld [vmem:[#allocation21 + $0x9b4] sm:$0xf]  ;;  %v10104_v21 = vld [vmem:[#allocation21 + $0xca4] sm:$0xf0] }
 0x530   :  { %6917 = vmatpush.bf16.msrb.mxu1 %v8987_v62  ;;  %6930 = vmatpush.bf16.msrb.mxu2 %v9211_v51  ;;  %v11044_v62 = vld [vmem:[#allocation21 + $0xd34] sm:$0xf]  ;;  %v10188_v51 = vld [vmem:[#allocation21 + $0xd4c] sm:$0xf0]  ;;  %v9743_v24 = vor.u32 %v10932_v42, %v9740_v45  ;;  %v10107_v42 = vor.u32 %v11023_v58, %v10104_v21 }
 0x531   :  { %v10191_v15 = vor.u32 %v11044_v62, %v10188_v51  ;;  %v10848_v34 = vld [vmem:[#allocation21 + $0x714] sm:$0xf]  ;;  %v9326_v58 = vld [vmem:[#allocation21 + $0x670] sm:$0xf] }
 0x532   :  { %v11016_v62 = vld [vmem:[#allocation21 + $0xc54] sm:$0xf]  ;;  %v9407_v39 = vor.u32 %v10848_v34, %v9404_v33 }
 0x533   :  { %6892 = vmatpush.bf16.msra.mxu3 %v8511_v4  ;;  %6905 = vmatpush.bf16.msrb.mxu0 %v8735_v11  ;;  %v12231_v29 = vpop.f32.mrf.mxu0  ;;  %v9936_v4 = vld [vmem:[#allocation21 + $0xb54] sm:$0xf0]  ;;  %v11037_v11 = vld [vmem:[#allocation21 + $0xcfc] sm:$0xf]  ;;  %v10656_v33 = vld [vmem:[#allocation21 + $0x110] sm:$0xf0] }
 0x534   :  { %6918 = vmatpush.bf16.msrb.mxu1 %v8959_v53  ;;  %6931 = vmatpush.bf16.msrb.mxu2 %v9183_v50  ;;  %v10862_v53 = vld [vmem:[#allocation21 + $0x784] sm:$0xf]  ;;  %v9460_v50 = vld [vmem:[#allocation21 + $0x79c] sm:$0xf0] }
 0x535   :  { %v9463_v6 = vor.u32 %v10862_v53, %v9460_v50 }
 0x536   :  { %6893 = vmatmul.bf16.vlgmr.msra.gmra.mxu3 %v12117_v60  ;;  %6906 = vmatmul.bf16.vlgmr.msrb.gmra.mxu0 %v12119_v1  ;;  %v12233_v54 = vpop.f32.mrf.mxu1 }
 0x537   :  { %6937 = vmatpush.bf16.msrb.mxu3 %v9603_v31  ;;  %6950 = vmatpush.bf16.msra.mxu0 %v9827_v23  ;;  %v9939_v31 = vor.u32 %v10981_v35, %v9936_v4  ;;  %v10163_v23 = vor.u32 %v11037_v11, %v10160_v19  ;;  %v10789_v35 = vld [vmem:[#allocation21 + $0x538] sm:$0xf0]  ;;  %v9382_v4 = vld [vmem:[#allocation21 + $0x6e0] sm:$0xf]  ;;  %v9855_v19 = vor.u32 %v10960_v47, %v9852_v43  ;;  %v10768_v47 = vld [vmem:[#allocation21 + $0x490] sm:$0xf0] }
 0x538   :  { %6963 = vmatpush.bf16.msra.mxu1 %v10051_v16  ;;  %6976 = vmatpush.bf16.msra.mxu2 %v10275_v30  ;;  %v9684_v16 = vld [vmem:[#allocation21 + $0x95c] sm:$0xf0]  ;;  %v10974_v30 = vld [vmem:[#allocation21 + $0xb04] sm:$0xf]  ;;  %v10845_v11 = vld [vmem:[#allocation21 + $0x6f8] sm:$0xf0] }
 0x539   :  { %6919 = vmatmul.bf16.vlgmr.msrb.gmra.mxu1 %v12121_v8  ;;  %6932 = vmatmul.bf16.vlgmr.msrb.gmra.mxu2 %v12123_v9  ;;  %v12235_v26 = vpop.f32.mrf.mxu3  ;;  %v9911_v3 = vor.u32 %v10974_v30, %v9908_v17  ;;  %v8906_v30 = vld [vmem:[#allocation21 + $0x328] sm:$0xf]  ;;  %v10726_v17 = vld [vmem:[#allocation21 + $0x340] sm:$0xf0]  ;;  %v9298_v43 = vld [vmem:[#allocation21 + $0x638] sm:$0xf] }
 0x53b   :  { %6938 = vmatpush.bf16.msrb.mxu3 %v9575_v37  ;;  %6951 = vmatpush.bf16.msra.mxu0 %v9799_v32  ;;  %v6701_v49 = vpop.f32.mrf.mxu0  ;;  %v9687_v37 = vor.u32 %v10918_v25, %v9684_v16  ;;  %v10855_v32 = vld [vmem:[#allocation21 + $0x74c] sm:$0xf]  ;;  %v9383_v16 = vor.u32 %v10845_v11, %v9382_v4  ;;  %v9046_v4 = vld [vmem:[#allocation21 + $0x440] sm:$0xf]  ;;  %v10761_v11 = vld [vmem:[#allocation21 + $0x458] sm:$0xf0] }
 0x53c   :  { %6964 = vmatpush.bf16.msra.mxu1 %v10023_v27  ;;  %6977 = vmatpush.bf16.msra.mxu2 %v10247_v63  ;;  %v12237_v12 = vpop.f32.mrf.mxu2  ;;  %v10135_v27 = vor.u32 %v11030_v18, %v10132_v22  ;;  %v10911_v63 = vld [vmem:[#allocation21 + $0x90c] sm:$0xf]  ;;  %v9130_v18 = vld [vmem:[#allocation21 + $0x4e8] sm:$0xf]  ;;  %v10782_v22 = vld [vmem:[#allocation21 + $0x500] sm:$0xf0] }
 0x53d   :  { %v9354_v49 = vld [vmem:[#allocation21 + $0x6a8] sm:$0xf] }
 0x53e   :  { %v6714_v55 = vpop.f32.mrf.mxu1 }
 0x53f   :  { %6939 = vmatpush.bf16.msrb.mxu3 %v9547_v0  ;;  %6952 = vmatpush.bf16.msra.mxu0 %v9771_v41  ;;  %v9435_v0 = vor.u32 %v10855_v32, %v9432_v61  ;;  %v9659_v41 = vor.u32 %v10911_v63, %v9656_v40  ;;  %v10838_v55 = vld [vmem:[#allocation21 + $0x6c0] sm:$0xf0]  ;;  %v8654_v32 = vld [vmem:[#allocation21 + $0x130] sm:$0xf]  ;;  %v10663_v61 = vld [vmem:[#allocation21 + $0x148] sm:$0xf0] }
 0x540   :  { %6965 = vmatpush.bf16.msra.mxu1 %v9995_v44  ;;  %6978 = vmatpush.bf16.msra.mxu2 %v10219_v13  ;;  %v9628_v44 = vld [vmem:[#allocation21 + $0x8ec] sm:$0xf0]  ;;  %v9883_v13 = vor.u32 %v10967_v59, %v9880_v46  ;;  %v10719_v40 = vld [vmem:[#allocation21 + $0x308] sm:$0xf0]  ;;  %v8655_v34 = vor.u32 %v10663_v61, %v8654_v32 }
 0x541   :  { %v6688_v45 = vpop.f32.mrf.mxu3  ;;  %v9631_v5 = vor.u32 %v10904_v38, %v9628_v44  ;;  %v8878_v63 = vld [vmem:[#allocation21 + $0x2f0] sm:$0xf]  ;;  %v10775_v46 = vld [vmem:[#allocation21 + $0x4c8] sm:$0xf0] }
 0x542   :  { %v9102_v59 = vld [vmem:[#allocation21 + $0x4b0] sm:$0xf]  ;;  %v9074_v45 = vld [vmem:[#allocation21 + $0x478] sm:$0xf] }
 0x543   :  { %6940 = vmatpush.bf16.msrb.mxu3 %v9519_v2  ;;  %6953 = vmatpush.bf16.msra.mxu0 %v9743_v24  ;;  %v10076_v2 = vld [vmem:[#allocation21 + $0xc6c] sm:$0xf0]  ;;  %v8710_v24 = vld [vmem:[#allocation21 + $0x1a0] sm:$0xf]  ;;  %v9103_v38 = vor.u32 %v10775_v46, %v9102_v59 }
 0x544   :  { %6966 = vmatpush.bf16.msra.mxu1 %v9967_v48  ;;  %6979 = vmatpush.bf16.msra.mxu2 %v10191_v15  ;;  %v6727_v51 = vpop.f32.mrf.mxu2  ;;  %v10733_v48 = vld [vmem:[#allocation21 + $0x378] sm:$0xf0]  ;;  %v9158_v15 = vld [vmem:[#allocation21 + $0x520] sm:$0xf]  ;;  %v8711_v53 = vor.u32 %v10677_v56, %v8710_v24  ;;  %v8766_v46 = vld [vmem:[#allocation21 + $0x210] sm:$0xf] }
 0x545   :  { %v8935_v50 = vor.u32 %v10733_v48, %v8934_v57  ;;  %v9159_v25 = vor.u32 %v10789_v35, %v9158_v15  ;;  %v8598_v57 = vld [vmem:[#allocation21 + $0xc0] sm:$0xf]  ;;  %v10649_v48 = vld [vmem:[#allocation21 + $0xd8] sm:$0xf0]  ;;  %v9075_v15 = vor.u32 %v10768_v47, %v9074_v45  ;;  %v8738_v45 = vld [vmem:[#allocation21 + $0x1d8] sm:$0xf] }
 0x546   :  { %v10705_v35 = vld [vmem:[#allocation21 + $0x298] sm:$0xf0]  ;;  %v10684_v47 = vld [vmem:[#allocation21 + $0x1f0] sm:$0xf0] }
 0x547   :  { %6941 = vmatpush.bf16.msrb.mxu3 %v9491_v52  ;;  %6954 = vmatpush.bf16.msra.mxu0 %v9715_v7  ;;  %v10079_v52 = vor.u32 %v11016_v62, %v10076_v2  ;;  %v4050_v7 = vperm.slane %v12213_v14, 3  ;;  %v10824_v62 = vld [vmem:[#allocation21 + $0x650] sm:$0xf0] }
 0x548   :  { %6967 = vmatpush.bf16.msra.mxu1 %v9939_v31  ;;  %6980 = vmatpush.bf16.msra.mxu2 %v10163_v23  ;;  %v8682_v31 = vld [vmem:[#allocation21 + $0x168] sm:$0xf]  ;;  %v10670_v23 = vld [vmem:[#allocation21 + $0x180] sm:$0xf0] }
 0x549   :  { %v8683_v14 = vor.u32 %v10670_v23, %v8682_v31  ;;  %v10642_v31 = vld [vmem:[#allocation21 + $0xa0] sm:$0xf0]  ;;  %v9047_v23 = vor.u32 %v10761_v11, %v9046_v4  ;;  %v8739_v11 = vor.u32 %v10684_v47, %v8738_v45  ;;  %v11048_v45 = vld [vmem:[#allocation21 + $0xd50] sm:$0xf0] }
 0x54b   :  { %6942 = vmatpush.bf16.msrb.mxu3 %v9463_v6  ;;  %6955 = vmatpush.bf16.msra.mxu0 %v9687_v37  ;;  %v6687_v6 = vadd.f32 %v12235_v26, %v4050_v7  ;;  %v8907_v37 = vor.u32 %v10726_v17, %v8906_v30  ;;  %v10831_v26 = vld [vmem:[#allocation21 + $0x688] sm:$0xf0]  ;;  %v8794_v30 = vld [vmem:[#allocation21 + $0x248] sm:$0xf]  ;;  %v10698_v17 = vld [vmem:[#allocation21 + $0x260] sm:$0xf0] }
 0x54c   :  { %6968 = vmatpush.bf16.msra.mxu1 %v9911_v3  ;;  %6981 = vmatpush.bf16.msra.mxu2 %v10135_v27  ;;  %v9131_v3 = vor.u32 %v10782_v22, %v9130_v18  ;;  %v9355_v27 = vor.u32 %v10838_v55, %v9354_v49  ;;  %v9327_v44 = vor.u32 %v10831_v26, %v9326_v58  ;;  %v9018_v18 = vld [vmem:[#allocation21 + $0x408] sm:$0xf]  ;;  %v10754_v55 = vld [vmem:[#allocation21 + $0x420] sm:$0xf0]  ;;  %v10691_v58 = vld [vmem:[#allocation21 + $0x228] sm:$0xf0] }
 0x54d   :  { %v6700_v21 = vadd.f32 %v12231_v29, %v6687_v6  ;;  %v9242_v6 = vld [vmem:[#allocation21 + $0x5c8] sm:$0xf]  ;;  %v8990_v26 = vld [vmem:[#allocation21 + $0x3d0] sm:$0xf] }
 0x54f   :  { %6943 = vmatpush.bf16.msrb.mxu3 %v9435_v0  ;;  %6956 = vmatpush.bf16.msra.mxu0 %v9659_v41  ;;  %v8879_v0 = vor.u32 %v10719_v40, %v8878_v63  ;;  %v8626_v41 = vld [vmem:[#allocation21 + $0xf8] sm:$0xf]  ;;  %v6713_v2 = vadd.f32 %v12233_v54, %v6700_v21  ;;  %v8599_v54 = vor.u32 %v10649_v48, %v8598_v57  ;;  %v10635_v63 = vld [vmem:[#allocation21 + $0x68] sm:$0xf0]  ;;  %v10796_v57 = vld [vmem:[#allocation21 + $0x570] sm:$0xf0] }
 0x550   :  { %6969 = vmatpush.bf16.msra.mxu1 %v9883_v13  ;;  %6982 = vmatpush.bf16.msra.mxu2 %v10107_v42  ;;  %v8850_v13 = vld [vmem:[#allocation21 + $0x2b8] sm:$0xf]  ;;  %v10712_v42 = vld [vmem:[#allocation21 + $0x2d0] sm:$0xf0]  ;;  %v8627_v24 = vor.u32 %v10656_v33, %v8626_v41  ;;  %v9019_v40 = vor.u32 %v10754_v55, %v9018_v18  ;;  %v10803_v41 = vld [vmem:[#allocation21 + $0x5a8] sm:$0xf0] }
 0x551   :  { %v8851_v56 = vor.u32 %v10712_v42, %v8850_v13  ;;  %v6726_v7 = vadd.f32 %v12237_v12, %v6713_v2  ;;  %v8514_v33 = vld [vmem:[#allocation21 + $0x18] sm:$0xf]  ;;  %v8767_v13 = vor.u32 %v10691_v58, %v8766_v46  ;;  %v10628_v42 = vld [vmem:[#allocation21 + $0x30] sm:$0xf0]  ;;  %v9606_v48 = vld [vmem:[#allocation21 + $0x8a0] sm:$0xf] }
 0x552   :  { %v8962_v2 = vld [vmem:[#allocation21 + $0x398] sm:$0xf]  ;;  %v8515_v4 = vor.u32 %v10628_v42, %v8514_v33  ;;  %v10950_v18 = vld [vmem:[#allocation21 + $0xa40] sm:$0xf0]  ;;  %v10999_v46 = vld [vmem:[#allocation21 + $0xbc8] sm:$0xf0] }
 0x553   :  { %6944 = vmatpush.bf16.msrb.mxu3 %v9407_v39  ;;  %6957 = vmatpush.bf16.msra.mxu0 %v9631_v5  ;;  %v6751_v51 = vpop.f32.mrf.mxu0  ;;  %v9299_v39 = vor.u32 %v10824_v62, %v9298_v43  ;;  %v8822_v5 = vld [vmem:[#allocation21 + $0x280] sm:$0xf]  ;;  %v11006_v55 = vld [vmem:[#allocation21 + $0xc00] sm:$0xf0]  ;;  %v10222_v58 = vld [vmem:[#allocation21 + $0xd70] sm:$0xf] }
 0x554   :  { %6970 = vmatpush.bf16.msra.mxu1 %v9855_v19  ;;  %6983 = vmatpush.bf16.msra.mxu2 %v10079_v52  ;;  %v9270_v19 = vld [vmem:[#allocation21 + $0x600] sm:$0xf]  ;;  %v10817_v52 = vld [vmem:[#allocation21 + $0x618] sm:$0xf0]  ;;  %v10194_v42 = vld [vmem:[#allocation21 + $0xd38] sm:$0xf] }
 0x556   :  { %6945 = vmatmul.bf16.vlgmr.msrb.gmra.mxu3 %v12137_v20  ;;  %6958 = vmatmul.bf16.vlgmr.msra.gmra.mxu0 %v12139_v28  ;;  %v6764_v29 = vpop.f32.mrf.mxu1 }
 0x557   :  { %6989 = vmatpush.bf16.msra.mxu3 %v8711_v53  ;;  %7002 = vmatpush.bf16.msrb.mxu0 %v8935_v50  ;;  %v8823_v53 = vor.u32 %v10705_v35, %v8822_v5  ;;  %v8570_v50 = vld [vmem:[#allocation21 + $0x88] sm:$0xf]  ;;  %v10957_v5 = vld [vmem:[#allocation21 + $0xa78] sm:$0xf0]  ;;  %v10054_v35 = vld [vmem:[#allocation21 + $0xc20] sm:$0xf] }
 0x558   :  { %7015 = vmatpush.bf16.msrb.mxu1 %v9159_v25  ;;  %7028 = vmatpush.bf16.msrb.mxu2 %v9383_v16  ;;  %v9271_v25 = vor.u32 %v10817_v52, %v9270_v19  ;;  %v8571_v61 = vor.u32 %v10642_v31, %v8570_v50  ;;  %v11013_v19 = vld [vmem:[#allocation21 + $0xc38] sm:$0xf0]  ;;  %v10278_v52 = vld [vmem:[#allocation21 + $0xde0] sm:$0xf] }
 0x559   :  { %6971 = vmatmul.bf16.vlgmr.msra.gmra.mxu1 %v12143_v36  ;;  %6984 = vmatmul.bf16.vlgmr.msra.gmra.mxu2 %v12141_v10  ;;  %v6738_v16 = vpop.f32.mrf.mxu3 }
 0x55a   :  { %v6739_v22 = vadd.f32 %v6738_v16, %v6726_v7  ;;  %v11069_v7 = vld [vmem:[#allocation21 + $0xdf8] sm:$0xf0]  ;;  %v10055_v16 = vor.u32 %v11013_v19, %v10054_v35 }
 0x55b   :  { %6990 = vmatpush.bf16.msra.mxu3 %v8683_v14  ;;  %7003 = vmatpush.bf16.msrb.mxu0 %v8907_v37  ;;  %v10810_v14 = vld [vmem:[#allocation21 + $0x5e0] sm:$0xf0]  ;;  %v6753_v12 = vpop.f32.mrf.mxu0 }
 0x55c   :  { %7016 = vmatpush.bf16.msrb.mxu1 %v9131_v3  ;;  %7029 = vmatpush.bf16.msrb.mxu2 %v9355_v27  ;;  %v6777_v49 = vpop.f32.mrf.mxu2  ;;  %v6752_v37 = vadd.f32 %v6751_v51, %v6739_v22  ;;  %v8795_v3 = vor.u32 %v10698_v17, %v8794_v30  ;;  %v8542_v27 = vld [vmem:[#allocation21 + $0x50] sm:$0xf]  ;;  %v9243_v59 = vor.u32 %v10810_v14, %v9242_v6  ;;  %v9802_v17 = vld [vmem:[#allocation21 + $0xa28] sm:$0xf]  ;;  %v11062_v14 = vld [vmem:[#allocation21 + $0xdc0] sm:$0xf0] }
 0x55d   :  { %v10279_v30 = vor.u32 %v11069_v7, %v10278_v52  ;;  %v10026_v22 = vld [vmem:[#allocation21 + $0xbe8] sm:$0xf] }
 0x55e   :  { %v6766_v32 = vpop.f32.mrf.mxu1  ;;  %v6765_v21 = vadd.f32 %v6764_v29, %v6752_v37  ;;  %v9186_v29 = vld [vmem:[#allocation21 + $0x558] sm:$0xf]  ;;  %v10250_v6 = vld [vmem:[#allocation21 + $0xda8] sm:$0xf]  ;;  %v9803_v37 = vor.u32 %v10950_v18, %v9802_v17 }
 0x55f   :  { %6991 = vmatpush.bf16.msra.mxu3 %v8655_v34  ;;  %7004 = vmatpush.bf16.msrb.mxu0 %v8879_v0  ;;  %v10747_v34 = vld [vmem:[#allocation21 + $0x3e8] sm:$0xf0]  ;;  %v9214_v0 = vld [vmem:[#allocation21 + $0x590] sm:$0xf] }
 0x560   :  { %7017 = vmatpush.bf16.msrb.mxu1 %v9103_v38  ;;  %7030 = vmatpush.bf16.msrb.mxu2 %v9327_v44  ;;  %v6778_v38 = vadd.f32 %v6777_v49, %v6765_v21  ;;  %v8543_v44 = vor.u32 %v10635_v63, %v8542_v27  ;;  %v8991_v43 = vor.u32 %v10747_v34, %v8990_v26  ;;  %v9550_v32 = vld [vmem:[#allocation21 + $0x830] sm:$0xf]  ;;  %v11055_v26 = vld [vmem:[#allocation21 + $0xd88] sm:$0xf0] }
 0x561   :  { %v9215_v62 = vor.u32 %v10803_v41, %v9214_v0  ;;  %v6740_v51 = vpop.f32.mrf.mxu3  ;;  %v10251_v27 = vor.u32 %v11062_v14, %v10250_v6  ;;  %v9774_v63 = vld [vmem:[#allocation21 + $0x9f0] sm:$0xf]  ;;  %v9522_v0 = vld [vmem:[#allocation21 + $0x7f8] sm:$0xf]  ;;  %v10880_v41 = vld [vmem:[#allocation21 + $0x810] sm:$0xf0] }
 0x562   :  { %11132 = vtanh.f32 %v6778_v38  ;;  %v10223_v38 = vor.u32 %v11055_v26, %v10222_v58  ;;  %v10873_v51 = vld [vmem:[#allocation21 + $0x7d8] sm:$0xf0] }
 0x563   :  { %6992 = vmatpush.bf16.msra.mxu3 %v8627_v24  ;;  %7005 = vmatpush.bf16.msrb.mxu0 %v8851_v56  ;;  %v10740_v24 = vld [vmem:[#allocation21 + $0x3b0] sm:$0xf0] }
 0x564   :  { %7018 = vmatpush.bf16.msrb.mxu1 %v9075_v15  ;;  %7031 = vmatpush.bf16.msrb.mxu2 %v9299_v39  ;;  %v6779_v56 = vpop.f32.mrf.mxu2  ;;  %v10901_v15 = vld [vmem:[#allocation21 + $0x8b8] sm:$0xf0]  ;;  %v9830_v39 = vld [vmem:[#allocation21 + $0xa60] sm:$0xf] }
 0x565   :  { %v9607_v50 = vor.u32 %v10901_v15, %v9606_v48  ;;  %v9831_v31 = vor.u32 %v10957_v5, %v9830_v39  ;;  %v10929_v56 = vld [vmem:[#allocation21 + $0x998] sm:$0xf0]  ;;  %v10166_v15 = vld [vmem:[#allocation21 + $0xd00] sm:$0xf] }
 0x566   :  { %v10985_v48 = vld [vmem:[#allocation21 + $0xb58] sm:$0xf0] }
 0x567   :  { %6993 = vmatpush.bf16.msra.mxu3 %v8599_v54  ;;  %7006 = vmatpush.bf16.msrb.mxu0 %v8823_v53  ;;  %v8963_v54 = vor.u32 %v10740_v24, %v8962_v2  ;;  %v9187_v53 = vor.u32 %v10796_v57, %v9186_v29  ;;  %v10195_v24 = vor.u32 %v11048_v45, %v10194_v42  ;;  %v9718_v29 = vld [vmem:[#allocation21 + $0x980] sm:$0xf]  ;;  %v11041_v39 = vld [vmem:[#allocation21 + $0xd18] sm:$0xf0] }
 0x568   :  { %7019 = vmatpush.bf16.msrb.mxu1 %v9047_v23  ;;  %7032 = vmatpush.bf16.msrb.mxu2 %v9271_v25  ;;  %v9578_v23 = vld [vmem:[#allocation21 + $0x868] sm:$0xf]  ;;  %v10894_v25 = vld [vmem:[#allocation21 + $0x880] sm:$0xf0]  ;;  %v11133_v49 = vpop.eup %11132  ;;  %v9942_v57 = vld [vmem:[#allocation21 + $0xb40] sm:$0xf]  ;;  %v9719_v35 = vor.u32 %v10929_v56, %v9718_v29  ;;  %v10167_v52 = vor.u32 %v11041_v39, %v10166_v15 }
 0x569   :  { %7103 = vst [vmem:[%s12296_s14 + $0x18] sm:$0xff] %v11133_v49  ;;  %v9579_v12 = vor.u32 %v10894_v25, %v9578_v23  ;;  %v9943_v19 = vor.u32 %v10985_v48, %v9942_v57  ;;  %v10978_v23 = vld [vmem:[#allocation21 + $0xb20] sm:$0xf0]  ;;  %v10138_v25 = vld [vmem:[#allocation21 + $0xcc8] sm:$0xf] }
 0x56a   :  { %v9438_v49 = vld [vmem:[#allocation21 + $0x750] sm:$0xf] }
 0x56b   :  { %6994 = vmatpush.bf16.msra.mxu3 %v8571_v61  ;;  %7007 = vmatpush.bf16.msrb.mxu0 %v8795_v3  ;;  %v10887_v61 = vld [vmem:[#allocation21 + $0x848] sm:$0xf0]  ;;  %v10027_v3 = vor.u32 %v11006_v55, %v10026_v22 }
 0x56c   :  { %7020 = vmatpush.bf16.msrb.mxu1 %v9019_v40  ;;  %7033 = vmatpush.bf16.msrb.mxu2 %v9243_v59  ;;  %v10943_v40 = vld [vmem:[#allocation21 + $0xa08] sm:$0xf0]  ;;  %v9998_v59 = vld [vmem:[#allocation21 + $0xbb0] sm:$0xf]  ;;  %v9551_v21 = vor.u32 %v10887_v61, %v9550_v32 }
 0x56d   :  { %v9775_v34 = vor.u32 %v10943_v40, %v9774_v63  ;;  %v9999_v33 = vor.u32 %v10999_v46, %v9998_v59  ;;  %v10859_v55 = vld [vmem:[#allocation21 + $0x768] sm:$0xf0]  ;;  %v9886_v32 = vld [vmem:[#allocation21 + $0xad0] sm:$0xf]  ;;  %v9410_v59 = vld [vmem:[#allocation21 + $0x718] sm:$0xf] }
 0x56e   :  { %v10971_v61 = vld [vmem:[#allocation21 + $0xae8] sm:$0xf0]  ;;  %v9439_v63 = vor.u32 %v10859_v55, %v9438_v49  ;;  %v10852_v46 = vld [vmem:[#allocation21 + $0x730] sm:$0xf0] }
 0x56f   :  { %6995 = vmatpush.bf16.msra.mxu3 %v8543_v44  ;;  %7008 = vmatpush.bf16.msrb.mxu0 %v8767_v13  ;;  %v10936_v44 = vld [vmem:[#allocation21 + $0x9d0] sm:$0xf0]  ;;  %v9887_v58 = vor.u32 %v10971_v61, %v9886_v32 }
 0x570   :  { %7021 = vmatpush.bf16.msrb.mxu1 %v8991_v43  ;;  %7034 = vmatpush.bf16.msrb.mxu2 %v9215_v62  ;;  %v10992_v13 = vld [vmem:[#allocation21 + $0xb90] sm:$0xf0]  ;;  %v9494_v62 = vld [vmem:[#allocation21 + $0x7c0] sm:$0xf] }
 0x571   :  { %v9495_v5 = vor.u32 %v10873_v51, %v9494_v62 }
 0x573   :  { %6996 = vmatpush.bf16.msra.mxu3 %v8515_v4  ;;  %7009 = vmatpush.bf16.msrb.mxu0 %v8739_v11  ;;  %v12255_v47 = vpop.f32.mrf.mxu0  ;;  %v9466_v4 = vld [vmem:[#allocation21 + $0x788] sm:$0xf]  ;;  %v10866_v11 = vld [vmem:[#allocation21 + $0x7a0] sm:$0xf0] }
 0x574   :  { %7022 = vmatpush.bf16.msrb.mxu1 %v8963_v54  ;;  %7035 = vmatpush.bf16.msrb.mxu2 %v9187_v53  ;;  %v9690_v54 = vld [vmem:[#allocation21 + $0x948] sm:$0xf]  ;;  %v10922_v53 = vld [vmem:[#allocation21 + $0x960] sm:$0xf0]  ;;  %v9467_v18 = vor.u32 %v10866_v11, %v9466_v4 }
 0x575   :  { %v9691_v22 = vor.u32 %v10922_v53, %v9690_v54 }
 0x576   :  { %6997 = vmatmul.bf16.vlgmr.msra.gmra.mxu3 %v12117_v60  ;;  %7010 = vmatmul.bf16.vlgmr.msrb.gmra.mxu0 %v12119_v1  ;;  %v9746_v60 = vld [vmem:[#allocation21 + $0x9b8] sm:$0xf] }
 0x577   :  { %7041 = vmatpush.bf16.msrb.mxu3 %v9607_v50  ;;  %7054 = vmatpush.bf16.msra.mxu0 %v9831_v31  ;;  %v9970_v1 = vld [vmem:[#allocation21 + $0xb78] sm:$0xf]  ;;  %v9747_v43 = vor.u32 %v10936_v44, %v9746_v60  ;;  %v9914_v50 = vld [vmem:[#allocation21 + $0xb08] sm:$0xf]  ;;  %v11020_v44 = vld [vmem:[#allocation21 + $0xc70] sm:$0xf0] }
 0x578   :  { %7067 = vmatpush.bf16.msra.mxu1 %v10055_v16  ;;  %7080 = vmatpush.bf16.msra.mxu2 %v10279_v30  ;;  %v9971_v2 = vor.u32 %v10992_v13, %v9970_v1  ;;  %v11034_v16 = vld [vmem:[#allocation21 + $0xce0] sm:$0xf0]  ;;  %v9915_v6 = vor.u32 %v10978_v23, %v9914_v50  ;;  %v10082_v60 = vld [vmem:[#allocation21 + $0xc58] sm:$0xf]  ;;  %v9411_v1 = vor.u32 %v10852_v46, %v9410_v59 }
 0x579   :  { %7023 = vmatmul.bf16.vlgmr.msrb.gmra.mxu1 %v12121_v8  ;;  %7036 = vmatmul.bf16.vlgmr.msrb.gmra.mxu2 %v12123_v9  ;;  %v12257_v8 = vpop.f32.mrf.mxu1  ;;  %v9523_v9 = vor.u32 %v10880_v41, %v9522_v0  ;;  %v6790_v7 = vpop.f32.mrf.mxu3  ;;  %v10139_v14 = vor.u32 %v11034_v16, %v10138_v25  ;;  %v10908_v0 = vld [vmem:[#allocation21 + $0x8f0] sm:$0xf0]  ;;  %v9858_v41 = vld [vmem:[#allocation21 + $0xa98] sm:$0xf]  ;;  %v10083_v45 = vor.u32 %v11020_v44, %v10082_v60 }
 0x57b   :  { %7042 = vmatpush.bf16.msrb.mxu3 %v9579_v12  ;;  %7055 = vmatpush.bf16.msra.mxu0 %v9803_v37  ;;  %v6805_v30 = vpop.f32.mrf.mxu0  ;;  %v9662_v12 = vld [vmem:[#allocation21 + $0x910] sm:$0xf]  ;;  %v10915_v37 = vld [vmem:[#allocation21 + $0x928] sm:$0xf0] }
 0x57c   :  { %7068 = vmatpush.bf16.msra.mxu1 %v10027_v3  ;;  %7081 = vmatpush.bf16.msra.mxu2 %v10251_v27  ;;  %v12259_v31 = vpop.f32.mrf.mxu2  ;;  %v10110_v3 = vld [vmem:[#allocation21 + $0xc90] sm:$0xf]  ;;  %v11027_v27 = vld [vmem:[#allocation21 + $0xca8] sm:$0xf0]  ;;  %v9663_v40 = vor.u32 %v10915_v37, %v9662_v12 }
 0x57d   :  { %v10111_v26 = vor.u32 %v11027_v27, %v10110_v3 }
 0x57f   :  { %7043 = vmatpush.bf16.msrb.mxu3 %v9551_v21  ;;  %7056 = vmatpush.bf16.msra.mxu0 %v9775_v34  ;;  %v9634_v34 = vld [vmem:[#allocation21 + $0x8d8] sm:$0xf] }
 0x580   :  { %7069 = vmatpush.bf16.msra.mxu1 %v9999_v33  ;;  %7082 = vmatpush.bf16.msra.mxu2 %v10223_v38  ;;  %v10964_v38 = vld [vmem:[#allocation21 + $0xab0] sm:$0xf0]  ;;  %v9635_v13 = vor.u32 %v10908_v0, %v9634_v34 }
 0x581   :  { %v6818_v17 = vpop.f32.mrf.mxu1  ;;  %v6792_v21 = vpop.f32.mrf.mxu3  ;;  %v9859_v42 = vor.u32 %v10964_v38, %v9858_v41 }
 0x583   :  { %7044 = vmatpush.bf16.msrb.mxu3 %v9523_v9  ;;  %7057 = vmatpush.bf16.msra.mxu0 %v9747_v43  ;;  %v12261_v9 = vld [vmem:[#allocation22] sm:$0xff] }
 0x584   :  { %7070 = vmatpush.bf16.msra.mxu1 %v9971_v2  ;;  %7083 = vmatpush.bf16.msra.mxu2 %v10195_v24  ;;  %v6831_v33 = vpop.f32.mrf.mxu2  ;;  %v4051_v43 = vperm.slane %v12261_v9, 4  ;;  %v4052_v50 = vperm.slane %v12261_v9, 5  ;;  %v4053_v34 = vperm.slane %v12261_v9, 6 }
 0x586   :  { %v6791_v62 = vadd.f32 %v6790_v7, %v4051_v43 }
 0x587   :  { %7045 = vmatpush.bf16.msrb.mxu3 %v9495_v5  ;;  %7058 = vmatpush.bf16.msra.mxu0 %v9719_v35 }
 0x588   :  { %7071 = vmatpush.bf16.msra.mxu1 %v9943_v19  ;;  %7084 = vmatpush.bf16.msra.mxu2 %v10167_v52  ;;  %v6804_v51 = vadd.f32 %v12255_v47, %v6791_v62 }
 0x58a   :  { %v6817_v24 = vadd.f32 %v12257_v8, %v6804_v51 }
 0x58b   :  { %7046 = vmatpush.bf16.msrb.mxu3 %v9467_v18  ;;  %7059 = vmatpush.bf16.msra.mxu0 %v9691_v22 }
 0x58c   :  { %7072 = vmatpush.bf16.msra.mxu1 %v9915_v6  ;;  %7085 = vmatpush.bf16.msra.mxu2 %v10139_v14  ;;  %v6830_v56 = vadd.f32 %v12259_v31, %v6817_v24 }
 0x58f   :  { %7047 = vmatpush.bf16.msrb.mxu3 %v9439_v63  ;;  %7060 = vmatpush.bf16.msra.mxu0 %v9663_v40 }
 0x590   :  { %7073 = vmatpush.bf16.msra.mxu1 %v9887_v58  ;;  %7086 = vmatpush.bf16.msra.mxu2 %v10111_v26 }
 0x593   :  { %7048 = vmatpush.bf16.msrb.mxu3 %v9411_v1  ;;  %7061 = vmatpush.bf16.msra.mxu0 %v9635_v13  ;;  %v6855_v2 = vpop.f32.mrf.mxu0 }
 0x594   :  { %7074 = vmatpush.bf16.msra.mxu1 %v9859_v42  ;;  %7087 = vmatpush.bf16.msra.mxu2 %v10083_v45 }
 0x596   :  { %7049 = vmatmul.bf16.vlgmr.msrb.gmra.mxu3 %v12137_v20  ;;  %7062 = vmatmul.bf16.vlgmr.msra.gmra.mxu0 %v12139_v28  ;;  %v6868_v29 = vpop.f32.mrf.mxu1 }
 0x597   :  { %7075 = vmatmul.bf16.vlgmr.msra.gmra.mxu1 %v12143_v36  ;;  %7088 = vmatmul.bf16.vlgmr.msra.gmra.mxu2 %v12141_v10 }
 0x599   :  { %v6842_v57 = vpop.f32.mrf.mxu3 }
 0x59a   :  { %v6843_v48 = vadd.f32 %v6842_v57, %v6830_v56 }
 0x59b   :  { %v6857_v39 = vpop.f32.mrf.mxu0 }
 0x59c   :  { %v6881_v15 = vpop.f32.mrf.mxu2  ;;  %v6856_v5 = vadd.f32 %v6855_v2, %v6843_v48 }
 0x59e   :  { %v6870_v20 = vpop.f32.mrf.mxu1  ;;  %v6869_v35 = vadd.f32 %v6868_v29, %v6856_v5 }
 0x5a0   :  { %v6882_v28 = vadd.f32 %v6881_v15, %v6869_v35 }
 0x5a1   :  { %v6844_v4 = vpop.f32.mrf.mxu3 }
 0x5a2   :  { %11134 = vtanh.f32 %v6882_v28 }
 0x5a4   :  { %v6883_v36 = vpop.f32.mrf.mxu2 }
 0x5a8   :  { %v11135_v10 = vpop.eup %11134 }
 0x5a9   :  { %7104 = vst [vmem:[%s12296_s14 + $0x20] sm:$0xff] %v11135_v10 }
 0x5b3   :  { %v6907_v47 = vpop.f32.mrf.mxu0 }
 0x5b6   :  { %v6920_v8 = vpop.f32.mrf.mxu1 }
 0x5b9   :  { %v6894_v11 = vpop.f32.mrf.mxu3 }
 0x5ba   :  { %v6895_v31 = vadd.f32 %v6894_v11, %v4052_v50 }
 0x5bb   :  { %v6909_v52 = vpop.f32.mrf.mxu0 }
 0x5bc   :  { %v6933_v19 = vpop.f32.mrf.mxu2  ;;  %v6908_v23 = vadd.f32 %v6907_v47, %v6895_v31 }
 0x5be   :  { %v6922_v7 = vpop.f32.mrf.mxu1  ;;  %v6921_v16 = vadd.f32 %v6920_v8, %v6908_v23 }
 0x5c0   :  { %v6934_v17 = vadd.f32 %v6933_v19, %v6921_v16 }
 0x5c1   :  { %v6896_v54 = vpop.f32.mrf.mxu3 }
 0x5c4   :  { %v6935_v53 = vpop.f32.mrf.mxu2 }
 0x5d3   :  { %v6959_v25 = vpop.f32.mrf.mxu0 }
 0x5d6   :  { %v6972_v30 = vpop.f32.mrf.mxu1 }
 0x5d9   :  { %v6946_v18 = vpop.f32.mrf.mxu3 }
 0x5da   :  { %v6947_v22 = vadd.f32 %v6946_v18, %v6934_v17 }
 0x5db   :  { %v6961_v55 = vpop.f32.mrf.mxu0 }
 0x5dc   :  { %v6985_v49 = vpop.f32.mrf.mxu2  ;;  %v6960_v6 = vadd.f32 %v6959_v25, %v6947_v22 }
 0x5de   :  { %v6974_v14 = vpop.f32.mrf.mxu1  ;;  %v6973_v12 = vadd.f32 %v6972_v30, %v6960_v6 }
 0x5e0   :  { %v6986_v37 = vadd.f32 %v6985_v49, %v6973_v12 }
 0x5e1   :  { %v6948_v32 = vpop.f32.mrf.mxu3 }
 0x5e2   :  { %11136 = vtanh.f32 %v6986_v37 }
 0x5e4   :  { %v6987_v61 = vpop.f32.mrf.mxu2 }
 0x5e8   :  { %v11137_v3 = vpop.eup %11136 }
 0x5e9   :  { %7105 = vst [vmem:[%s12296_s14 + $0x28] sm:$0xff] %v11137_v3 }
 0x5f3   :  { %v7011_v27 = vpop.f32.mrf.mxu0 }
 0x5f6   :  { %v7024_v63 = vpop.f32.mrf.mxu1 }
 0x5f9   :  { %v6998_v40 = vpop.f32.mrf.mxu3 }
 0x5fa   :  { %v6999_v0 = vadd.f32 %v6998_v40, %v4053_v34 }
 0x5fb   :  { %v7013_v46 = vpop.f32.mrf.mxu0 }
 0x5fc   :  { %v7037_v59 = vpop.f32.mrf.mxu2  ;;  %v7012_v41 = vadd.f32 %v7011_v27, %v6999_v0 }
 0x5fe   :  { %v7026_v58 = vpop.f32.mrf.mxu1  ;;  %v7025_v38 = vadd.f32 %v7024_v63, %v7012_v41 }
 0x600   :  { %v7038_v44 = vadd.f32 %v7037_v59, %v7025_v38 }
 0x601   :  { %v7000_v26 = vpop.f32.mrf.mxu3 }
 0x604   :  { %v7039_v21 = vpop.f32.mrf.mxu2 }
 0x613   :  { %v7063_v33 = vpop.f32.mrf.mxu0 }
 0x614   :  { %v7076_v60 = vpop.f32.mrf.mxu1 }
 0x619   :  { %v7050_v1 = vpop.f32.mrf.mxu3 }
 0x61a   :  { %v7051_v13 = vadd.f32 %v7050_v1, %v7038_v44  ;;  %v7089_v42 = vpop.f32.mrf.mxu2 }
 0x61b   :  { %v7065_v45 = vpop.f32.mrf.mxu0 }
 0x61c   :  { %v7064_v43 = vadd.f32 %v7063_v33, %v7051_v13  ;;  %v7078_v62 = vpop.f32.mrf.mxu1 }
 0x61e   :  { %v7077_v51 = vadd.f32 %v7076_v60, %v7064_v43 }
 0x620   :  { %v7090_v2 = vadd.f32 %v7089_v42, %v7077_v51 }
 0x621   :  { %v7052_v24 = vpop.f32.mrf.mxu3 }
 0x622   :  { %11138 = vtanh.f32 %v7090_v2  ;;  %v7091_v29 = vpop.f32.mrf.mxu2 }
 0x628   :  { %v11139_v56 = vpop.eup %11138 }
 0x629   :  { %7106 = vst [vmem:[%s12296_s14 + $0x30] sm:$0xff] %v11139_v56 }
 0x62a   :  { %7111 = vsyncpa [#allocation3], 1 }
 0x62b   :  { %7112 = vsyncpa [#allocation5], 1 }
 0x62c   :  { %7113 = vsyncpa [#allocation8], 1 }
 0x62d   :  { %7114 = vsyncpa [#allocation11], 1 }
 0x62e   :  { %7115 = vsyncpa [#allocation14], 1 }
 0x62f   :  { %7116 = vsyncpa [#allocation17], 1 }
 0x630   :  { %7117 = vsyncpa [#allocation20], 1 }
 0x631   :  { %7118 = vsyncpa [#allocation23], 1 }

</bundles_post_ra>
